<compile_context>
chip_gen: v7x
topology: tpu7x:2x2x1
jax: 0.10.0
libtpu: 0.0.40
codegen_flags: <defaults>
</compile_context>

<pallas_src>
import functools

import jax
import jax.numpy as jnp
from jax import lax
from jax.experimental import pallas as pl
from jax.experimental.pallas import tpu as pltpu


# Row-pitch-5 layout: spatial position (h, w) of the padded 5x5 grid lives at
# row h*5 + w of each sample's 25-row block.  A 2x2 tap (dh, dw) is therefore a
# sublane shift of dh*5 + dw rows.
_STARTS = (0, 1, 5, 6)          # dd = dh*2 + dw  ->  shift dh*5 + dw


def _round_up(x, m):
    return (x + m - 1) // m * m


# ----------------------------- fused Pallas kernel ---------------------------

def _fused_forward_kernel(
    x_ref,                       # (RV, 11)    bf16  padded-5x5 input rows
    mask_ref,                    # (RV, 1)     f32   1.0 on interior rows
    w0_ref, b0_ref,              # (11, 128)   bf16, (1, 128) f32
    w1_ref, b1_ref,              # (512, 128)  bf16, (1, 128) f32
    w2_ref, b2_ref,              # (512, 256)  bf16, (1, 256) f32
    w3_ref, b3_ref,              # (1024, 384) bf16, (1, 384) f32
    wf1_ref, bf1_ref,            # (1536, 256) bf16, (1, 256) f32
    wf2_ref, bf2_ref,            # (1, 256) f32, (1, 1) f32
    out_ref,                     # (RV, 1) f32   (valid rows: b*25)
    p_ref,                       # (RS, 128) bf16  conv1 input (padded 5x5)
    a1_ref,                      # (RS, 128) bf16  conv1 output
    a2_ref,                      # (RS, 256) bf16  conv2 output
    a3_ref,                      # (RS, 384) bf16  conv3 output
):
    f32, bf16 = jnp.float32, jnp.bfloat16
    RV = x_ref.shape[0]          # Bb * 25  (multiple of 8)
    RS = p_ref.shape[0]          # RV + 8   (room for the shifted views)
    npad = RS - RV

    # Zero the trailing pad rows: shifted views read up to row RV+5; those
    # rows only ever feed garbage output rows but must stay finite.
    for ref in (p_ref, a1_ref, a2_ref, a3_ref):
        ref[pl.ds(RV, npad), :] = jnp.zeros((npad, ref.shape[1]), bf16)

    # ---- conv0 (1x1) + ReLU; bias masked to interior rows so conv1's zero
    # padding border stays exactly zero ---------------------------------------
    y0 = jnp.dot(x_ref[...], w0_ref[...], preferred_element_type=f32)
    y0 = jnp.maximum(y0 + mask_ref[...] * b0_ref[...], 0.0)
    p_ref[pl.ds(0, RV), :] = y0.astype(bf16)

    # ---- 2x2 / stride-1 conv as ONE matmul: K-merged taps -------------------
    # lhs[:, dd*Cin:(dd+1)*Cin] = in[rows + shift_dd]; weights are pre-packed
    # offline as (4*Cin, Cout), so no output realignment is needed.
    def conv2x2(in_ref, w_ref, b_ref):
        lhs = jnp.concatenate(
            [in_ref[pl.ds(s, RV), :] for s in _STARTS], axis=1)
        acc = jnp.dot(lhs, w_ref[...], preferred_element_type=f32)
        return jnp.maximum(acc + b_ref[...], 0.0)

    a1_ref[pl.ds(0, RV), :] = conv2x2(p_ref, w1_ref, b1_ref).astype(bf16)
    a2_ref[pl.ds(0, RV), :] = conv2x2(a1_ref, w2_ref, b2_ref).astype(bf16)
    a3_ref[pl.ds(0, RV), :] = conv2x2(a2_ref, w3_ref, b3_ref).astype(bf16)

    # ---- fc1 as a 2x2 "conv" over the slab (valid rows are b*25) ------------
    h1 = conv2x2(a3_ref, wf1_ref, bf1_ref)               # (RV, 256) f32

    # ---- fc2 (N=1): VPU multiply + lane reduction ----------------------------
    out = jnp.sum(h1 * wf2_ref[...], axis=1, keepdims=True) + bf2_ref[...]
    out_ref[...] = out.astype(out_ref.dtype)


# ------------------------------- wrapper -------------------------------------

def forward(packed, x):
    """Equivalent of Model.forward; x is anything reshapeable to (-1, 11, 3, 3)."""
    x = x.reshape(-1, 11, 3, 3).astype(jnp.float32)
    B = x.shape[0]

    Bb = min(16, _round_up(max(B, 1), 8))     # samples per grid block (mult of 8)
    Bpad = _round_up(B, Bb)
    n_blocks = Bpad // Bb
    RV = Bb * 25                              # valid rows per block
    RS = RV + 8                               # scratch rows (pad for shifts)

    # NCHW -> zero-padded 5x5 NHWC rows: row b*25 + h*5 + w, channels on lanes.
    x_nhwc = jnp.transpose(x, (0, 2, 3, 1))                       # (B, 3, 3, 11)
    x_nhwc = jnp.pad(x_nhwc, ((0, Bpad - B), (1, 1), (1, 1), (0, 0)))
    x_rows = x_nhwc.reshape(Bpad * 25, 11).astype(jnp.bfloat16)   # (Bpad*25, 11)

    # conv0 bias mask: 1.0 on interior rows of the 5x5 grid, 0.0 on the border.
    pos = jnp.arange(5)
    inner = (pos >= 1) & (pos <= 3)
    m2 = (inner[:, None] & inner[None, :]).astype(jnp.float32)    # (5, 5)
    mask = jnp.tile(m2.reshape(25, 1), (Bb, 1))                   # (RV, 1)

    args = (
        x_rows, mask,
        packed["w0"], packed["b0"],
        packed["w1"], packed["b1"],
        packed["w2"], packed["b2"],
        packed["w3"], packed["b3"],
        packed["wf1"], packed["bf1"],
        packed["wf2"], packed["bf2"],
    )

    def full_spec(arr):
        nd = arr.ndim
        return pl.BlockSpec(arr.shape, lambda i, _nd=nd: (0,) * _nd)

    in_specs = [
        pl.BlockSpec((RV, 11), lambda i: (i, 0)),     # x rows: blocked by batch
        pl.BlockSpec((RV, 1), lambda i: (0, 0)),      # bias mask: resident
    ] + [full_spec(a) for a in args[2:]]              # weights/biases: resident

    out_full = pl.pallas_call(
        _fused_forward_kernel,
        out_shape=jax.ShapeDtypeStruct((Bpad * 25, 1), jnp.float32),
        grid=(n_blocks,),
        in_specs=in_specs,
        out_specs=pl.BlockSpec((RV, 1), lambda i: (i, 0)),
        scratch_shapes=[
            pltpu.VMEM((RS, 128), jnp.bfloat16),
            pltpu.VMEM((RS, 128), jnp.bfloat16),
            pltpu.VMEM((RS, 256), jnp.bfloat16),
            pltpu.VMEM((RS, 384), jnp.bfloat16),
        ],
        compiler_params=pltpu.CompilerParams(
            dimension_semantics=("parallel",)),
    )(*args)

    # Valid fc2 results live at rows b*25; strided extract (tiny, plain XLA).
    return out_full[:B * 25:25, :]


# -------------------------- offline weight packing ---------------------------

def pack_params(params):
    """One-time, offline repacking into the kernel's layouts."""
    bf16 = jnp.bfloat16

    def conv_kpack(w, cin_pad, cout_pad):
        # OIHW (Cout, Cin, 2, 2) -> (4*cin_pad, cout_pad), row = dd*cin_pad + c
        co, ci, kh, kw = w.shape
        w = jnp.transpose(w, (2, 3, 1, 0))                       # (kh, kw, ci, co)
        w = jnp.pad(w, ((0, 0), (0, 0), (0, cin_pad - ci), (0, cout_pad - co)))
        return w.reshape(kh * kw * cin_pad, cout_pad).astype(bf16)

    def bias_pad(b, n):
        return jnp.pad(b.reshape(1, -1), ((0, 0), (0, n - b.shape[0])))

    p = {}
    # conv0: (64,11,1,1) -> (11, 128) with Cout padded 64 -> 128.
    w0 = jnp.transpose(params["conv0_w"], (2, 3, 1, 0)).reshape(11, 64)
    p["w0"] = jnp.pad(w0, ((0, 0), (0, 64))).astype(bf16)
    p["b0"] = bias_pad(params["conv0_b"], 128)
    # conv1..conv3: K-merged taps, Cin/Cout padded to multiples of 128.
    p["w1"] = conv_kpack(params["conv1_w"], 128, 128)            # (512, 128)
    p["b1"] = bias_pad(params["conv1_b"], 128)
    p["w2"] = conv_kpack(params["conv2_w"], 128, 256)            # (512, 256)
    p["b2"] = bias_pad(params["conv2_b"], 256)
    p["w3"] = conv_kpack(params["conv3_w"], 256, 384)            # (1024, 384)
    p["b3"] = bias_pad(params["conv3_b"], 384)
    # fc1: (256, 272*2*2), NCHW-flatten input order (c*4 + h*2 + w).
    # Repack to (4*384, 256): row dd*384 + c holds fc1_w[:, c*4 + dd].
    wf1 = params["fc1_w"].reshape(256, 272, 2, 2)                # (o, c, h, w)
    wf1 = jnp.transpose(wf1, (2, 3, 1, 0))                       # (h, w, c, o)
    wf1 = jnp.pad(wf1, ((0, 0), (0, 0), (0, 384 - 272), (0, 0)))
    p["wf1"] = wf1.reshape(4 * 384, 256).astype(bf16)            # (1536, 256)
    p["bf1"] = params["fc1_b"].reshape(1, -1)
    p["wf2"] = params["fc2_w"].reshape(1, 256)                   # f32 (VPU reduce)
    p["bf2"] = params["fc2_b"].reshape(1, 1)
    return p


# --------------------------- deterministic params ----------------------------

def init_params(key):
    # Shapes follow the PyTorch module (conv: OIHW, fc: (out, in)).
    shapes = {
        "conv0_w": (64, 11, 1, 1),   "conv0_b": (64,),
        "conv1_w": (128, 64, 2, 2),  "conv1_b": (128,),
        "conv2_w": (256, 128, 2, 2), "conv2_b": (256,),
        "conv3_w": (272, 256, 2, 2), "conv3_b": (272,),
        "fc1_w": (256, 272 * 2 * 2), "fc1_b": (256,),
        "fc2_w": (1, 256),           "fc2_b": (1,),
    }
    params = {}
    for name, shape in sorted(shapes.items()):
        key, sub = jax.random.split(key)
        fan_in = 1
        for d in shape[1:]:
            fan_in *= d
        scale = 1.0 / jnp.sqrt(jnp.maximum(fan_in, 1)).astype(jnp.float32)
        params[name] = jax.random.uniform(
            sub, shape, jnp.float32, minval=-1.0, maxval=1.0) * scale
    return params


# ----------------------- pure-XLA reference (for checking) -------------------

def reference_forward(params, x):
    """Mirrors the PyTorch module with the same bf16-operand / f32-acc matmuls."""
    bf16 = jnp.bfloat16
    x = x.reshape(-1, 11, 3, 3)

    def conv(x, w, b, pad):
        y = lax.conv_general_dilated(
            x.astype(bf16), w.astype(bf16),
            window_strides=(1, 1), padding=[(pad, pad), (pad, pad)],
            dimension_numbers=("NCHW", "OIHW", "NCHW"),
            preferred_element_type=jnp.float32)
        return jnp.maximum(y + b.reshape(1, -1, 1, 1), 0.0)

    x = conv(x, params["conv0_w"], params["conv0_b"], 0)
    x = conv(x, params["conv1_w"], params["conv1_b"], 1)
    x = conv(x, params["conv2_w"], params["conv2_b"], 0)
    x = conv(x, params["conv3_w"], params["conv3_b"], 0)
    x = x.reshape(x.shape[0], -1)                                # NCHW flatten(1)
    h = jnp.dot(x.astype(bf16), params["fc1_w"].T.astype(bf16),
                preferred_element_type=jnp.float32) + params["fc1_b"]
    h = jnp.maximum(h, 0.0)
    return jnp.dot(h, params["fc2_w"].T,
                   preferred_element_type=jnp.float32) + params["fc2_b"]


# ---------------------------------- main --------------------------------------

if __name__ == "__main__":
    key = jax.random.PRNGKey(0)
    pkey, xkey, xkey2 = jax.random.split(key, 3)
    params = init_params(pkey)
    packed = pack_params(params)             # offline, once, outside jit

    fwd = jax.jit(forward)
    ref_fwd = jax.jit(reference_forward)

    # Small batch (B=2): single grid block, exercises batch padding.
    x = jax.random.normal(xkey, (2, 11, 3, 3), dtype=jnp.float32)
    out = jax.block_until_ready(fwd(packed, x))
    assert out.shape == (2, 1), out.shape
    assert out.dtype == jnp.float32
    assert bool(jnp.all(jnp.isfinite(out)))
    ref = jax.block_until_ready(ref_fwd(params, x))
    assert bool(jnp.allclose(out, ref, rtol=2e-2, atol=2e-2)), (out, ref)

    # Larger batch (B=40): multi-block grid, weights resident across blocks.
    x2 = jax.random.normal(xkey2, (40, 11, 3, 3), dtype=jnp.float32)
    out2 = jax.block_until_ready(fwd(packed, x2))
    assert out2.shape == (40, 1), out2.shape
    assert bool(jnp.all(jnp.isfinite(out2)))
    ref2 = jax.block_until_ready(ref_fwd(params, x2))
    assert bool(jnp.allclose(out2, ref2, rtol=2e-2, atol=2e-2)), (out2, ref2)

    print("KERNEL_OK")
</pallas_src>

<mosaic_0001>
module attributes {stable_mosaic.version = 11 : i64} {
  func.func @_fused_forward_kernel(%arg0: i32, %arg1: memref<200x11xbf16, #tpu.memory_space<vmem>>, %arg2: memref<200x1xf32, #tpu.memory_space<vmem>>, %arg3: memref<11x128xbf16, #tpu.memory_space<vmem>>, %arg4: memref<1x128xf32, #tpu.memory_space<vmem>>, %arg5: memref<512x128xbf16, #tpu.memory_space<vmem>>, %arg6: memref<1x128xf32, #tpu.memory_space<vmem>>, %arg7: memref<512x256xbf16, #tpu.memory_space<vmem>>, %arg8: memref<1x256xf32, #tpu.memory_space<vmem>>, %arg9: memref<1024x384xbf16, #tpu.memory_space<vmem>>, %arg10: memref<1x384xf32, #tpu.memory_space<vmem>>, %arg11: memref<1536x256xbf16, #tpu.memory_space<vmem>>, %arg12: memref<1x256xf32, #tpu.memory_space<vmem>>, %arg13: memref<1x256xf32, #tpu.memory_space<vmem>>, %arg14: memref<1x1xf32, #tpu.memory_space<vmem>>, %arg15: memref<200x1xf32, #tpu.memory_space<vmem>>, %arg16: memref<208x128xbf16, #tpu.memory_space<vmem>>, %arg17: memref<208x128xbf16, #tpu.memory_space<vmem>>, %arg18: memref<208x256xbf16, #tpu.memory_space<vmem>>, %arg19: memref<208x384xbf16, #tpu.memory_space<vmem>>) attributes {dimension_semantics = [#tpu.dimension_semantics<parallel>], iteration_bounds = array<i64: 1>, scalar_prefetch = 0 : i64, scratch_operands = 4 : i64, tpu.core_type = #tpu.core_type<tc>, window_params = [{transform_indices = @transform_0, window_bounds = array<i64: 200, 11>}, {pipeline_mode = #tpu.pipeline_mode<synchronous>, transform_indices = @transform_1, window_bounds = array<i64: 200, 1>}, {pipeline_mode = #tpu.pipeline_mode<synchronous>, transform_indices = @transform_2, window_bounds = array<i64: 11, 128>}, {pipeline_mode = #tpu.pipeline_mode<synchronous>, transform_indices = @transform_3, window_bounds = array<i64: 1, 128>}, {pipeline_mode = #tpu.pipeline_mode<synchronous>, transform_indices = @transform_4, window_bounds = array<i64: 512, 128>}, {pipeline_mode = #tpu.pipeline_mode<synchronous>, transform_indices = @transform_5, window_bounds = array<i64: 1, 128>}, {pipeline_mode = #tpu.pipeline_mode<synchronous>, transform_indices = @transform_6, window_bounds = array<i64: 512, 256>}, {pipeline_mode = #tpu.pipeline_mode<synchronous>, transform_indices = @transform_7, window_bounds = array<i64: 1, 256>}, {pipeline_mode = #tpu.pipeline_mode<synchronous>, transform_indices = @transform_8, window_bounds = array<i64: 1024, 384>}, {pipeline_mode = #tpu.pipeline_mode<synchronous>, transform_indices = @transform_9, window_bounds = array<i64: 1, 384>}, {pipeline_mode = #tpu.pipeline_mode<synchronous>, transform_indices = @transform_10, window_bounds = array<i64: 1536, 256>}, {pipeline_mode = #tpu.pipeline_mode<synchronous>, transform_indices = @transform_11, window_bounds = array<i64: 1, 256>}, {pipeline_mode = #tpu.pipeline_mode<synchronous>, transform_indices = @transform_12, window_bounds = array<i64: 1, 256>}, {pipeline_mode = #tpu.pipeline_mode<synchronous>, transform_indices = @transform_13, window_bounds = array<i64: 1, 1>}, {transform_indices = @transform_14, window_bounds = array<i64: 200, 1>}]} {
    %cst = arith.constant 0.000000e+00 : bf16
    %0 = vector.broadcast %cst : bf16 to vector<8x128xbf16>
    %c200 = arith.constant 200 : index
    %c0 = arith.constant 0 : index
    %1 = vector.load %arg16[%c200, %c0] : memref<208x128xbf16, #tpu.memory_space<vmem>>, vector<8x128xbf16>
    tpu.vector_store %arg16[%c200, %c0], %0 {strides = array<i32>} : memref<208x128xbf16, #tpu.memory_space<vmem>>, vector<8x128xbf16>,
    %cst_0 = arith.constant 0.000000e+00 : bf16
    %2 = vector.broadcast %cst_0 : bf16 to vector<8x128xbf16>
    %c200_1 = arith.constant 200 : index
    %c0_2 = arith.constant 0 : index
    %3 = vector.load %arg17[%c200_1, %c0_2] : memref<208x128xbf16, #tpu.memory_space<vmem>>, vector<8x128xbf16>
    tpu.vector_store %arg17[%c200_1, %c0_2], %2 {strides = array<i32>} : memref<208x128xbf16, #tpu.memory_space<vmem>>, vector<8x128xbf16>,
    %cst_3 = arith.constant 0.000000e+00 : bf16
    %4 = vector.broadcast %cst_3 : bf16 to vector<8x256xbf16>
    %c200_4 = arith.constant 200 : index
    %c0_5 = arith.constant 0 : index
    %5 = vector.load %arg18[%c200_4, %c0_5] : memref<208x256xbf16, #tpu.memory_space<vmem>>, vector<8x256xbf16>
    tpu.vector_store %arg18[%c200_4, %c0_5], %4 {strides = array<i32>} : memref<208x256xbf16, #tpu.memory_space<vmem>>, vector<8x256xbf16>,
    %cst_6 = arith.constant 0.000000e+00 : bf16
    %6 = vector.broadcast %cst_6 : bf16 to vector<8x384xbf16>
    %c200_7 = arith.constant 200 : index
    %c0_8 = arith.constant 0 : index
    %7 = vector.load %arg19[%c200_7, %c0_8] : memref<208x384xbf16, #tpu.memory_space<vmem>>, vector<8x384xbf16>
    tpu.vector_store %arg19[%c200_7, %c0_8], %6 {strides = array<i32>} : memref<208x384xbf16, #tpu.memory_space<vmem>>, vector<8x384xbf16>,
    %c0_9 = arith.constant 0 : index
    %c0_10 = arith.constant 0 : index
    %8 = vector.load %arg1[%c0_9, %c0_10] : memref<200x11xbf16, #tpu.memory_space<vmem>>, vector<200x11xbf16>
    %c0_11 = arith.constant 0 : index
    %c0_12 = arith.constant 0 : index
    %9 = vector.load %arg3[%c0_11, %c0_12] : memref<11x128xbf16, #tpu.memory_space<vmem>>, vector<11x128xbf16>
    %cst_13 = arith.constant dense<0.000000e+00> : vector<200x128xf32>
    %10 = tpu.matmul %8, %9, %cst_13 {dimension_numbers = #tpu.dot_dimension_numbers<[1], [0], [0], [1], [0, 0, 1, 1], [], []>} : vector<200x11xbf16>, vector<11x128xbf16>, vector<200x128xf32> -> vector<200x128xf32>
    %c0_14 = arith.constant 0 : index
    %c0_15 = arith.constant 0 : index
    %11 = vector.load %arg2[%c0_14, %c0_15] : memref<200x1xf32, #tpu.memory_space<vmem>>, vector<200x1xf32>
    %c0_16 = arith.constant 0 : index
    %c0_17 = arith.constant 0 : index
    %12 = vector.load %arg4[%c0_16, %c0_17] : memref<1x128xf32, #tpu.memory_space<vmem>>, vector<1x128xf32>
    %13 = vector.broadcast %11 : vector<200x1xf32> to vector<200x128xf32>
    %14 = vector.broadcast %12 : vector<1x128xf32> to vector<200x128xf32>
    %15 = arith.mulf %13, %14 : vector<200x128xf32>
    %16 = arith.addf %10, %15 : vector<200x128xf32>
    %cst_18 = arith.constant 0.000000e+00 : f32
    %17 = vector.broadcast %cst_18 : f32 to vector<200x128xf32>
    %18 = arith.maximumf %16, %17 : vector<200x128xf32>
    %19 = arith.truncf %18 : vector<200x128xf32> to vector<200x128xbf16>
    %c0_19 = arith.constant 0 : index
    %c0_20 = arith.constant 0 : index
    %20 = vector.load %arg16[%c0_19, %c0_20] : memref<208x128xbf16, #tpu.memory_space<vmem>>, vector<200x128xbf16>
    tpu.vector_store %arg16[%c0_19, %c0_20], %19 {strides = array<i32>} : memref<208x128xbf16, #tpu.memory_space<vmem>>, vector<200x128xbf16>,
    %c0_21 = arith.constant 0 : index
    %c0_22 = arith.constant 0 : index
    %21 = vector.load %arg16[%c0_21, %c0_22] : memref<208x128xbf16, #tpu.memory_space<vmem>>, vector<200x128xbf16>
    %c1 = arith.constant 1 : index
    %c0_23 = arith.constant 0 : index
    %22 = vector.load %arg16[%c1, %c0_23] : memref<208x128xbf16, #tpu.memory_space<vmem>>, vector<200x128xbf16>
    %c5 = arith.constant 5 : index
    %c0_24 = arith.constant 0 : index
    %23 = vector.load %arg16[%c5, %c0_24] : memref<208x128xbf16, #tpu.memory_space<vmem>>, vector<200x128xbf16>
    %c6 = arith.constant 6 : index
    %c0_25 = arith.constant 0 : index
    %24 = vector.load %arg16[%c6, %c0_25] : memref<208x128xbf16, #tpu.memory_space<vmem>>, vector<200x128xbf16>
    %25 = tpu.concatenate %21, %22, %23, %24 in 1 : vector<200x128xbf16>, vector<200x128xbf16>, vector<200x128xbf16>, vector<200x128xbf16> -> vector<200x512xbf16>
    %c0_26 = arith.constant 0 : index
    %c0_27 = arith.constant 0 : index
    %26 = vector.load %arg5[%c0_26, %c0_27] : memref<512x128xbf16, #tpu.memory_space<vmem>>, vector<512x128xbf16>
    %cst_28 = arith.constant dense<0.000000e+00> : vector<200x128xf32>
    %27 = tpu.matmul %25, %26, %cst_28 {dimension_numbers = #tpu.dot_dimension_numbers<[1], [0], [0], [1], [0, 0, 1, 1], [], []>} : vector<200x512xbf16>, vector<512x128xbf16>, vector<200x128xf32> -> vector<200x128xf32>
    %c0_29 = arith.constant 0 : index
    %c0_30 = arith.constant 0 : index
    %28 = vector.load %arg6[%c0_29, %c0_30] : memref<1x128xf32, #tpu.memory_space<vmem>>, vector<1x128xf32>
    %29 = vector.broadcast %28 : vector<1x128xf32> to vector<200x128xf32>
    %30 = arith.addf %27, %29 : vector<200x128xf32>
    %cst_31 = arith.constant 0.000000e+00 : f32
    %31 = vector.broadcast %cst_31 : f32 to vector<200x128xf32>
    %32 = arith.maximumf %30, %31 : vector<200x128xf32>
    %33 = arith.truncf %32 : vector<200x128xf32> to vector<200x128xbf16>
    %c0_32 = arith.constant 0 : index
    %c0_33 = arith.constant 0 : index
    %34 = vector.load %arg17[%c0_32, %c0_33] : memref<208x128xbf16, #tpu.memory_space<vmem>>, vector<200x128xbf16>
    tpu.vector_store %arg17[%c0_32, %c0_33], %33 {strides = array<i32>} : memref<208x128xbf16, #tpu.memory_space<vmem>>, vector<200x128xbf16>,
    %c0_34 = arith.constant 0 : index
    %c0_35 = arith.constant 0 : index
    %35 = vector.load %arg17[%c0_34, %c0_35] : memref<208x128xbf16, #tpu.memory_space<vmem>>, vector<200x128xbf16>
    %c1_36 = arith.constant 1 : index
    %c0_37 = arith.constant 0 : index
    %36 = vector.load %arg17[%c1_36, %c0_37] : memref<208x128xbf16, #tpu.memory_space<vmem>>, vector<200x128xbf16>
    %c5_38 = arith.constant 5 : index
    %c0_39 = arith.constant 0 : index
    %37 = vector.load %arg17[%c5_38, %c0_39] : memref<208x128xbf16, #tpu.memory_space<vmem>>, vector<200x128xbf16>
    %c6_40 = arith.constant 6 : index
    %c0_41 = arith.constant 0 : index
    %38 = vector.load %arg17[%c6_40, %c0_41] : memref<208x128xbf16, #tpu.memory_space<vmem>>, vector<200x128xbf16>
    %39 = tpu.concatenate %35, %36, %37, %38 in 1 : vector<200x128xbf16>, vector<200x128xbf16>, vector<200x128xbf16>, vector<200x128xbf16> -> vector<200x512xbf16>
    %c0_42 = arith.constant 0 : index
    %c0_43 = arith.constant 0 : index
    %40 = vector.load %arg7[%c0_42, %c0_43] : memref<512x256xbf16, #tpu.memory_space<vmem>>, vector<512x256xbf16>
    %cst_44 = arith.constant dense<0.000000e+00> : vector<200x256xf32>
    %41 = tpu.matmul %39, %40, %cst_44 {dimension_numbers = #tpu.dot_dimension_numbers<[1], [0], [0], [1], [0, 0, 1, 1], [], []>} : vector<200x512xbf16>, vector<512x256xbf16>, vector<200x256xf32> -> vector<200x256xf32>
    %c0_45 = arith.constant 0 : index
    %c0_46 = arith.constant 0 : index
    %42 = vector.load %arg8[%c0_45, %c0_46] : memref<1x256xf32, #tpu.memory_space<vmem>>, vector<1x256xf32>
    %43 = vector.broadcast %42 : vector<1x256xf32> to vector<200x256xf32>
    %44 = arith.addf %41, %43 : vector<200x256xf32>
    %cst_47 = arith.constant 0.000000e+00 : f32
    %45 = vector.broadcast %cst_47 : f32 to vector<200x256xf32>
    %46 = arith.maximumf %44, %45 : vector<200x256xf32>
    %47 = arith.truncf %46 : vector<200x256xf32> to vector<200x256xbf16>
    %c0_48 = arith.constant 0 : index
    %c0_49 = arith.constant 0 : index
    %48 = vector.load %arg18[%c0_48, %c0_49] : memref<208x256xbf16, #tpu.memory_space<vmem>>, vector<200x256xbf16>
    tpu.vector_store %arg18[%c0_48, %c0_49], %47 {strides = array<i32>} : memref<208x256xbf16, #tpu.memory_space<vmem>>, vector<200x256xbf16>,
    %c0_50 = arith.constant 0 : index
    %c0_51 = arith.constant 0 : index
    %49 = vector.load %arg18[%c0_50, %c0_51] : memref<208x256xbf16, #tpu.memory_space<vmem>>, vector<200x256xbf16>
    %c1_52 = arith.constant 1 : index
    %c0_53 = arith.constant 0 : index
    %50 = vector.load %arg18[%c1_52, %c0_53] : memref<208x256xbf16, #tpu.memory_space<vmem>>, vector<200x256xbf16>
    %c5_54 = arith.constant 5 : index
    %c0_55 = arith.constant 0 : index
    %51 = vector.load %arg18[%c5_54, %c0_55] : memref<208x256xbf16, #tpu.memory_space<vmem>>, vector<200x256xbf16>
    %c6_56 = arith.constant 6 : index
    %c0_57 = arith.constant 0 : index
    %52 = vector.load %arg18[%c6_56, %c0_57] : memref<208x256xbf16, #tpu.memory_space<vmem>>, vector<200x256xbf16>
    %53 = tpu.concatenate %49, %50, %51, %52 in 1 : vector<200x256xbf16>, vector<200x256xbf16>, vector<200x256xbf16>, vector<200x256xbf16> -> vector<200x1024xbf16>
    %c0_58 = arith.constant 0 : index
    %c0_59 = arith.constant 0 : index
    %54 = vector.load %arg9[%c0_58, %c0_59] : memref<1024x384xbf16, #tpu.memory_space<vmem>>, vector<1024x384xbf16>
    %cst_60 = arith.constant dense<0.000000e+00> : vector<200x384xf32>
    %55 = tpu.matmul %53, %54, %cst_60 {dimension_numbers = #tpu.dot_dimension_numbers<[1], [0], [0], [1], [0, 0, 1, 1], [], []>} : vector<200x1024xbf16>, vector<1024x384xbf16>, vector<200x384xf32> -> vector<200x384xf32>
    %c0_61 = arith.constant 0 : index
    %c0_62 = arith.constant 0 : index
    %56 = vector.load %arg10[%c0_61, %c0_62] : memref<1x384xf32, #tpu.memory_space<vmem>>, vector<1x384xf32>
    %57 = vector.broadcast %56 : vector<1x384xf32> to vector<200x384xf32>
    %58 = arith.addf %55, %57 : vector<200x384xf32>
    %cst_63 = arith.constant 0.000000e+00 : f32
    %59 = vector.broadcast %cst_63 : f32 to vector<200x384xf32>
    %60 = arith.maximumf %58, %59 : vector<200x384xf32>
    %61 = arith.truncf %60 : vector<200x384xf32> to vector<200x384xbf16>
    %c0_64 = arith.constant 0 : index
    %c0_65 = arith.constant 0 : index
    %62 = vector.load %arg19[%c0_64, %c0_65] : memref<208x384xbf16, #tpu.memory_space<vmem>>, vector<200x384xbf16>
    tpu.vector_store %arg19[%c0_64, %c0_65], %61 {strides = array<i32>} : memref<208x384xbf16, #tpu.memory_space<vmem>>, vector<200x384xbf16>,
    %c0_66 = arith.constant 0 : index
    %c0_67 = arith.constant 0 : index
    %63 = vector.load %arg19[%c0_66, %c0_67] : memref<208x384xbf16, #tpu.memory_space<vmem>>, vector<200x384xbf16>
    %c1_68 = arith.constant 1 : index
    %c0_69 = arith.constant 0 : index
    %64 = vector.load %arg19[%c1_68, %c0_69] : memref<208x384xbf16, #tpu.memory_space<vmem>>, vector<200x384xbf16>
    %c5_70 = arith.constant 5 : index
    %c0_71 = arith.constant 0 : index
    %65 = vector.load %arg19[%c5_70, %c0_71] : memref<208x384xbf16, #tpu.memory_space<vmem>>, vector<200x384xbf16>
    %c6_72 = arith.constant 6 : index
    %c0_73 = arith.constant 0 : index
    %66 = vector.load %arg19[%c6_72, %c0_73] : memref<208x384xbf16, #tpu.memory_space<vmem>>, vector<200x384xbf16>
    %67 = tpu.concatenate %63, %64, %65, %66 in 1 : vector<200x384xbf16>, vector<200x384xbf16>, vector<200x384xbf16>, vector<200x384xbf16> -> vector<200x1536xbf16>
    %c0_74 = arith.constant 0 : index
    %c0_75 = arith.constant 0 : index
    %68 = vector.load %arg11[%c0_74, %c0_75] : memref<1536x256xbf16, #tpu.memory_space<vmem>>, vector<1536x256xbf16>
    %cst_76 = arith.constant dense<0.000000e+00> : vector<200x256xf32>
    %69 = tpu.matmul %67, %68, %cst_76 {dimension_numbers = #tpu.dot_dimension_numbers<[1], [0], [0], [1], [0, 0, 1, 1], [], []>} : vector<200x1536xbf16>, vector<1536x256xbf16>, vector<200x256xf32> -> vector<200x256xf32>
    %c0_77 = arith.constant 0 : index
    %c0_78 = arith.constant 0 : index
    %70 = vector.load %arg12[%c0_77, %c0_78] : memref<1x256xf32, #tpu.memory_space<vmem>>, vector<1x256xf32>
    %71 = vector.broadcast %70 : vector<1x256xf32> to vector<200x256xf32>
    %72 = arith.addf %69, %71 : vector<200x256xf32>
    %cst_79 = arith.constant 0.000000e+00 : f32
    %73 = vector.broadcast %cst_79 : f32 to vector<200x256xf32>
    %74 = arith.maximumf %72, %73 : vector<200x256xf32>
    %c0_80 = arith.constant 0 : index
    %c0_81 = arith.constant 0 : index
    %75 = vector.load %arg13[%c0_80, %c0_81] : memref<1x256xf32, #tpu.memory_space<vmem>>, vector<1x256xf32>
    %76 = vector.broadcast %75 : vector<1x256xf32> to vector<200x256xf32>
    %77 = arith.mulf %74, %76 : vector<200x256xf32>
    %cst_82 = arith.constant dense<0.000000e+00> : vector<200xf32>
    %78 = vector.multi_reduction <add>, %77, %cst_82 [1] : vector<200x256xf32> to vector<200xf32>
    %79 = vector.shape_cast %78 : vector<200xf32> to vector<200x1xf32>
    %c0_83 = arith.constant 0 : index
    %c0_84 = arith.constant 0 : index
    %80 = vector.load %arg14[%c0_83, %c0_84] : memref<1x1xf32, #tpu.memory_space<vmem>>, vector<1x1xf32>
    %81 = vector.broadcast %80 : vector<1x1xf32> to vector<200x1xf32>
    %82 = arith.addf %79, %81 : vector<200x1xf32>
    %c0_85 = arith.constant 0 : index
    %c0_86 = arith.constant 0 : index
    %83 = vector.load %arg15[%c0_85, %c0_86] : memref<200x1xf32, #tpu.memory_space<vmem>>, vector<200x1xf32>
    tpu.vector_store %arg15[%c0_85, %c0_86], %82 {strides = array<i32>} : memref<200x1xf32, #tpu.memory_space<vmem>>, vector<200x1xf32>,
    return
  }
  func.func @transform_0(%arg0: i32) -> (i32, i32) {
    %c0_i32 = arith.constant 0 : i32
    %c0_i32_0 = arith.constant 0 : i32
    return %arg0, %c0_i32 : i32, i32
  }
  func.func @transform_1(%arg0: i32) -> (i32, i32) {
    %c0_i32 = arith.constant 0 : i32
    %c0_i32_0 = arith.constant 0 : i32
    %c0_i32_1 = arith.constant 0 : i32
    return %c0_i32, %c0_i32_0 : i32, i32
  }
  func.func @transform_2(%arg0: i32) -> (i32, i32) {
    %c0_i32 = arith.constant 0 : i32
    %c0_i32_0 = arith.constant 0 : i32
    %c0_i32_1 = arith.constant 0 : i32
    return %c0_i32, %c0_i32_0 : i32, i32
  }
  func.func @transform_3(%arg0: i32) -> (i32, i32) {
    %c0_i32 = arith.constant 0 : i32
    %c0_i32_0 = arith.constant 0 : i32
    %c0_i32_1 = arith.constant 0 : i32
    return %c0_i32, %c0_i32_0 : i32, i32
  }
  func.func @transform_4(%arg0: i32) -> (i32, i32) {
    %c0_i32 = arith.constant 0 : i32
    %c0_i32_0 = arith.constant 0 : i32
    %c0_i32_1 = arith.constant 0 : i32
    return %c0_i32, %c0_i32_0 : i32, i32
  }
  func.func @transform_5(%arg0: i32) -> (i32, i32) {
    %c0_i32 = arith.constant 0 : i32
    %c0_i32_0 = arith.constant 0 : i32
    %c0_i32_1 = arith.constant 0 : i32
    return %c0_i32, %c0_i32_0 : i32, i32
  }
  func.func @transform_6(%arg0: i32) -> (i32, i32) {
    %c0_i32 = arith.constant 0 : i32
    %c0_i32_0 = arith.constant 0 : i32
    %c0_i32_1 = arith.constant 0 : i32
    return %c0_i32, %c0_i32_0 : i32, i32
  }
  func.func @transform_7(%arg0: i32) -> (i32, i32) {
    %c0_i32 = arith.constant 0 : i32
    %c0_i32_0 = arith.constant 0 : i32
    %c0_i32_1 = arith.constant 0 : i32
    return %c0_i32, %c0_i32_0 : i32, i32
  }
  func.func @transform_8(%arg0: i32) -> (i32, i32) {
    %c0_i32 = arith.constant 0 : i32
    %c0_i32_0 = arith.constant 0 : i32
    %c0_i32_1 = arith.constant 0 : i32
    return %c0_i32, %c0_i32_0 : i32, i32
  }
  func.func @transform_9(%arg0: i32) -> (i32, i32) {
    %c0_i32 = arith.constant 0 : i32
    %c0_i32_0 = arith.constant 0 : i32
    %c0_i32_1 = arith.constant 0 : i32
    return %c0_i32, %c0_i32_0 : i32, i32
  }
  func.func @transform_10(%arg0: i32) -> (i32, i32) {
    %c0_i32 = arith.constant 0 : i32
    %c0_i32_0 = arith.constant 0 : i32
    %c0_i32_1 = arith.constant 0 : i32
    return %c0_i32, %c0_i32_0 : i32, i32
  }
  func.func @transform_11(%arg0: i32) -> (i32, i32) {
    %c0_i32 = arith.constant 0 : i32
    %c0_i32_0 = arith.constant 0 : i32
    %c0_i32_1 = arith.constant 0 : i32
    return %c0_i32, %c0_i32_0 : i32, i32
  }
  func.func @transform_12(%arg0: i32) -> (i32, i32) {
    %c0_i32 = arith.constant 0 : i32
    %c0_i32_0 = arith.constant 0 : i32
    %c0_i32_1 = arith.constant 0 : i32
    return %c0_i32, %c0_i32_0 : i32, i32
  }
  func.func @transform_13(%arg0: i32) -> (i32, i32) {
    %c0_i32 = arith.constant 0 : i32
    %c0_i32_0 = arith.constant 0 : i32
    %c0_i32_1 = arith.constant 0 : i32
    return %c0_i32, %c0_i32_0 : i32, i32
  }
  func.func @transform_14(%arg0: i32) -> (i32, i32) {
    %c0_i32 = arith.constant 0 : i32
    %c0_i32_0 = arith.constant 0 : i32
    return %arg0, %c0_i32 : i32, i32
  }
}

</mosaic_0001>

<bundles_post_ra>
// kernel: forward.1
= control target key start
LH: loop header
LB: loop body
LE: loop exit
PB: predicated region body
PF: predicated region fallthrough
CT: control target
= control target key end

     0   :  { %s14228_s0 = inlined_call_operand.vmem [shape: bf16[200,11], index: 0, kind: input, shape index: {}]   ;;  %s14229_s1 = inlined_call_operand.vmem [shape: f32[200,1], index: 1, kind: input, shape index: {}]   ;;  %s14230_s2 = inlined_call_operand.vmem [shape: bf16[11,128], index: 2, kind: input, shape index: {}]   ;;  %s14231_s3 = inlined_call_operand.vmem [shape: f32[1,128], index: 3, kind: input, shape index: {}]   ;;  %s14232_s4 = inlined_call_operand.hbm [shape: bf16[512,128], index: 4, kind: input, shape index: {}]   ;;  %s14233_s5 = inlined_call_operand.vmem [shape: f32[1,128], index: 5, kind: input, shape index: {}]   ;;  %s14234_s6 = inlined_call_operand.vmem [shape: bf16[512,256], index: 6, kind: input, shape index: {}]   ;;  %s14235_s7 = inlined_call_operand.vmem [shape: f32[1,256], index: 7, kind: input, shape index: {}]   ;;  %s14236_s8 = inlined_call_operand.hbm [shape: bf16[1024,384], index: 8, kind: input, shape index: {}]   ;;  %s14237_s9 = inlined_call_operand.vmem [shape: f32[1,384], index: 9, kind: input, shape index: {}]   ;;  %s14238_s10 = inlined_call_operand.hbm [shape: bf16[1536,256], index: 10, kind: input, shape index: {}]   ;;  %s14239_s11 = inlined_call_operand.vmem [shape: f32[1,256], index: 11, kind: input, shape index: {}]   ;;  %s14240_s12 = inlined_call_operand.vmem [shape: f32[1,256], index: 12, kind: input, shape index: {}]   ;;  %s14241_s13 = inlined_call_operand.<no memory space> [shape: f32[1,1], index: 13, kind: input, shape index: {}]   ;;  %s14242_s14 = inlined_call_operand.vmem [shape: f32[200,1], index: 14, kind: output, shape index: {}]  }
   0x1   :  { %v19_v0 = vstv %s14241_s13 }
   0x2   :  { %20 = vst [vmem:[#allocation6] sm:$0x1] %v19_v0 }
   0x3   :  { %21 = vsyncpa [#allocation8], 0 }
   0x4   :  { %22 = vsyncpa [#allocation10], 0  ;;  %s11392_s15 = smov [#allocation9]   ;;  %s11322_s19 = scalar_lea.hbm %s14236_s8, 24576 }
   0x5   :  { %s54_s16 = sshll.u32 %s11392_s15, 4  ;;  %p11323_p0 = scmp.ne.s32.totalorder %s14236_s8, %s11322_s19  ;;  %s55_s16 = int_to_ptr.vmem [resolvable:$true] %s54_s16 }
   0x6   :  { %p11326_p1 = scmp.lt.u32.totalorder %s11322_s19, %s14236_s8 }
   0x8   :  { %p11328_p2 = pnand %p11326_p1, %p11323_p0 }
   0xa   :  { %11331 = shalt.err (!%p11328_p2)
}
   0xb   :  { %s11332_s13 = scalar_lea.vmem %s55_s16, 24576  ;;  %p11337_p4 = scmp.lt.s32.totalorder %s55_s16, %s55_s16 }
   0xc   :  { %p11333_p3 = scmp.ne.s32.totalorder %s55_s16, %s11332_s13  ;;  %p11338_p5 = scmp.lt.s32.totalorder %s11332_s13, %s11332_s13 }
   0xe   :  { %p11339_p6 = por %p11338_p5, %p11337_p4 }
  0x10   :  { %p11340_p7 = pnand %p11339_p6, %p11333_p3 }
  0x12   :  { %11343 = shalt.err (!%p11340_p7)
}
  0x13   :  { %s11393_s24 = smov 192   ;;  %s11394_s25 = smov 12  }
  0x14   :  { %60 = dma.hbm_to_vmem [thread:$0]  %s14236_s8, 24576, %s55_s16, [#allocation10], %s11393_s24, %s11393_s24, %s11394_s25  }
  0x15   :  { %s11395_s28 = smov [#allocation7]   ;;  %s11344_s17 = scalar_lea.hbm %s14232_s4, 4096 }
  0x16   :  { %s36_s29 = sshll.u32 %s11395_s28, 4  ;;  %p11345_p8 = scmp.ne.s32.totalorder %s14232_s4, %s11344_s17  ;;  %s37_s29 = int_to_ptr.vmem [resolvable:$true] %s36_s29 }
  0x17   :  { %p11348_p9 = scmp.lt.u32.totalorder %s11344_s17, %s14232_s4 }
  0x19   :  { %p11350_p10 = pnand %p11348_p9, %p11345_p8 }
  0x1b   :  { %11353 = shalt.err (!%p11350_p10)
}
  0x1c   :  { %s11354_s22 = scalar_lea.vmem %s37_s29, 4096  ;;  %p11359_p12 = scmp.lt.s32.totalorder %s37_s29, %s37_s29 }
  0x1d   :  { %p11355_p11 = scmp.ne.s32.totalorder %s37_s29, %s11354_s22  ;;  %p11360_p13 = scmp.lt.s32.totalorder %s11354_s22, %s11354_s22 }
  0x1f   :  { %p11361_p0 = por %p11360_p13, %p11359_p12 }
  0x21   :  { %p11362_p1 = pnand %p11361_p0, %p11355_p11 }
  0x23   :  { %11365 = shalt.err (!%p11362_p1)
}
  0x24   :  { %s11396_s8 = smov 64   ;;  %s11397_s16 = smov 4  }
  0x25   :  { %42 = dma.hbm_to_vmem [thread:$0]  %s14232_s4, 4096, %s37_s29, [#allocation8], %s11396_s8, %s11396_s8, %s11397_s16  }
  0x26   :  { %s11398_s24 = smov [#allocation11]   ;;  %s11366_s28 = scalar_lea.hbm %s14238_s10, 24576 }
  0x27   :  { %s68_s25 = sshll.u32 %s11398_s24, 4  ;;  %p11367_p2 = scmp.ne.s32.totalorder %s14238_s10, %s11366_s28  ;;  %s69_s25 = int_to_ptr.vmem [resolvable:$true] %s68_s25 }
  0x28   :  { %p11370_p3 = scmp.lt.u32.totalorder %s11366_s28, %s14238_s10 }
  0x2a   :  { %p11372_p4 = pnand %p11370_p3, %p11367_p2 }
  0x2c   :  { %11375 = shalt.err (!%p11372_p4)
}
  0x2d   :  { %s11376_s19 = scalar_lea.vmem %s69_s25, 24576  ;;  %p11381_p6 = scmp.lt.s32.totalorder %s69_s25, %s69_s25 }
  0x2e   :  { %p11377_p5 = scmp.ne.s32.totalorder %s69_s25, %s11376_s19  ;;  %p11382_p7 = scmp.lt.s32.totalorder %s11376_s19, %s11376_s19 }
  0x30   :  { %p11383_p8 = por %p11382_p7, %p11381_p6 }
  0x32   :  { %p11384_p9 = pnand %p11383_p8, %p11377_p5 }
  0x34   :  { %11387 = shalt.err (!%p11384_p9)
}
  0x35   :  { %s11399_s4 = smov 128   ;;  %s11400_s29 = smov 8  }
  0x36   :  { %74 = dma.hbm_to_vmem [thread:$0]  %s14238_s10, 24576, %s69_s25, [#allocation10], %s11399_s4, %s11399_s4, %s11400_s29  }
  0x37   :  { %11388 = dma.done.wait [#allocation8], 4096  }
  0x38   :  { %11389 = vsyncadd [#allocation8], 4294963200 }
  0x39   :  { %11390 = dma.done.wait [#allocation10], 49152  }
  0x3a   :  { %11391 = vsyncadd [#allocation10], 4294918144  ;;  %vm415_vm0 = vcmask 1044480   ;;  %v11401_v1 = vmov 0.0   ;;  %vm11402_vm1 = vmmov 0   ;;  %v11403_v2 = vmov 0  }
  0x3b   :  { %9931 = vmatprep.subr.bf16.mxu0 %v11401_v1  ;;  %9933 = vmatprep.mubr.msk.bf16.mxu0 %vm11402_vm1, %v11401_v1  ;;  %91 = vst [vmem:[#allocation2 + $0x60] sm:$0xf0] %v11403_v2  ;;  %92 = vst [vmem:[#allocation3 + $0x60] sm:$0xf0] %v11403_v2  ;;  %vm416_vm2 = vcmask 1045504   ;;  %v11404_v3 = vmov 65535  }
  0x3c   :  { %10632 = vset.pattern.permute.xlu0 %v11403_v2  ;;  %93 = vst [vmem:[#allocation4 + $0xc0] sm:$0xf0] %v11403_v2  ;;  %94 = vst [vmem:[#allocation4 + $0xc8] sm:$0xf0] %v11403_v2  ;;  %v417_v4 = vsel %vm415_vm0, 4294967295, %v11404_v3  ;;  %10633 = vset.pattern.permute.xlu1 %v11403_v2  ;;  %v10635_v8 = vld [vmem:[%s14228_s0] sm:$0xff]  }
  0x3d   :  { %95 = vst [vmem:[#allocation5 + $0x120] sm:$0xf0] %v11403_v2  ;;  %96 = vst [vmem:[#allocation5 + $0x128] sm:$0xf0] %v11403_v2  ;;  %v418_v5 = vsel %vm416_vm2, %v417_v4, 0  ;;  %vm375_vm3 = vcmask 89088  }
  0x3e   :  { %97 = vst [vmem:[#allocation5 + $0x130] sm:$0xf0] %v11403_v2  ;;  %v10634_v6 = vld [vmem:[%s14230_s2] sm:$0x3f]   ;;  %v127_v10 = vld [vmem:[%s14229_s1 + $0x10] sm:$0xff]  ;;  %v126_v11 = vld [vmem:[%s14229_s1 + $0x8] sm:$0xff] }
  0x3f   :  { %v420_v7 = vand.u32 %v10634_v6, %v418_v5  ;;  %v125_v9 = vld [vmem:[%s14229_s1] sm:$0xff]  ;;  %163 = vperm.xlu1 %10633, %v127_v10   ;;  %v128_v12 = vld [vmem:[%s14229_s1 + $0x18] sm:$0xff]  ;;  %v10636_v13 = vld [vmem:[%s14228_s0 + $0x8] sm:$0xff]   ;;  %vm626_vm4 = vsmask.f32 7424  ;;  %vm8811_vm6 = vcmask 7168  }
  0x40   :  { %153 = vperm.xlu0 %10632, %v125_v9   ;;  %v129_v14 = vld [vmem:[%s14229_s1 + $0x20] sm:$0xff]  ;;  %v130_v15 = vld [vmem:[%s14229_s1 + $0x28] sm:$0xff]  ;;  %v131_v16 = vld [vmem:[%s14229_s1 + $0x30] sm:$0xff]  ;;  %vm743_vm5 = vsmask.f32 5376 }
  0x41   :  { %9932 = vmatpush3.bf16.msra.mxu0 %v420_v7  ;;  %v132_v17 = vld [vmem:[%s14229_s1 + $0x38] sm:$0xff]  ;;  %v10637_v18 = vld [vmem:[%s14228_s0 + $0x10] sm:$0xff]   ;;  %v133_v19 = vld [vmem:[%s14229_s1 + $0x40] sm:$0xff] }
  0x42   :  { %v134_v20 = vld [vmem:[%s14229_s1 + $0x48] sm:$0xff]  ;;  %v135_v21 = vld [vmem:[%s14229_s1 + $0x50] sm:$0xff]  ;;  %v10648_v22 = vld [vmem:[#allocation7 + $0x40] sm:$0xff]  }
  0x43   :  { %168 = vperm.xlu1 %10633, %v128_v12   ;;  %v10649_v23 = vld [vmem:[#allocation7] sm:$0xff]   ;;  %v10650_v24 = vld [vmem:[#allocation7 + $0x48] sm:$0xff]   ;;  %9367 = vmatprep.subr.bf16.mxu0 %v10648_v22  ;;  %v10652_v30 = vld [vmem:[#allocation7 + $0x50] sm:$0xff]  }
  0x44   :  { %9934 = vmatmul.mubr.msk.bf16.vlgmr.msra.gmra.mrb[0].mxu0 %vm375_vm3, %v10635_v8  ;;  %158 = vperm.xlu0 %10632, %v126_v11   ;;  %v10638_v25 = vld [vmem:[%s14228_s0 + $0x18] sm:$0xff]   ;;  %v10651_v27 = vld [vmem:[#allocation7 + $0x8] sm:$0xff]   ;;  %v139_v31 = vld [vmem:[%s14229_s1 + $0x70] sm:$0xff] }
  0x45   :  { %9937 = vmatprep.mubr.msk.bf16.mxu0 %vm11402_vm1, %v11401_v1  ;;  %v136_v26 = vld [vmem:[%s14229_s1 + $0x58] sm:$0xff]  ;;  %9985 = vmatprep.subr.bf16.mxu1 %v10648_v22  ;;  %v137_v28 = vld [vmem:[%s14229_s1 + $0x60] sm:$0xff]  ;;  %v138_v29 = vld [vmem:[%s14229_s1 + $0x68] sm:$0xff] }
  0x46   :  { %9368 = vmatpush3.bf16.msra.mxu0 %v10649_v23  ;;  %9993 = vmatpush3.bf16.msra.mxu1 %v10649_v23  ;;  %v10653_v32 = vld [vmem:[#allocation7 + $0x10] sm:$0xff]   ;;  %v140_v33 = vld [vmem:[%s14229_s1 + $0x78] sm:$0xff]  ;;  %v10639_v36 = vld [vmem:[%s14228_s0 + $0x20] sm:$0xff]  }
  0x47   :  { %178 = vperm.xlu1 %10633, %v130_v15   ;;  %9369 = vmatprep.subr.bf16.mxu0 %v10650_v24  ;;  %v10654_v34 = vld [vmem:[#allocation7 + $0x58] sm:$0xff]   ;;  %v141_v37 = vld [vmem:[%s14229_s1 + $0x80] sm:$0xff]  ;;  %v142_v38 = vld [vmem:[%s14229_s1 + $0x88] sm:$0xff] }
  0x48   :  { %173 = vperm.xlu0 %10632, %v129_v14   ;;  %9986 = vmatprep.subr.bf16.mxu1 %v10650_v24  ;;  %v10655_v35 = vld [vmem:[#allocation7 + $0x18] sm:$0xff]   ;;  %v10656_v39 = vld [vmem:[#allocation7 + $0x60] sm:$0xff]   ;;  %v10640_v43 = vld [vmem:[%s14228_s0 + $0x28] sm:$0xff]  }
  0x49   :  { %v10657_v40 = vld [vmem:[#allocation7 + $0x20] sm:$0xff]   ;;  %v143_v41 = vld [vmem:[%s14229_s1 + $0x90] sm:$0xff]  ;;  %v146_v45 = vld [vmem:[%s14229_s1 + $0xa8] sm:$0xff] }
  0x4a   :  { %9370 = vmatpush3.bf16.msra.mxu0 %v10651_v27  ;;  %9994 = vmatpush3.bf16.msra.mxu1 %v10651_v27  ;;  %v144_v42 = vld [vmem:[%s14229_s1 + $0x98] sm:$0xff]  ;;  %v145_v44 = vld [vmem:[%s14229_s1 + $0xa0] sm:$0xff]  ;;  %v147_v48 = vld [vmem:[%s14229_s1 + $0xb0] sm:$0xff] }
  0x4b   :  { %188 = vperm.xlu1 %10633, %v132_v17   ;;  %9371 = vmatprep.subr.bf16.mxu0 %v10652_v30  ;;  %v10658_v46 = vld [vmem:[#allocation7 + $0x68] sm:$0xff]   ;;  %v148_v49 = vld [vmem:[%s14229_s1 + $0xb8] sm:$0xff]  ;;  %v10641_v50 = vld [vmem:[%s14228_s0 + $0x30] sm:$0xff]  }
  0x4c   :  { %9938 = vmatmul.mubr.msk.bf16.gmra.mrb[4].mxu0 %vm375_vm3, %v10636_v13  ;;  %183 = vperm.xlu0 %10632, %v131_v16   ;;  %v10659_v47 = vld [vmem:[#allocation7 + $0x28] sm:$0xff]   ;;  %v10642_v52 = vld [vmem:[%s14228_s0 + $0x38] sm:$0xff]   ;;  %v10645_v55 = vld [vmem:[%s14228_s0 + $0x50] sm:$0xff]  }
  0x4d   :  { %9941 = vmatprep.mubr.msk.bf16.mxu0 %vm11402_vm1, %v11401_v1  ;;  %9987 = vmatprep.subr.bf16.mxu1 %v10652_v30  ;;  %v149_v51 = vld [vmem:[%s14229_s1 + $0xc0] sm:$0xff]  ;;  %v10644_v54 = vld [vmem:[%s14228_s0 + $0x48] sm:$0xff]   ;;  %v10646_v56 = vld [vmem:[%s14228_s0 + $0x58] sm:$0xff]  }
  0x4e   :  { %9372 = vmatpush3.bf16.msra.mxu0 %v10653_v32  ;;  %9995 = vmatpush3.bf16.msra.mxu1 %v10653_v32  ;;  %v10643_v53 = vld [vmem:[%s14228_s0 + $0x40] sm:$0xff]   ;;  %v10660_v58 = vld [vmem:[#allocation7 + $0x70] sm:$0xff]   ;;  %v10662_v60 = vld [vmem:[#allocation7 + $0x78] sm:$0xff]  }
  0x4f   :  { %198 = vperm.xlu1 %10633, %v134_v20   ;;  %9373 = vmatprep.subr.bf16.mxu0 %v10654_v34  ;;  %v10647_v57 = vld [vmem:[%s14228_s0 + $0x60] ss:$0 sps:$4 sm:$0xff]   ;;  %v10661_v59 = vld [vmem:[#allocation7 + $0x30] sm:$0xff]   ;;  %v10663_v61 = vld [vmem:[#allocation7 + $0x38] sm:$0xff]  }
  0x50   :  { %193 = vperm.xlu0 %10632, %v133_v19   ;;  %9988 = vmatprep.subr.bf16.mxu1 %v10654_v34  ;;  %v10664_v62 = vld [vmem:[#allocation7 + $0xc0] sm:$0xff]  }
  0x51   :  { %v11680_v63 = vld [vmem:[%s14231_s3] ss:$0 sm:$0xff] }
  0x52   :  { %9374 = vmatpush3.bf16.msra.mxu0 %v10655_v35  ;;  %9996 = vmatpush3.bf16.msra.mxu1 %v10655_v35 }
  0x53   :  { %208 = vperm.xlu1 %10633, %v136_v26   ;;  %9375 = vmatprep.subr.bf16.mxu0 %v10656_v39 }
  0x54   :  { %9942 = vmatmul.mubr.msk.bf16.gmra.mrb[8].mxu0 %vm375_vm3, %v10637_v18  ;;  %203 = vperm.xlu0 %10632, %v135_v21  }
  0x55   :  { %9945 = vmatprep.mubr.msk.bf16.mxu0 %vm11402_vm1, %v11401_v1  ;;  %9989 = vmatprep.subr.bf16.mxu1 %v10656_v39 }
  0x56   :  { %9376 = vmatpush3.bf16.msra.mxu0 %v10657_v40  ;;  %9997 = vmatpush3.bf16.msra.mxu1 %v10657_v40 }
  0x57   :  { %218 = vperm.xlu1 %10633, %v138_v29   ;;  %9377 = vmatprep.subr.bf16.mxu0 %v10658_v46 }
  0x58   :  { %213 = vperm.xlu0 %10632, %v137_v28   ;;  %9990 = vmatprep.subr.bf16.mxu1 %v10658_v46 }
  0x5a   :  { %9378 = vmatpush3.bf16.msra.mxu0 %v10659_v47  ;;  %9998 = vmatpush3.bf16.msra.mxu1 %v10659_v47 }
  0x5b   :  { %228 = vperm.xlu1 %10633, %v140_v33   ;;  %9379 = vmatprep.subr.bf16.mxu0 %v10660_v58 }
  0x5c   :  { %9946 = vmatmul.mubr.msk.bf16.gmra.mrb[12].mxu0 %vm375_vm3, %v10638_v25  ;;  %223 = vperm.xlu0 %10632, %v139_v31  }
  0x5d   :  { %9949 = vmatprep.mubr.msk.bf16.mxu0 %vm11402_vm1, %v11401_v1  ;;  %9991 = vmatprep.subr.bf16.mxu1 %v10660_v58 }
  0x5e   :  { %9380 = vmatpush3.bf16.msra.mxu0 %v10661_v59  ;;  %9999 = vmatpush3.bf16.msra.mxu1 %v10661_v59 }
  0x5f   :  { %238 = vperm.xlu1 %10633, %v142_v38   ;;  %9381 = vmatprep.subr.bf16.mxu0 %v10662_v60 }
  0x60   :  { %233 = vperm.xlu0 %10632, %v141_v37   ;;  %9992 = vmatprep.subr.bf16.mxu1 %v10662_v60 }
  0x62   :  { %9382 = vmatpush3.bf16.msra.mxu0 %v10663_v61  ;;  %10000 = vmatpush3.bf16.msra.mxu1 %v10663_v61 }
  0x63   :  { %248 = vperm.xlu1 %10633, %v144_v42   ;;  %9461 = vmatprep.subr.bf16.mxu0 %v10664_v62 }
  0x64   :  { %9950 = vmatmul.mubr.msk.bf16.gmra.mrb[16].mxu0 %vm375_vm3, %v10639_v36  ;;  %243 = vperm.xlu0 %10632, %v143_v41  }
  0x65   :  { %9953 = vmatprep.mubr.msk.bf16.mxu0 %vm11402_vm1, %v11401_v1 }
  0x67   :  { %258 = vperm.xlu1 %10633, %v146_v45  }
  0x68   :  { %253 = vperm.xlu0 %10632, %v145_v44   ;;  %v10665_v44 = vld [vmem:[#allocation7 + $0x80] sm:$0xff]  }
  0x6b   :  { %268 = vperm.xlu1 %10633, %v148_v49   ;;  %v10666_v49 = vld [vmem:[#allocation7 + $0xc8] sm:$0xff]  }
  0x6c   :  { %9954 = vmatmul.mubr.msk.bf16.gmra.mrb[20].mxu0 %vm375_vm3, %v10640_v43  ;;  %263 = vperm.xlu0 %10632, %v147_v48  }
  0x6d   :  { %9957 = vmatprep.mubr.msk.bf16.mxu0 %vm11402_vm1, %v11401_v1 }
  0x70   :  { %273 = vperm.xlu0 %10632, %v149_v51  }
  0x74   :  { %9958 = vmatmul.mubr.msk.bf16.gmra.mrb[24].mxu0 %vm375_vm3, %v10641_v50 }
  0x75   :  { %9961 = vmatprep.mubr.msk.bf16.mxu0 %vm11402_vm1, %v11401_v1 }
  0x7c   :  { %9962 = vmatmul.mubr.msk.bf16.gmra.mrb[28].mxu0 %vm375_vm3, %v10642_v52 }
  0x7d   :  { %9965 = vmatprep.mubr.msk.bf16.mxu0 %vm11402_vm1, %v11401_v1 }
  0x84   :  { %9966 = vmatmul.mubr.msk.bf16.gmra.mrb[32].mxu0 %vm375_vm3, %v10643_v53 }
  0x85   :  { %9969 = vmatprep.mubr.msk.bf16.mxu0 %vm11402_vm1, %v11401_v1 }
  0x8c   :  { %9970 = vmatmul.mubr.msk.bf16.gmra.mrb[36].mxu0 %vm375_vm3, %v10644_v54 }
  0x8d   :  { %9973 = vmatprep.mubr.msk.bf16.mxu0 %vm11402_vm1, %v11401_v1 }
  0x94   :  { %9974 = vmatmul.mubr.msk.bf16.gmra.mrb[40].mxu0 %vm375_vm3, %v10645_v55 }
  0x95   :  { %9977 = vmatprep.mubr.msk.bf16.mxu0 %vm11402_vm1, %v11401_v1 }
  0x9c   :  { %9978 = vmatmul.mubr.msk.bf16.gmra.mrb[44].mxu0 %vm375_vm3, %v10646_v56 }
  0x9d   :  { %9981 = vmatprep.mubr.msk.bf16.mxu0 %vm11402_vm1, %v11401_v1 }
  0xa4   :  { %9982 = vmatmul.mubr.msk.bf16.gmra.mrb[48].mxu0 %vm375_vm3, %v10647_v57  ;;  %v10667_v57 = vld [vmem:[#allocation7 + $0x88] sm:$0xff]  }
  0xbe   :  { %v164_v7 = vpop.permute.xlu1 %163 }
  0xbf   :  { %v154_v0 = vpop.permute.xlu0 %153  ;;  %v284_v13 = vmul.f32 %v11680_v63, %v164_v7 }
  0xc0   :  { %v282_v1 = vmul.f32 %v11680_v63, %v154_v0  ;;  %v10668_v0 = vld [vmem:[#allocation7 + $0xd0] sm:$0xff]  }
  0xc2   :  { %v169_v15 = vpop.permute.xlu1 %168 }
  0xc3   :  { %v159_v2 = vpop.permute.xlu0 %158  ;;  %v285_v17 = vmul.f32 %v11680_v63, %v169_v15 }
  0xc4   :  { %v283_v3 = vmul.f32 %v11680_v63, %v159_v2 }
  0xc6   :  { %v179_v28 = vpop.permute.xlu1 %178 }
  0xc7   :  { %v174_v26 = vpop.permute.xlu0 %173  ;;  %v287_v31 = vmul.f32 %v11680_v63, %v179_v28  ;;  %v10672_v28 = vld [vmem:[#allocation7 + $0xe0] sm:$0xff]  }
  0xc8   :  { %v286_v27 = vmul.f32 %v11680_v63, %v174_v26 }
  0xca   :  { %v189_v53 = vpop.permute.xlu1 %188 }
  0xcb   :  { %v184_v50 = vpop.permute.xlu0 %183  ;;  %v289_v55 = vmul.f32 %v11680_v63, %v189_v53 }
  0xcc   :  { %v288_v52 = vmul.f32 %v11680_v63, %v184_v50 }
  0xcf   :  { %v194_v15 = vpop.permute.xlu0 %193 }
 0x117   :  { %v456_v4 = vpop.f32.mrb[0].mxu0 }
 0x118   :  { %v457_v5 = vadd.f32 %v456_v4, %v282_v1  ;;  %v9935_v6 = vpop.f32.mrb[1].mxu0 }
 0x119   :  { %v459_v8 = vpop.f32.mrb[2].mxu0 }
 0x11a   :  { %v460_v9 = vadd.f32 %v459_v8, %v283_v3  ;;  %v9936_v10 = vpop.f32.mrb[3].mxu0  ;;  %v558_v11 = vmax.f32 %v457_v5, 0.0  ;;  %v10669_v8 = vld [vmem:[#allocation7 + $0x90] sm:$0xff]  }
 0x11c   :  { %v559_v12 = vmax.f32 %v460_v9, 0.0 }
 0x11e   :  { %v583_v14 = vpack.c.bf16 %v559_v12, %v558_v11 }
 0x11f   :  { %v464_v16 = vpop.f32.mrb[4].mxu0 }
 0x120   :  { %596 = vst [vmem:[#allocation2] sm:$0xff] %v583_v14  ;;  %v465_v18 = vadd.f32 %v464_v16, %v284_v13  ;;  %v9939_v19 = vpop.f32.mrb[5].mxu0  ;;  %v630_v23 = vshll.u32 %v583_v14, 16  ;;  %v628_v35 = vshrl.u32 %v583_v14, 16 }
 0x121   :  { %v467_v20 = vpop.f32.mrb[6].mxu0 }
 0x122   :  { %v468_v21 = vadd.f32 %v467_v20, %v285_v17  ;;  %v9940_v22 = vpop.f32.mrb[7].mxu0  ;;  %v560_v24 = vmax.f32 %v465_v18, 0.0  ;;  %v632_v30 = vrot.slane %v630_v23, 1  ;;  %v290_v17 = vmul.f32 %v11680_v63, %v194_v15  ;;  %v199_v18 = vpop.permute.xlu1 %198 }
 0x123   :  { %v291_v20 = vmul.f32 %v11680_v63, %v199_v18  ;;  %v10671_v22 = vld [vmem:[#allocation7 + $0x98] sm:$0xff]  }
 0x124   :  { %v561_v25 = vmax.f32 %v468_v21, 0.0  ;;  %v633_v41 = vor.u32 %v632_v30, %v628_v35 }
 0x126   :  { %v11687_v29 = vpack.c.bf16 %v561_v25, %v560_v24 }
 0x127   :  { %v472_v32 = vpop.f32.mrb[8].mxu0 }
 0x128   :  { %v473_v33 = vadd.f32 %v472_v32, %v286_v27  ;;  %v9943_v34 = vpop.f32.mrb[9].mxu0  ;;  %v635_v36 = vshll.u32 %v11687_v29, 16  ;;  %v639_v37 = vshrl.u32 %v11687_v29, 16  ;;  %v833_v58 = vrot.slane %v11687_v29, 3 }
 0x129   :  { %v475_v38 = vpop.f32.mrb[10].mxu0 }
 0x12a   :  { %v476_v39 = vadd.f32 %v475_v38, %v287_v31  ;;  %v9944_v40 = vpop.f32.mrb[11].mxu0  ;;  %v637_v42 = vrot.slane %v635_v36, 1  ;;  %v753_v43 = vrot.slane %v635_v36, 3  ;;  %v752_v45 = vrot.slane %v639_v37, 2 }
 0x12b   :  { %v562_v46 = vmax.f32 %v473_v33, 0.0 }
 0x12c   :  { %v563_v47 = vmax.f32 %v476_v39, 0.0  ;;  %v638_v48 = vsel %vm626_vm4, %v633_v41, %v637_v42  ;;  %v11693_v51 = vor.u32 %v753_v43, %v752_v45  ;;  %v641_v5 = vor.u32 %v639_v37, %v637_v42  ;;  %v10673_v37 = vld [vmem:[#allocation7 + $0xa0] sm:$0xff]   ;;  %v10674_v43 = vld [vmem:[#allocation7 + $0xe8] sm:$0xff]  }
 0x12d   :  { %1165 = vmatprep.mubr.bf16.mxu0 %v638_v48 }
 0x12e   :  { %v11696_v54 = vpack.c.bf16 %v563_v47, %v562_v46  ;;  %1166 = vmatmul.mubr.bf16.vlgmr.msra.gmra.mrb[52].mxu0 %v583_v14  ;;  %v10670_v14 = vld [vmem:[#allocation7 + $0xd8] sm:$0xff]   ;;  %v209_v47 = vpop.permute.xlu1 %208 }
 0x12f   :  { %v480_v56 = vpop.f32.mrb[12].mxu0  ;;  %9462 = vmatpush3.bf16.msra.mxu0 %v10665_v44  ;;  %v204_v44 = vpop.permute.xlu0 %203 }
 0x130   :  { %v481_v59 = vadd.f32 %v480_v56, %v288_v52  ;;  %v9947_v60 = vpop.f32.mrb[13].mxu0  ;;  %v643_v61 = vshll.u32 %v11696_v54, 16  ;;  %9463 = vmatprep.subr.bf16.mxu0 %v10666_v49  ;;  %v647_v62 = vshrl.u32 %v11696_v54, 16  ;;  %v835_v1 = vrot.slane %v11696_v54, 3  ;;  %v10675_v52 = vld [vmem:[#allocation7 + $0xa8] sm:$0xff]  }
 0x131   :  { %v483_v2 = vpop.f32.mrb[14].mxu0  ;;  %v292_v46 = vmul.f32 %v11680_v63, %v204_v44  ;;  %v293_v49 = vmul.f32 %v11680_v63, %v209_v47  ;;  %v10676_v60 = vld [vmem:[#allocation7 + $0xf0] sm:$0xff]  }
 0x132   :  { %v484_v3 = vadd.f32 %v483_v2, %v289_v55  ;;  %v9948_v4 = vpop.f32.mrb[15].mxu0  ;;  %v645_v6 = vrot.slane %v643_v61, 1  ;;  %v11706_v7 = vsel %vm415_vm0, %v833_v58, %v835_v1  ;;  %v756_v9 = vrot.slane %v647_v62, 2  ;;  %v219_v15 = vpop.permute.xlu1 %218 }
 0x133   :  { %9464 = vmatpush3.bf16.msra.mxu0 %v10667_v57  ;;  %v757_v10 = vrot.slane %v643_v61, 3  ;;  %v564_v11 = vmax.f32 %v481_v59, 0.0  ;;  %v10677_v4 = vld [vmem:[#allocation7 + $0xb0] sm:$0xff]  }
 0x134   :  { %v565_v12 = vmax.f32 %v484_v3, 0.0  ;;  %v646_v13 = vsel %vm626_vm4, %v641_v5, %v645_v6  ;;  %9465 = vmatprep.subr.bf16.mxu0 %v10668_v0  ;;  %v649_v34 = vor.u32 %v647_v62, %v645_v6 }
 0x135   :  { %1173 = vmatprep.mubr.bf16.mxu0 %v646_v13  ;;  %v758_v16 = vor.u32 %v757_v10, %v756_v9 }
 0x136   :  { %v11710_v19 = vpack.c.bf16 %v565_v12, %v564_v11  ;;  %1174 = vmatmul.mubr.bf16.gmra.mrb[56].mxu0 %v11687_v29  ;;  %v10678_v11 = vld [vmem:[#allocation7 + $0xf8] sm:$0xff]   ;;  %v214_v12 = vpop.permute.xlu0 %213 }
 0x137   :  { %v488_v21 = vpop.f32.mrb[16].mxu0  ;;  %9466 = vmatpush3.bf16.msra.mxu0 %v10669_v8  ;;  %v11716_v23 = vsel %vm743_vm5, %v11693_v51, %v758_v16 }
 0x138   :  { %v489_v24 = vadd.f32 %v488_v21, %v290_v17  ;;  %v9951_v25 = vpop.f32.mrb[17].mxu0  ;;  %v651_v26 = vshll.u32 %v11710_v19, 16  ;;  %v655_v27 = vshrl.u32 %v11710_v19, 16  ;;  %9467 = vmatprep.subr.bf16.mxu0 %v10670_v14  ;;  %v837_v30 = vrot.slane %v11710_v19, 3 }
 0x139   :  { %v491_v31 = vpop.f32.mrb[18].mxu0  ;;  %v294_v14 = vmul.f32 %v11680_v63, %v214_v12  ;;  %v295_v17 = vmul.f32 %v11680_v63, %v219_v15 }
 0x13a   :  { %v492_v32 = vadd.f32 %v491_v31, %v291_v20  ;;  %v9952_v33 = vpop.f32.mrb[19].mxu0  ;;  %v653_v35 = vrot.slane %v651_v26, 1  ;;  %v11722_v36 = vsel %vm415_vm0, %v835_v1, %v837_v30  ;;  %v760_v38 = vrot.slane %v655_v27, 2  ;;  %v10679_v20 = vld [vmem:[#allocation7 + $0xb8] sm:$0xff]  }
 0x13b   :  { %9468 = vmatpush3.bf16.msra.mxu0 %v10671_v22  ;;  %v761_v39 = vrot.slane %v651_v26, 3  ;;  %v566_v40 = vmax.f32 %v489_v24, 0.0 }
 0x13c   :  { %v567_v41 = vmax.f32 %v492_v32, 0.0  ;;  %v654_v42 = vsel %vm626_vm4, %v649_v34, %v653_v35  ;;  %9469 = vmatprep.subr.bf16.mxu0 %v10672_v28  ;;  %v657_v1 = vor.u32 %v655_v27, %v653_v35 }
 0x13d   :  { %1181 = vmatprep.mubr.bf16.mxu0 %v654_v42  ;;  %v762_v45 = vor.u32 %v761_v39, %v760_v38 }
 0x13e   :  { %v11726_v48 = vpack.c.bf16 %v567_v41, %v566_v40  ;;  %1182 = vmatmul.mubr.bf16.gmra.mrb[60].mxu0 %v11696_v54  ;;  %v224_v40 = vpop.permute.xlu0 %223 }
 0x13f   :  { %v496_v50 = vpop.f32.mrb[20].mxu0  ;;  %9470 = vmatpush3.bf16.msra.mxu0 %v10673_v37  ;;  %v11731_v53 = vsel %vm743_vm5, %v758_v16, %v762_v45  ;;  %v296_v42 = vmul.f32 %v11680_v63, %v224_v40 }
 0x140   :  { %v497_v55 = vadd.f32 %v496_v50, %v292_v46  ;;  %v9955_v56 = vpop.f32.mrb[21].mxu0  ;;  %v659_v57 = vshll.u32 %v11726_v48, 16  ;;  %v663_v59 = vshrl.u32 %v11726_v48, 16  ;;  %9471 = vmatprep.subr.bf16.mxu0 %v10674_v43  ;;  %v839_v61 = vrot.slane %v11726_v48, 3  ;;  %v229_v43 = vpop.permute.xlu1 %228 }
 0x141   :  { %v499_v62 = vpop.f32.mrb[22].mxu0  ;;  %v297_v46 = vmul.f32 %v11680_v63, %v229_v43 }
 0x142   :  { %v500_v54 = vadd.f32 %v499_v62, %v293_v49  ;;  %v9956_v0 = vpop.f32.mrb[23].mxu0  ;;  %v661_v2 = vrot.slane %v659_v57, 1  ;;  %v11737_v3 = vsel %vm415_vm0, %v837_v30, %v839_v61  ;;  %v764_v5 = vrot.slane %v663_v59, 2 }
 0x143   :  { %9472 = vmatpush3.bf16.msra.mxu0 %v10675_v52  ;;  %v765_v6 = vrot.slane %v659_v57, 3  ;;  %v568_v8 = vmax.f32 %v497_v55, 0.0 }
 0x144   :  { %v569_v9 = vmax.f32 %v500_v54, 0.0  ;;  %v662_v10 = vsel %vm626_vm4, %v657_v1, %v661_v2  ;;  %9473 = vmatprep.subr.bf16.mxu0 %v10676_v60  ;;  %v665_v32 = vor.u32 %v663_v59, %v661_v2 }
 0x145   :  { %1189 = vmatprep.mubr.bf16.mxu0 %v662_v10  ;;  %v766_v13 = vor.u32 %v765_v6, %v764_v5  ;;  %v234_v6 = vpop.permute.xlu0 %233  ;;  %v239_v10 = vpop.permute.xlu1 %238 }
 0x146   :  { %v588_v16 = vpack.c.bf16 %v569_v9, %v568_v8  ;;  %1190 = vmatmul.mubr.bf16.gmra.mrb[64].mxu0 %v11710_v19  ;;  %v298_v9 = vmul.f32 %v11680_v63, %v234_v6  ;;  %v299_v12 = vmul.f32 %v11680_v63, %v239_v10 }
 0x147   :  { %v504_v18 = vpop.f32.mrb[24].mxu0  ;;  %9474 = vmatpush3.bf16.msra.mxu0 %v10677_v4  ;;  %v11744_v21 = vsel %vm743_vm5, %v762_v45, %v766_v13  ;;  %v10682_v45 = vld [vmem:[%s14234_s6 + $0x4] ss:$8 sps:$4 sm:$0xff]  }
 0x148   :  { %v505_v22 = vadd.f32 %v504_v18, %v294_v14  ;;  %v9959_v24 = vpop.f32.mrb[25].mxu0  ;;  %v667_v25 = vshll.u32 %v588_v16, 16  ;;  %v671_v26 = vshrl.u32 %v588_v16, 16  ;;  %9475 = vmatprep.subr.bf16.mxu0 %v10678_v11  ;;  %v841_v27 = vrot.slane %v588_v16, 3 }
 0x149   :  { %v507_v28 = vpop.f32.mrb[26].mxu0 }
 0x14a   :  { %v508_v30 = vadd.f32 %v507_v28, %v295_v17  ;;  %v9960_v31 = vpop.f32.mrb[27].mxu0  ;;  %v669_v33 = vrot.slane %v667_v25, 1  ;;  %v11747_v19 = vsel %vm415_vm0, %v839_v61, %v841_v27  ;;  %v768_v34 = vrot.slane %v671_v26, 2 }
 0x14b   :  { %9476 = vmatpush3.bf16.msra.mxu0 %v10679_v20  ;;  %v769_v35 = vrot.slane %v667_v25, 3  ;;  %v570_v37 = vmax.f32 %v505_v22, 0.0 }
 0x14c   :  { %v571_v38 = vmax.f32 %v508_v30, 0.0  ;;  %v670_v39 = vsel %vm626_vm4, %v665_v32, %v669_v33  ;;  %2110 = vmatprep.subr.bf16.mxu0 %v10682_v45 }
 0x14d   :  { %1197 = vmatprep.mubr.bf16.mxu0 %v670_v39  ;;  %v770_v41 = vor.u32 %v769_v35, %v768_v34  ;;  %v244_v35 = vpop.permute.xlu0 %243  ;;  %v249_v39 = vpop.permute.xlu1 %248 }
 0x14e   :  { %v589_v44 = vpack.c.bf16 %v571_v38, %v570_v37  ;;  %1198 = vmatmul.mubr.bf16.gmra.mrb[68].mxu0 %v11726_v48  ;;  %v673_v48 = vor.u32 %v671_v26, %v669_v33  ;;  %v300_v38 = vmul.f32 %v11680_v63, %v244_v35  ;;  %v301_v43 = vmul.f32 %v11680_v63, %v249_v39 }
 0x14f   :  { %v512_v47 = vpop.f32.mrb[28].mxu0  ;;  %v11757_v49 = vsel %vm743_vm5, %v766_v13, %v770_v41 }
 0x150   :  { %v513_v50 = vadd.f32 %v512_v47, %v296_v42  ;;  %v9963_v52 = vpop.f32.mrb[29].mxu0  ;;  %v675_v55 = vshll.u32 %v589_v44, 16  ;;  %v679_v56 = vshrl.u32 %v589_v44, 16  ;;  %v843_v57 = vrot.slane %v589_v44, 3  ;;  %v623_v42 = vld [vmem:[#allocation2] sm:$0xfc] }
 0x151   :  { %v515_v59 = vpop.f32.mrb[30].mxu0 }
 0x152   :  { %v516_v60 = vadd.f32 %v515_v59, %v297_v46  ;;  %v9964_v61 = vpop.f32.mrb[31].mxu0  ;;  %v677_v62 = vrot.slane %v675_v55, 1  ;;  %v11760_v54 = vsel %vm415_vm0, %v841_v27, %v843_v57  ;;  %v772_v0 = vrot.slane %v679_v56, 2 }
 0x153   :  { %v773_v1 = vrot.slane %v675_v55, 3  ;;  %v572_v2 = vmax.f32 %v513_v50, 0.0 }
 0x154   :  { %v573_v4 = vmax.f32 %v516_v60, 0.0  ;;  %v678_v5 = vsel %vm626_vm4, %v673_v48, %v677_v62  ;;  %v681_v27 = vor.u32 %v679_v56, %v677_v62  ;;  %v745_v60 = vshrl.u32 %v623_v42, 16 }
 0x155   :  { %1205 = vmatprep.mubr.bf16.mxu0 %v678_v5  ;;  %v774_v8 = vor.u32 %v773_v1, %v772_v0 }
 0x156   :  { %v590_v11 = vpack.c.bf16 %v573_v4, %v572_v2  ;;  %1206 = vmatmul.mubr.bf16.gmra.mrb[72].mxu0 %v588_v16  ;;  %v747_v10 = vrot.slane %v745_v60, 2 }
 0x157   :  { %v520_v13 = vpop.f32.mrb[32].mxu0  ;;  %v11766_v14 = vsel %vm743_vm5, %v770_v41, %v774_v8  ;;  %v625_v41 = vld [vmem:[#allocation2] sm:$0xf8] }
 0x158   :  { %v521_v15 = vadd.f32 %v520_v13, %v298_v9  ;;  %v9967_v17 = vpop.f32.mrb[33].mxu0  ;;  %v683_v18 = vshll.u32 %v590_v11, 16  ;;  %v687_v20 = vshrl.u32 %v590_v11, 16  ;;  %v845_v22 = vrot.slane %v590_v11, 3  ;;  %v254_v9 = vpop.permute.xlu0 %253 }
 0x159   :  { %v523_v24 = vpop.f32.mrb[34].mxu0  ;;  %v832_v59 = vrot.slane %v625_v41, 3  ;;  %v259_v17 = vpop.permute.xlu1 %258 }
 0x15a   :  { %v524_v25 = vadd.f32 %v523_v24, %v299_v12  ;;  %v9968_v26 = vpop.f32.mrb[35].mxu0  ;;  %v685_v28 = vrot.slane %v683_v18, 1  ;;  %v11769_v30 = vsel %vm415_vm0, %v843_v57, %v845_v22  ;;  %v776_v16 = vrot.slane %v687_v20, 2 }
 0x15b   :  { %v777_v31 = vrot.slane %v683_v18, 3  ;;  %v574_v32 = vmax.f32 %v521_v15, 0.0  ;;  %v302_v15 = vmul.f32 %v11680_v63, %v254_v9 }
 0x15c   :  { %v575_v33 = vmax.f32 %v524_v25, 0.0  ;;  %v686_v34 = vsel %vm626_vm4, %v681_v27, %v685_v28  ;;  %v689_v62 = vor.u32 %v687_v20, %v685_v28  ;;  %v834_v20 = vsel %vm415_vm0, %v832_v59, %v833_v58 }
 0x15d   :  { %1213 = vmatprep.mubr.bf16.mxu0 %v686_v34  ;;  %v778_v37 = vor.u32 %v777_v31, %v776_v16  ;;  %v269_v41 = vpop.permute.xlu1 %268 }
 0x15e   :  { %v11773_v40 = vpack.c.bf16 %v575_v33, %v574_v32  ;;  %1214 = vmatmul.mubr.bf16.gmra.mrb[76].mxu0 %v589_v44  ;;  %v748_v44 = vshll.u32 %v623_v42, 16 }
 0x15f   :  { %v528_v45 = vpop.f32.mrb[36].mxu0  ;;  %v11777_v46 = vsel %vm743_vm5, %v774_v8, %v778_v37 }
 0x160   :  { %v529_v47 = vadd.f32 %v528_v45, %v300_v38  ;;  %v9971_v50 = vpop.f32.mrb[37].mxu0  ;;  %v691_v52 = vshll.u32 %v11773_v40, 16  ;;  %v695_v55 = vshrl.u32 %v11773_v40, 16  ;;  %v847_v56 = vrot.slane %v11773_v40, 3 }
 0x161   :  { %v531_v57 = vpop.f32.mrb[38].mxu0  ;;  %v750_v12 = vrot.slane %v748_v44, 3 }
 0x162   :  { %v532_v61 = vadd.f32 %v531_v57, %v301_v43  ;;  %v9972_v48 = vpop.f32.mrb[39].mxu0  ;;  %v693_v0 = vrot.slane %v691_v52, 1  ;;  %v11783_v1 = vsel %vm415_vm0, %v845_v22, %v847_v56  ;;  %v780_v2 = vrot.slane %v695_v55, 2 }
 0x163   :  { %v781_v4 = vrot.slane %v691_v52, 3  ;;  %v576_v5 = vmax.f32 %v529_v47, 0.0  ;;  %v303_v22 = vmul.f32 %v11680_v63, %v259_v17  ;;  %v751_v33 = vor.u32 %v750_v12, %v747_v10  ;;  %v264_v47 = vpop.permute.xlu0 %263 }
 0x164   :  { %v577_v6 = vmax.f32 %v532_v61, 0.0  ;;  %v694_v8 = vsel %vm626_vm4, %v689_v62, %v693_v0  ;;  %v697_v35 = vor.u32 %v695_v55, %v693_v0  ;;  %v304_v55 = vmul.f32 %v11680_v63, %v264_v47 }
 0x165   :  { %1221 = vmatprep.mubr.bf16.mxu0 %v694_v8  ;;  %v782_v13 = vor.u32 %v781_v4, %v780_v2  ;;  %v755_v50 = vsel %vm743_vm5, %v751_v33, %v11693_v51  ;;  %v305_v57 = vmul.f32 %v11680_v63, %v269_v41  ;;  %v10685_v41 = vld [vmem:[%s14234_s6 + $0x14] ss:$8 sps:$4 sm:$0xff]  }
 0x166   :  { %v592_v18 = vpack.c.bf16 %v577_v6, %v576_v5  ;;  %1222 = vmatmul.mubr.bf16.gmra.mrb[80].mxu0 %v590_v11 }
 0x167   :  { %v536_v24 = vpop.f32.mrb[40].mxu0  ;;  %1301 = vmatprep.mubr.bf16.mxu0 %v834_v20  ;;  %v11792_v25 = vsel %vm743_vm5, %v778_v37, %v782_v13  ;;  %v10680_v37 = vld [vmem:[%s14234_s6] ss:$8 sps:$4 sm:$0xff]   ;;  %v274_v8 = vpop.permute.xlu0 %273 }
 0x168   :  { %v537_v26 = vadd.f32 %v536_v24, %v302_v15  ;;  %v9975_v27 = vpop.f32.mrb[41].mxu0  ;;  %v699_v28 = vshll.u32 %v592_v18, 16  ;;  %v703_v16 = vshrl.u32 %v592_v18, 16  ;;  %v849_v31 = vrot.slane %v592_v18, 3 }
 0x169   :  { %v539_v32 = vpop.f32.mrb[42].mxu0  ;;  %v306_v17 = vmul.f32 %v11680_v63, %v274_v8 }
 0x16a   :  { %v540_v34 = vadd.f32 %v539_v32, %v303_v22  ;;  %v9976_v11 = vpop.f32.mrb[43].mxu0  ;;  %v701_v29 = vrot.slane %v699_v28, 1  ;;  %v11795_v58 = vsel %vm415_vm0, %v847_v56, %v849_v31  ;;  %v784_v38 = vrot.slane %v703_v16, 2 }
 0x16b   :  { %v785_v39 = vrot.slane %v699_v28, 3  ;;  %v578_v42 = vmax.f32 %v537_v26, 0.0 }
 0x16c   :  { %v579_v43 = vmax.f32 %v540_v34, 0.0  ;;  %v702_v45 = vsel %vm626_vm4, %v697_v35, %v701_v29  ;;  %v705_v5 = vor.u32 %v703_v16, %v701_v29 }
 0x16d   :  { %1229 = vmatprep.mubr.bf16.mxu1 %v702_v45  ;;  %v786_v52 = vor.u32 %v785_v39, %v784_v38 }
 0x16e   :  { %v593_v56 = vpack.c.bf16 %v579_v43, %v578_v42  ;;  %1230 = vmatmul.mubr.bf16.vlgmr.msra.gmra.mrb[0].mxu1 %v11773_v40  ;;  %1302 = vmatmul.mubr.bf16.vlgmr.msra.gmra.mrb[84].mxu0 %v755_v50 }
 0x16f   :  { %v544_v59 = vpop.f32.mrb[44].mxu0  ;;  %1309 = vmatprep.mubr.bf16.mxu0 %v11706_v7  ;;  %v11808_v60 = vsel %vm743_vm5, %v782_v13, %v786_v52  ;;  %2111 = vmatpush1.bf16.msra.mxu0 %v10680_v37  ;;  %v10683_v37 = vld [vmem:[%s14234_s6 + $0x10] ss:$8 sps:$4 sm:$0xff]  }
 0x170   :  { %v545_v44 = vadd.f32 %v544_v59, %v304_v55  ;;  %v9979_v61 = vpop.f32.mrb[45].mxu0  ;;  %v707_v48 = vshll.u32 %v593_v56, 16  ;;  %v711_v51 = vshrl.u32 %v593_v56, 16  ;;  %v851_v62 = vrot.slane %v593_v56, 3  ;;  %2112 = vmatprep.subr.bf16.mxu0 %v10685_v41  ;;  %v10700_v59 = vld [vmem:[%s14234_s6 + $0x64] ss:$8 sps:$4 sm:$0xff]  }
 0x171   :  { %v547_v0 = vpop.f32.mrb[46].mxu0  ;;  %v10709_v61 = vld [vmem:[%s14234_s6 + $0x94] ss:$8 sps:$4 sm:$0xff]  }
 0x172   :  { %v548_v2 = vadd.f32 %v547_v0, %v305_v57  ;;  %v9980_v4 = vpop.f32.mrb[47].mxu0  ;;  %v709_v40 = vrot.slane %v707_v48, 1  ;;  %v11811_v6 = vsel %vm415_vm0, %v849_v31, %v851_v62  ;;  %v788_v9 = vrot.slane %v711_v51, 2  ;;  %v10695_v57 = vld [vmem:[%s14234_s6 + $0x50] ss:$8 sps:$4 sm:$0xff]  }
 0x173   :  { %v789_v7 = vrot.slane %v707_v48, 3  ;;  %v580_v10 = vmax.f32 %v545_v44, 0.0  ;;  %2113 = vmatpush1.bf16.msra.mxu0 %v10683_v37  ;;  %v10710_v4 = vld [vmem:[%s14234_s6 + $0xa0] ss:$8 sps:$4 sm:$0xff]  }
 0x174   :  { %v581_v12 = vmax.f32 %v548_v2, 0.0  ;;  %v710_v13 = vsel %vm626_vm4, %v705_v5, %v709_v40  ;;  %v713_v63 = vor.u32 %v711_v51, %v709_v40  ;;  %v10712_v5 = vld [vmem:[%s14234_s6 + $0xa4] ss:$8 sps:$4 sm:$0xff]  }
 0x175   :  { %1237 = vmatprep.mubr.bf16.mxu1 %v710_v13  ;;  %v790_v15 = vor.u32 %v789_v7, %v788_v9  ;;  %v10715_v9 = vld [vmem:[%s14234_s6 + $0xb4] ss:$8 sps:$4 sm:$0xff]   ;;  %v10713_v7 = vld [vmem:[%s14234_s6 + $0xb0] ss:$8 sps:$4 sm:$0xff]  }
 0x176   :  { %v11815_v20 = vpack.c.bf16 %v581_v12, %v580_v10  ;;  %1238 = vmatmul.mubr.bf16.gmra.mrb[4].mxu1 %v592_v18  ;;  %1310 = vmatmul.mubr.bf16.gmra.mrb[88].mxu0 %v11716_v23  ;;  %v10718_v10 = vld [vmem:[%s14234_s6 + $0xc4] ss:$8 sps:$4 sm:$0xff]   ;;  %v10716_v12 = vld [vmem:[%s14234_s6 + $0xc0] ss:$8 sps:$4 sm:$0xff]   ;;  %v10721_v13 = vld [vmem:[%s14234_s6 + $0xd4] ss:$8 sps:$4 sm:$0xff]  }
 0x177   :  { %v552_v22 = vpop.f32.mrb[48].mxu0  ;;  %1317 = vmatprep.mubr.bf16.mxu0 %v11722_v36  ;;  %v11820_v24 = vsel %vm743_vm5, %v786_v52, %v790_v15 }
 0x178   :  { %v553_v26 = vadd.f32 %v552_v22, %v306_v17  ;;  %v715_v27 = vshll.u32 %v11815_v20, 16  ;;  %v719_v28 = vshrl.u32 %v11815_v20, 16  ;;  %v9983_v16 = vpop.f32.mrb[49].mxu0  ;;  %v853_v31 = vrot.slane %v11815_v20, 3  ;;  %v10724_v17 = vld [vmem:[%s14234_s6 + $0xe4] ss:$8 sps:$4 sm:$0xff]  }
 0x179   :  { %v555_v32 = vpop.f32.mrb[50].mxu0  ;;  %v10727_v22 = vld [vmem:[%s14234_s6 + $0xf4] ss:$8 sps:$4 sm:$0xff]  }
 0x17a   :  { %v582_v33 = vmax.f32 %v553_v26, 0.0  ;;  %v717_v18 = vrot.slane %v715_v27, 1  ;;  %v9984_v34 = vpop.f32.mrb[51].mxu0  ;;  %v11828_v23 = vsel %vm415_vm0, %v851_v62, %v853_v31  ;;  %v792_v36 = vrot.slane %v719_v28, 2  ;;  %v10730_v26 = vld [vmem:[%s14234_s6 + $0x104] ss:$8 sps:$4 sm:$0xff]  }
 0x17b   :  { %v793_v11 = vrot.slane %v715_v27, 3 }
 0x17c   :  { %v595_v35 = vpack.c.bf16 %v582_v33, %v582_v33  ;;  %v718_v29 = vsel %vm626_vm4, %v713_v63, %v717_v18  ;;  %v721_v45 = vor.u32 %v719_v28, %v717_v18 }
 0x17d   :  { %1245 = vmatprep.mubr.bf16.mxu1 %v718_v29  ;;  %v11831_v38 = vor.u32 %v793_v11, %v792_v36 }
 0x17e   :  { %608 = vst [vmem:[#allocation2 + $0x60] sm:$0xf] %v595_v35  ;;  %1246 = vmatmul.mubr.bf16.gmra.mrb[8].mxu1 %v593_v56  ;;  %1318 = vmatmul.mubr.bf16.gmra.mrb[92].mxu0 %v11731_v53  ;;  %v10686_v53 = vld [vmem:[%s14234_s6 + $0x20] ss:$8 sps:$4 sm:$0xff]  }
 0x17f   :  { %1325 = vmatprep.mubr.bf16.mxu0 %v11737_v3  ;;  %v11837_v39 = vsel %vm743_vm5, %v790_v15, %v11831_v38  ;;  %v10688_v3 = vld [vmem:[%s14234_s6 + $0x24] ss:$8 sps:$4 sm:$0xff]   ;;  %v10719_v15 = vld [vmem:[%s14234_s6 + $0xd0] ss:$8 sps:$4 sm:$0xff]  }
 0x180   :  { %2114 = vmatprep.subr.bf16.mxu0 %v10688_v3 }
 0x181   :  { %2115 = vmatpush1.bf16.msra.mxu0 %v10686_v53 }
 0x185   :  { %v622_v42 = vld [vmem:[#allocation2 + $0x60] sm:$0x1f] }
 0x186   :  { %v723_v43 = vshll.u32 %v622_v42, 16  ;;  %1326 = vmatmul.mubr.bf16.gmra.mrb[96].mxu0 %v11744_v21  ;;  %v727_v50 = vshrl.u32 %v622_v42, 16  ;;  %v10689_v21 = vld [vmem:[%s14234_s6 + $0x30] ss:$8 sps:$4 sm:$0xff]   ;;  %v621_v56 = vld [vmem:[#allocation2 + $0x60] sm:$0xf] }
 0x187   :  { %1333 = vmatprep.mubr.bf16.mxu0 %v11747_v19  ;;  %v10691_v19 = vld [vmem:[%s14234_s6 + $0x34] ss:$8 sps:$4 sm:$0xff]   ;;  %v624_v44 = vld [vmem:[#allocation2 + $0x60] sm:$0x7f] }
 0x188   :  { %v725_v47 = vrot.slane %v723_v43, 1  ;;  %2116 = vmatprep.subr.bf16.mxu0 %v10691_v19  ;;  %v797_v48 = vshrl.u32 %v624_v44, 16  ;;  %v800_v51 = vshll.u32 %v624_v44, 16  ;;  %v855_v62 = vrot.slane %v624_v44, 3 }
 0x189   :  { %2117 = vmatpush1.bf16.msra.mxu0 %v10689_v21 }
 0x18a   :  { %v726_v52 = vsel %vm626_vm4, %v721_v45, %v725_v47  ;;  %v729_v55 = vor.u32 %v727_v50, %v725_v47  ;;  %v799_v0 = vrot.slane %v797_v48, 2  ;;  %v802_v2 = vrot.slane %v800_v51, 3 }
 0x18b   :  { %1253 = vmatprep.mubr.bf16.mxu1 %v726_v52  ;;  %v856_v40 = vsel %vm415_vm0, %v853_v31, %v855_v62 }
 0x18c   :  { %1254 = vmatmul.mubr.bf16.gmra.mrb[12].mxu1 %v11815_v20  ;;  %v10722_v20 = vld [vmem:[%s14234_s6 + $0xe0] ss:$8 sps:$4 sm:$0xff]  }
 0x18d   :  { %1261 = vmatprep.mubr.bf16.mxu1 %v729_v55 }
 0x18e   :  { %1334 = vmatmul.mubr.bf16.gmra.mrb[100].mxu0 %v11757_v49  ;;  %v10692_v49 = vld [vmem:[%s14234_s6 + $0x40] ss:$8 sps:$4 sm:$0xff]  }
 0x18f   :  { %1341 = vmatprep.mubr.bf16.mxu0 %v11760_v54  ;;  %v10694_v54 = vld [vmem:[%s14234_s6 + $0x44] ss:$8 sps:$4 sm:$0xff]  }
 0x190   :  { %2118 = vmatprep.subr.bf16.mxu0 %v10694_v54 }
 0x191   :  { %2119 = vmatpush1.bf16.msra.mxu0 %v10692_v49 }
 0x194   :  { %1262 = vmatmul.mubr.bf16.gmra.mrb[16].mxu1 %v621_v56 }
 0x196   :  { %1342 = vmatmul.mubr.bf16.gmra.mrb[104].mxu0 %v11766_v14  ;;  %v10697_v14 = vld [vmem:[%s14234_s6 + $0x54] ss:$8 sps:$4 sm:$0xff]  }
 0x197   :  { %1349 = vmatprep.mubr.bf16.mxu0 %v11769_v30  ;;  %2120 = vmatprep.subr.bf16.mxu0 %v10697_v14  ;;  %v10698_v30 = vld [vmem:[%s14234_s6 + $0x60] ss:$8 sps:$4 sm:$0xff]  }
 0x198   :  { %2121 = vmatpush1.bf16.msra.mxu0 %v10695_v57 }
 0x199   :  { %2122 = vmatprep.subr.bf16.mxu0 %v10700_v59 }
 0x19c   :  { %2123 = vmatpush1.bf16.msra.mxu0 %v10698_v30 }
 0x19e   :  { %1350 = vmatmul.mubr.bf16.gmra.mrb[108].mxu0 %v11777_v46  ;;  %v10701_v46 = vld [vmem:[%s14234_s6 + $0x70] ss:$8 sps:$4 sm:$0xff]  }
 0x19f   :  { %1357 = vmatprep.mubr.bf16.mxu0 %v11783_v1  ;;  %v10703_v1 = vld [vmem:[%s14234_s6 + $0x74] ss:$8 sps:$4 sm:$0xff]  }
 0x1a0   :  { %2124 = vmatprep.subr.bf16.mxu0 %v10703_v1 }
 0x1a1   :  { %2125 = vmatpush1.bf16.msra.mxu0 %v10701_v46 }
 0x1a6   :  { %1358 = vmatmul.mubr.bf16.gmra.mrb[112].mxu0 %v11792_v25  ;;  %v10704_v25 = vld [vmem:[%s14234_s6 + $0x80] ss:$8 sps:$4 sm:$0xff]  }
 0x1a7   :  { %1365 = vmatprep.mubr.bf16.mxu0 %v11795_v58  ;;  %v10706_v58 = vld [vmem:[%s14234_s6 + $0x84] ss:$8 sps:$4 sm:$0xff]  }
 0x1a8   :  { %2126 = vmatprep.subr.bf16.mxu0 %v10706_v58 }
 0x1a9   :  { %2127 = vmatpush1.bf16.msra.mxu0 %v10704_v25 }
 0x1aa   :  { %2128 = vmatprep.subr.bf16.mxu0 %v10709_v61 }
 0x1ae   :  { %1366 = vmatmul.mubr.bf16.gmra.mrb[116].mxu0 %v11808_v60  ;;  %v10707_v60 = vld [vmem:[%s14234_s6 + $0x90] ss:$8 sps:$4 sm:$0xff]  }
 0x1af   :  { %1373 = vmatprep.mubr.bf16.mxu0 %v11811_v6  ;;  %2129 = vmatpush1.bf16.msra.mxu0 %v10707_v60  ;;  %v803_v6 = vor.u32 %v802_v2, %v799_v0 }
 0x1b0   :  { %2130 = vmatprep.subr.bf16.mxu0 %v10712_v5 }
 0x1b1   :  { %v804_v8 = vsel %vm743_vm5, %v11831_v38, %v803_v6 }
 0x1b3   :  { %2131 = vmatpush1.bf16.msra.mxu0 %v10710_v4  ;;  %v11985_v4 = vld [vmem:[%s14233_s5] ss:$0 sm:$0xff] }
 0x1b4   :  { %2132 = vmatprep.subr.bf16.mxu0 %v10715_v9 }
 0x1b6   :  { %1374 = vmatmul.mubr.bf16.gmra.mrb[120].mxu0 %v11820_v24  ;;  %v10725_v24 = vld [vmem:[%s14234_s6 + $0xf0] ss:$8 sps:$4 sm:$0xff]  }
 0x1b7   :  { %1381 = vmatprep.mubr.bf16.mxu0 %v11828_v23  ;;  %2133 = vmatpush1.bf16.msra.mxu0 %v10713_v7 }
 0x1b8   :  { %2134 = vmatprep.subr.bf16.mxu0 %v10718_v10 }
 0x1bb   :  { %2135 = vmatpush1.bf16.msra.mxu0 %v10716_v12 }
 0x1bc   :  { %2136 = vmatprep.subr.bf16.mxu0 %v10721_v13 }
 0x1be   :  { %1382 = vmatmul.mubr.bf16.gmra.mrb[124].mxu0 %v11837_v39 }
 0x1bf   :  { %1389 = vmatprep.mubr.bf16.mxu0 %v856_v40  ;;  %2137 = vmatpush1.bf16.msra.mxu0 %v10719_v15 }
 0x1c0   :  { %2138 = vmatprep.subr.bf16.mxu0 %v10724_v17 }
 0x1c3   :  { %2139 = vmatpush1.bf16.msra.mxu0 %v10722_v20 }
 0x1c4   :  { %2140 = vmatprep.subr.bf16.mxu0 %v10727_v22 }
 0x1c6   :  { %1390 = vmatmul.mubr.bf16.gmra.mrb[128].mxu0 %v804_v8 }
 0x1c7   :  { %1397 = vmatprep.mubr.bf16.mxu0 %v855_v62  ;;  %2141 = vmatpush1.bf16.msra.mxu0 %v10725_v24 }
 0x1c8   :  { %2271 = vmatprep.subr.bf16.mxu0 %v10730_v26 }
 0x1ce   :  { %1398 = vmatmul.mubr.bf16.gmra.mrb[132].mxu0 %v803_v6 }
 0x201   :  { %v9383_v27 = vpop.f32.mrb[52].mxu0 }
 0x202   :  { %v9384_v28 = vpop.f32.mrb[53].mxu0 }
 0x203   :  { %v9385_v16 = vadd.f32 %v9384_v28, %v9383_v27  ;;  %v9386_v31 = vpop.f32.mrb[54].mxu0 }
 0x204   :  { %v9387_v63 = vpop.f32.mrb[55].mxu0 }
 0x205   :  { %v9388_v32 = vadd.f32 %v9387_v63, %v9386_v31  ;;  %v1168_v9 = vadd.f32 %v9385_v16, %v11985_v4 }
 0x207   :  { %v1171_v20 = vadd.f32 %v9388_v32, %v11985_v4 }
 0x209   :  { %v9389_v33 = vpop.f32.mrb[56].mxu0 }
 0x20a   :  { %v9390_v18 = vpop.f32.mrb[57].mxu0 }
 0x20b   :  { %v11954_v34 = vadd.f32 %v9390_v18, %v9389_v33  ;;  %v9392_v23 = vpop.f32.mrb[58].mxu0 }
 0x20c   :  { %v9393_v36 = vpop.f32.mrb[59].mxu0 }
 0x20d   :  { %v11956_v11 = vadd.f32 %v9393_v36, %v9392_v23  ;;  %v1176_v23 = vadd.f32 %v11954_v34, %v11985_v4 }
 0x211   :  { %v9395_v35 = vpop.f32.mrb[60].mxu0 }
 0x212   :  { %v9396_v29 = vpop.f32.mrb[61].mxu0 }
 0x213   :  { %v11958_v38 = vadd.f32 %v9396_v29, %v9395_v35  ;;  %v9398_v39 = vpop.f32.mrb[62].mxu0 }
 0x214   :  { %v9399_v37 = vpop.f32.mrb[63].mxu0 }
 0x215   :  { %v11960_v41 = vadd.f32 %v9399_v37, %v9398_v39 }
 0x219   :  { %v9401_v42 = vpop.f32.mrb[64].mxu0 }
 0x21a   :  { %v9402_v43 = vpop.f32.mrb[65].mxu0 }
 0x21b   :  { %v11962_v53 = vadd.f32 %v9402_v43, %v9401_v42  ;;  %v9404_v3 = vpop.f32.mrb[66].mxu0  ;;  %v1179_v43 = vadd.f32 %v11956_v11, %v11985_v4 }
 0x21c   :  { %v9405_v45 = vpop.f32.mrb[67].mxu0 }
 0x21d   :  { %v11964_v47 = vadd.f32 %v9405_v45, %v9404_v3 }
 0x221   :  { %v9407_v50 = vpop.f32.mrb[68].mxu0 }
 0x222   :  { %v9408_v52 = vpop.f32.mrb[69].mxu0 }
 0x223   :  { %v11966_v55 = vadd.f32 %v9408_v52, %v9407_v50  ;;  %v9410_v21 = vpop.f32.mrb[70].mxu0 }
 0x224   :  { %v9411_v19 = vpop.f32.mrb[71].mxu0 }
 0x225   :  { %v11968_v56 = vadd.f32 %v9411_v19, %v9410_v21 }
 0x229   :  { %v9413_v49 = vpop.f32.mrb[72].mxu0 }
 0x22a   :  { %v9414_v54 = vpop.f32.mrb[73].mxu0 }
 0x22b   :  { %v11970_v57 = vadd.f32 %v9414_v54, %v9413_v49  ;;  %v9416_v14 = vpop.f32.mrb[74].mxu0 }
 0x22c   :  { %v9417_v30 = vpop.f32.mrb[75].mxu0 }
 0x22d   :  { %v11972_v59 = vadd.f32 %v9417_v30, %v9416_v14 }
 0x231   :  { %v9419_v46 = vpop.f32.mrb[76].mxu0 }
 0x232   :  { %v9420_v1 = vpop.f32.mrb[77].mxu0 }
 0x233   :  { %v11974_v25 = vadd.f32 %v9420_v1, %v9419_v46  ;;  %v9422_v58 = vpop.f32.mrb[78].mxu0  ;;  %v1184_v46 = vadd.f32 %v11958_v38, %v11985_v4 }
 0x234   :  { %v9423_v44 = vpop.f32.mrb[79].mxu0 }
 0x235   :  { %v11976_v60 = vadd.f32 %v9423_v44, %v9422_v58 }
 0x239   :  { %v9425_v61 = vpop.f32.mrb[80].mxu0 }
 0x23a   :  { %v9426_v48 = vpop.f32.mrb[81].mxu0 }
 0x23b   :  { %v11978_v51 = vadd.f32 %v9426_v48, %v9425_v61  ;;  %v9428_v62 = vpop.f32.mrb[82].mxu0 }
 0x23c   :  { %v9429_v0 = vpop.f32.mrb[83].mxu0 }
 0x23d   :  { %v11980_v2 = vadd.f32 %v9429_v0, %v9428_v62 }
 0x241   :  { %v9431_v5 = vpop.f32.mrb[0].mxu1  ;;  %v9477_v40 = vpop.f32.mrb[84].mxu0 }
 0x242   :  { %v9432_v6 = vpop.f32.mrb[1].mxu1  ;;  %v9478_v8 = vpop.f32.mrb[85].mxu0 }
 0x243   :  { %v11988_v7 = vadd.f32 %v9432_v6, %v9431_v5  ;;  %v9479_v10 = vadd.f32 %v9478_v8, %v9477_v40  ;;  %v9434_v12 = vpop.f32.mrb[2].mxu1  ;;  %v9480_v13 = vpop.f32.mrb[86].mxu0  ;;  %v1187_v5 = vadd.f32 %v11960_v41, %v11985_v4  ;;  %v10728_v41 = vld [vmem:[%s14234_s6 + $0x100] ss:$8 sps:$4 sm:$0xff]  }
 0x244   :  { %v9435_v15 = vpop.f32.mrb[3].mxu1  ;;  %v9481_v17 = vpop.f32.mrb[87].mxu0 }
 0x245   :  { %v1304_v22 = vadd.f32 %v9479_v10, %v1168_v9  ;;  %v11991_v24 = vadd.f32 %v9435_v15, %v9434_v12  ;;  %v9482_v26 = vadd.f32 %v9481_v17, %v9480_v13 }
 0x247   :  { %v1307_v27 = vadd.f32 %v9482_v26, %v1171_v20  ;;  %v1405_v28 = vmax.f32 %v1304_v22, 0.0 }
 0x249   :  { %v1406_v31 = vmax.f32 %v1307_v27, 0.0  ;;  %v9437_v63 = vpop.f32.mrb[4].mxu1  ;;  %v9483_v33 = vpop.f32.mrb[88].mxu0 }
 0x24a   :  { %v9438_v18 = vpop.f32.mrb[5].mxu1  ;;  %v9484_v16 = vpop.f32.mrb[89].mxu0 }
 0x24b   :  { %v1430_v36 = vpack.c.bf16 %v1406_v31, %v1405_v28  ;;  %v11995_v35 = vadd.f32 %v9438_v18, %v9437_v63  ;;  %v9485_v29 = vadd.f32 %v9484_v16, %v9483_v33  ;;  %v9440_v39 = vpop.f32.mrb[6].mxu1  ;;  %v9486_v32 = vpop.f32.mrb[90].mxu0  ;;  %v10733_v63 = vld [vmem:[%s14234_s6 + $0x114] ss:$8 sps:$4 sm:$0xff]   ;;  %v1192_v18 = vadd.f32 %v11962_v53, %v11985_v4 }
 0x24c   :  { %v9441_v37 = vpop.f32.mrb[7].mxu1  ;;  %v9487_v42 = vpop.f32.mrb[91].mxu0 }
 0x24d   :  { %1443 = vst [vmem:[#allocation3] sm:$0xff] %v1430_v36  ;;  %v1312_v3 = vadd.f32 %v9485_v29, %v1176_v23  ;;  %v11999_v45 = vadd.f32 %v9441_v37, %v9440_v39  ;;  %v9488_v50 = vadd.f32 %v9487_v42, %v9486_v32  ;;  %v1476_v21 = vshll.u32 %v1430_v36, 16 }
 0x24e   :  { %v1474_v9 = vshrl.u32 %v1430_v36, 16  ;;  %v1195_v39 = vadd.f32 %v11964_v47, %v11985_v4 }
 0x24f   :  { %v1315_v52 = vadd.f32 %v9488_v50, %v1179_v43  ;;  %v1407_v19 = vmax.f32 %v1312_v3, 0.0  ;;  %v1478_v0 = vrot.slane %v1476_v21, 1  ;;  %v10731_v43 = vld [vmem:[%s14234_s6 + $0x110] ss:$8 sps:$4 sm:$0xff]   ;;  %v10736_v50 = vld [vmem:[%s14234_s6 + $0x124] ss:$8 sps:$4 sm:$0xff]  }
 0x251   :  { %v1408_v34 = vmax.f32 %v1315_v52, 0.0  ;;  %v9443_v49 = vpop.f32.mrb[8].mxu1  ;;  %v9489_v54 = vpop.f32.mrb[92].mxu0  ;;  %v1479_v13 = vor.u32 %v1478_v0, %v1474_v9  ;;  %v10734_v0 = vld [vmem:[%s14234_s6 + $0x120] ss:$8 sps:$4 sm:$0xff]  }
 0x252   :  { %v9444_v14 = vpop.f32.mrb[9].mxu1  ;;  %v9490_v30 = vpop.f32.mrb[93].mxu0 }
 0x253   :  { %v12003_v1 = vpack.c.bf16 %v1408_v34, %v1407_v19  ;;  %v12005_v58 = vadd.f32 %v9444_v14, %v9443_v49  ;;  %v9491_v11 = vadd.f32 %v9490_v30, %v9489_v54  ;;  %v9446_v44 = vpop.f32.mrb[10].mxu1  ;;  %v9492_v61 = vpop.f32.mrb[94].mxu0 }
 0x254   :  { %v9447_v48 = vpop.f32.mrb[11].mxu1  ;;  %v9493_v62 = vpop.f32.mrb[95].mxu0 }
 0x255   :  { %v1320_v40 = vadd.f32 %v9491_v11, %v1184_v46  ;;  %v12009_v6 = vadd.f32 %v9447_v48, %v9446_v44  ;;  %v9494_v8 = vadd.f32 %v9493_v62, %v9492_v61  ;;  %v1481_v38 = vshll.u32 %v12003_v1, 16 }
 0x256   :  { %v1485_v10 = vshrl.u32 %v12003_v1, 16  ;;  %v1677_v47 = vrot.slane %v12003_v1, 3 }
 0x257   :  { %v1323_v12 = vadd.f32 %v9494_v8, %v1187_v5  ;;  %v1483_v15 = vrot.slane %v1481_v38, 1  ;;  %v1598_v17 = vrot.slane %v1481_v38, 3  ;;  %v1409_v22 = vmax.f32 %v1320_v40, 0.0  ;;  %v10739_v8 = vld [vmem:[%s14234_s6 + $0x134] ss:$8 sps:$4 sm:$0xff]  }
 0x258   :  { %v1597_v20 = vrot.slane %v1485_v10, 2  ;;  %v1200_v38 = vadd.f32 %v11966_v55, %v11985_v4 }
 0x259   :  { %v1410_v26 = vmax.f32 %v1323_v12, 0.0  ;;  %v9495_v27 = vpop.f32.mrb[96].mxu0  ;;  %v1484_v31 = vsel %vm626_vm4, %v1479_v13, %v1483_v15  ;;  %v1487_v19 = vor.u32 %v1485_v10, %v1483_v15 }
 0x25a   :  { %v9496_v28 = vpop.f32.mrb[97].mxu0  ;;  %v12020_v33 = vor.u32 %v1598_v17, %v1597_v20  ;;  %2142 = vmatprep.mubr.bf16.mxu0 %v1484_v31  ;;  %v10742_v31 = vld [vmem:[%s14234_s6 + $0x144] ss:$8 sps:$4 sm:$0xff]  }
 0x25b   :  { %v12024_v16 = vpack.c.bf16 %v1410_v26, %v1409_v22  ;;  %v9497_v23 = vadd.f32 %v9496_v28, %v9495_v27  ;;  %v9498_v29 = vpop.f32.mrb[98].mxu0  ;;  %2143 = vmatmul.mubr.bf16.vlgmr.msra.gmra.mrb[136].mxu0 %v1430_v36  ;;  %v1203_v22 = vadd.f32 %v11968_v56, %v11985_v4 }
 0x25c   :  { %v9499_v32 = vpop.f32.mrb[99].mxu0  ;;  %2272 = vmatpush1.bf16.msra.mxu0 %v10728_v41  ;;  %v10737_v41 = vld [vmem:[%s14234_s6 + $0x130] ss:$8 sps:$4 sm:$0xff]  }
 0x25d   :  { %v1328_v37 = vadd.f32 %v9497_v23, %v1192_v18  ;;  %v9500_v42 = vadd.f32 %v9499_v32, %v9498_v29  ;;  %v1489_v3 = vshll.u32 %v12024_v16, 16  ;;  %v1493_v53 = vshrl.u32 %v12024_v16, 16  ;;  %2273 = vmatprep.subr.bf16.mxu0 %v10733_v63 }
 0x25e   :  { %v1679_v36 = vrot.slane %v12024_v16, 3 }
 0x25f   :  { %v9449_v52 = vpop.f32.mrb[12].mxu1  ;;  %v1331_v21 = vadd.f32 %v9500_v42, %v1195_v39  ;;  %v1491_v34 = vrot.slane %v1489_v3, 1  ;;  %v1601_v49 = vrot.slane %v1493_v53, 2  ;;  %v1602_v30 = vrot.slane %v1489_v3, 3 }
 0x260   :  { %v9450_v54 = vpop.f32.mrb[13].mxu1  ;;  %v12041_v14 = vsel %vm415_vm0, %v1677_v47, %v1679_v36  ;;  %v1411_v11 = vmax.f32 %v1328_v37, 0.0  ;;  %2274 = vmatpush1.bf16.msra.mxu0 %v10731_v43 }
 0x261   :  { %v12043_v46 = vadd.f32 %v9450_v54, %v9449_v52  ;;  %v9452_v44 = vpop.f32.mrb[14].mxu1  ;;  %v1412_v61 = vmax.f32 %v1331_v21, 0.0  ;;  %v9501_v48 = vpop.f32.mrb[100].mxu0  ;;  %v1492_v62 = vsel %vm626_vm4, %v1487_v19, %v1491_v34  ;;  %2275 = vmatprep.subr.bf16.mxu0 %v10736_v50  ;;  %v1603_v9 = vor.u32 %v1602_v30, %v1601_v49 }
 0x262   :  { %v9453_v5 = vpop.f32.mrb[15].mxu1  ;;  %v9502_v40 = vpop.f32.mrb[101].mxu0  ;;  %2152 = vmatprep.mubr.bf16.mxu0 %v1492_v62  ;;  %v1495_v23 = vor.u32 %v1493_v53, %v1491_v34  ;;  %v10740_v53 = vld [vmem:[%s14234_s6 + $0x140] ss:$8 sps:$4 sm:$0xff]   ;;  %v1208_v30 = vadd.f32 %v11970_v57, %v11985_v4 }
 0x263   :  { %v12054_v10 = vadd.f32 %v9453_v5, %v9452_v44  ;;  %v12056_v12 = vpack.c.bf16 %v1412_v61, %v1411_v11  ;;  %v9503_v13 = vadd.f32 %v9502_v40, %v9501_v48  ;;  %v9504_v15 = vpop.f32.mrb[102].mxu0  ;;  %2153 = vmatmul.mubr.bf16.gmra.mrb[140].mxu0 %v12003_v1  ;;  %v12061_v20 = vsel %vm743_vm5, %v12020_v33, %v1603_v9  ;;  %v10787_v1 = vld [vmem:[#allocation9 + $0x4c] ss:$12 sps:$4 sm:$0xff]  }
 0x264   :  { %v9505_v17 = vpop.f32.mrb[103].mxu0  ;;  %2276 = vmatpush1.bf16.msra.mxu0 %v10734_v0  ;;  %v1211_v48 = vadd.f32 %v11972_v59, %v11985_v4  ;;  %v10748_v59 = vld [vmem:[%s14234_s6 + $0x164] ss:$8 sps:$4 sm:$0xff]  }
 0x265   :  { %v1336_v26 = vadd.f32 %v9503_v13, %v1200_v38  ;;  %v9506_v27 = vadd.f32 %v9505_v17, %v9504_v15  ;;  %v1497_v55 = vshll.u32 %v12056_v12, 16  ;;  %2277 = vmatprep.subr.bf16.mxu0 %v10739_v8  ;;  %v1501_v28 = vshrl.u32 %v12056_v12, 16  ;;  %v10743_v38 = vld [vmem:[%s14234_s6 + $0x150] ss:$8 sps:$4 sm:$0xff]  }
 0x266   :  { %v1681_v63 = vrot.slane %v12056_v12, 3 }
 0x267   :  { %v9455_v18 = vpop.f32.mrb[16].mxu1  ;;  %v1339_v56 = vadd.f32 %v9506_v27, %v1203_v22  ;;  %v1499_v29 = vrot.slane %v1497_v55, 1  ;;  %v1606_v39 = vrot.slane %v1497_v55, 3  ;;  %v1605_v42 = vrot.slane %v1501_v28, 2 }
 0x268   :  { %v9456_v32 = vpop.f32.mrb[17].mxu1  ;;  %v12075_v37 = vsel %vm415_vm0, %v1679_v36, %v1681_v63  ;;  %v1413_v3 = vmax.f32 %v1336_v26, 0.0  ;;  %2278 = vmatpush1.bf16.msra.mxu0 %v10737_v41  ;;  %v10745_v36 = vld [vmem:[%s14234_s6 + $0x154] ss:$8 sps:$4 sm:$0xff]  }
 0x269   :  { %v12077_v43 = vadd.f32 %v9456_v32, %v9455_v18  ;;  %v9458_v50 = vpop.f32.mrb[18].mxu1  ;;  %v1414_v52 = vmax.f32 %v1339_v56, 0.0  ;;  %v9507_v21 = vpop.f32.mrb[104].mxu0  ;;  %v1500_v19 = vsel %vm626_vm4, %v1495_v23, %v1499_v29  ;;  %2279 = vmatprep.subr.bf16.mxu0 %v10742_v31  ;;  %v1607_v54 = vor.u32 %v1606_v39, %v1605_v42  ;;  %v10746_v18 = vld [vmem:[%s14234_s6 + $0x160] ss:$8 sps:$4 sm:$0xff]  }
 0x26a   :  { %v9459_v34 = vpop.f32.mrb[19].mxu1  ;;  %v9508_v49 = vpop.f32.mrb[105].mxu0  ;;  %2162 = vmatprep.mubr.bf16.mxu0 %v1500_v19  ;;  %v1503_v13 = vor.u32 %v1501_v28, %v1499_v29  ;;  %v10751_v28 = vld [vmem:[%s14234_s6 + $0x174] ss:$8 sps:$4 sm:$0xff]   ;;  %v1216_v23 = vadd.f32 %v11974_v25, %v11985_v4  ;;  %v1219_v42 = vadd.f32 %v11976_v60, %v11985_v4  ;;  %v10749_v25 = vld [vmem:[%s14234_s6 + $0x170] ss:$8 sps:$4 sm:$0xff]  }
 0x26b   :  { %v12088_v11 = vpack.c.bf16 %v1414_v52, %v1413_v3  ;;  %v9509_v44 = vadd.f32 %v9508_v49, %v9507_v21  ;;  %v9510_v61 = vpop.f32.mrb[106].mxu0  ;;  %2163 = vmatmul.mubr.bf16.gmra.mrb[144].mxu0 %v12024_v16  ;;  %v12094_v0 = vsel %vm743_vm5, %v1603_v9, %v1607_v54  ;;  %v10754_v60 = vld [vmem:[%s14234_s6 + $0x184] ss:$8 sps:$4 sm:$0xff]  }
 0x26c   :  { %v9511_v62 = vpop.f32.mrb[107].mxu0  ;;  %2280 = vmatpush1.bf16.msra.mxu0 %v10740_v53 }
 0x26d   :  { %v1344_v5 = vadd.f32 %v9509_v44, %v1208_v30  ;;  %v9512_v40 = vadd.f32 %v9511_v62, %v9510_v61  ;;  %v1505_v8 = vshll.u32 %v12088_v11, 16  ;;  %v1509_v57 = vshrl.u32 %v12088_v11, 16  ;;  %2281 = vmatprep.subr.bf16.mxu0 %v10745_v36 }
 0x26e   :  { %v1683_v16 = vrot.slane %v12088_v11, 3 }
 0x26f   :  { %v1347_v9 = vadd.f32 %v9512_v40, %v1211_v48  ;;  %v1507_v15 = vrot.slane %v1505_v8, 1  ;;  %v1609_v17 = vrot.slane %v1509_v57, 2  ;;  %v1610_v26 = vrot.slane %v1505_v8, 3  ;;  %v10752_v40 = vld [vmem:[%s14234_s6 + $0x180] ss:$8 sps:$4 sm:$0xff]  }
 0x270   :  { %v12106_v22 = vsel %vm415_vm0, %v1681_v63, %v1683_v16  ;;  %v1415_v27 = vmax.f32 %v1344_v5, 0.0  ;;  %2282 = vmatpush1.bf16.msra.mxu0 %v10743_v38 }
 0x271   :  { %v1416_v55 = vmax.f32 %v1347_v9, 0.0  ;;  %v9513_v41 = vpop.f32.mrb[108].mxu0  ;;  %v1508_v31 = vsel %vm626_vm4, %v1503_v13, %v1507_v15  ;;  %2283 = vmatprep.subr.bf16.mxu0 %v10748_v59  ;;  %v1611_v63 = vor.u32 %v1610_v26, %v1609_v17  ;;  %v1511_v49 = vor.u32 %v1509_v57, %v1507_v15  ;;  %v10757_v57 = vld [vmem:[%s14234_s6 + $0x194] ss:$8 sps:$4 sm:$0xff]  }
 0x272   :  { %v9514_v56 = vpop.f32.mrb[109].mxu0  ;;  %2172 = vmatprep.mubr.bf16.mxu0 %v1508_v31  ;;  %v1224_v59 = vadd.f32 %v11978_v51, %v11985_v4  ;;  %v1227_v15 = vadd.f32 %v11980_v2, %v11985_v4  ;;  %v10755_v51 = vld [vmem:[%s14234_s6 + $0x190] ss:$8 sps:$4 sm:$0xff]   ;;  %v10760_v2 = vld [vmem:[%s14234_s6 + $0x1a4] ss:$8 sps:$4 sm:$0xff]  }
 0x273   :  { %v12117_v29 = vpack.c.bf16 %v1416_v55, %v1415_v27  ;;  %v9515_v39 = vadd.f32 %v9514_v56, %v9513_v41  ;;  %v9516_v32 = vpop.f32.mrb[110].mxu0  ;;  %2173 = vmatmul.mubr.bf16.gmra.mrb[148].mxu0 %v12056_v12  ;;  %v12123_v50 = vsel %vm743_vm5, %v1607_v54, %v1611_v63 }
 0x274   :  { %v9517_v3 = vpop.f32.mrb[111].mxu0  ;;  %2284 = vmatpush1.bf16.msra.mxu0 %v10746_v18 }
 0x275   :  { %v1352_v52 = vadd.f32 %v9515_v39, %v1216_v23  ;;  %v9518_v21 = vadd.f32 %v9517_v3, %v9516_v32  ;;  %v1513_v19 = vshll.u32 %v12117_v29, 16  ;;  %v1517_v53 = vshrl.u32 %v12117_v29, 16  ;;  %2285 = vmatprep.subr.bf16.mxu0 %v10751_v28 }
 0x276   :  { %v1685_v12 = vrot.slane %v12117_v29, 3 }
 0x277   :  { %v1355_v34 = vadd.f32 %v9518_v21, %v1219_v42  ;;  %v1515_v36 = vrot.slane %v1513_v19, 1  ;;  %v1613_v54 = vrot.slane %v1517_v53, 2  ;;  %v1614_v44 = vrot.slane %v1513_v19, 3  ;;  %v10758_v21 = vld [vmem:[%s14234_s6 + $0x1a0] ss:$8 sps:$4 sm:$0xff]  }
 0x278   :  { %v12135_v30 = vsel %vm415_vm0, %v1683_v16, %v1685_v12  ;;  %v1417_v61 = vmax.f32 %v1352_v52, 0.0  ;;  %2286 = vmatpush1.bf16.msra.mxu0 %v10749_v25 }
 0x279   :  { %v1418_v48 = vmax.f32 %v1355_v34, 0.0  ;;  %v9519_v62 = vpop.f32.mrb[112].mxu0  ;;  %v1516_v5 = vsel %vm626_vm4, %v1511_v49, %v1515_v36  ;;  %2287 = vmatprep.subr.bf16.mxu0 %v10754_v60  ;;  %v1615_v38 = vor.u32 %v1614_v44, %v1613_v54  ;;  %v1519_v56 = vor.u32 %v1517_v53, %v1515_v36  ;;  %v10763_v53 = vld [vmem:[%s14234_s6 + $0x1b4] ss:$8 sps:$4 sm:$0xff]  }
 0x27a   :  { %v9520_v8 = vpop.f32.mrb[113].mxu0  ;;  %2182 = vmatprep.mubr.bf16.mxu0 %v1516_v5  ;;  %v1232_v60 = vadd.f32 %v11988_v7, %v11985_v4  ;;  %v1235_v36 = vadd.f32 %v11991_v24, %v11985_v4  ;;  %v10761_v7 = vld [vmem:[%s14234_s6 + $0x1b0] ss:$8 sps:$4 sm:$0xff]   ;;  %v10766_v24 = vld [vmem:[%s14234_s6 + $0x1c4] ss:$8 sps:$4 sm:$0xff]  }
 0x27b   :  { %v12146_v16 = vpack.c.bf16 %v1418_v48, %v1417_v61  ;;  %v9521_v9 = vadd.f32 %v9520_v8, %v9519_v62  ;;  %v9522_v13 = vpop.f32.mrb[114].mxu0  ;;  %2183 = vmatmul.mubr.bf16.gmra.mrb[152].mxu0 %v12088_v11  ;;  %v12152_v26 = vsel %vm743_vm5, %v1611_v63, %v1615_v38 }
 0x27c   :  { %v9523_v17 = vpop.f32.mrb[115].mxu0  ;;  %2288 = vmatpush1.bf16.msra.mxu0 %v10752_v40 }
 0x27d   :  { %v1360_v27 = vadd.f32 %v9521_v9, %v1224_v59  ;;  %v9524_v55 = vadd.f32 %v9523_v17, %v9522_v13  ;;  %v1521_v41 = vshll.u32 %v12146_v16, 16  ;;  %v1525_v31 = vshrl.u32 %v12146_v16, 16  ;;  %2289 = vmatprep.subr.bf16.mxu0 %v10757_v57 }
 0x27e   :  { %v1687_v11 = vrot.slane %v12146_v16, 3 }
 0x27f   :  { %v1363_v18 = vadd.f32 %v9524_v55, %v1227_v15  ;;  %v1523_v28 = vrot.slane %v1521_v41, 1  ;;  %v1617_v63 = vrot.slane %v1525_v31, 2  ;;  %v1618_v39 = vrot.slane %v1521_v41, 3  ;;  %v10764_v55 = vld [vmem:[%s14234_s6 + $0x1c0] ss:$8 sps:$4 sm:$0xff]  }
 0x280   :  { %v12164_v23 = vsel %vm415_vm0, %v1685_v12, %v1687_v11  ;;  %v1419_v32 = vmax.f32 %v1360_v27, 0.0  ;;  %2290 = vmatpush1.bf16.msra.mxu0 %v10755_v51 }
 0x281   :  { %v1420_v42 = vmax.f32 %v1363_v18, 0.0  ;;  %v9525_v3 = vpop.f32.mrb[116].mxu0  ;;  %v1524_v52 = vsel %vm626_vm4, %v1519_v56, %v1523_v28  ;;  %2291 = vmatprep.subr.bf16.mxu0 %v10760_v2  ;;  %v1619_v25 = vor.u32 %v1618_v39, %v1617_v63  ;;  %v1527_v8 = vor.u32 %v1525_v31, %v1523_v28  ;;  %v10769_v31 = vld [vmem:[%s14234_s6 + $0x1d4] ss:$8 sps:$4 sm:$0xff]  }
 0x282   :  { %v9526_v19 = vpop.f32.mrb[117].mxu0  ;;  %2192 = vmatprep.mubr.bf16.mxu0 %v1524_v52  ;;  %v1240_v2 = vadd.f32 %v11995_v35, %v11985_v4  ;;  %v1243_v28 = vadd.f32 %v11999_v45, %v11985_v4  ;;  %v10767_v35 = vld [vmem:[%s14234_s6 + $0x1d0] ss:$8 sps:$4 sm:$0xff]   ;;  %v10772_v45 = vld [vmem:[%s14234_s6 + $0x1e4] ss:$8 sps:$4 sm:$0xff]  }
 0x283   :  { %v12175_v12 = vpack.c.bf16 %v1420_v42, %v1419_v32  ;;  %v9527_v34 = vadd.f32 %v9526_v19, %v9525_v3  ;;  %v9528_v49 = vpop.f32.mrb[118].mxu0  ;;  %2193 = vmatmul.mubr.bf16.gmra.mrb[156].mxu0 %v12117_v29  ;;  %v12181_v44 = vsel %vm743_vm5, %v1615_v38, %v1619_v25 }
 0x284   :  { %v9529_v54 = vpop.f32.mrb[119].mxu0  ;;  %2292 = vmatpush1.bf16.msra.mxu0 %v10758_v21 }
 0x285   :  { %v1368_v61 = vadd.f32 %v9527_v34, %v1232_v60  ;;  %v9530_v48 = vadd.f32 %v9529_v54, %v9528_v49  ;;  %v1529_v62 = vshll.u32 %v12175_v12, 16  ;;  %v1533_v5 = vshrl.u32 %v12175_v12, 16  ;;  %2293 = vmatprep.subr.bf16.mxu0 %v10763_v53 }
 0x286   :  { %v1689_v29 = vrot.slane %v12175_v12, 3 }
 0x287   :  { %v1371_v40 = vadd.f32 %v9530_v48, %v1235_v36  ;;  %v1531_v57 = vrot.slane %v1529_v62, 1  ;;  %v1621_v38 = vrot.slane %v1533_v5, 2  ;;  %v1622_v9 = vrot.slane %v1529_v62, 3  ;;  %v10770_v48 = vld [vmem:[%s14234_s6 + $0x1e0] ss:$8 sps:$4 sm:$0xff]  }
 0x288   :  { %v12193_v59 = vsel %vm415_vm0, %v1687_v11, %v1689_v29  ;;  %v1421_v13 = vmax.f32 %v1368_v61, 0.0  ;;  %2294 = vmatpush1.bf16.msra.mxu0 %v10761_v7 }
 0x289   :  { %v1422_v15 = vmax.f32 %v1371_v40, 0.0  ;;  %v9531_v17 = vpop.f32.mrb[120].mxu0  ;;  %v1532_v27 = vsel %vm626_vm4, %v1527_v8, %v1531_v57  ;;  %2295 = vmatprep.subr.bf16.mxu0 %v10766_v24  ;;  %v1623_v51 = vor.u32 %v1622_v9, %v1621_v38  ;;  %v1535_v19 = vor.u32 %v1533_v5, %v1531_v57  ;;  %v10775_v5 = vld [vmem:[%s14234_s6 + $0x1f4] ss:$8 sps:$4 sm:$0xff]  }
 0x28a   :  { %v9532_v41 = vpop.f32.mrb[121].mxu0  ;;  %2202 = vmatprep.mubr.bf16.mxu0 %v1532_v27  ;;  %v1248_v24 = vadd.f32 %v12005_v58, %v11985_v4  ;;  %v1251_v57 = vadd.f32 %v12009_v6, %v11985_v4  ;;  %v10773_v58 = vld [vmem:[%s14234_s6 + $0x1f0] ss:$8 sps:$4 sm:$0xff]  }
 0x28b   :  { %v12204_v11 = vpack.c.bf16 %v1422_v15, %v1421_v13  ;;  %v9533_v18 = vadd.f32 %v9532_v41, %v9531_v17  ;;  %v9534_v56 = vpop.f32.mrb[122].mxu0  ;;  %2203 = vmatmul.mubr.bf16.gmra.mrb[160].mxu0 %v12146_v16  ;;  %v12210_v39 = vsel %vm743_vm5, %v1619_v25, %v1623_v51 }
 0x28c   :  { %v9535_v63 = vpop.f32.mrb[123].mxu0  ;;  %2296 = vmatpush1.bf16.msra.mxu0 %v10764_v55 }
 0x28d   :  { %v1376_v32 = vadd.f32 %v9533_v18, %v1240_v2  ;;  %v9536_v42 = vadd.f32 %v9535_v63, %v9534_v56  ;;  %v1537_v3 = vshll.u32 %v12204_v11, 16  ;;  %v1541_v52 = vshrl.u32 %v12204_v11, 16  ;;  %2297 = vmatprep.subr.bf16.mxu0 %v10769_v31 }
 0x28e   :  { %v1691_v16 = vrot.slane %v12204_v11, 3 }
 0x28f   :  { %v1379_v21 = vadd.f32 %v9536_v42, %v1243_v28  ;;  %v1539_v53 = vrot.slane %v1537_v3, 1  ;;  %v1625_v25 = vrot.slane %v1541_v52, 2  ;;  %v1626_v34 = vrot.slane %v1537_v3, 3 }
 0x290   :  { %v12222_v60 = vsel %vm415_vm0, %v1689_v29, %v1691_v16  ;;  %v1423_v49 = vmax.f32 %v1376_v32, 0.0  ;;  %2298 = vmatpush1.bf16.msra.mxu0 %v10767_v35  ;;  %v1256_v3 = vadd.f32 %v12043_v46, %v11985_v4 }
 0x291   :  { %v1424_v36 = vmax.f32 %v1379_v21, 0.0  ;;  %v9537_v54 = vpop.f32.mrb[124].mxu0  ;;  %v1540_v61 = vsel %vm626_vm4, %v1535_v19, %v1539_v53  ;;  %2299 = vmatprep.subr.bf16.mxu0 %v10772_v45  ;;  %v1627_v7 = vor.u32 %v1626_v34, %v1625_v25  ;;  %v1543_v31 = vor.u32 %v1541_v52, %v1539_v53 }
 0x292   :  { %v9538_v62 = vpop.f32.mrb[125].mxu0  ;;  %2212 = vmatprep.mubr.bf16.mxu0 %v1540_v61 }
 0x293   :  { %v1439_v29 = vpack.c.bf16 %v1424_v36, %v1423_v49  ;;  %v9539_v40 = vadd.f32 %v9538_v62, %v9537_v54  ;;  %v9540_v8 = vpop.f32.mrb[126].mxu0  ;;  %2213 = vmatmul.mubr.bf16.gmra.mrb[164].mxu0 %v12175_v12  ;;  %v12237_v9 = vsel %vm743_vm5, %v1623_v51, %v1627_v7 }
 0x294   :  { %v9541_v38 = vpop.f32.mrb[127].mxu0  ;;  %2300 = vmatpush1.bf16.msra.mxu0 %v10770_v48 }
 0x295   :  { %v1384_v13 = vadd.f32 %v9539_v40, %v1248_v24  ;;  %v9542_v15 = vadd.f32 %v9541_v38, %v9540_v8  ;;  %v1545_v17 = vshll.u32 %v1439_v29, 16  ;;  %v1549_v27 = vshrl.u32 %v1439_v29, 16  ;;  %2301 = vmatprep.subr.bf16.mxu0 %v10775_v5 }
 0x296   :  { %v1693_v55 = vrot.slane %v1439_v29, 3 }
 0x297   :  { %v1387_v41 = vadd.f32 %v9542_v15, %v1251_v57  ;;  %v1547_v6 = vrot.slane %v1545_v17, 1  ;;  %v1629_v2 = vrot.slane %v1549_v27, 2  ;;  %v1630_v51 = vrot.slane %v1545_v17, 3 }
 0x298   :  { %v12243_v12 = vsel %vm415_vm0, %v1691_v16, %v1693_v55  ;;  %v1425_v18 = vmax.f32 %v1384_v13, 0.0  ;;  %2302 = vmatpush1.bf16.msra.mxu0 %v10773_v58  ;;  %v1259_v16 = vadd.f32 %v12054_v10, %v11985_v4  ;;  %v1264_v57 = vadd.f32 %v12077_v43, %v11985_v4 }
 0x299   :  { %v1426_v56 = vmax.f32 %v1387_v41, 0.0  ;;  %v9543_v28 = vpop.f32.mrb[128].mxu0  ;;  %v1548_v63 = vsel %vm626_vm4, %v1543_v31, %v1547_v6  ;;  %v1631_v42 = vor.u32 %v1630_v51, %v1629_v2  ;;  %v1551_v61 = vor.u32 %v1549_v27, %v1547_v6 }
 0x29a   :  { %v9544_v32 = vpop.f32.mrb[129].mxu0  ;;  %2222 = vmatprep.mubr.bf16.mxu0 %v1548_v63 }
 0x29b   :  { %v1440_v35 = vpack.c.bf16 %v1426_v56, %v1425_v18  ;;  %v9545_v52 = vadd.f32 %v9544_v32, %v9543_v28  ;;  %v9546_v45 = vpop.f32.mrb[130].mxu0  ;;  %2223 = vmatmul.mubr.bf16.gmra.mrb[168].mxu0 %v12204_v11  ;;  %v12252_v19 = vsel %vm743_vm5, %v1627_v7, %v1631_v42  ;;  %v10778_v28 = vld [vmem:[#allocation9 + $0x4] ss:$12 sps:$4 sm:$0xff]  }
 0x29c   :  { %v9547_v21 = vpop.f32.mrb[131].mxu0  ;;  %4347 = vmatprep.subr.bf16.mxu0 %v10778_v28  ;;  %v10809_v28 = vld [vmem:[#allocation9 + $0x108] ss:$12 sps:$4 sm:$0xff]  }
 0x29d   :  { %v1392_v53 = vadd.f32 %v9545_v52, %v1256_v3  ;;  %v9548_v25 = vadd.f32 %v9547_v21, %v9546_v45  ;;  %v1553_v34 = vshll.u32 %v1440_v35, 16  ;;  %v1557_v49 = vshrl.u32 %v1440_v35, 16  ;;  %v10813_v3 = vld [vmem:[#allocation9 + $0x8] ss:$12 sps:$4 sm:$0xff]   ;;  %v10814_v52 = vld [vmem:[#allocation9 + $0xe0] ss:$12 sps:$4 sm:$0xff]  }
 0x29e   :  { %v1695_v36 = vrot.slane %v1440_v35, 3  ;;  %v10818_v21 = vld [vmem:[#allocation9 + $0x20] ss:$12 sps:$4 sm:$0xff]  }
 0x29f   :  { %v1395_v54 = vadd.f32 %v9548_v25, %v1259_v16  ;;  %v1555_v46 = vrot.slane %v1553_v34, 1  ;;  %v1633_v48 = vrot.slane %v1557_v49, 2  ;;  %v1634_v5 = vrot.slane %v1553_v34, 3 }
 0x2a0   :  { %v12255_v62 = vsel %vm415_vm0, %v1693_v55, %v1695_v36  ;;  %v1427_v10 = vmax.f32 %v1392_v53, 0.0 }
 0x2a1   :  { %v1428_v24 = vmax.f32 %v1395_v54, 0.0  ;;  %v9549_v40 = vpop.f32.mrb[132].mxu0  ;;  %v1556_v11 = vsel %vm626_vm4, %v1551_v61, %v1555_v46  ;;  %v1635_v8 = vor.u32 %v1634_v5, %v1633_v48  ;;  %v1559_v6 = vor.u32 %v1557_v49, %v1555_v46  ;;  %v10819_v49 = vld [vmem:[#allocation9 + $0xf8] ss:$12 sps:$4 sm:$0xff]   ;;  %v1470_v61 = vld [vmem:[#allocation3] sm:$0xfc] }
 0x2a2   :  { %v9550_v7 = vpop.f32.mrb[133].mxu0  ;;  %2232 = vmatprep.mubr.bf16.mxu0 %v1556_v11  ;;  %v10820_v54 = vld [vmem:[#allocation9 + $0x38] ss:$12 sps:$4 sm:$0xff]   ;;  %v10824_v46 = vld [vmem:[#allocation9 + $0x110] ss:$12 sps:$4 sm:$0xff]   ;;  %v1590_v5 = vshrl.u32 %v1470_v61, 16 }
 0x2a3   :  { %v12260_v38 = vpack.c.bf16 %v1428_v24, %v1427_v10  ;;  %v9551_v13 = vadd.f32 %v9550_v7, %v9549_v40  ;;  %v9552_v15 = vpop.f32.mrb[134].mxu0  ;;  %2233 = vmatmul.mubr.bf16.gmra.mrb[172].mxu0 %v1439_v29  ;;  %v12263_v27 = vsel %vm743_vm5, %v1631_v42, %v1635_v8  ;;  %v10812_v42 = vld [vmem:[#allocation9 + $0xc8] ss:$12 sps:$4 sm:$0xff]   ;;  %v1593_v10 = vshll.u32 %v1470_v61, 16 }
 0x2a4   :  { %v9553_v17 = vpop.f32.mrb[135].mxu0  ;;  %9555 = vmatprep.subr.bf16.mxu1 %v10812_v42  ;;  %v1472_v48 = vld [vmem:[#allocation3] sm:$0xf8]  ;;  %v1592_v11 = vrot.slane %v1590_v5, 2  ;;  %v10781_v15 = vld [vmem:[#allocation9 + $0x1c] ss:$12 sps:$4 sm:$0xff]  }
 0x2a5   :  { %v1400_v58 = vadd.f32 %v9551_v13, %v1264_v57  ;;  %v1561_v55 = vshll.u32 %v12260_v38, 16  ;;  %v1565_v41 = vshrl.u32 %v12260_v38, 16  ;;  %v1697_v31 = vrot.slane %v12260_v38, 3  ;;  %9556 = vmatpush3.bf16.msra.mxu1 %v10813_v3  ;;  %v10776_v13 = vld [vmem:[#allocation9] ss:$12 sps:$4 sm:$0xff]  }
 0x2a6   :  { %9557 = vmatprep.subr.bf16.mxu1 %v10814_v52  ;;  %v1676_v24 = vrot.slane %v1472_v48, 3  ;;  %v1595_v7 = vrot.slane %v1593_v10, 3  ;;  %v10817_v42 = vld [vmem:[#allocation9 + $0x124] ss:$12 sps:$4 sm:$0xff]  }
 0x2a7   :  { %v1429_v2 = vmax.f32 %v1400_v58, 0.0  ;;  %v1563_v51 = vrot.slane %v1561_v55, 1  ;;  %v12271_v4 = vsel %vm415_vm0, %v1695_v36, %v1697_v31  ;;  %v1637_v43 = vrot.slane %v1565_v41, 2  ;;  %v10779_v58 = vld [vmem:[#allocation9 + $0x18] ss:$12 sps:$4 sm:$0xff]  }
 0x2a8   :  { %v1638_v29 = vrot.slane %v1561_v55, 3  ;;  %v1596_v57 = vor.u32 %v1595_v7, %v1592_v11  ;;  %v10784_v55 = vld [vmem:[#allocation9 + $0x34] ss:$12 sps:$4 sm:$0xff]   ;;  %v10821_v3 = vld [vmem:[#allocation9 + $0x138] ss:$12 sps:$4 sm:$0xff]  }
 0x2a9   :  { %v1442_v18 = vpack.c.bf16 %v1429_v2, %v1429_v2  ;;  %v1564_v56 = vsel %vm626_vm4, %v1559_v6, %v1563_v51  ;;  %v1567_v53 = vor.u32 %v1565_v41, %v1563_v51  ;;  %9558 = vmatpush3.bf16.msra.mxu1 %v10818_v21  ;;  %v10782_v41 = vld [vmem:[#allocation9 + $0x30] ss:$12 sps:$4 sm:$0xff]   ;;  %v10791_v2 = vld [vmem:[#allocation9 + $0x78] ss:$12 sps:$4 sm:$0xff]   ;;  %v10796_v51 = vld [vmem:[#allocation9 + $0x94] ss:$12 sps:$4 sm:$0xff]  }
 0x2aa   :  { %2242 = vmatprep.mubr.bf16.mxu0 %v1564_v56  ;;  %v12274_v63 = vor.u32 %v1638_v29, %v1637_v43  ;;  %9559 = vmatprep.subr.bf16.mxu1 %v10819_v49  ;;  %v1600_v17 = vsel %vm743_vm5, %v1596_v57, %v12020_v33  ;;  %v10790_v6 = vld [vmem:[#allocation9 + $0x64] ss:$12 sps:$4 sm:$0xff]   ;;  %v10788_v33 = vld [vmem:[#allocation9 + $0x60] ss:$12 sps:$4 sm:$0xff]   ;;  %v10797_v43 = vld [vmem:[#allocation9 + $0xa8] ss:$12 sps:$4 sm:$0xff]  }
 0x2ab   :  { %1455 = vst [vmem:[#allocation3 + $0x60] sm:$0xf] %v1442_v18  ;;  %2243 = vmatmul.mubr.bf16.gmra.mrb[176].mxu0 %v1440_v35  ;;  %v10802_v29 = vld [vmem:[#allocation9 + $0xc4] ss:$12 sps:$4 sm:$0xff]   ;;  %v10808_v56 = vld [vmem:[#allocation9 + $0xf4] ss:$12 sps:$4 sm:$0xff]  }
 0x2ac   :  { %v12278_v32 = vsel %vm743_vm5, %v1635_v8, %v12274_v63  ;;  %v1678_v8 = vsel %vm415_vm0, %v1676_v24, %v1677_v47  ;;  %v10785_v47 = vld [vmem:[#allocation9 + $0x48] ss:$12 sps:$4 sm:$0xff]   ;;  %v10803_v18 = vld [vmem:[#allocation9 + $0xd8] ss:$12 sps:$4 sm:$0xff]   ;;  %v10825_v52 = vld [vmem:[#allocation9 + $0x50] ss:$12 sps:$4 sm:$0xff]  }
 0x2ad   :  { %9560 = vmatpush3.bf16.msra.mxu1 %v10820_v54  ;;  %v10834_v49 = vld [vmem:[#allocation9 + $0x168] ss:$12 sps:$4 sm:$0xff]   ;;  %v1780_v54 = vlaneseq }
 0x2ae   :  { %9561 = vmatprep.subr.bf16.mxu1 %v10824_v46  ;;  %v1778_v48 = vld [vmem:[%s14235_s7] sm:$0x3] }
 0x2af   :  { %v12312_v61 = vshrl.u32 %v1780_v54, 7 }
 0x2b1   :  { %9562 = vmatpush3.bf16.msra.mxu1 %v10825_v52  ;;  %14299 = vst [vmem:[#allocation14_spill] sm:$0xff] %v12312_v61  ;;  %v12315_v46 = vsub.s32 0, %v12312_v61  ;;  %v12321_v5 = vsub.s32 1, %v12312_v61 }
 0x2b2   :  { %v1469_v45 = vld [vmem:[#allocation3 + $0x60] sm:$0x1f] }
 0x2b3   :  { %v1569_v16 = vshll.u32 %v1469_v45, 16  ;;  %v1573_v34 = vshrl.u32 %v1469_v45, 16  ;;  %v1468_v40 = vld [vmem:[#allocation3 + $0x60] sm:$0xf]  ;;  %14300 = vst [vmem:[#allocation15_spill] sm:$0xff] %v12315_v46  ;;  %14301 = vst [vmem:[#allocation16_spill] sm:$0xff] %v12321_v5  ;;  %v12324_v10 = vrot.slane %v1778_v48, %v12315_v46  ;;  %v12327_v24 = vrot.slane %v1778_v48, %v12321_v5 }
 0x2b5   :  { %v1571_v25 = vrot.slane %v1569_v16, 1 }
 0x2b7   :  { %v1572_v36 = vsel %vm626_vm4, %v1567_v53, %v1571_v25  ;;  %v1575_v35 = vor.u32 %v1573_v34, %v1571_v25  ;;  %v10828_v53 = vld [vmem:[#allocation9 + $0x150] ss:$12 sps:$4 sm:$0xff]   ;;  %v10836_v25 = vld [vmem:[#allocation9 + $0x16c] ss:$12 sps:$4 sm:$0xff]  }
 0x2b8   :  { %2252 = vmatprep.mubr.bf16.mxu0 %v1572_v36  ;;  %v10838_v34 = vld [vmem:[#allocation9 + $0x170] ss:$12 sps:$4 sm:$0xff]  }
 0x2b9   :  { %2253 = vmatmul.mubr.bf16.gmra.mrb[180].mxu0 %v12260_v38  ;;  %v10833_v38 = vld [vmem:[#allocation9 + $0x158] ss:$12 sps:$4 sm:$0xff]   ;;  %v10839_v36 = vld [vmem:[#allocation9 + $0xb0] ss:$12 sps:$4 sm:$0xff]  }
 0x2ba   :  { %2262 = vmatprep.mubr.bf16.mxu0 %v1575_v35  ;;  %v10876_v35 = vld [vmem:[#allocation9 + $0x248] ss:$12 sps:$4 sm:$0xff]  }
 0x2c1   :  { %2263 = vmatmul.mubr.bf16.gmra.mrb[184].mxu0 %v1468_v40 }
 0x2c2   :  { %2303 = vmatprep.mubr.bf16.mxu0 %v1678_v8 }
 0x2c9   :  { %2304 = vmatmul.mubr.bf16.vlgmr.msra.gmra.mrb[136].mxu0 %v1600_v17 }
 0x2ca   :  { %2313 = vmatprep.mubr.bf16.mxu0 %v12041_v14  ;;  %4348 = vmatpush1.bf16.msra.mxu0 %v10776_v13  ;;  %v10793_v14 = vld [vmem:[#allocation9 + $0x7c] ss:$12 sps:$4 sm:$0xff]  }
 0x2cb   :  { %4349 = vmatprep.subr.bf16.mxu0 %v10781_v15 }
 0x2ce   :  { %4350 = vmatpush1.bf16.msra.mxu0 %v10779_v58 }
 0x2cf   :  { %4351 = vmatprep.subr.bf16.mxu0 %v10784_v55 }
 0x2d1   :  { %2314 = vmatmul.mubr.bf16.gmra.mrb[140].mxu0 %v12061_v20  ;;  %v10794_v20 = vld [vmem:[#allocation9 + $0x90] ss:$12 sps:$4 sm:$0xff]  }
 0x2d2   :  { %2323 = vmatprep.mubr.bf16.mxu0 %v12075_v37  ;;  %4352 = vmatpush1.bf16.msra.mxu0 %v10782_v41  ;;  %v10799_v37 = vld [vmem:[#allocation9 + $0xac] ss:$12 sps:$4 sm:$0xff]  }
 0x2d3   :  { %4353 = vmatprep.subr.bf16.mxu0 %v10787_v1 }
 0x2d6   :  { %4354 = vmatpush1.bf16.msra.mxu0 %v10785_v47 }
 0x2d7   :  { %4355 = vmatprep.subr.bf16.mxu0 %v10790_v6 }
 0x2d9   :  { %2324 = vmatmul.mubr.bf16.gmra.mrb[144].mxu0 %v12094_v0  ;;  %v10800_v0 = vld [vmem:[#allocation9 + $0xc0] ss:$12 sps:$4 sm:$0xff]  }
 0x2da   :  { %2333 = vmatprep.mubr.bf16.mxu0 %v12106_v22  ;;  %4356 = vmatpush1.bf16.msra.mxu0 %v10788_v33  ;;  %v10805_v22 = vld [vmem:[#allocation9 + $0xdc] ss:$12 sps:$4 sm:$0xff]  }
 0x2db   :  { %4357 = vmatprep.subr.bf16.mxu0 %v10793_v14  ;;  %v10840_v14 = vld [vmem:[#allocation9 + $0x180] ss:$12 sps:$4 sm:$0xff]  }
 0x2de   :  { %4358 = vmatpush1.bf16.msra.mxu0 %v10791_v2  ;;  %v10877_v2 = vld [vmem:[#allocation9 + $0x188] ss:$12 sps:$4 sm:$0xff]  }
 0x2df   :  { %4359 = vmatprep.subr.bf16.mxu0 %v10796_v51 }
 0x2e1   :  { %2334 = vmatmul.mubr.bf16.gmra.mrb[148].mxu0 %v12123_v50  ;;  %v10806_v50 = vld [vmem:[#allocation9 + $0xf0] ss:$12 sps:$4 sm:$0xff]  }
 0x2e2   :  { %2343 = vmatprep.mubr.bf16.mxu0 %v12135_v30  ;;  %4360 = vmatpush1.bf16.msra.mxu0 %v10794_v20  ;;  %v10811_v30 = vld [vmem:[#allocation9 + $0x10c] ss:$12 sps:$4 sm:$0xff]  }
 0x2e3   :  { %4361 = vmatprep.subr.bf16.mxu0 %v10799_v37  ;;  %v10845_v37 = vld [vmem:[#allocation9 + $0x19c] ss:$12 sps:$4 sm:$0xff]  }
 0x2e6   :  { %4362 = vmatpush1.bf16.msra.mxu0 %v10797_v43  ;;  %v10878_v43 = vld [vmem:[#allocation9 + $0x260] ss:$12 sps:$4 sm:$0xff]  }
 0x2e7   :  { %4363 = vmatprep.subr.bf16.mxu0 %v10802_v29 }
 0x2e9   :  { %2344 = vmatmul.mubr.bf16.gmra.mrb[152].mxu0 %v12152_v26  ;;  %v10815_v26 = vld [vmem:[#allocation9 + $0x120] ss:$12 sps:$4 sm:$0xff]  }
 0x2ea   :  { %2353 = vmatprep.mubr.bf16.mxu0 %v12164_v23  ;;  %4364 = vmatpush1.bf16.msra.mxu0 %v10800_v0  ;;  %v10823_v23 = vld [vmem:[#allocation9 + $0x13c] ss:$12 sps:$4 sm:$0xff]  }
 0x2eb   :  { %4365 = vmatprep.subr.bf16.mxu0 %v10805_v22 }
 0x2ee   :  { %4366 = vmatpush1.bf16.msra.mxu0 %v10803_v18 }
 0x2ef   :  { %4367 = vmatprep.subr.bf16.mxu0 %v10808_v56 }
 0x2f1   :  { %2354 = vmatmul.mubr.bf16.gmra.mrb[156].mxu0 %v12181_v44  ;;  %v1471_v44 = vld [vmem:[#allocation3 + $0x60] sm:$0x7f] }
 0x2f2   :  { %2363 = vmatprep.mubr.bf16.mxu0 %v12193_v59  ;;  %4368 = vmatpush1.bf16.msra.mxu0 %v10806_v50  ;;  %v1642_v59 = vshrl.u32 %v1471_v44, 16 }
 0x2f3   :  { %4369 = vmatprep.subr.bf16.mxu0 %v10811_v30 }
 0x2f4   :  { %v1644_v45 = vrot.slane %v1642_v59, 2 }
 0x2f6   :  { %4370 = vmatpush1.bf16.msra.mxu0 %v10809_v28  ;;  %v10843_v28 = vld [vmem:[#allocation9 + $0x198] ss:$12 sps:$4 sm:$0xff]  }
 0x2f7   :  { %4371 = vmatprep.subr.bf16.mxu0 %v10817_v42  ;;  %v10882_v42 = vld [vmem:[#allocation9 + $0x1a0] ss:$12 sps:$4 sm:$0xff]  }
 0x2f9   :  { %2364 = vmatmul.mubr.bf16.gmra.mrb[160].mxu0 %v12210_v39  ;;  %v1645_v39 = vshll.u32 %v1471_v44, 16 }
 0x2fa   :  { %2373 = vmatprep.mubr.bf16.mxu0 %v12222_v60  ;;  %4372 = vmatpush1.bf16.msra.mxu0 %v10815_v26  ;;  %v1699_v60 = vrot.slane %v1471_v44, 3  ;;  %v10883_v44 = vld [vmem:[#allocation9 + $0x278] ss:$12 sps:$4 sm:$0xff]  }
 0x2fb   :  { %4373 = vmatprep.subr.bf16.mxu0 %v10823_v23  ;;  %v1647_v16 = vrot.slane %v1645_v39, 3 }
 0x2fe   :  { %4374 = vmatpush1.bf16.msra.mxu0 %v10821_v3  ;;  %v10848_v3 = vld [vmem:[#allocation9 + $0x1b4] ss:$12 sps:$4 sm:$0xff]  }
 0x301   :  { %2374 = vmatmul.mubr.bf16.gmra.mrb[164].mxu0 %v12237_v9  ;;  %v1700_v9 = vsel %vm415_vm0, %v1697_v31, %v1699_v60  ;;  %v10837_v31 = vld [vmem:[#allocation9 + $0x98] ss:$12 sps:$4 sm:$0xff]  }
 0x302   :  { %2383 = vmatprep.mubr.bf16.mxu0 %v12243_v12  ;;  %v10826_v12 = vld [vmem:[#allocation9 + $0x128] ss:$12 sps:$4 sm:$0xff]  }
 0x303   :  { %9563 = vmatprep.subr.bf16.mxu1 %v10826_v12 }
 0x309   :  { %2384 = vmatmul.mubr.bf16.gmra.mrb[168].mxu0 %v12252_v19  ;;  %v10827_v19 = vld [vmem:[#allocation9 + $0x68] ss:$12 sps:$4 sm:$0xff]  }
 0x30a   :  { %2393 = vmatprep.mubr.bf16.mxu0 %v12255_v62  ;;  %v1648_v62 = vor.u32 %v1647_v16, %v1644_v45  ;;  %9564 = vmatpush3.bf16.msra.mxu1 %v10827_v19  ;;  %v10846_v45 = vld [vmem:[#allocation9 + $0x1b0] ss:$12 sps:$4 sm:$0xff]   ;;  %v10851_v19 = vld [vmem:[#allocation9 + $0x1cc] ss:$12 sps:$4 sm:$0xff]  }
 0x30c   :  { %v1649_v21 = vsel %vm743_vm5, %v12274_v63, %v1648_v62  ;;  %v10842_v63 = vld [vmem:[#allocation9 + $0x184] ss:$12 sps:$4 sm:$0xff]  }
 0x311   :  { %2394 = vmatmul.mubr.bf16.gmra.mrb[172].mxu0 %v12263_v27  ;;  %v10831_v27 = vld [vmem:[#allocation9 + $0x140] ss:$12 sps:$4 sm:$0xff]  }
 0x312   :  { %2403 = vmatprep.mubr.bf16.mxu0 %v12271_v4  ;;  %v10832_v4 = vld [vmem:[#allocation9 + $0x80] ss:$12 sps:$4 sm:$0xff]   ;;  %9565 = vmatprep.subr.bf16.mxu1 %v10831_v27 }
 0x313   :  { %9566 = vmatpush3.bf16.msra.mxu1 %v10832_v4 }
 0x314   :  { %9567 = vmatprep.subr.bf16.mxu1 %v10833_v38  ;;  %v10888_v38 = vld [vmem:[#allocation9 + $0x290] ss:$12 sps:$4 sm:$0xff]  }
 0x317   :  { %9568 = vmatpush3.bf16.msra.mxu1 %v10837_v31 }
 0x318   :  { %9569 = vmatprep.subr.bf16.mxu1 %v10838_v34 }
 0x319   :  { %2404 = vmatmul.mubr.bf16.gmra.mrb[176].mxu0 %v12278_v32  ;;  %v10830_v32 = vld [vmem:[#allocation9 + $0x154] ss:$12 sps:$4 sm:$0xff]  }
 0x31a   :  { %2413 = vmatprep.mubr.bf16.mxu0 %v1700_v9  ;;  %4375 = vmatprep.subr.bf16.mxu0 %v10830_v32 }
 0x31b   :  { %4376 = vmatpush1.bf16.msra.mxu0 %v10828_v53  ;;  %9570 = vmatpush3.bf16.msra.mxu1 %v10839_v36 }
 0x31c   :  { %4377 = vmatprep.subr.bf16.mxu0 %v10836_v25  ;;  %9649 = vmatprep.subr.bf16.mxu1 %v10876_v35  ;;  %v10849_v35 = vld [vmem:[#allocation9 + $0x1c8] ss:$12 sps:$4 sm:$0xff]  }
 0x31f   :  { %4378 = vmatpush1.bf16.msra.mxu0 %v10834_v49 }
 0x320   :  { %4508 = vmatprep.subr.bf16.mxu0 %v10842_v63 }
 0x321   :  { %2414 = vmatmul.mubr.bf16.gmra.mrb[180].mxu0 %v1649_v21 }
 0x322   :  { %2423 = vmatprep.mubr.bf16.mxu0 %v1699_v60 }
 0x329   :  { %2424 = vmatmul.mubr.bf16.gmra.mrb[184].mxu0 %v1648_v62  ;;  %v10884_v62 = vld [vmem:[#allocation9 + $0x1b8] ss:$12 sps:$4 sm:$0xff]  }
 0x39c   :  { %v2305_v40 = vpop.f32.mrb[136].mxu0 }
 0x39d   :  { %v10001_v11 = vadd.f32 %v2305_v40, %v12324_v10  ;;  %v2307_v7 = vpop.f32.mrb[137].mxu0 }
 0x39e   :  { %v10002_v8 = vadd.f32 %v2307_v7, %v12327_v24  ;;  %v2309_v57 = vpop.f32.mrb[138].mxu0  ;;  %v10889_v7 = vld [vmem:[#allocation9 + $0x1d0] ss:$12 sps:$4 sm:$0xff]  }
 0x39f   :  { %v10003_v13 = vadd.f32 %v2309_v57, %v12324_v10  ;;  %v2311_v15 = vpop.f32.mrb[139].mxu0  ;;  %v2432_v58 = vmax.f32 %v10001_v11, 0.0  ;;  %v10854_v11 = vld [vmem:[#allocation9 + $0x1e4] ss:$12 sps:$4 sm:$0xff]  }
 0x3a0   :  { %v10004_v17 = vadd.f32 %v2311_v15, %v12327_v24  ;;  %v2433_v41 = vmax.f32 %v10002_v8, 0.0 }
 0x3a1   :  { %v2434_v55 = vmax.f32 %v10003_v13, 0.0 }
 0x3a2   :  { %v2435_v1 = vmax.f32 %v10004_v17, 0.0  ;;  %v10890_v17 = vld [vmem:[#allocation9 + $0x2a8] ss:$12 sps:$4 sm:$0xff]  }
 0x3a3   :  { %v12333_v47 = vpack.c.bf16 %v2434_v55, %v2432_v58 }
 0x3a4   :  { %v12335_v6 = vpack.c.bf16 %v2435_v1, %v2433_v41  ;;  %v2315_v33 = vpop.f32.mrb[140].mxu0 }
 0x3a5   :  { %2508 = vst [vmem:[#allocation4] sm:$0xff] %v12333_v47  ;;  %v10005_v51 = vadd.f32 %v2315_v33, %v12324_v10  ;;  %v2317_v20 = vpop.f32.mrb[141].mxu0  ;;  %v2571_v56 = vshll.u32 %v12333_v47, 16  ;;  %v2569_v21 = vshrl.u32 %v12333_v47, 16 }
 0x3a6   :  { %2509 = vst [vmem:[#allocation4 + $0x8] sm:$0xff] %v12335_v6  ;;  %v10006_v29 = vadd.f32 %v2317_v20, %v12327_v24  ;;  %v2319_v0 = vpop.f32.mrb[142].mxu0  ;;  %4379 = vmatprep.mubr.bf16.mxu0 %v12335_v6  ;;  %5023 = vmatprep.mubr.bf16.mxu1 %v12335_v6  ;;  %v2583_v30 = vshll.u32 %v12335_v6, 16  ;;  %v2581_v25 = vshrl.u32 %v12335_v6, 16 }
 0x3a7   :  { %v10007_v22 = vadd.f32 %v2319_v0, %v12324_v10  ;;  %v2321_v18 = vpop.f32.mrb[143].mxu0  ;;  %4380 = vmatmul.mubr.bf16.vlgmr.msra.gmra.mrb[188].mxu0 %v12333_v47  ;;  %5024 = vmatmul.mubr.bf16.vlgmr.msra.gmra.mrb[20].mxu1 %v12333_v47  ;;  %v2436_v26 = vmax.f32 %v10005_v51, 0.0  ;;  %v2573_v52 = vrot.slane %v2571_v56, 1 }
 0x3a8   :  { %v10008_v50 = vadd.f32 %v2321_v18, %v12327_v24  ;;  %4509 = vmatpush1.bf16.msra.mxu0 %v10840_v14  ;;  %9650 = vmatpush3.bf16.msra.mxu1 %v10877_v2  ;;  %v2437_v59 = vmax.f32 %v10006_v29, 0.0  ;;  %v2585_v12 = vrot.slane %v2583_v30, 1  ;;  %v10852_v14 = vld [vmem:[#allocation9 + $0x1e0] ss:$12 sps:$4 sm:$0xff]  }
 0x3a9   :  { %v2438_v23 = vmax.f32 %v10007_v22, 0.0  ;;  %4510 = vmatprep.subr.bf16.mxu0 %v10845_v37  ;;  %9651 = vmatprep.subr.bf16.mxu1 %v10878_v43  ;;  %v2574_v54 = vor.u32 %v2573_v52, %v2569_v21  ;;  %v10857_v37 = vld [vmem:[#allocation9 + $0x1fc] ss:$12 sps:$4 sm:$0xff]   ;;  %v10895_v22 = vld [vmem:[#allocation9 + $0x2c0] ss:$12 sps:$4 sm:$0xff]  }
 0x3aa   :  { %v2439_v39 = vmax.f32 %v10008_v50, 0.0  ;;  %v2586_v8 = vor.u32 %v2585_v12, %v2581_v25  ;;  %v10891_v43 = vld [vmem:[#allocation9 + $0x1e8] ss:$12 sps:$4 sm:$0xff]   ;;  %v10896_v12 = vld [vmem:[#allocation9 + $0x200] ss:$12 sps:$4 sm:$0xff]  }
 0x3ab   :  { %v12349_v60 = vpack.c.bf16 %v2438_v23, %v2436_v26  ;;  %v10860_v21 = vld [vmem:[#allocation9 + $0x214] ss:$12 sps:$4 sm:$0xff]  }
 0x3ac   :  { %v12351_v16 = vpack.c.bf16 %v2439_v39, %v2437_v59  ;;  %v2325_v9 = vpop.f32.mrb[144].mxu0  ;;  %4511 = vmatpush1.bf16.msra.mxu0 %v10843_v28  ;;  %9652 = vmatpush3.bf16.msra.mxu1 %v10882_v42 }
 0x3ad   :  { %14302 = vst [vmem:[#allocation17_spill] sm:$0xff] %v12349_v60  ;;  %v10009_v27 = vadd.f32 %v2325_v9, %v12324_v10  ;;  %v2327_v4 = vpop.f32.mrb[145].mxu0  ;;  %v2576_v32 = vshll.u32 %v12349_v60, 16  ;;  %4512 = vmatprep.subr.bf16.mxu0 %v10848_v3  ;;  %9653 = vmatprep.subr.bf16.mxu1 %v10883_v44  ;;  %v2592_v55 = vshrl.u32 %v12349_v60, 16  ;;  %v10855_v9 = vld [vmem:[#allocation9 + $0x1f8] ss:$12 sps:$4 sm:$0xff]  }
 0x3ae   :  { %14303 = vst [vmem:[#allocation18_spill] sm:$0xff] %v12351_v16  ;;  %v10010_v53 = vadd.f32 %v2327_v4, %v12327_v24  ;;  %v2329_v31 = vpop.f32.mrb[146].mxu0  ;;  %4389 = vmatprep.mubr.bf16.mxu0 %v12351_v16  ;;  %5031 = vmatprep.mubr.bf16.mxu1 %v12351_v16  ;;  %v2588_v34 = vshll.u32 %v12351_v16, 16  ;;  %v2600_v49 = vshrl.u32 %v12351_v16, 16 }
 0x3af   :  { %v10011_v36 = vadd.f32 %v2329_v31, %v12324_v10  ;;  %v2331_v63 = vpop.f32.mrb[147].mxu0  ;;  %4390 = vmatmul.mubr.bf16.gmra.mrb[192].mxu0 %v12349_v60  ;;  %5032 = vmatmul.mubr.bf16.gmra.mrb[24].mxu1 %v12349_v60  ;;  %v2578_v48 = vrot.slane %v2576_v32, 1  ;;  %v2440_v13 = vmax.f32 %v10009_v27, 0.0  ;;  %v2808_v50 = vrot.slane %v2592_v55, 2 }
 0x3b0   :  { %v10012_v40 = vadd.f32 %v2331_v63, %v12327_v24  ;;  %4513 = vmatpush1.bf16.msra.mxu0 %v10846_v45  ;;  %9654 = vmatpush3.bf16.msra.mxu1 %v10884_v62  ;;  %v2590_v57 = vrot.slane %v2588_v34, 1  ;;  %v2441_v41 = vmax.f32 %v10010_v53, 0.0  ;;  %v2820_v6 = vrot.slane %v2600_v49, 2 }
 0x3b1   :  { %v2442_v15 = vmax.f32 %v10011_v36, 0.0  ;;  %4514 = vmatprep.subr.bf16.mxu0 %v10851_v19  ;;  %9655 = vmatprep.subr.bf16.mxu1 %v10888_v38  ;;  %v12367_v58 = vsel %vm626_vm4, %v2574_v54, %v2578_v48  ;;  %v2821_v2 = vrot.slane %v2588_v34, 3  ;;  %v2594_v18 = vor.u32 %v2592_v55, %v2578_v48 }
 0x3b2   :  { %v2443_v1 = vmax.f32 %v10012_v40, 0.0  ;;  %v12371_v47 = vsel %vm626_vm4, %v2586_v8, %v2590_v57  ;;  %v2809_v23 = vrot.slane %v2576_v32, 3  ;;  %v2602_v19 = vor.u32 %v2600_v49, %v2590_v57  ;;  %v10897_v32 = vld [vmem:[#allocation9 + $0x2d8] ss:$12 sps:$4 sm:$0xff]   ;;  %v10858_v40 = vld [vmem:[#allocation9 + $0x210] ss:$12 sps:$4 sm:$0xff]  }
 0x3b3   :  { %v12373_v33 = vpack.c.bf16 %v2442_v15, %v2440_v13  ;;  %v12383_v26 = vor.u32 %v2821_v2, %v2820_v6  ;;  %v10863_v13 = vld [vmem:[#allocation9 + $0x22c] ss:$12 sps:$4 sm:$0xff]   ;;  %v10902_v15 = vld [vmem:[#allocation9 + $0x2f0] ss:$12 sps:$4 sm:$0xff]  }
 0x3b4   :  { %v12375_v51 = vpack.c.bf16 %v2443_v1, %v2441_v41  ;;  %v2335_v20 = vpop.f32.mrb[148].mxu0  ;;  %4515 = vmatpush1.bf16.msra.mxu0 %v10849_v35  ;;  %9656 = vmatpush3.bf16.msra.mxu1 %v10889_v7  ;;  %v12397_v34 = vor.u32 %v2809_v23, %v2808_v50  ;;  %v10903_v50 = vld [vmem:[#allocation9 + $0x230] ss:$12 sps:$4 sm:$0xff]  }
 0x3b5   :  { %v10013_v29 = vadd.f32 %v2335_v20, %v12324_v10  ;;  %v2337_v0 = vpop.f32.mrb[149].mxu0  ;;  %4516 = vmatprep.subr.bf16.mxu0 %v10854_v11  ;;  %9657 = vmatprep.subr.bf16.mxu1 %v10890_v17  ;;  %v2596_v56 = vshll.u32 %v12373_v33, 16  ;;  %v2608_v52 = vshrl.u32 %v12373_v33, 16  ;;  %v10901_v11 = vld [vmem:[#allocation9 + $0x218] ss:$12 sps:$4 sm:$0xff]  }
 0x3b6   :  { %v10014_v30 = vadd.f32 %v2337_v0, %v12327_v24  ;;  %v2339_v28 = vpop.f32.mrb[150].mxu0  ;;  %4399 = vmatprep.mubr.bf16.mxu0 %v12375_v51  ;;  %5039 = vmatprep.mubr.bf16.mxu1 %v12375_v51  ;;  %v2604_v42 = vshll.u32 %v12375_v51, 16  ;;  %v2616_v39 = vshrl.u32 %v12375_v51, 16 }
 0x3b7   :  { %v10015_v3 = vadd.f32 %v2339_v28, %v12324_v10  ;;  %v2341_v44 = vpop.f32.mrb[151].mxu0  ;;  %4400 = vmatmul.mubr.bf16.gmra.mrb[196].mxu0 %v12373_v33  ;;  %5040 = vmatmul.mubr.bf16.gmra.mrb[28].mxu1 %v12373_v33  ;;  %v2598_v59 = vrot.slane %v2596_v56, 1  ;;  %v2444_v27 = vmax.f32 %v10013_v29, 0.0  ;;  %v2824_v35 = vrot.slane %v2608_v52, 2 }
 0x3b8   :  { %v10016_v45 = vadd.f32 %v2341_v44, %v12327_v24  ;;  %4517 = vmatpush1.bf16.msra.mxu0 %v10852_v14  ;;  %9658 = vmatpush3.bf16.msra.mxu1 %v10891_v43  ;;  %v2606_v62 = vrot.slane %v2604_v42, 1  ;;  %v2445_v53 = vmax.f32 %v10014_v30, 0.0  ;;  %v2828_v49 = vrot.slane %v2616_v39, 2  ;;  %v10866_v44 = vld [vmem:[#allocation9 + $0x244] ss:$12 sps:$4 sm:$0xff]  }
 0x3b9   :  { %v2446_v4 = vmax.f32 %v10015_v3, 0.0  ;;  %4518 = vmatprep.subr.bf16.mxu0 %v10857_v37  ;;  %9659 = vmatprep.subr.bf16.mxu1 %v10895_v22  ;;  %v12392_v38 = vsel %vm626_vm4, %v2594_v18, %v2598_v59  ;;  %v2829_v63 = vrot.slane %v2604_v42, 3  ;;  %v2825_v7 = vrot.slane %v2596_v56, 3  ;;  %v10861_v56 = vld [vmem:[#allocation9 + $0x228] ss:$12 sps:$4 sm:$0xff]  }
 0x3ba   :  { %v2447_v31 = vmax.f32 %v10016_v45, 0.0  ;;  %v12395_v25 = vsel %vm626_vm4, %v2602_v19, %v2606_v62  ;;  %v2610_v17 = vor.u32 %v2608_v52, %v2598_v59  ;;  %v2618_v30 = vor.u32 %v2616_v39, %v2606_v62 }
 0x3bb   :  { %v12399_v36 = vpack.c.bf16 %v2446_v4, %v2444_v27  ;;  %v2830_v41 = vor.u32 %v2829_v63, %v2828_v49  ;;  %v2826_v20 = vor.u32 %v2825_v7, %v2824_v35  ;;  %v14244_v49 = vrot.slane %v12351_v16, 3 }
 0x3bc   :  { %v12401_v54 = vpack.c.bf16 %v2447_v31, %v2445_v53  ;;  %v2345_v48 = vpop.f32.mrb[152].mxu0  ;;  %4519 = vmatpush1.bf16.msra.mxu0 %v10855_v9  ;;  %9660 = vmatpush3.bf16.msra.mxu1 %v10896_v12 }
 0x3bd   :  { %v10017_v8 = vadd.f32 %v2345_v48, %v12324_v10  ;;  %v2347_v57 = vpop.f32.mrb[153].mxu0  ;;  %4520 = vmatprep.subr.bf16.mxu0 %v10860_v21  ;;  %9661 = vmatprep.subr.bf16.mxu1 %v10897_v32  ;;  %v2612_v55 = vshll.u32 %v12399_v36, 16  ;;  %v2624_v0 = vshrl.u32 %v12399_v36, 16  ;;  %v12416_v22 = vsel %vm743_vm5, %v12383_v26, %v2830_v41  ;;  %v10864_v32 = vld [vmem:[#allocation9 + $0x240] ss:$12 sps:$4 sm:$0xff]  }
 0x3be   :  { %v10018_v1 = vadd.f32 %v2347_v57, %v12327_v24  ;;  %v2349_v6 = vpop.f32.mrb[154].mxu0  ;;  %4409 = vmatprep.mubr.bf16.mxu0 %v12401_v54  ;;  %5047 = vmatprep.mubr.bf16.mxu1 %v12401_v54  ;;  %v2620_v14 = vshll.u32 %v12401_v54, 16  ;;  %v2632_v2 = vshrl.u32 %v12401_v54, 16  ;;  %v12421_v42 = vsel %vm743_vm5, %v12397_v34, %v2826_v20  ;;  %v10869_v48 = vld [vmem:[#allocation9 + $0x25c] ss:$12 sps:$4 sm:$0xff]  }
 0x3bf   :  { %v10019_v37 = vadd.f32 %v2349_v6, %v12324_v10  ;;  %v2351_v43 = vpop.f32.mrb[155].mxu0  ;;  %4410 = vmatmul.mubr.bf16.gmra.mrb[200].mxu0 %v12399_v36  ;;  %5048 = vmatmul.mubr.bf16.gmra.mrb[32].mxu1 %v12399_v36  ;;  %v2614_v29 = vrot.slane %v2612_v55, 1  ;;  %v2448_v23 = vmax.f32 %v10017_v8, 0.0  ;;  %v2832_v62 = vrot.slane %v2624_v0, 2 }
 0x3c0   :  { %v10020_v18 = vadd.f32 %v2351_v43, %v12327_v24  ;;  %4521 = vmatpush1.bf16.msra.mxu0 %v10858_v40  ;;  %9662 = vmatpush3.bf16.msra.mxu1 %v10901_v11  ;;  %v2622_v28 = vrot.slane %v2620_v14, 1  ;;  %v2836_v52 = vrot.slane %v2632_v2, 2  ;;  %v2449_v45 = vmax.f32 %v10018_v1, 0.0 }
 0x3c1   :  { %v2450_v3 = vmax.f32 %v10019_v37, 0.0  ;;  %4522 = vmatprep.subr.bf16.mxu0 %v10863_v13  ;;  %9663 = vmatprep.subr.bf16.mxu1 %v10902_v15  ;;  %v12424_v59 = vsel %vm626_vm4, %v2610_v17, %v2614_v29  ;;  %v2837_v39 = vrot.slane %v2620_v14, 3  ;;  %v2833_v27 = vrot.slane %v2612_v55, 3 }
 0x3c2   :  { %v2451_v9 = vmax.f32 %v10020_v18, 0.0  ;;  %v12427_v12 = vsel %vm626_vm4, %v2618_v30, %v2622_v28  ;;  %v2626_v53 = vor.u32 %v2624_v0, %v2614_v29  ;;  %v2634_v6 = vor.u32 %v2632_v2, %v2622_v28  ;;  %v10867_v29 = vld [vmem:[#allocation9 + $0x258] ss:$12 sps:$4 sm:$0xff]   ;;  %v10872_v30 = vld [vmem:[#allocation9 + $0x274] ss:$12 sps:$4 sm:$0xff]  }
 0x3c3   :  { %v12429_v19 = vpack.c.bf16 %v2450_v3, %v2448_v23  ;;  %v2838_v31 = vor.u32 %v2837_v39, %v2836_v52  ;;  %v12437_v7 = vor.u32 %v2833_v27, %v2832_v62  ;;  %v14243_v18 = vrot.slane %v12349_v60, 3 }
 0x3c4   :  { %v12431_v4 = vpack.c.bf16 %v2451_v9, %v2449_v45  ;;  %v2355_v21 = vpop.f32.mrb[156].mxu0  ;;  %4523 = vmatpush1.bf16.msra.mxu0 %v10861_v56  ;;  %9664 = vmatpush3.bf16.msra.mxu1 %v10903_v50 }
 0x3c5   :  { %v10021_v63 = vadd.f32 %v2355_v21, %v12324_v10  ;;  %v2357_v35 = vpop.f32.mrb[157].mxu0  ;;  %4524 = vmatprep.subr.bf16.mxu0 %v10866_v44  ;;  %v2628_v40 = vshll.u32 %v12429_v19, 16  ;;  %v2640_v11 = vshrl.u32 %v12429_v19, 16  ;;  %v12445_v17 = vsel %vm743_vm5, %v2830_v41, %v2838_v31  ;;  %v10870_v21 = vld [vmem:[#allocation9 + $0x270] ss:$12 sps:$4 sm:$0xff]  }
 0x3c6   :  { %v10022_v8 = vadd.f32 %v2357_v35, %v12327_v24  ;;  %v2359_v57 = vpop.f32.mrb[158].mxu0  ;;  %4419 = vmatprep.mubr.bf16.mxu0 %v12431_v4  ;;  %5055 = vmatprep.mubr.bf16.mxu1 %v12431_v4  ;;  %v2636_v13 = vshll.u32 %v12431_v4, 16  ;;  %v2648_v15 = vshrl.u32 %v12431_v4, 16  ;;  %v12452_v37 = vsel %vm743_vm5, %v2826_v20, %v12437_v7 }
 0x3c7   :  { %v10023_v55 = vadd.f32 %v2359_v57, %v12324_v10  ;;  %v2361_v1 = vpop.f32.mrb[159].mxu0  ;;  %4420 = vmatmul.mubr.bf16.gmra.mrb[204].mxu0 %v12429_v19  ;;  %5056 = vmatmul.mubr.bf16.gmra.mrb[36].mxu1 %v12429_v19  ;;  %v2630_v14 = vrot.slane %v2628_v40, 1  ;;  %v2452_v56 = vmax.f32 %v10021_v63, 0.0  ;;  %v2840_v44 = vrot.slane %v2640_v11, 2 }
 0x3c8   :  { %v10024_v43 = vadd.f32 %v2361_v1, %v12327_v24  ;;  %4525 = vmatpush1.bf16.msra.mxu0 %v10864_v32  ;;  %v2638_v0 = vrot.slane %v2636_v13, 1  ;;  %v2844_v41 = vrot.slane %v2648_v15, 2  ;;  %v2845_v2 = vrot.slane %v2636_v13, 3 }
 0x3c9   :  { %v2454_v50 = vmax.f32 %v10023_v55, 0.0  ;;  %4526 = vmatprep.subr.bf16.mxu0 %v10869_v48  ;;  %v12457_v23 = vsel %vm626_vm4, %v2626_v53, %v2630_v14  ;;  %v2453_v28 = vmax.f32 %v10022_v8, 0.0  ;;  %v2642_v45 = vor.u32 %v2640_v11, %v2630_v14  ;;  %v10875_v8 = vld [vmem:[#allocation9 + $0x28c] ss:$12 sps:$4 sm:$0xff]  }
 0x3ca   :  { %v2455_v3 = vmax.f32 %v10024_v43, 0.0  ;;  %v12460_v20 = vsel %vm626_vm4, %v2634_v6, %v2638_v0  ;;  %v12464_v9 = vor.u32 %v2845_v2, %v2844_v41  ;;  %v2841_v39 = vrot.slane %v2628_v40, 3  ;;  %v10873_v41 = vld [vmem:[#allocation9 + $0x288] ss:$12 sps:$4 sm:$0xff]  }
 0x3cb   :  { %v12462_v52 = vpack.c.bf16 %v2454_v50, %v2452_v56  ;;  %v2650_v32 = vor.u32 %v2648_v15, %v2638_v0  ;;  %v2982_v53 = vrot.slane %v12375_v51, 3  ;;  %v14246_v63 = vrot.slane %v12373_v33, 3 }
 0x3cc   :  { %v12466_v62 = vpack.c.bf16 %v2455_v3, %v2453_v28  ;;  %v2365_v27 = vpop.f32.mrb[160].mxu0  ;;  %4527 = vmatpush1.bf16.msra.mxu0 %v10867_v29  ;;  %v12475_v40 = vsel %vm743_vm5, %v2838_v31, %v12464_v9  ;;  %v2842_v1 = vor.u32 %v2841_v39, %v2840_v44  ;;  %v14245_v29 = vrot.slane %v12401_v54, 3  ;;  %v10881_v3 = vld [vmem:[#allocation9 + $0x2a4] ss:$12 sps:$4 sm:$0xff]  }
 0x3cd   :  { %v10025_v35 = vadd.f32 %v2365_v27, %v12324_v10  ;;  %v2367_v48 = vpop.f32.mrb[161].mxu0  ;;  %4528 = vmatprep.subr.bf16.mxu0 %v10872_v30  ;;  %v2644_v11 = vshll.u32 %v12462_v52, 16  ;;  %v2656_v57 = vshrl.u32 %v12462_v52, 16  ;;  %14304 = vst [vmem:[#allocation19_spill] sm:$0xff] %v12475_v40 }
 0x3ce   :  { %v10026_v13 = vadd.f32 %v2367_v48, %v12327_v24  ;;  %v2369_v15 = vpop.f32.mrb[162].mxu0  ;;  %4429 = vmatprep.mubr.bf16.mxu0 %v12466_v62  ;;  %5063 = vmatprep.mubr.bf16.mxu1 %v12466_v62  ;;  %v2652_v51 = vshll.u32 %v12466_v62, 16  ;;  %v2664_v55 = vshrl.u32 %v12466_v62, 16  ;;  %v12489_v50 = vsel %vm743_vm5, %v12437_v7, %v2842_v1 }
 0x3cf   :  { %v2456_v6 = vmax.f32 %v10025_v35, 0.0  ;;  %v10027_v14 = vadd.f32 %v2369_v15, %v12324_v10  ;;  %v2371_v43 = vpop.f32.mrb[163].mxu0  ;;  %4430 = vmatmul.mubr.bf16.gmra.mrb[208].mxu0 %v12462_v52  ;;  %5064 = vmatmul.mubr.bf16.gmra.mrb[40].mxu1 %v12462_v52  ;;  %v2646_v31 = vrot.slane %v2644_v11, 1  ;;  %14305 = vst [vmem:[#allocation20_spill] sm:$0xff] %v12489_v50  ;;  %v2848_v30 = vrot.slane %v2656_v57, 2 }
 0x3d0   :  { %v10028_v0 = vadd.f32 %v2371_v43, %v12327_v24  ;;  %4529 = vmatpush1.bf16.msra.mxu0 %v10870_v21  ;;  %v2654_v56 = vrot.slane %v2652_v51, 1  ;;  %v2457_v2 = vmax.f32 %v10026_v13, 0.0  ;;  %v2852_v39 = vrot.slane %v2664_v55, 2 }
 0x3d1   :  { %v2458_v28 = vmax.f32 %v10027_v14, 0.0  ;;  %4530 = vmatprep.subr.bf16.mxu0 %v10875_v8  ;;  %v12492_v44 = vsel %vm626_vm4, %v2642_v45, %v2646_v31  ;;  %v2658_v21 = vor.u32 %v2656_v57, %v2646_v31  ;;  %v2853_v48 = vrot.slane %v2652_v51, 3  ;;  %v10879_v57 = vld [vmem:[#allocation9 + $0x2a0] ss:$12 sps:$4 sm:$0xff]   ;;  %v10887_v31 = vld [vmem:[#allocation9 + $0x2bc] ss:$12 sps:$4 sm:$0xff]  }
 0x3d2   :  { %v2459_v27 = vmax.f32 %v10028_v0, 0.0  ;;  %v12495_v35 = vsel %vm626_vm4, %v2650_v32, %v2654_v56  ;;  %v2849_v43 = vrot.slane %v2644_v11, 3  ;;  %v12502_v7 = vsel %vm415_vm0, %v14244_v49, %v2982_v53 }
 0x3d3   :  { %v12497_v15 = vpack.c.bf16 %v2458_v28, %v2456_v6  ;;  %14306 = vst [vmem:[#allocation21_spill] sm:$0xff] %v12502_v7  ;;  %v12509_v45 = vsel %vm415_vm0, %v14243_v18, %v14246_v63  ;;  %v2666_v13 = vor.u32 %v2664_v55, %v2654_v56  ;;  %v2854_v51 = vor.u32 %v2853_v48, %v2852_v39  ;;  %v10894_v63 = vld [vmem:[#allocation9 + $0x2d4] ss:$12 sps:$4 sm:$0xff]  }
 0x3d4   :  { %14307 = vst [vmem:[#allocation22_spill] sm:$0xff] %v12509_v45  ;;  %v12511_v8 = vpack.c.bf16 %v2459_v27, %v2457_v2  ;;  %v2375_v32 = vpop.f32.mrb[164].mxu0  ;;  %4531 = vmatpush1.bf16.msra.mxu0 %v10873_v41  ;;  %v12516_v11 = vsel %vm415_vm0, %v2982_v53, %v14245_v29  ;;  %v12521_v28 = vor.u32 %v2849_v43, %v2848_v30 }
 0x3d5   :  { %14308 = vst [vmem:[#allocation23_spill] sm:$0xff] %v12516_v11  ;;  %v10029_v6 = vadd.f32 %v2375_v32, %v12324_v10  ;;  %v2377_v14 = vpop.f32.mrb[165].mxu0  ;;  %4532 = vmatprep.subr.bf16.mxu0 %v10881_v3  ;;  %v2660_v0 = vshll.u32 %v12497_v15, 16  ;;  %v2672_v2 = vshrl.u32 %v12497_v15, 16  ;;  %v12530_v3 = vsel %vm743_vm5, %v12464_v9, %v2854_v51  ;;  %v10885_v9 = vld [vmem:[#allocation9 + $0x2b8] ss:$12 sps:$4 sm:$0xff]  }
 0x3d6   :  { %v10030_v41 = vadd.f32 %v2377_v14, %v12327_v24  ;;  %v2379_v55 = vpop.f32.mrb[166].mxu0  ;;  %4439 = vmatprep.mubr.bf16.mxu0 %v12511_v8  ;;  %5071 = vmatprep.mubr.bf16.mxu1 %v12511_v8  ;;  %v2668_v53 = vshll.u32 %v12511_v8, 16  ;;  %v2680_v56 = vshrl.u32 %v12511_v8, 16  ;;  %14309 = vst [vmem:[#allocation24_spill] sm:$0xff] %v12530_v3  ;;  %v12537_v48 = vsel %vm743_vm5, %v2842_v1, %v12521_v28 }
 0x3d7   :  { %v10031_v39 = vadd.f32 %v2379_v55, %v12324_v10  ;;  %v2381_v27 = vpop.f32.mrb[167].mxu0  ;;  %4440 = vmatmul.mubr.bf16.gmra.mrb[212].mxu0 %v12497_v15  ;;  %5072 = vmatmul.mubr.bf16.gmra.mrb[44].mxu1 %v12497_v15  ;;  %v2662_v30 = vrot.slane %v2660_v0, 1  ;;  %14310 = vst [vmem:[#allocation25_spill] sm:$0xff] %v12537_v48  ;;  %v2460_v32 = vmax.f32 %v10029_v6, 0.0  ;;  %v2856_v6 = vrot.slane %v2672_v2, 2 }
 0x3d8   :  { %v10032_v14 = vadd.f32 %v2381_v27, %v12327_v24  ;;  %4533 = vmatpush1.bf16.msra.mxu0 %v10879_v57  ;;  %v2670_v18 = vrot.slane %v2668_v53, 1  ;;  %v2860_v49 = vrot.slane %v2680_v56, 2  ;;  %v2461_v55 = vmax.f32 %v10030_v41, 0.0  ;;  %v10892_v57 = vld [vmem:[#allocation9 + $0x2d0] ss:$12 sps:$4 sm:$0xff]  }
 0x3d9   :  { %v2462_v29 = vmax.f32 %v10031_v39, 0.0  ;;  %4534 = vmatprep.subr.bf16.mxu0 %v10887_v31  ;;  %v12542_v5 = vsel %vm626_vm4, %v2658_v21, %v2662_v30  ;;  %v2861_v46 = vrot.slane %v2668_v53, 3  ;;  %v2674_v43 = vor.u32 %v2672_v2, %v2662_v30 }
 0x3da   :  { %v2463_v11 = vmax.f32 %v10032_v14, 0.0  ;;  %v12545_v1 = vsel %vm626_vm4, %v2666_v13, %v2670_v18  ;;  %v2857_v7 = vrot.slane %v2660_v0, 3  ;;  %v14311_v41 = vrot.slane %v12399_v36, 3  ;;  %v10900_v13 = vld [vmem:[#allocation9 + $0x2ec] ss:$12 sps:$4 sm:$0xff]  }
 0x3db   :  { %v12547_v45 = vpack.c.bf16 %v2462_v29, %v2460_v32  ;;  %v12549_v27 = vor.u32 %v2861_v46, %v2860_v49  ;;  %v14312_v31 = vrot.slane %v12373_v33, 3  ;;  %v2682_v30 = vor.u32 %v2680_v56, %v2670_v18  ;;  %v10940_v32 = vld [vmem:[#allocation9 + $0x3c8] ss:$12 sps:$4 sm:$0xff]  }
 0x3dc   :  { %v12558_v53 = vpack.c.bf16 %v2463_v11, %v2461_v55  ;;  %v2385_v39 = vpop.f32.mrb[168].mxu0  ;;  %4535 = vmatpush1.bf16.msra.mxu0 %v10885_v9  ;;  %v2990_v29 = vrot.slane %v12431_v4, 3  ;;  %v2858_v56 = vor.u32 %v2857_v7, %v2856_v6  ;;  %9743 = vmatprep.subr.bf16.mxu1 %v10940_v32 }
 0x3dd   :  { %v12556_v21 = vsel %vm415_vm0, %v14312_v31, %v14311_v41  ;;  %v10033_v46 = vadd.f32 %v2385_v39, %v12324_v10  ;;  %v2387_v49 = vpop.f32.mrb[169].mxu0  ;;  %4536 = vmatprep.subr.bf16.mxu0 %v10894_v63  ;;  %v2676_v0 = vshll.u32 %v12547_v45, 16  ;;  %v2688_v33 = vshrl.u32 %v12547_v45, 16 }
 0x3de   :  { %14313 = vst [vmem:[#allocation26_spill] sm:$0xff] %v12556_v21  ;;  %v12567_v11 = vsel %vm743_vm5, %v2854_v51, %v12549_v27  ;;  %v10034_v14 = vadd.f32 %v2387_v49, %v12327_v24  ;;  %v2389_v18 = vpop.f32.mrb[170].mxu0  ;;  %4449 = vmatprep.mubr.bf16.mxu0 %v12558_v53  ;;  %5079 = vmatprep.mubr.bf16.mxu1 %v12558_v53  ;;  %v2684_v4 = vshll.u32 %v12558_v53, 16  ;;  %v2696_v63 = vshrl.u32 %v12558_v53, 16  ;;  %v10898_v49 = vld [vmem:[#allocation9 + $0x2e8] ss:$12 sps:$4 sm:$0xff]  }
 0x3df   :  { %14314 = vst [vmem:[#allocation27_spill] sm:$0xff] %v12567_v11  ;;  %v2464_v9 = vmax.f32 %v10033_v46, 0.0  ;;  %v10035_v55 = vadd.f32 %v2389_v18, %v12324_v10  ;;  %v2391_v41 = vpop.f32.mrb[171].mxu0  ;;  %4450 = vmatmul.mubr.bf16.gmra.mrb[216].mxu0 %v12547_v45  ;;  %5080 = vmatmul.mubr.bf16.gmra.mrb[48].mxu1 %v12547_v45  ;;  %v2678_v51 = vrot.slane %v2676_v0, 1  ;;  %v12581_v7 = vsel %vm743_vm5, %v12521_v28, %v2858_v56  ;;  %v10906_v21 = vld [vmem:[#allocation9 + $0x304] ss:$12 sps:$4 sm:$0xff]  }
 0x3e0   :  { %v10036_v39 = vadd.f32 %v2391_v41, %v12327_v24  ;;  %4537 = vmatpush1.bf16.msra.mxu0 %v10892_v57  ;;  %v2686_v2 = vrot.slane %v2684_v4, 1  ;;  %14315 = vst [vmem:[#allocation28_spill] sm:$0xff] %v12581_v7  ;;  %v2864_v6 = vrot.slane %v2688_v33, 2  ;;  %v2465_v46 = vmax.f32 %v10034_v14, 0.0 }
 0x3e1   :  { %v2466_v18 = vmax.f32 %v10035_v55, 0.0  ;;  %4538 = vmatprep.subr.bf16.mxu0 %v10900_v13  ;;  %v12584_v60 = vsel %vm626_vm4, %v2674_v43, %v2678_v51  ;;  %v2868_v61 = vrot.slane %v2696_v63, 2  ;;  %v2690_v57 = vor.u32 %v2688_v33, %v2678_v51 }
 0x3e2   :  { %v2467_v31 = vmax.f32 %v10036_v39, 0.0  ;;  %v12587_v41 = vsel %vm626_vm4, %v2682_v30, %v2686_v2  ;;  %v2869_v16 = vrot.slane %v2684_v4, 3  ;;  %v2865_v11 = vrot.slane %v2676_v0, 3 }
 0x3e3   :  { %v12589_v32 = vpack.c.bf16 %v2466_v18, %v2464_v9  ;;  %v14316_v28 = vrot.slane %v12401_v54, 3  ;;  %v14318_v13 = vrot.slane %v12429_v19, 3  ;;  %v14319_v43 = vrot.slane %v12399_v36, 3 }
 0x3e4   :  { %v12603_v39 = vpack.c.bf16 %v2467_v31, %v2465_v46  ;;  %v2395_v30 = vpop.f32.mrb[172].mxu0  ;;  %4539 = vmatpush1.bf16.msra.mxu0 %v10898_v49  ;;  %v2870_v33 = vor.u32 %v2869_v16, %v2868_v61  ;;  %v14321_v4 = vrot.slane %v12466_v62, 3  ;;  %v14265_v54 = vrot.slane %v12462_v52, 3 }
 0x3e5   :  { %v12594_v14 = vsel %vm415_vm0, %v14316_v28, %v2990_v29  ;;  %v12601_v55 = vsel %vm415_vm0, %v14319_v43, %v14318_v13  ;;  %v10037_v9 = vadd.f32 %v2395_v30, %v12324_v10  ;;  %v2397_v51 = vpop.f32.mrb[173].mxu0  ;;  %4669 = vmatprep.subr.bf16.mxu0 %v10906_v21  ;;  %v2698_v36 = vor.u32 %v2696_v63, %v2686_v2 }
 0x3e6   :  { %14317 = vst [vmem:[#allocation29_spill] sm:$0xff] %v12594_v14  ;;  %14320 = vst [vmem:[#allocation30_spill] sm:$0xff] %v12601_v55  ;;  %v12608_v0 = vsel %vm415_vm0, %v2990_v29, %v14321_v4  ;;  %v2692_v18 = vshll.u32 %v12589_v32, 16  ;;  %v2866_v28 = vor.u32 %v2865_v11, %v2864_v6  ;;  %v10038_v31 = vadd.f32 %v2397_v51, %v12327_v24  ;;  %v2399_v46 = vpop.f32.mrb[174].mxu0 }
 0x3e7   :  { %14322 = vst [vmem:[#allocation31_spill] sm:$0xff] %v12608_v0  ;;  %4459 = vmatprep.mubr.bf16.mxu0 %v12603_v39  ;;  %5087 = vmatprep.mubr.bf16.mxu1 %v12603_v39  ;;  %v2700_v61 = vshll.u32 %v12603_v39, 16  ;;  %v2712_v16 = vshrl.u32 %v12603_v39, 16  ;;  %v12620_v29 = vsel %vm743_vm5, %v12549_v27, %v2870_v33  ;;  %v10039_v21 = vadd.f32 %v2399_v46, %v12324_v10  ;;  %v2401_v2 = vpop.f32.mrb[175].mxu0 }
 0x3e8   :  { %14323 = vst [vmem:[#allocation32_spill] sm:$0xff] %v12620_v29  ;;  %4460 = vmatmul.mubr.bf16.gmra.mrb[220].mxu0 %v12589_v32  ;;  %5088 = vmatmul.mubr.bf16.gmra.mrb[52].mxu1 %v12589_v32  ;;  %v2694_v11 = vrot.slane %v2692_v18, 1  ;;  %v2704_v63 = vshrl.u32 %v12589_v32, 16  ;;  %v12627_v49 = vsel %vm743_vm5, %v2858_v56, %v2866_v28  ;;  %v2468_v6 = vmax.f32 %v10037_v9, 0.0 }
 0x3e9   :  { %14324 = vst [vmem:[#allocation33_spill] sm:$0xff] %v12627_v49  ;;  %v10040_v13 = vadd.f32 %v2401_v2, %v12327_v24  ;;  %v2702_v43 = vrot.slane %v2700_v61, 1  ;;  %v14325_v27 = vrot.slane %v12429_v19, 3  ;;  %v2469_v4 = vmax.f32 %v10038_v31, 0.0 }
 0x3ea   :  { %v2470_v51 = vmax.f32 %v10039_v21, 0.0  ;;  %v12638_v46 = vsel %vm626_vm4, %v2690_v57, %v2694_v11  ;;  %v2876_v0 = vrot.slane %v2712_v16, 2  ;;  %v2706_v9 = vor.u32 %v2704_v63, %v2694_v11 }
 0x3eb   :  { %v12635_v30 = vsel %vm415_vm0, %v14325_v27, %v14265_v54  ;;  %v2471_v55 = vmax.f32 %v10040_v13, 0.0  ;;  %v12641_v56 = vsel %vm626_vm4, %v2698_v36, %v2702_v43  ;;  %v2877_v2 = vrot.slane %v2700_v61, 3 }
 0x3ec   :  { %14326 = vst [vmem:[#allocation34_spill] sm:$0xff] %v12635_v30  ;;  %v12643_v14 = vpack.c.bf16 %v2470_v51, %v2468_v6  ;;  %v2714_v49 = vor.u32 %v2712_v16, %v2702_v43  ;;  %v2872_v29 = vrot.slane %v2704_v63, 2  ;;  %v2873_v19 = vrot.slane %v2692_v18, 3  ;;  %v2405_v27 = vpop.f32.mrb[176].mxu0 }
 0x3ed   :  { %v12645_v7 = vpack.c.bf16 %v2471_v55, %v2469_v4  ;;  %v2878_v31 = vor.u32 %v2877_v2, %v2876_v0  ;;  %v2998_v21 = vrot.slane %v12511_v8, 3  ;;  %v10041_v13 = vadd.f32 %v2405_v27, %v12324_v10  ;;  %v2407_v54 = vpop.f32.mrb[177].mxu0 }
 0x3ee   :  { %v2708_v36 = vshll.u32 %v12643_v14, 16  ;;  %v2874_v11 = vor.u32 %v2873_v19, %v2872_v29  ;;  %v10042_v16 = vadd.f32 %v2407_v54, %v12327_v24  ;;  %v2409_v63 = vpop.f32.mrb[178].mxu0  ;;  %v2720_v29 = vshrl.u32 %v12643_v14, 16 }
 0x3ef   :  { %4469 = vmatprep.mubr.bf16.mxu0 %v12645_v7  ;;  %5095 = vmatprep.mubr.bf16.mxu1 %v12645_v7  ;;  %v2716_v55 = vshll.u32 %v12645_v7, 16  ;;  %v2728_v8 = vshrl.u32 %v12645_v7, 16  ;;  %v12658_v0 = vsel %vm743_vm5, %v2870_v33, %v2878_v31  ;;  %v10043_v18 = vadd.f32 %v2409_v63, %v12324_v10  ;;  %v2411_v6 = vpop.f32.mrb[179].mxu0 }
 0x3f0   :  { %14327 = vst [vmem:[#allocation35_spill] sm:$0xff] %v12658_v0  ;;  %4470 = vmatmul.mubr.bf16.gmra.mrb[224].mxu0 %v12643_v14  ;;  %5096 = vmatmul.mubr.bf16.gmra.mrb[56].mxu1 %v12643_v14  ;;  %v2710_v54 = vrot.slane %v2708_v36, 1  ;;  %v12665_v43 = vsel %vm743_vm5, %v2866_v28, %v2874_v11  ;;  %v2472_v4 = vmax.f32 %v10041_v13, 0.0  ;;  %v10044_v51 = vadd.f32 %v2411_v6, %v12327_v24 }
 0x3f1   :  { %14328 = vst [vmem:[#allocation36_spill] sm:$0xff] %v12665_v43  ;;  %v2718_v2 = vrot.slane %v2716_v55, 1  ;;  %v14329_v33 = vrot.slane %v12466_v62, 3  ;;  %v2473_v27 = vmax.f32 %v10042_v16, 0.0  ;;  %v2474_v63 = vmax.f32 %v10043_v18, 0.0 }
 0x3f2   :  { %v12674_v61 = vsel %vm626_vm4, %v2706_v9, %v2710_v54  ;;  %v2884_v57 = vrot.slane %v2728_v8, 2  ;;  %v2475_v30 = vmax.f32 %v10044_v51, 0.0  ;;  %v2722_v28 = vor.u32 %v2720_v29, %v2710_v54 }
 0x3f3   :  { %v12671_v19 = vsel %vm415_vm0, %v14329_v33, %v2998_v21  ;;  %v12677_v0 = vsel %vm626_vm4, %v2714_v49, %v2718_v2  ;;  %v2885_v13 = vrot.slane %v2716_v55, 3  ;;  %v12679_v43 = vpack.c.bf16 %v2474_v63, %v2472_v4 }
 0x3f4   :  { %14330 = vst [vmem:[#allocation37_spill] sm:$0xff] %v12671_v19  ;;  %v2880_v6 = vrot.slane %v2720_v29, 2  ;;  %v2881_v48 = vrot.slane %v2708_v36, 3  ;;  %v14331_v62 = vrot.slane %v12497_v15, 3  ;;  %v14332_v33 = vrot.slane %v12462_v52, 3  ;;  %v2415_v18 = vpop.f32.mrb[180].mxu0 }
 0x3f5   :  { %v12688_v9 = vpack.c.bf16 %v2475_v30, %v2473_v27  ;;  %v2886_v51 = vor.u32 %v2885_v13, %v2884_v57  ;;  %v14334_v49 = vrot.slane %v12558_v53, 3  ;;  %v14278_v55 = vrot.slane %v12547_v45, 3  ;;  %v2417_v29 = vpop.f32.mrb[181].mxu0 }
 0x3f6   :  { %v12686_v16 = vsel %vm415_vm0, %v14332_v33, %v14331_v62  ;;  %v10045_v36 = vadd.f32 %v2415_v18, %v12324_v10  ;;  %v2730_v4 = vor.u32 %v2728_v8, %v2718_v2  ;;  %v2724_v52 = vshll.u32 %v12679_v43, 16  ;;  %v2419_v30 = vpop.f32.mrb[182].mxu0 }
 0x3f7   :  { %14333 = vst [vmem:[#allocation38_spill] sm:$0xff] %v12686_v16  ;;  %v12693_v54 = vsel %vm415_vm0, %v2998_v21, %v14334_v49  ;;  %v2882_v63 = vor.u32 %v2881_v48, %v2880_v6  ;;  %v10046_v62 = vadd.f32 %v2417_v29, %v12327_v24  ;;  %4479 = vmatprep.mubr.bf16.mxu0 %v12688_v9  ;;  %v2732_v57 = vshll.u32 %v12688_v9, 16  ;;  %v2421_v8 = vpop.f32.mrb[183].mxu0 }
 0x3f8   :  { %14335 = vst [vmem:[#allocation39_spill] sm:$0xff] %v12693_v54  ;;  %5103 = vmatprep.mubr.bf16.mxu1 %v12688_v9  ;;  %v2744_v21 = vshrl.u32 %v12688_v9, 16  ;;  %v12704_v27 = vsel %vm743_vm5, %v2878_v31, %v2886_v51  ;;  %v10047_v13 = vadd.f32 %v2419_v30, %v12324_v10  ;;  %4480 = vmatmul.mubr.bf16.gmra.mrb[228].mxu0 %v12679_v43  ;;  %v2726_v48 = vrot.slane %v2724_v52, 1 }
 0x3f9   :  { %14336 = vst [vmem:[#allocation40_spill] sm:$0xff] %v12704_v27  ;;  %5104 = vmatmul.mubr.bf16.gmra.mrb[60].mxu1 %v12679_v43  ;;  %v2736_v2 = vshrl.u32 %v12679_v43, 16  ;;  %v12711_v6 = vsel %vm743_vm5, %v2874_v11, %v2882_v63  ;;  %v2476_v33 = vmax.f32 %v10045_v36, 0.0  ;;  %v10048_v18 = vadd.f32 %v2421_v8, %v12327_v24 }
 0x3fa   :  { %14337 = vst [vmem:[#allocation41_spill] sm:$0xff] %v12711_v6  ;;  %v2734_v49 = vrot.slane %v2732_v57, 1  ;;  %v14338_v31 = vrot.slane %v12497_v15, 3  ;;  %v2477_v30 = vmax.f32 %v10046_v62, 0.0  ;;  %v2478_v54 = vmax.f32 %v10047_v13, 0.0 }
 0x3fb   :  { %v12722_v16 = vsel %vm626_vm4, %v2722_v28, %v2726_v48  ;;  %v2892_v19 = vrot.slane %v2744_v21, 2  ;;  %v2479_v27 = vmax.f32 %v10048_v18, 0.0  ;;  %v2738_v36 = vor.u32 %v2736_v2, %v2726_v48 }
 0x3fc   :  { %v12719_v29 = vsel %vm415_vm0, %v14338_v31, %v14278_v55  ;;  %v12725_v11 = vsel %vm626_vm4, %v2730_v4, %v2734_v49  ;;  %v2893_v8 = vrot.slane %v2732_v57, 3  ;;  %v12727_v6 = vpack.c.bf16 %v2478_v54, %v2476_v33  ;;  %v2425_v31 = vpop.f32.mrb[184].mxu0 }
 0x3fd   :  { %v2746_v3 = vor.u32 %v2744_v21, %v2734_v49  ;;  %v2888_v50 = vrot.slane %v2736_v2, 2  ;;  %v2889_v15 = vrot.slane %v2724_v52, 3  ;;  %v12729_v40 = vpack.c.bf16 %v2479_v27, %v2477_v30  ;;  %v2427_v55 = vpop.f32.mrb[185].mxu0 }
 0x3fe   :  { %v2894_v62 = vor.u32 %v2893_v8, %v2892_v19  ;;  %v3006_v13 = vrot.slane %v12603_v39, 3  ;;  %v3004_v28 = vrot.slane %v12589_v32, 3  ;;  %v10049_v18 = vadd.f32 %v2425_v31, %v12324_v10  ;;  %v2429_v21 = vpop.f32.mrb[186].mxu0 }
 0x3ff   :  { %v2740_v4 = vshll.u32 %v12727_v6, 16  ;;  %v2890_v48 = vor.u32 %v2889_v15, %v2888_v50  ;;  %v3010_v54 = vrot.slane %v12645_v7, 3  ;;  %v10050_v57 = vadd.f32 %v2427_v55, %v12327_v24  ;;  %4489 = vmatprep.mubr.bf16.mxu0 %v12729_v40  ;;  %5111 = vmatprep.mubr.bf16.mxu1 %v12729_v40  ;;  %v2430_v52 = vpop.f32.mrb[187].mxu0 }
 0x400   :  { %v2748_v19 = vshll.u32 %v12729_v40, 16  ;;  %v2760_v39 = vshrl.u32 %v12729_v40, 16  ;;  %v12742_v32 = vsel %vm743_vm5, %v2886_v51, %v2894_v62  ;;  %v2480_v10 = vmax.f32 %v10049_v18, 0.0  ;;  %4490 = vmatmul.mubr.bf16.gmra.mrb[232].mxu0 %v12727_v6 }
 0x401   :  { %5112 = vmatmul.mubr.bf16.gmra.mrb[64].mxu1 %v12727_v6  ;;  %v12746_v50 = vrot.slane %v2740_v4, 1  ;;  %v2752_v24 = vshrl.u32 %v12727_v6, 16  ;;  %v12750_v7 = vsel %vm743_vm5, %v2882_v63, %v2890_v48  ;;  %v2481_v55 = vmax.f32 %v10050_v57, 0.0 }
 0x402   :  { %v12752_v27 = vrot.slane %v2748_v19, 1  ;;  %v14339_v2 = vrot.slane %v12558_v53, 3  ;;  %v14341_v33 = vrot.slane %v12547_v45, 3  ;;  %v2506_v30 = vpack.c.bf16 %v2480_v10, %v2480_v10 }
 0x403   :  { %v12766_v8 = vsel %vm626_vm4, %v2738_v36, %v12746_v50  ;;  %v2507_v63 = vpack.c.bf16 %v2481_v55, %v2481_v55  ;;  %v2900_v53 = vrot.slane %v2760_v39, 2  ;;  %v2901_v31 = vrot.slane %v2748_v19, 3 }
 0x404   :  { %v12757_v51 = vsel %vm415_vm0, %v14339_v2, %v3006_v13  ;;  %v12762_v49 = vsel %vm415_vm0, %v14341_v33, %v3004_v28  ;;  %v12770_v15 = vsel %vm626_vm4, %v2746_v3, %v12752_v27  ;;  %2532 = vst [vmem:[#allocation4 + $0xc0] sm:$0xf] %v2506_v30  ;;  %v2896_v45 = vrot.slane %v2752_v24, 2  ;;  %v10909_v30 = vld [vmem:[#allocation9 + $0x31c] ss:$12 sps:$4 sm:$0xff]  }
 0x405   :  { %14340 = vst [vmem:[#allocation42_spill] sm:$0xff] %v12757_v51  ;;  %v2897_v18 = vrot.slane %v2740_v4, 3  ;;  %v12777_v57 = vsel %vm415_vm0, %v3006_v13, %v3010_v54  ;;  %2533 = vst [vmem:[#allocation4 + $0xc8] sm:$0xf] %v2507_v63  ;;  %v3008_v36 = vrot.slane %v12643_v14, 3  ;;  %v3014_v21 = vrot.slane %v12688_v9, 3 }
 0x406   :  { %v3012_v3 = vrot.slane %v12679_v43, 3  ;;  %v14280_v10 = vrot.slane %v12729_v40, 3  ;;  %v12783_v52 = vor.u32 %v2901_v31, %v2900_v53  ;;  %v14279_v19 = vrot.slane %v12727_v6, 3  ;;  %v10941_v63 = vld [vmem:[#allocation9 + $0x308] ss:$12 sps:$4 sm:$0xff]  }
 0x407   :  { %v12785_v55 = vor.u32 %v2897_v18, %v2896_v45  ;;  %v12789_v4 = vsel %vm415_vm0, %v3004_v28, %v3008_v36  ;;  %v12792_v13 = vsel %vm415_vm0, %v3010_v54, %v3014_v21  ;;  %v10907_v53 = vld [vmem:[#allocation9 + $0x318] ss:$12 sps:$4 sm:$0xff]   ;;  %v10912_v31 = vld [vmem:[#allocation9 + $0x334] ss:$12 sps:$4 sm:$0xff]  }
 0x408   :  { %v12795_v14 = vsel %vm415_vm0, %v3008_v36, %v3012_v3  ;;  %v12800_v43 = vsel %vm415_vm0, %v3014_v21, %v14280_v10  ;;  %v12804_v9 = vsel %vm743_vm5, %v2894_v62, %v12783_v52  ;;  %v12813_v28 = vsel %vm415_vm0, %v3012_v3, %v14279_v19  ;;  %v10904_v62 = vld [vmem:[#allocation9 + $0x300] ss:$12 sps:$4 sm:$0xff]   ;;  %v10947_v18 = vld [vmem:[#allocation9 + $0x3f8] ss:$12 sps:$4 sm:$0xff]   ;;  %v11049_v10 = vld [vmem:[#allocation11 + $0x54] ss:$8 sps:$4 sm:$0xff]  }
 0x409   :  { %v12808_v2 = vsel %vm743_vm5, %v2890_v48, %v12785_v55  ;;  %v10942_v48 = vld [vmem:[#allocation9 + $0x3e0] ss:$12 sps:$4 sm:$0xff]   ;;  %v10948_v21 = vld [vmem:[#allocation9 + $0x338] ss:$12 sps:$4 sm:$0xff]  }
 0x40a   :  { %v10946_v45 = vld [vmem:[#allocation9 + $0x320] ss:$12 sps:$4 sm:$0xff]   ;;  %v10918_v3 = vld [vmem:[#allocation9 + $0x364] ss:$12 sps:$4 sm:$0xff]  }
 0x40b   :  { %v2558_v33 = vld [vmem:[#allocation4 + $0xc0] sm:$0xf] }
 0x40c   :  { %v2559_v54 = vld [vmem:[#allocation4 + $0xc8] sm:$0xf]  ;;  %v10915_v36 = vld [vmem:[#allocation9 + $0x34c] ss:$12 sps:$4 sm:$0xff]  }
 0x40d   :  { %4499 = vmatprep.mubr.bf16.mxu0 %v2559_v54  ;;  %5119 = vmatprep.mubr.bf16.mxu1 %v2559_v54  ;;  %v10953_v54 = vld [vmem:[#allocation9 + $0x350] ss:$12 sps:$4 sm:$0xff]  }
 0x40e   :  { %4500 = vmatmul.mubr.bf16.gmra.mrb[236].mxu0 %v2558_v33  ;;  %5120 = vmatmul.mubr.bf16.gmra.mrb[68].mxu1 %v2558_v33  ;;  %v10916_v33 = vld [vmem:[#allocation9 + $0x360] ss:$12 sps:$4 sm:$0xff]  }
 0x40f   :  { %4540 = vmatprep.mubr.bf16.mxu0 %v12371_v47  ;;  %5159 = vmatprep.mubr.bf16.mxu1 %v12371_v47  ;;  %v10910_v47 = vld [vmem:[#allocation9 + $0x330] ss:$12 sps:$4 sm:$0xff]  }
 0x416   :  { %4541 = vmatmul.mubr.bf16.vlgmr.msra.gmra.mrb[188].mxu0 %v12367_v58  ;;  %5160 = vmatmul.mubr.bf16.vlgmr.msra.gmra.mrb[72].mxu1 %v12367_v58  ;;  %v10952_v58 = vld [vmem:[#allocation9 + $0x410] ss:$12 sps:$4 sm:$0xff]  }
 0x417   :  { %4670 = vmatpush1.bf16.msra.mxu0 %v10904_v62  ;;  %4550 = vmatprep.mubr.bf16.mxu0 %v12395_v25  ;;  %v10954_v62 = vld [vmem:[#allocation9 + $0x428] ss:$12 sps:$4 sm:$0xff]  }
 0x418   :  { %5167 = vmatprep.mubr.bf16.mxu1 %v12395_v25  ;;  %4671 = vmatprep.subr.bf16.mxu0 %v10909_v30  ;;  %v10913_v25 = vld [vmem:[#allocation9 + $0x348] ss:$12 sps:$4 sm:$0xff]  }
 0x419   :  { %9744 = vmatpush3.bf16.msra.mxu1 %v10941_v63  ;;  %v10921_v30 = vld [vmem:[#allocation9 + $0x37c] ss:$12 sps:$4 sm:$0xff]   ;;  %v10919_v63 = vld [vmem:[#allocation9 + $0x378] ss:$12 sps:$4 sm:$0xff]  }
 0x41a   :  { %9745 = vmatprep.subr.bf16.mxu1 %v10942_v48  ;;  %v10924_v48 = vld [vmem:[#allocation9 + $0x394] ss:$12 sps:$4 sm:$0xff]  }
 0x41b   :  { %4672 = vmatpush1.bf16.msra.mxu0 %v10907_v53  ;;  %v10960_v53 = vld [vmem:[#allocation9 + $0x380] ss:$12 sps:$4 sm:$0xff]  }
 0x41c   :  { %4673 = vmatprep.subr.bf16.mxu0 %v10912_v31  ;;  %v10922_v31 = vld [vmem:[#allocation9 + $0x390] ss:$12 sps:$4 sm:$0xff]  }
 0x41d   :  { %9746 = vmatpush3.bf16.msra.mxu1 %v10946_v45  ;;  %v10961_v45 = vld [vmem:[#allocation9 + $0x458] ss:$12 sps:$4 sm:$0xff]  }
 0x41e   :  { %4551 = vmatmul.mubr.bf16.gmra.mrb[192].mxu0 %v12392_v38  ;;  %5168 = vmatmul.mubr.bf16.gmra.mrb[76].mxu1 %v12392_v38  ;;  %v10955_v38 = vld [vmem:[#allocation9 + $0x368] ss:$12 sps:$4 sm:$0xff]  }
 0x41f   :  { %4560 = vmatprep.mubr.bf16.mxu0 %v12427_v12  ;;  %5175 = vmatprep.mubr.bf16.mxu1 %v12427_v12  ;;  %v10959_v12 = vld [vmem:[#allocation9 + $0x440] ss:$12 sps:$4 sm:$0xff]  }
 0x420   :  { %4674 = vmatpush1.bf16.msra.mxu0 %v10910_v47  ;;  %9747 = vmatprep.subr.bf16.mxu1 %v10947_v18  ;;  %v10927_v47 = vld [vmem:[#allocation9 + $0x3ac] ss:$12 sps:$4 sm:$0xff]   ;;  %v10925_v18 = vld [vmem:[#allocation9 + $0x3a8] ss:$12 sps:$4 sm:$0xff]  }
 0x421   :  { %4675 = vmatprep.subr.bf16.mxu0 %v10915_v36  ;;  %9748 = vmatpush3.bf16.msra.mxu1 %v10948_v21  ;;  %v10930_v36 = vld [vmem:[#allocation9 + $0x3c4] ss:$12 sps:$4 sm:$0xff]  }
 0x422   :  { %9749 = vmatprep.subr.bf16.mxu1 %v10952_v58  ;;  %v10967_v21 = vld [vmem:[#allocation9 + $0x3b0] ss:$12 sps:$4 sm:$0xff]   ;;  %v10928_v58 = vld [vmem:[#allocation9 + $0x3c0] ss:$12 sps:$4 sm:$0xff]  }
 0x424   :  { %4676 = vmatpush1.bf16.msra.mxu0 %v10913_v25  ;;  %v10933_v25 = vld [vmem:[#allocation9 + $0x3dc] ss:$12 sps:$4 sm:$0xff]  }
 0x425   :  { %4677 = vmatprep.subr.bf16.mxu0 %v10918_v3  ;;  %9750 = vmatpush3.bf16.msra.mxu1 %v10953_v54  ;;  %v10934_v3 = vld [vmem:[#allocation9 + $0x3f0] ss:$12 sps:$4 sm:$0xff]   ;;  %v10939_v54 = vld [vmem:[#allocation9 + $0x40c] ss:$12 sps:$4 sm:$0xff]  }
 0x426   :  { %4561 = vmatmul.mubr.bf16.gmra.mrb[196].mxu0 %v12424_v59  ;;  %5176 = vmatmul.mubr.bf16.gmra.mrb[80].mxu1 %v12424_v59  ;;  %v10965_v59 = vld [vmem:[#allocation9 + $0x398] ss:$12 sps:$4 sm:$0xff]  }
 0x427   :  { %4570 = vmatprep.mubr.bf16.mxu0 %v12460_v20  ;;  %5183 = vmatprep.mubr.bf16.mxu1 %v12460_v20  ;;  %v10966_v20 = vld [vmem:[#allocation9 + $0x470] ss:$12 sps:$4 sm:$0xff]  }
 0x428   :  { %4678 = vmatpush1.bf16.msra.mxu0 %v10916_v33  ;;  %9751 = vmatprep.subr.bf16.mxu1 %v10954_v62  ;;  %v10943_v33 = vld [vmem:[#allocation9 + $0x420] ss:$12 sps:$4 sm:$0xff]   ;;  %v10951_v62 = vld [vmem:[#allocation9 + $0x43c] ss:$12 sps:$4 sm:$0xff]  }
 0x429   :  { %4679 = vmatprep.subr.bf16.mxu0 %v10921_v30  ;;  %9752 = vmatpush3.bf16.msra.mxu1 %v10955_v38  ;;  %v10956_v30 = vld [vmem:[#allocation9 + $0x450] ss:$12 sps:$4 sm:$0xff]   ;;  %v10964_v38 = vld [vmem:[#allocation9 + $0x46c] ss:$12 sps:$4 sm:$0xff]  }
 0x42a   :  { %9753 = vmatprep.subr.bf16.mxu1 %v10959_v12  ;;  %v2561_v12 = vld [vmem:[#allocation4 + $0xc8] sm:$0x1f] }
 0x42c   :  { %4680 = vmatpush1.bf16.msra.mxu0 %v10919_v63  ;;  %v2560_v63 = vld [vmem:[#allocation4 + $0xc0] sm:$0x1f] }
 0x42d   :  { %4681 = vmatprep.subr.bf16.mxu0 %v10924_v48  ;;  %9754 = vmatpush3.bf16.msra.mxu1 %v10960_v53  ;;  %v2756_v48 = vshll.u32 %v2560_v63, 16 }
 0x42e   :  { %4571 = vmatmul.mubr.bf16.gmra.mrb[200].mxu0 %v12457_v23  ;;  %5184 = vmatmul.mubr.bf16.gmra.mrb[84].mxu1 %v12457_v23  ;;  %v10931_v23 = vld [vmem:[#allocation9 + $0x3d8] ss:$12 sps:$4 sm:$0xff]  }
 0x42f   :  { %4580 = vmatprep.mubr.bf16.mxu0 %v12495_v35  ;;  %5191 = vmatprep.mubr.bf16.mxu1 %v12495_v35  ;;  %v10936_v35 = vld [vmem:[#allocation9 + $0x3f4] ss:$12 sps:$4 sm:$0xff]   ;;  %v2758_v53 = vrot.slane %v2756_v48, 1  ;;  %v10982_v48 = vld [vmem:[#allocation9 + $0x4e4] ss:$12 sps:$4 sm:$0xff]  }
 0x430   :  { %4682 = vmatpush1.bf16.msra.mxu0 %v10922_v31  ;;  %9755 = vmatprep.subr.bf16.mxu1 %v10961_v45 }
 0x431   :  { %4683 = vmatprep.subr.bf16.mxu0 %v10927_v47  ;;  %9756 = vmatpush3.bf16.msra.mxu1 %v10965_v59  ;;  %v2771_v47 = vshrl.u32 %v2561_v12, 16 }
 0x432   :  { %9757 = vmatprep.subr.bf16.mxu1 %v10966_v20  ;;  %v2562_v20 = vld [vmem:[#allocation4] sm:$0xfc] }
 0x434   :  { %4684 = vmatpush1.bf16.msra.mxu0 %v10925_v18  ;;  %v2801_v18 = vshrl.u32 %v2562_v20, 16 }
 0x435   :  { %4685 = vmatprep.subr.bf16.mxu0 %v10930_v36  ;;  %9758 = vmatpush3.bf16.msra.mxu1 %v10967_v21  ;;  %v2804_v36 = vshll.u32 %v2562_v20, 16  ;;  %v2768_v21 = vshrl.u32 %v2560_v63, 16  ;;  %v10986_v20 = vld [vmem:[#allocation9 + $0x510] ss:$12 sps:$4 sm:$0xff]  }
 0x436   :  { %4581 = vmatmul.mubr.bf16.gmra.mrb[204].mxu0 %v12492_v44  ;;  %5192 = vmatmul.mubr.bf16.gmra.mrb[88].mxu1 %v12492_v44  ;;  %v10937_v44 = vld [vmem:[#allocation9 + $0x408] ss:$12 sps:$4 sm:$0xff]  }
 0x437   :  { %4590 = vmatprep.mubr.bf16.mxu0 %v12545_v1  ;;  %5199 = vmatprep.mubr.bf16.mxu1 %v12545_v1  ;;  %v10945_v1 = vld [vmem:[#allocation9 + $0x424] ss:$12 sps:$4 sm:$0xff]  }
 0x438   :  { %4686 = vmatpush1.bf16.msra.mxu0 %v10928_v58 }
 0x439   :  { %4687 = vmatprep.subr.bf16.mxu0 %v10933_v25  ;;  %v2770_v25 = vor.u32 %v2768_v21, %v2758_v53  ;;  %v14343_v21 = vld [vmem:[#allocation20_spill] sm:$0xff] }
 0x43c   :  { %4688 = vmatpush1.bf16.msra.mxu0 %v10931_v23  ;;  %v2803_v23 = vrot.slane %v2801_v18, 2 }
 0x43d   :  { %4689 = vmatprep.subr.bf16.mxu0 %v10936_v35  ;;  %v2806_v35 = vrot.slane %v2804_v36, 3 }
 0x43e   :  { %4591 = vmatmul.mubr.bf16.gmra.mrb[208].mxu0 %v12542_v5  ;;  %5200 = vmatmul.mubr.bf16.gmra.mrb[92].mxu1 %v12542_v5  ;;  %v10949_v5 = vld [vmem:[#allocation9 + $0x438] ss:$12 sps:$4 sm:$0xff]  }
 0x43f   :  { %4600 = vmatprep.mubr.bf16.mxu0 %v12587_v41  ;;  %5207 = vmatprep.mubr.bf16.mxu1 %v12587_v41  ;;  %v10958_v41 = vld [vmem:[#allocation9 + $0x454] ss:$12 sps:$4 sm:$0xff]  }
 0x440   :  { %4690 = vmatpush1.bf16.msra.mxu0 %v10934_v3  ;;  %v10968_v3 = vld [vmem:[#allocation9 + $0x480] ss:$12 sps:$4 sm:$0xff]  }
 0x441   :  { %4691 = vmatprep.subr.bf16.mxu0 %v10939_v54 }
 0x444   :  { %4692 = vmatpush1.bf16.msra.mxu0 %v10937_v44 }
 0x445   :  { %4693 = vmatprep.subr.bf16.mxu0 %v10945_v1  ;;  %v10973_v1 = vld [vmem:[#allocation9 + $0x49c] ss:$12 sps:$4 sm:$0xff]  }
 0x446   :  { %4601 = vmatmul.mubr.bf16.gmra.mrb[212].mxu0 %v12584_v60  ;;  %5208 = vmatmul.mubr.bf16.gmra.mrb[96].mxu1 %v12584_v60  ;;  %v10962_v60 = vld [vmem:[#allocation9 + $0x468] ss:$12 sps:$4 sm:$0xff]  }
 0x447   :  { %4610 = vmatprep.mubr.bf16.mxu0 %v12641_v56  ;;  %5215 = vmatprep.mubr.bf16.mxu1 %v12641_v56  ;;  %v10970_v56 = vld [vmem:[#allocation9 + $0x484] ss:$12 sps:$4 sm:$0xff]  }
 0x448   :  { %4694 = vmatpush1.bf16.msra.mxu0 %v10943_v33 }
 0x449   :  { %4695 = vmatprep.subr.bf16.mxu0 %v10951_v62 }
 0x44c   :  { %4696 = vmatpush1.bf16.msra.mxu0 %v10949_v5 }
 0x44d   :  { %4697 = vmatprep.subr.bf16.mxu0 %v10958_v41 }
 0x44e   :  { %4611 = vmatmul.mubr.bf16.gmra.mrb[216].mxu0 %v12638_v46  ;;  %5216 = vmatmul.mubr.bf16.gmra.mrb[100].mxu1 %v12638_v46  ;;  %v2764_v46 = vshll.u32 %v2561_v12, 16 }
 0x44f   :  { %4620 = vmatprep.mubr.bf16.mxu0 %v12677_v0  ;;  %5223 = vmatprep.mubr.bf16.mxu1 %v12677_v0 }
 0x450   :  { %4698 = vmatpush1.bf16.msra.mxu0 %v10956_v30  ;;  %v2766_v0 = vrot.slane %v2764_v46, 1 }
 0x451   :  { %4699 = vmatprep.subr.bf16.mxu0 %v10964_v38  ;;  %v10976_v38 = vld [vmem:[#allocation9 + $0x4b4] ss:$12 sps:$4 sm:$0xff]  }
 0x454   :  { %4700 = vmatpush1.bf16.msra.mxu0 %v10962_v60 }
 0x455   :  { %4830 = vmatprep.subr.bf16.mxu0 %v10970_v56  ;;  %v10974_v56 = vld [vmem:[#allocation9 + $0x4b0] ss:$12 sps:$4 sm:$0xff]  }
 0x456   :  { %4621 = vmatmul.mubr.bf16.gmra.mrb[220].mxu0 %v12674_v61  ;;  %5224 = vmatmul.mubr.bf16.gmra.mrb[104].mxu1 %v12674_v61  ;;  %v2762_v61 = vor.u32 %v2760_v39, %v12752_v27  ;;  %v2773_v27 = vor.u32 %v2771_v47, %v2766_v0 }
 0x457   :  { %4630 = vmatprep.mubr.bf16.mxu0 %v12725_v11  ;;  %5231 = vmatprep.mubr.bf16.mxu1 %v12725_v11 }
 0x458   :  { %v2767_v11 = vsel %vm626_vm4, %v2762_v61, %v2766_v0  ;;  %v10979_v0 = vld [vmem:[#allocation9 + $0x4cc] ss:$12 sps:$4 sm:$0xff]   ;;  %v10977_v61 = vld [vmem:[#allocation9 + $0x4c8] ss:$12 sps:$4 sm:$0xff]  }
 0x45e   :  { %4631 = vmatmul.mubr.bf16.gmra.mrb[224].mxu0 %v12722_v16  ;;  %5232 = vmatmul.mubr.bf16.gmra.mrb[108].mxu1 %v12722_v16  ;;  %v2563_v16 = vld [vmem:[#allocation4 + $0x8] sm:$0xfc] }
 0x45f   :  { %4640 = vmatprep.mubr.bf16.mxu0 %v12770_v15  ;;  %5239 = vmatprep.mubr.bf16.mxu1 %v12770_v15  ;;  %v2813_v31 = vshrl.u32 %v2563_v16, 16  ;;  %v2816_v45 = vshll.u32 %v2563_v16, 16  ;;  %v2754_v15 = vor.u32 %v2752_v24, %v12746_v50  ;;  %v2807_v24 = vor.u32 %v2806_v35, %v2803_v23  ;;  %v10989_v35 = vld [vmem:[#allocation9 + $0x528] ss:$12 sps:$4 sm:$0xff]  }
 0x461   :  { %v2759_v39 = vsel %vm626_vm4, %v2754_v15, %v2758_v53  ;;  %v2815_v59 = vrot.slane %v2813_v31, 2  ;;  %v2811_v33 = vsel %vm743_vm5, %v2807_v24, %v12397_v34  ;;  %v10980_v53 = vld [vmem:[#allocation9 + $0x4e0] ss:$12 sps:$4 sm:$0xff]  }
 0x462   :  { %v14342_v15 = vld [vmem:[#allocation19_spill] sm:$0xff] }
 0x466   :  { %4641 = vmatmul.mubr.bf16.gmra.mrb[228].mxu0 %v12766_v8  ;;  %5240 = vmatmul.mubr.bf16.gmra.mrb[112].mxu1 %v12766_v8  ;;  %v2818_v8 = vrot.slane %v2816_v45, 3 }
 0x467   :  { %4650 = vmatprep.mubr.bf16.mxu0 %v2767_v11  ;;  %5247 = vmatprep.mubr.bf16.mxu1 %v2767_v11 }
 0x468   :  { %v2819_v58 = vor.u32 %v2818_v8, %v2815_v59 }
 0x46a   :  { %v2823_v50 = vsel %vm743_vm5, %v2819_v58, %v12383_v26  ;;  %v10971_v26 = vld [vmem:[#allocation9 + $0x498] ss:$12 sps:$4 sm:$0xff]  }
 0x46e   :  { %4651 = vmatmul.mubr.bf16.gmra.mrb[232].mxu0 %v2759_v39  ;;  %5248 = vmatmul.mubr.bf16.gmra.mrb[116].mxu1 %v2759_v39  ;;  %v10983_v39 = vld [vmem:[#allocation9 + $0x4f8] ss:$12 sps:$4 sm:$0xff]  }
 0x46f   :  { %4660 = vmatprep.mubr.bf16.mxu0 %v2773_v27  ;;  %5255 = vmatprep.mubr.bf16.mxu1 %v2773_v27  ;;  %v10988_v27 = vld [vmem:[#allocation9 + $0x514] ss:$12 sps:$4 sm:$0xff]  }
 0x476   :  { %4661 = vmatmul.mubr.bf16.gmra.mrb[236].mxu0 %v2770_v25  ;;  %5256 = vmatmul.mubr.bf16.gmra.mrb[120].mxu1 %v2770_v25  ;;  %v14344_v25 = vld [vmem:[#allocation24_spill] sm:$0xff] }
 0x477   :  { %4701 = vmatprep.mubr.bf16.mxu0 %v2823_v50  ;;  %5295 = vmatprep.mubr.bf16.mxu1 %v2823_v50  ;;  %v10994_v50 = vld [vmem:[#allocation9 + $0x544] ss:$12 sps:$4 sm:$0xff]  }
 0x47a   :  { %v9571_v54 = vpop.f32.mrb[20].mxu1 }
 0x47b   :  { %v9572_v44 = vpop.f32.mrb[21].mxu1 }
 0x47c   :  { %v12871_v62 = vadd.f32 %v9572_v44, %v9571_v54  ;;  %v9574_v5 = vpop.f32.mrb[22].mxu1  ;;  %v10992_v54 = vld [vmem:[#allocation9 + $0x540] ss:$12 sps:$4 sm:$0xff]  }
 0x47d   :  { %v9575_v41 = vpop.f32.mrb[23].mxu1 }
 0x47e   :  { %4702 = vmatmul.mubr.bf16.vlgmr.msra.gmra.mrb[188].mxu0 %v2811_v33  ;;  %5296 = vmatmul.mubr.bf16.vlgmr.msra.gmra.mrb[124].mxu1 %v2811_v33  ;;  %v12874_v30 = vadd.f32 %v9575_v41, %v9574_v5  ;;  %v10997_v33 = vld [vmem:[#allocation9 + $0x55c] ss:$12 sps:$4 sm:$0xff]  }
 0x47f   :  { %4831 = vmatpush1.bf16.msra.mxu0 %v10968_v3  ;;  %4711 = vmatprep.mubr.bf16.mxu0 %v12416_v22  ;;  %v14345_v5 = vld [vmem:[#allocation25_spill] sm:$0xff] }
 0x480   :  { %5303 = vmatprep.mubr.bf16.mxu1 %v12416_v22  ;;  %4832 = vmatprep.subr.bf16.mxu0 %v10973_v1 }
 0x482   :  { %v9577_v60 = vpop.f32.mrb[24].mxu1 }
 0x483   :  { %4833 = vmatpush1.bf16.msra.mxu0 %v10971_v26  ;;  %v9578_v34 = vpop.f32.mrb[25].mxu1  ;;  %v14346_v26 = vld [vmem:[#allocation27_spill] sm:$0xff] }
 0x484   :  { %4834 = vmatprep.subr.bf16.mxu0 %v10976_v38  ;;  %v12877_v12 = vadd.f32 %v9578_v34, %v9577_v60  ;;  %v9580_v46 = vpop.f32.mrb[26].mxu1  ;;  %v10995_v60 = vld [vmem:[#allocation9 + $0x558] ss:$12 sps:$4 sm:$0xff]  }
 0x485   :  { %v9581_v63 = vpop.f32.mrb[27].mxu1 }
 0x486   :  { %4712 = vmatmul.mubr.bf16.gmra.mrb[192].mxu0 %v12421_v42  ;;  %5304 = vmatmul.mubr.bf16.gmra.mrb[128].mxu1 %v12421_v42  ;;  %v12883_v22 = vadd.f32 %v9581_v63, %v9580_v46  ;;  %v10985_v42 = vld [vmem:[#allocation9 + $0x4fc] ss:$12 sps:$4 sm:$0xff]  }
 0x487   :  { %4721 = vmatprep.mubr.bf16.mxu0 %v12445_v17  ;;  %5311 = vmatprep.mubr.bf16.mxu1 %v12445_v17 }
 0x488   :  { %4835 = vmatpush1.bf16.msra.mxu0 %v10974_v56  ;;  %v11000_v56 = vld [vmem:[#allocation9 + $0x574] ss:$12 sps:$4 sm:$0xff]  }
 0x489   :  { %4836 = vmatprep.subr.bf16.mxu0 %v10979_v0  ;;  %v10998_v0 = vld [vmem:[#allocation9 + $0x570] ss:$12 sps:$4 sm:$0xff]  }
 0x48a   :  { %v9583_v11 = vpop.f32.mrb[28].mxu1 }
 0x48b   :  { %v9584_v16 = vpop.f32.mrb[29].mxu1 }
 0x48c   :  { %4837 = vmatpush1.bf16.msra.mxu0 %v10977_v61  ;;  %v12885_v31 = vadd.f32 %v9584_v16, %v9583_v11  ;;  %v9586_v45 = vpop.f32.mrb[30].mxu1  ;;  %v14347_v11 = vld [vmem:[#allocation28_spill] sm:$0xff] }
 0x48d   :  { %4838 = vmatprep.subr.bf16.mxu0 %v10982_v48  ;;  %v9587_v17 = vpop.f32.mrb[31].mxu1  ;;  %v11003_v48 = vld [vmem:[#allocation9 + $0x58c] ss:$12 sps:$4 sm:$0xff]  }
 0x48e   :  { %4722 = vmatmul.mubr.bf16.gmra.mrb[196].mxu0 %v12452_v37  ;;  %5312 = vmatmul.mubr.bf16.gmra.mrb[132].mxu1 %v12452_v37  ;;  %v12891_v47 = vadd.f32 %v9587_v17, %v9586_v45  ;;  %v10991_v37 = vld [vmem:[#allocation9 + $0x52c] ss:$12 sps:$4 sm:$0xff]   ;;  %v11006_v17 = vld [vmem:[#allocation9 + $0x5a4] ss:$12 sps:$4 sm:$0xff]  }
 0x48f   :  { %4731 = vmatprep.mubr.bf16.mxu0 %v14342_v15  ;;  %5319 = vmatprep.mubr.bf16.mxu1 %v14342_v15 }
 0x490   :  { %4839 = vmatpush1.bf16.msra.mxu0 %v10980_v53  ;;  %v14348_v53 = vld [vmem:[#allocation32_spill] sm:$0xff] }
 0x491   :  { %4840 = vmatprep.subr.bf16.mxu0 %v10985_v42  ;;  %v11001_v42 = vld [vmem:[#allocation9 + $0x588] ss:$12 sps:$4 sm:$0xff]  }
 0x492   :  { %v9589_v59 = vpop.f32.mrb[32].mxu1 }
 0x493   :  { %v9590_v8 = vpop.f32.mrb[33].mxu1 }
 0x494   :  { %4841 = vmatpush1.bf16.msra.mxu0 %v10983_v39  ;;  %v12893_v18 = vadd.f32 %v9590_v8, %v9589_v59  ;;  %v9592_v36 = vpop.f32.mrb[34].mxu1 }
 0x495   :  { %4842 = vmatprep.subr.bf16.mxu0 %v10988_v27  ;;  %v9593_v58 = vpop.f32.mrb[35].mxu1  ;;  %v11004_v27 = vld [vmem:[#allocation9 + $0x5a0] ss:$12 sps:$4 sm:$0xff]  }
 0x496   :  { %4732 = vmatmul.mubr.bf16.gmra.mrb[200].mxu0 %v14343_v21  ;;  %5320 = vmatmul.mubr.bf16.gmra.mrb[136].mxu1 %v14343_v21  ;;  %v12899_v23 = vadd.f32 %v9593_v58, %v9592_v36  ;;  %v14349_v36 = vld [vmem:[#allocation33_spill] sm:$0xff]  ;;  %v14350_v21 = vld [vmem:[#allocation35_spill] sm:$0xff] }
 0x497   :  { %4741 = vmatprep.mubr.bf16.mxu0 %v14344_v25  ;;  %5327 = vmatprep.mubr.bf16.mxu1 %v14344_v25  ;;  %v11007_v25 = vld [vmem:[#allocation9 + $0x5b8] ss:$12 sps:$4 sm:$0xff]  }
 0x498   :  { %4843 = vmatpush1.bf16.msra.mxu0 %v10986_v20  ;;  %v11009_v20 = vld [vmem:[#allocation9 + $0x5bc] ss:$12 sps:$4 sm:$0xff]  }
 0x499   :  { %4844 = vmatprep.subr.bf16.mxu0 %v10991_v37 }
 0x49a   :  { %v9595_v24 = vpop.f32.mrb[36].mxu1 }
 0x49b   :  { %v9596_v3 = vpop.f32.mrb[37].mxu1 }
 0x49c   :  { %4845 = vmatpush1.bf16.msra.mxu0 %v10989_v35  ;;  %v12901_v44 = vadd.f32 %v9596_v3, %v9595_v24  ;;  %v9598_v1 = vpop.f32.mrb[38].mxu1  ;;  %v11012_v35 = vld [vmem:[#allocation9 + $0x5d4] ss:$12 sps:$4 sm:$0xff]   ;;  %v11010_v3 = vld [vmem:[#allocation9 + $0x5d0] ss:$12 sps:$4 sm:$0xff]  }
 0x49d   :  { %4846 = vmatprep.subr.bf16.mxu0 %v10994_v50  ;;  %v9599_v41 = vpop.f32.mrb[39].mxu1 }
 0x49e   :  { %4742 = vmatmul.mubr.bf16.gmra.mrb[204].mxu0 %v14345_v5  ;;  %5328 = vmatmul.mubr.bf16.gmra.mrb[140].mxu1 %v14345_v5  ;;  %v12907_v38 = vadd.f32 %v9599_v41, %v9598_v1  ;;  %v14351_v5 = vld [vmem:[#allocation36_spill] sm:$0xff] }
 0x49f   :  { %4751 = vmatprep.mubr.bf16.mxu0 %v14346_v26  ;;  %5335 = vmatprep.mubr.bf16.mxu1 %v14346_v26  ;;  %v14352_v26 = vld [vmem:[#allocation40_spill] sm:$0xff] }
 0x4a0   :  { %4847 = vmatpush1.bf16.msra.mxu0 %v10992_v54 }
 0x4a1   :  { %4848 = vmatprep.subr.bf16.mxu0 %v10997_v33  ;;  %v11015_v33 = vld [vmem:[#allocation9 + $0x5ec] ss:$12 sps:$4 sm:$0xff]  }
 0x4a2   :  { %v9601_v34 = vpop.f32.mrb[40].mxu1 }
 0x4a3   :  { %v9602_v46 = vpop.f32.mrb[41].mxu1 }
 0x4a4   :  { %4849 = vmatpush1.bf16.msra.mxu0 %v10995_v60  ;;  %v12909_v63 = vadd.f32 %v9602_v46, %v9601_v34  ;;  %v9604_v61 = vpop.f32.mrb[42].mxu1  ;;  %v11016_v34 = vld [vmem:[#allocation9 + $0x548] ss:$12 sps:$4 sm:$0xff]  }
 0x4a5   :  { %4850 = vmatprep.subr.bf16.mxu0 %v11000_v56  ;;  %v9605_v16 = vpop.f32.mrb[43].mxu1  ;;  %v11013_v56 = vld [vmem:[#allocation9 + $0x5e8] ss:$12 sps:$4 sm:$0xff]  }
 0x4a6   :  { %4752 = vmatmul.mubr.bf16.gmra.mrb[208].mxu0 %v14347_v11  ;;  %5336 = vmatmul.mubr.bf16.gmra.mrb[144].mxu1 %v14347_v11  ;;  %v12915_v45 = vadd.f32 %v9605_v16, %v9604_v61  ;;  %v14353_v11 = vld [vmem:[#allocation41_spill] sm:$0xff] }
 0x4a7   :  { %4761 = vmatprep.mubr.bf16.mxu0 %v14348_v53  ;;  %5343 = vmatprep.mubr.bf16.mxu1 %v14348_v53 }
 0x4a8   :  { %4851 = vmatpush1.bf16.msra.mxu0 %v10998_v0 }
 0x4a9   :  { %4852 = vmatprep.subr.bf16.mxu0 %v11003_v48 }
 0x4aa   :  { %v9607_v15 = vpop.f32.mrb[44].mxu1 }
 0x4ab   :  { %v9608_v39 = vpop.f32.mrb[45].mxu1 }
 0x4ac   :  { %4853 = vmatpush1.bf16.msra.mxu0 %v11001_v42  ;;  %v12917_v59 = vadd.f32 %v9608_v39, %v9607_v15  ;;  %v9610_v8 = vpop.f32.mrb[46].mxu1  ;;  %v12941_v42 = vld [vmem:[#allocation4 + $0xc8] sm:$0x7f] }
 0x4ad   :  { %4854 = vmatprep.subr.bf16.mxu0 %v11006_v17  ;;  %v9611_v37 = vpop.f32.mrb[47].mxu1  ;;  %v2914_v17 = vshrl.u32 %v12941_v42, 16  ;;  %v2917_v15 = vshll.u32 %v12941_v42, 16 }
 0x4ae   :  { %4762 = vmatmul.mubr.bf16.gmra.mrb[212].mxu0 %v14349_v36  ;;  %5344 = vmatmul.mubr.bf16.gmra.mrb[148].mxu1 %v14349_v36  ;;  %v12923_v58 = vadd.f32 %v9611_v37, %v9610_v8 }
 0x4af   :  { %4771 = vmatprep.mubr.bf16.mxu0 %v14350_v21  ;;  %5351 = vmatprep.mubr.bf16.mxu1 %v14350_v21  ;;  %v2916_v37 = vrot.slane %v2914_v17, 2  ;;  %v12949_v21 = vld [vmem:[#allocation4 + $0xc0] sm:$0x7f]  ;;  %v2567_v17 = vld [vmem:[#allocation4 + $0x8] sm:$0xf8] }
 0x4b0   :  { %4855 = vmatpush1.bf16.msra.mxu0 %v11004_v27 }
 0x4b1   :  { %4856 = vmatprep.subr.bf16.mxu0 %v11009_v20 }
 0x4b2   :  { %v9613_v50 = vpop.f32.mrb[48].mxu1 }
 0x4b3   :  { %v9614_v24 = vpop.f32.mrb[49].mxu1 }
 0x4b4   :  { %4857 = vmatpush1.bf16.msra.mxu0 %v11007_v25  ;;  %v12925_v54 = vadd.f32 %v9614_v24, %v9613_v50  ;;  %v9616_v1 = vpop.f32.mrb[50].mxu1  ;;  %v2908_v50 = vshll.u32 %v12949_v21, 16 }
 0x4b5   :  { %4858 = vmatprep.subr.bf16.mxu0 %v11012_v35  ;;  %v9617_v41 = vpop.f32.mrb[51].mxu1  ;;  %v2905_v35 = vshrl.u32 %v12949_v21, 16 }
 0x4b6   :  { %4772 = vmatmul.mubr.bf16.gmra.mrb[216].mxu0 %v14351_v5  ;;  %5352 = vmatmul.mubr.bf16.gmra.mrb[152].mxu1 %v14351_v5  ;;  %v12931_v60 = vadd.f32 %v9617_v41, %v9616_v1  ;;  %v2910_v41 = vrot.slane %v2908_v50, 3 }
 0x4b7   :  { %4781 = vmatprep.mubr.bf16.mxu0 %v14352_v26  ;;  %5359 = vmatprep.mubr.bf16.mxu1 %v14352_v26  ;;  %v2907_v5 = vrot.slane %v2905_v35, 2  ;;  %v14356_v35 = vld [vmem:[#allocation14_spill] sm:$0xff] }
 0x4b8   :  { %4859 = vmatpush1.bf16.msra.mxu0 %v11010_v3  ;;  %v3318_v50 = vsub.s32 2, %v14356_v35  ;;  %v11022_v35 = vld [vmem:[#allocation9 + $0x590] ss:$12 sps:$4 sm:$0xff]  }
 0x4b9   :  { %4860 = vmatprep.subr.bf16.mxu0 %v11015_v33 }
 0x4bb   :  { %v9619_v46 = vpop.f32.mrb[52].mxu1 }
 0x4bc   :  { %v9620_v0 = vpop.f32.mrb[53].mxu1  ;;  %4861 = vmatpush1.bf16.msra.mxu0 %v11013_v56 }
 0x4bd   :  { %v12933_v61 = vadd.f32 %v9620_v0, %v9619_v46  ;;  %v9622_v48 = vpop.f32.mrb[54].mxu1  ;;  %9837 = vmatprep.subr.bf16.mxu0 %v11016_v34  ;;  %v2911_v34 = vor.u32 %v2910_v41, %v2907_v5  ;;  %v11018_v41 = vld [vmem:[#allocation9 + $0x560] ss:$12 sps:$4 sm:$0xff]  }
 0x4be   :  { %4782 = vmatmul.mubr.bf16.gmra.mrb[220].mxu0 %v14353_v11  ;;  %5360 = vmatmul.mubr.bf16.gmra.mrb[156].mxu1 %v14353_v11  ;;  %v9623_v16 = vpop.f32.mrb[55].mxu1 }
 0x4bf   :  { %4791 = vmatprep.mubr.bf16.mxu0 %v12742_v32  ;;  %5367 = vmatprep.mubr.bf16.mxu1 %v12742_v32  ;;  %v12939_v53 = vadd.f32 %v9623_v16, %v9622_v48  ;;  %v2919_v32 = vrot.slane %v2917_v15, 3  ;;  %v2912_v48 = vsel %vm743_vm5, %v12785_v55, %v2911_v34  ;;  %v2977_v15 = vrot.slane %v2567_v17, 3  ;;  %v2566_v55 = vld [vmem:[#allocation4] sm:$0xf8] }
 0x4c0   :  { %v11020_v17 = vld [vmem:[#allocation9 + $0x578] ss:$12 sps:$4 sm:$0xff]  }
 0x4c1   :  { %v2920_v24 = vor.u32 %v2919_v32, %v2916_v37  ;;  %v2974_v37 = vrot.slane %v2566_v55, 3 }
 0x4c3   :  { %v9625_v39 = vpop.f32.mrb[56].mxu1 }
 0x4c4   :  { %v9626_v27 = vpop.f32.mrb[57].mxu1 }
 0x4c5   :  { %v12945_v8 = vadd.f32 %v9626_v27, %v9625_v39  ;;  %v9628_v20 = vpop.f32.mrb[58].mxu1  ;;  %v14354_v39 = vld [vmem:[#allocation18_spill] sm:$0xff] }
 0x4c6   :  { %4792 = vmatmul.mubr.bf16.gmra.mrb[224].mxu0 %v12750_v7  ;;  %5368 = vmatmul.mubr.bf16.gmra.mrb[160].mxu1 %v12750_v7  ;;  %v9629_v36 = vpop.f32.mrb[59].mxu1  ;;  %v14355_v27 = vrot.slane %v14354_v39, 3 }
 0x4c7   :  { %4801 = vmatprep.mubr.bf16.mxu0 %v12804_v9  ;;  %5375 = vmatprep.mubr.bf16.mxu1 %v12804_v9  ;;  %v12953_v25 = vadd.f32 %v9629_v36, %v9628_v20  ;;  %v2921_v9 = vsel %vm743_vm5, %v12783_v52, %v2920_v24 }
 0x4c8   :  { %v12974_v20 = vsel %vm415_vm0, %v2977_v15, %v14355_v27 }
 0x4cc   :  { %v9631_v3 = vpop.f32.mrb[60].mxu1 }
 0x4cd   :  { %v9632_v1 = vpop.f32.mrb[61].mxu1 }
 0x4ce   :  { %v12957_v33 = vadd.f32 %v9632_v1, %v9631_v3  ;;  %v9634_v7 = vpop.f32.mrb[62].mxu1  ;;  %4802 = vmatmul.mubr.bf16.gmra.mrb[228].mxu0 %v12808_v2  ;;  %5376 = vmatmul.mubr.bf16.gmra.mrb[164].mxu1 %v12808_v2  ;;  %v11017_v1 = vld [vmem:[#allocation9 + $0x488] ss:$12 sps:$4 sm:$0xff]  }
 0x4cf   :  { %v9635_v26 = vpop.f32.mrb[63].mxu1  ;;  %4811 = vmatprep.mubr.bf16.mxu0 %v2921_v9  ;;  %5383 = vmatprep.mubr.bf16.mxu1 %v2921_v9  ;;  %v14358_v9 = vld [vmem:[#allocation17_spill] sm:$0xff] }
 0x4d0   :  { %v12963_v56 = vadd.f32 %v9635_v26, %v9634_v7  ;;  %v12983_v7 = vld [vmem:[%s14237_s9] sm:$0x7]  ;;  %v14359_v26 = vrot.slane %v14358_v9, 3 }
 0x4d1   :  { %14357 = vst [vmem:[#allocation19_spill] sm:$0xff] %v12983_v7  ;;  %v14361_v9 = vld [vmem:[#allocation22_spill] sm:$0xff] }
 0x4d4   :  { %v9637_v46 = vpop.f32.mrb[64].mxu1 }
 0x4d5   :  { %v9638_v0 = vpop.f32.mrb[65].mxu1 }
 0x4d6   :  { %v12967_v11 = vadd.f32 %v9638_v0, %v9637_v46  ;;  %v9640_v16 = vpop.f32.mrb[66].mxu1  ;;  %4812 = vmatmul.mubr.bf16.gmra.mrb[232].mxu0 %v2912_v48  ;;  %5384 = vmatmul.mubr.bf16.gmra.mrb[168].mxu1 %v2912_v48  ;;  %v12992_v46 = vrot.slane %v12983_v7, %v3318_v50  ;;  %v14360_v0 = vld [vmem:[#allocation21_spill] sm:$0xff]  ;;  %v11019_v48 = vld [vmem:[#allocation9 + $0x4a0] ss:$12 sps:$4 sm:$0xff]  }
 0x4d7   :  { %v9641_v2 = vpop.f32.mrb[67].mxu1  ;;  %4821 = vmatprep.mubr.bf16.mxu0 %v2920_v24  ;;  %5391 = vmatprep.mubr.bf16.mxu1 %v2920_v24 }
 0x4d8   :  { %v12969_v52 = vadd.f32 %v9641_v2, %v9640_v16  ;;  %v11032_v16 = vld [vmem:[#allocation11] ss:$8 sps:$4 sm:$0xff]   ;;  %v11034_v2 = vld [vmem:[#allocation11 + $0x4] ss:$8 sps:$4 sm:$0xff]   ;;  %v5026_v27 = vadd.f32 %v12871_v62, %v12992_v46  ;;  %v5029_v50 = vadd.f32 %v12874_v30, %v12992_v46 }
 0x4d9   :  { %7626 = vmatprep.subr.bf16.mxu1 %v11034_v2  ;;  %v14362_v62 = vld [vmem:[#allocation23_spill] sm:$0xff] }
 0x4da   :  { %7627 = vmatpush1.bf16.msra.mxu1 %v11032_v16  ;;  %v11024_v16 = vld [vmem:[#allocation9 + $0x5a8] ss:$12 sps:$4 sm:$0xff]   ;;  %v11040_v30 = vld [vmem:[#allocation11 + $0x24] ss:$8 sps:$4 sm:$0xff]  }
 0x4de   :  { %4822 = vmatmul.mubr.bf16.gmra.mrb[236].mxu0 %v2911_v34  ;;  %5392 = vmatmul.mubr.bf16.gmra.mrb[172].mxu1 %v2911_v34  ;;  %v12988_v34 = vsel %vm415_vm0, %v2974_v37, %v14359_v26  ;;  %v11021_v37 = vld [vmem:[#allocation9 + $0x4b8] ss:$12 sps:$4 sm:$0xff]  }
 0x4df   :  { %4862 = vmatprep.mubr.bf16.mxu0 %v12974_v20 }
 0x4e1   :  { %v9643_v36 = vpop.f32.mrb[68].mxu1 }
 0x4e2   :  { %v9644_v32 = vpop.f32.mrb[69].mxu1 }
 0x4e3   :  { %v12978_v24 = vadd.f32 %v9644_v32, %v9643_v36  ;;  %v9646_v3 = vpop.f32.mrb[70].mxu1 }
 0x4e4   :  { %v9647_v5 = vpop.f32.mrb[71].mxu1 }
 0x4e5   :  { %v11035_v5 = vld [vmem:[#allocation11 + $0x10] ss:$8 sps:$4 sm:$0xff]  }
 0x4e6   :  { %4863 = vmatmul.mubr.bf16.vlgmr.msra.gmra.mrb[188].mxu0 %v12988_v34 }
 0x4e7   :  { %9838 = vmatpush3.bf16.msra.mxu0 %v11017_v1  ;;  %4872 = vmatprep.mubr.bf16.mxu0 %v14360_v0 }
 0x4e8   :  { %9839 = vmatprep.subr.bf16.mxu0 %v11018_v41  ;;  %v11037_v41 = vld [vmem:[#allocation11 + $0x14] ss:$8 sps:$4 sm:$0xff]  }
 0x4e9   :  { %v9665_v15 = vpop.f32.mrb[72].mxu1  ;;  %7628 = vmatprep.subr.bf16.mxu1 %v11037_v41 }
 0x4ea   :  { %v9666_v39 = vpop.f32.mrb[73].mxu1  ;;  %7629 = vmatpush1.bf16.msra.mxu1 %v11035_v5  ;;  %v14363_v5 = vld [vmem:[#allocation26_spill] sm:$0xff] }
 0x4eb   :  { %v9667_v55 = vadd.f32 %v9666_v39, %v9665_v15  ;;  %v9668_v36 = vpop.f32.mrb[74].mxu1  ;;  %9840 = vmatpush3.bf16.msra.mxu0 %v11019_v48  ;;  %v11023_v48 = vld [vmem:[#allocation9 + $0x4d0] ss:$12 sps:$4 sm:$0xff]   ;;  %v5034_v39 = vadd.f32 %v12877_v12, %v12992_v46  ;;  %7630 = vmatprep.subr.bf16.mxu1 %v11040_v30 }
 0x4ec   :  { %v9669_v32 = vpop.f32.mrb[75].mxu1  ;;  %9841 = vmatprep.subr.bf16.mxu0 %v11020_v17  ;;  %v11038_v17 = vld [vmem:[#allocation11 + $0x20] ss:$8 sps:$4 sm:$0xff]   ;;  %v14364_v12 = vld [vmem:[#allocation29_spill] sm:$0xff] }
 0x4ed   :  { %v12999_v3 = vadd.f32 %v9667_v55, %v5026_v27  ;;  %v9670_v1 = vadd.f32 %v9669_v32, %v9668_v36  ;;  %v11025_v36 = vld [vmem:[#allocation9 + $0x4e8] ss:$12 sps:$4 sm:$0xff]  }
 0x4ee   :  { %4873 = vmatmul.mubr.bf16.gmra.mrb[192].mxu0 %v14361_v9  ;;  %7631 = vmatpush1.bf16.msra.mxu1 %v11038_v17  ;;  %v11043_v30 = vld [vmem:[#allocation11 + $0x34] ss:$8 sps:$4 sm:$0xff]  }
 0x4ef   :  { %v13002_v26 = vadd.f32 %v9670_v1, %v5029_v50  ;;  %4882 = vmatprep.mubr.bf16.mxu0 %v14362_v62  ;;  %9842 = vmatpush3.bf16.msra.mxu0 %v11021_v37  ;;  %v11026_v37 = vld [vmem:[#allocation9 + $0x5c0] ss:$12 sps:$4 sm:$0xff]  }
 0x4f0   :  { %9843 = vmatprep.subr.bf16.mxu0 %v11022_v35  ;;  %v5037_v35 = vadd.f32 %v12883_v22, %v12992_v46  ;;  %7632 = vmatprep.subr.bf16.mxu1 %v11043_v30  ;;  %v5042_v22 = vadd.f32 %v12885_v31, %v12992_v46  ;;  %v11044_v31 = vld [vmem:[#allocation11 + $0x40] ss:$8 sps:$4 sm:$0xff]  }
 0x4f1   :  { %v9671_v2 = vpop.f32.mrb[76].mxu1 }
 0x4f2   :  { %v9672_v15 = vpop.f32.mrb[77].mxu1 }
 0x4f3   :  { %v9673_v27 = vadd.f32 %v9672_v15, %v9671_v2  ;;  %v9674_v55 = vpop.f32.mrb[78].mxu1  ;;  %9844 = vmatpush3.bf16.msra.mxu0 %v11023_v48  ;;  %v11027_v48 = vld [vmem:[#allocation9 + $0x500] ss:$12 sps:$4 sm:$0xff]   ;;  %v11041_v2 = vld [vmem:[#allocation11 + $0x30] ss:$8 sps:$4 sm:$0xff]  }
 0x4f4   :  { %v9675_v32 = vpop.f32.mrb[79].mxu1  ;;  %9845 = vmatprep.subr.bf16.mxu0 %v11024_v16  ;;  %v11028_v16 = vld [vmem:[#allocation9 + $0x5d8] ss:$12 sps:$4 sm:$0xff]   ;;  %7633 = vmatpush1.bf16.msra.mxu1 %v11041_v2  ;;  %v14366_v2 = vld [vmem:[#allocation31_spill] sm:$0xff] }
 0x4f5   :  { %v13009_v50 = vadd.f32 %v9673_v27, %v5034_v39  ;;  %v9676_v1 = vadd.f32 %v9675_v32, %v9674_v55  ;;  %v11029_v27 = vld [vmem:[#allocation9 + $0x518] ss:$12 sps:$4 sm:$0xff]   ;;  %v11030_v32 = vld [vmem:[#allocation9 + $0x5f0] ss:$12 sps:$4 sm:$0xff]  }
 0x4f6   :  { %4883 = vmatmul.mubr.bf16.gmra.mrb[196].mxu0 %v14363_v5 }
 0x4f7   :  { %v13012_v41 = vadd.f32 %v9676_v1, %v5037_v35  ;;  %4892 = vmatprep.mubr.bf16.mxu0 %v14364_v12  ;;  %9846 = vmatpush3.bf16.msra.mxu0 %v11025_v36  ;;  %v5045_v36 = vadd.f32 %v12891_v47, %v12992_v46  ;;  %v14365_v1 = vld [vmem:[#allocation30_spill] sm:$0xff]  ;;  %v5050_v47 = vadd.f32 %v12893_v18, %v12992_v46 }
 0x4f8   :  { %9847 = vmatprep.subr.bf16.mxu0 %v11026_v37 }
 0x4f9   :  { %v9677_v15 = vpop.f32.mrb[80].mxu1 }
 0x4fa   :  { %v9678_v19 = vpop.f32.mrb[81].mxu1 }
 0x4fb   :  { %v9679_v17 = vadd.f32 %v9678_v19, %v9677_v15  ;;  %v9680_v39 = vpop.f32.mrb[82].mxu1  ;;  %9848 = vmatpush3.bf16.msra.mxu0 %v11027_v48  ;;  %v11031_v19 = vld [vmem:[#allocation9 + $0x530] ss:$12 sps:$4 sm:$0xff]   ;;  %v11046_v48 = vld [vmem:[#allocation11 + $0x44] ss:$8 sps:$4 sm:$0xff]  }
 0x4fc   :  { %v9681_v55 = vpop.f32.mrb[83].mxu1  ;;  %9849 = vmatprep.subr.bf16.mxu0 %v11028_v16  ;;  %7634 = vmatprep.subr.bf16.mxu1 %v11046_v48  ;;  %v14368_v48 = vld [vmem:[#allocation37_spill] sm:$0xff] }
 0x4fd   :  { %v13019_v35 = vadd.f32 %v9679_v17, %v5042_v22  ;;  %v9682_v37 = vadd.f32 %v9681_v55, %v9680_v39  ;;  %7635 = vmatpush1.bf16.msra.mxu1 %v11044_v31  ;;  %v5053_v55 = vadd.f32 %v12899_v23, %v12992_v46  ;;  %v11047_v31 = vld [vmem:[#allocation11 + $0x50] ss:$8 sps:$4 sm:$0xff]  }
 0x4fe   :  { %4893 = vmatmul.mubr.bf16.gmra.mrb[200].mxu0 %v14365_v1  ;;  %7636 = vmatprep.subr.bf16.mxu1 %v11049_v10  ;;  %v14370_v10 = vld [vmem:[#allocation39_spill] sm:$0xff] }
 0x4ff   :  { %v13022_v30 = vadd.f32 %v9682_v37, %v5045_v36  ;;  %4902 = vmatprep.mubr.bf16.mxu0 %v14366_v2  ;;  %9850 = vmatpush3.bf16.msra.mxu0 %v11029_v27  ;;  %v14367_v37 = vld [vmem:[#allocation34_spill] sm:$0xff] }
 0x500   :  { %9851 = vmatprep.subr.bf16.mxu0 %v11030_v32 }
 0x501   :  { %v9683_v15 = vpop.f32.mrb[84].mxu1  ;;  %7637 = vmatpush1.bf16.msra.mxu1 %v11047_v31  ;;  %v5066_v31 = vadd.f32 %v12909_v63, %v12992_v46  ;;  %v11056_v63 = vld [vmem:[#allocation11 + $0x80] ss:$8 sps:$4 sm:$0xff]  }
 0x502   :  { %v9684_v16 = vpop.f32.mrb[85].mxu1 }
 0x503   :  { %v9685_v22 = vadd.f32 %v9684_v16, %v9683_v15  ;;  %v9686_v17 = vpop.f32.mrb[86].mxu1  ;;  %9852 = vmatpush3.bf16.msra.mxu0 %v11031_v19  ;;  %v5058_v19 = vadd.f32 %v12901_v44, %v12992_v46 }
 0x504   :  { %v9687_v39 = vpop.f32.mrb[87].mxu1 }
 0x505   :  { %v13029_v36 = vadd.f32 %v9685_v22, %v5050_v47  ;;  %v9688_v27 = vadd.f32 %v9687_v39, %v9686_v17  ;;  %v5061_v47 = vadd.f32 %v12907_v38, %v12992_v46  ;;  %v11050_v39 = vld [vmem:[#allocation11 + $0x60] ss:$8 sps:$4 sm:$0xff]  }
 0x506   :  { %4903 = vmatmul.mubr.bf16.gmra.mrb[204].mxu0 %v14367_v37 }
 0x507   :  { %v13032_v32 = vadd.f32 %v9688_v27, %v5053_v55  ;;  %4912 = vmatprep.mubr.bf16.mxu0 %v14368_v48  ;;  %v11052_v55 = vld [vmem:[#allocation11 + $0x64] ss:$8 sps:$4 sm:$0xff]  }
 0x508   :  { %v14369_v27 = vld [vmem:[#allocation38_spill] sm:$0xff]  ;;  %7638 = vmatprep.subr.bf16.mxu1 %v11052_v55 }
 0x509   :  { %v9689_v7 = vpop.f32.mrb[88].mxu1  ;;  %7639 = vmatpush1.bf16.msra.mxu1 %v11050_v39  ;;  %v11058_v39 = vld [vmem:[#allocation11 + $0x84] ss:$8 sps:$4 sm:$0xff]  }
 0x50a   :  { %v9690_v18 = vpop.f32.mrb[89].mxu1 }
 0x50b   :  { %v9691_v15 = vadd.f32 %v9690_v18, %v9689_v7  ;;  %v9692_v23 = vpop.f32.mrb[90].mxu1 }
 0x50c   :  { %v9693_v16 = vpop.f32.mrb[91].mxu1 }
 0x50d   :  { %v13039_v22 = vadd.f32 %v9691_v15, %v5058_v19  ;;  %v9694_v17 = vadd.f32 %v9693_v16, %v9692_v23  ;;  %v5069_v15 = vadd.f32 %v12915_v45, %v12992_v46  ;;  %v5074_v45 = vadd.f32 %v12917_v59, %v12992_v46 }
 0x50e   :  { %4913 = vmatmul.mubr.bf16.gmra.mrb[208].mxu0 %v14369_v27 }
 0x50f   :  { %v13042_v48 = vadd.f32 %v9694_v17, %v5061_v47  ;;  %4922 = vmatprep.mubr.bf16.mxu0 %v14370_v10  ;;  %v11053_v47 = vld [vmem:[#allocation11 + $0x70] ss:$8 sps:$4 sm:$0xff]   ;;  %v11055_v17 = vld [vmem:[#allocation11 + $0x74] ss:$8 sps:$4 sm:$0xff]  }
 0x510   :  { %7640 = vmatprep.subr.bf16.mxu1 %v11055_v17  ;;  %v11059_v17 = vld [vmem:[#allocation11 + $0x90] ss:$8 sps:$4 sm:$0xff]  }
 0x511   :  { %v9695_v44 = vpop.f32.mrb[92].mxu1  ;;  %7641 = vmatpush1.bf16.msra.mxu1 %v11053_v47 }
 0x512   :  { %v9696_v7 = vpop.f32.mrb[93].mxu1  ;;  %7642 = vmatprep.subr.bf16.mxu1 %v11058_v39  ;;  %v11061_v39 = vld [vmem:[#allocation11 + $0x94] ss:$8 sps:$4 sm:$0xff]  }
 0x513   :  { %v9697_v18 = vadd.f32 %v9696_v7, %v9695_v44  ;;  %v9698_v38 = vpop.f32.mrb[94].mxu1 }
 0x514   :  { %v9699_v19 = vpop.f32.mrb[95].mxu1 }
 0x515   :  { %v13049_v23 = vadd.f32 %v9697_v18, %v5066_v31  ;;  %v9700_v16 = vadd.f32 %v9699_v19, %v9698_v38  ;;  %7643 = vmatpush1.bf16.msra.mxu1 %v11056_v63  ;;  %v5077_v19 = vadd.f32 %v12923_v58, %v12992_v46  ;;  %v5082_v63 = vadd.f32 %v12925_v54, %v12992_v46 }
 0x516   :  { %4923 = vmatmul.mubr.bf16.gmra.mrb[212].mxu0 %v12719_v29  ;;  %7644 = vmatprep.subr.bf16.mxu1 %v11061_v39 }
 0x517   :  { %v13052_v55 = vadd.f32 %v9700_v16, %v5069_v15  ;;  %4932 = vmatprep.mubr.bf16.mxu0 %v12757_v51 }
 0x519   :  { %v9701_v44 = vpop.f32.mrb[96].mxu1  ;;  %7645 = vmatpush1.bf16.msra.mxu1 %v11059_v17 }
 0x51a   :  { %v9702_v7 = vpop.f32.mrb[97].mxu1 }
 0x51b   :  { %v9703_v31 = vadd.f32 %v9702_v7, %v9701_v44  ;;  %v9704_v18 = vpop.f32.mrb[98].mxu1 }
 0x51c   :  { %v9705_v38 = vpop.f32.mrb[99].mxu1 }
 0x51d   :  { %v13059_v15 = vadd.f32 %v9703_v31, %v5074_v45  ;;  %v9706_v16 = vadd.f32 %v9705_v38, %v9704_v18  ;;  %v5085_v45 = vadd.f32 %v12931_v60, %v12992_v46 }
 0x51e   :  { %4933 = vmatmul.mubr.bf16.gmra.mrb[216].mxu0 %v12762_v49 }
 0x51f   :  { %v13062_v47 = vadd.f32 %v9706_v16, %v5077_v19  ;;  %4942 = vmatprep.mubr.bf16.mxu0 %v12777_v57  ;;  %v11062_v19 = vld [vmem:[#allocation11 + $0xa0] ss:$8 sps:$4 sm:$0xff]   ;;  %v11064_v16 = vld [vmem:[#allocation11 + $0xa4] ss:$8 sps:$4 sm:$0xff]  }
 0x520   :  { %7646 = vmatprep.subr.bf16.mxu1 %v11064_v16  ;;  %v13086_v16 = vrot.slane %v12941_v42, 3  ;;  %v14372_v42 = vrot.slane %v12729_v40, 3 }
 0x521   :  { %v9707_v51 = vpop.f32.mrb[100].mxu1  ;;  %7647 = vmatpush1.bf16.msra.mxu1 %v11062_v19 }
 0x522   :  { %v9708_v59 = vpop.f32.mrb[101].mxu1  ;;  %14371 = vst [vmem:[#allocation20_spill] sm:$0xff] %v13086_v16 }
 0x523   :  { %v9709_v44 = vadd.f32 %v9708_v59, %v9707_v51  ;;  %v9710_v58 = vpop.f32.mrb[102].mxu1  ;;  %v5090_v51 = vadd.f32 %v12933_v61, %v12992_v46 }
 0x524   :  { %v9711_v7 = vpop.f32.mrb[103].mxu1 }
 0x525   :  { %v13069_v31 = vadd.f32 %v9709_v44, %v5082_v63  ;;  %v9712_v18 = vadd.f32 %v9711_v7, %v9710_v58  ;;  %v5093_v63 = vadd.f32 %v12939_v53, %v12992_v46  ;;  %v5098_v53 = vadd.f32 %v12945_v8, %v12992_v46 }
 0x526   :  { %4943 = vmatmul.mubr.bf16.gmra.mrb[220].mxu0 %v12789_v4 }
 0x527   :  { %v13072_v38 = vadd.f32 %v9712_v18, %v5085_v45  ;;  %4952 = vmatprep.mubr.bf16.mxu0 %v12792_v13  ;;  %v11065_v45 = vld [vmem:[#allocation11 + $0xb0] ss:$8 sps:$4 sm:$0xff]   ;;  %v11067_v18 = vld [vmem:[#allocation11 + $0xb4] ss:$8 sps:$4 sm:$0xff]  }
 0x528   :  { %7648 = vmatprep.subr.bf16.mxu1 %v11067_v18  ;;  %v13105_v18 = vrot.slane %v12949_v21, 3 }
 0x529   :  { %v9713_v17 = vpop.f32.mrb[104].mxu1  ;;  %7649 = vmatpush1.bf16.msra.mxu1 %v11065_v45  ;;  %v13099_v45 = vsel %vm415_vm0, %v14372_v42, %v13086_v16 }
 0x52a   :  { %v9714_v54 = vpop.f32.mrb[105].mxu1 }
 0x52b   :  { %v9715_v39 = vadd.f32 %v9714_v54, %v9713_v17  ;;  %v9716_v60 = vpop.f32.mrb[106].mxu1 }
 0x52c   :  { %v9717_v59 = vpop.f32.mrb[107].mxu1 }
 0x52d   :  { %v13079_v44 = vadd.f32 %v9715_v39, %v5090_v51  ;;  %v9718_v58 = vadd.f32 %v9717_v59, %v9716_v60  ;;  %v5101_v39 = vadd.f32 %v12953_v25, %v12992_v46 }
 0x52e   :  { %4953 = vmatmul.mubr.bf16.gmra.mrb[224].mxu0 %v12795_v14 }
 0x52f   :  { %v13082_v7 = vadd.f32 %v9718_v58, %v5093_v63  ;;  %4962 = vmatprep.mubr.bf16.mxu0 %v12800_v43  ;;  %v11068_v63 = vld [vmem:[#allocation11 + $0xc0] ss:$8 sps:$4 sm:$0xff]   ;;  %v11070_v58 = vld [vmem:[#allocation11 + $0xc4] ss:$8 sps:$4 sm:$0xff]  }
 0x530   :  { %7650 = vmatprep.subr.bf16.mxu1 %v11070_v58 }
 0x531   :  { %v9719_v19 = vpop.f32.mrb[108].mxu1  ;;  %7651 = vmatpush1.bf16.msra.mxu1 %v11068_v63  ;;  %v14373_v63 = vrot.slane %v12727_v6, 3  ;;  %v11076_v6 = vld [vmem:[#allocation11 + $0xe4] ss:$8 sps:$4 sm:$0xff]  }
 0x532   :  { %v9720_v61 = vpop.f32.mrb[109].mxu1 }
 0x533   :  { %v9721_v17 = vadd.f32 %v9720_v61, %v9719_v19  ;;  %v9722_v54 = vpop.f32.mrb[110].mxu1  ;;  %v5106_v61 = vadd.f32 %v12957_v33, %v12992_v46  ;;  %v13117_v21 = vsel %vm415_vm0, %v14373_v63, %v13105_v18 }
 0x534   :  { %v9723_v51 = vpop.f32.mrb[111].mxu1 }
 0x535   :  { %v13092_v60 = vadd.f32 %v9721_v17, %v5098_v53  ;;  %v9724_v59 = vadd.f32 %v9723_v51, %v9722_v54  ;;  %v11071_v54 = vld [vmem:[#allocation11 + $0xd0] ss:$8 sps:$4 sm:$0xff]   ;;  %v11073_v51 = vld [vmem:[#allocation11 + $0xd4] ss:$8 sps:$4 sm:$0xff]  }
 0x536   :  { %4963 = vmatmul.mubr.bf16.gmra.mrb[228].mxu0 %v12813_v28  ;;  %7652 = vmatprep.subr.bf16.mxu1 %v11073_v51 }
 0x537   :  { %v13101_v8 = vadd.f32 %v9724_v59, %v5101_v39  ;;  %4972 = vmatprep.mubr.bf16.mxu0 %v13099_v45  ;;  %v5109_v39 = vadd.f32 %v12963_v56, %v12992_v46  ;;  %7653 = vmatpush1.bf16.msra.mxu1 %v11071_v54  ;;  %v5114_v56 = vadd.f32 %v12967_v11, %v12992_v46 }
 0x538   :  { %7654 = vmatprep.subr.bf16.mxu1 %v11076_v6 }
 0x539   :  { %v9725_v25 = vpop.f32.mrb[112].mxu1 }
 0x53a   :  { %v9726_v19 = vpop.f32.mrb[113].mxu1 }
 0x53b   :  { %v9727_v53 = vadd.f32 %v9726_v19, %v9725_v25  ;;  %v9728_v17 = vpop.f32.mrb[114].mxu1 }
 0x53c   :  { %v9729_v40 = vpop.f32.mrb[115].mxu1 }
 0x53d   :  { %v13111_v59 = vadd.f32 %v9727_v53, %v5106_v61  ;;  %v9730_v58 = vadd.f32 %v9729_v40, %v9728_v17  ;;  %v11074_v53 = vld [vmem:[#allocation11 + $0xe0] ss:$8 sps:$4 sm:$0xff]   ;;  %v5117_v40 = vadd.f32 %v12969_v52, %v12992_v46  ;;  %v11079_v52 = vld [vmem:[#allocation11 + $0xf4] ss:$8 sps:$4 sm:$0xff]  }
 0x53e   :  { %4973 = vmatmul.mubr.bf16.gmra.mrb[232].mxu0 %v13117_v21  ;;  %7655 = vmatpush1.bf16.msra.mxu1 %v11074_v53 }
 0x53f   :  { %v13120_v33 = vadd.f32 %v9730_v58, %v5109_v39  ;;  %4982 = vmatprep.mubr.bf16.mxu0 %v13086_v16  ;;  %v5122_v58 = vadd.f32 %v12978_v24, %v12992_v46  ;;  %v11077_v16 = vld [vmem:[#allocation11 + $0xf0] ss:$8 sps:$4 sm:$0xff]   ;;  %7656 = vmatprep.subr.bf16.mxu1 %v11079_v52 }
 0x541   :  { %v9731_v42 = vpop.f32.mrb[116].mxu1 }
 0x542   :  { %v9732_v25 = vpop.f32.mrb[117].mxu1  ;;  %7657 = vmatpush1.bf16.msra.mxu1 %v11077_v16 }
 0x543   :  { %v9733_v19 = vadd.f32 %v9732_v25, %v9731_v42  ;;  %v9734_v61 = vpop.f32.mrb[118].mxu1 }
 0x544   :  { %v9735_v17 = vpop.f32.mrb[119].mxu1 }
 0x545   :  { %v13127_v63 = vadd.f32 %v9733_v19, %v5114_v56  ;;  %v9736_v51 = vadd.f32 %v9735_v17, %v9734_v61  ;;  %v11082_v17 = vld [vmem:[#allocation11 + $0x104] ss:$8 sps:$4 sm:$0xff]  }
 0x546   :  { %4983 = vmatmul.mubr.bf16.gmra.mrb[236].mxu0 %v13105_v18  ;;  %7787 = vmatprep.subr.bf16.mxu1 %v11082_v17 }
 0x547   :  { %v13130_v54 = vadd.f32 %v9736_v51, %v5117_v40  ;;  %5431 = vmatprep.mubr.bf16.mxu0 %v12974_v20 }
 0x549   :  { %v9737_v11 = vpop.f32.mrb[120].mxu1 }
 0x54a   :  { %v9738_v39 = vpop.f32.mrb[121].mxu1 }
 0x54b   :  { %v9739_v42 = vadd.f32 %v9738_v39, %v9737_v11  ;;  %v9740_v25 = vpop.f32.mrb[122].mxu1 }
 0x54c   :  { %v9741_v56 = vpop.f32.mrb[123].mxu1 }
 0x54d   :  { %v13135_v19 = vadd.f32 %v9739_v42, %v5122_v58 }
 0x54e   :  { %5432 = vmatmul.mubr.bf16.vlgmr.msra.gmra.mrb[240].mxu0 %v12988_v34 }
 0x54f   :  { %5439 = vmatprep.mubr.bf16.mxu0 %v14360_v0 }
 0x551   :  { %v9759_v61 = vpop.f32.mrb[124].mxu1 }
 0x552   :  { %v9760_v20 = vpop.f32.mrb[125].mxu1 }
 0x553   :  { %v9761_v53 = vadd.f32 %v9760_v20, %v9759_v61  ;;  %v9762_v6 = vpop.f32.mrb[126].mxu1 }
 0x554   :  { %v9763_v40 = vpop.f32.mrb[127].mxu1 }
 0x555   :  { %v13140_v24 = vadd.f32 %v9761_v53, %v12999_v3  ;;  %v9764_v46 = vadd.f32 %v9763_v40, %v9762_v6 }
 0x556   :  { %5440 = vmatmul.mubr.bf16.gmra.mrb[244].mxu0 %v14361_v9 }
 0x557   :  { %v13144_v51 = vadd.f32 %v9764_v46, %v13002_v26  ;;  %5447 = vmatprep.mubr.bf16.mxu0 %v14362_v62 }
 0x559   :  { %v9765_v34 = vpop.f32.mrb[128].mxu1 }
 0x55a   :  { %v9766_v0 = vpop.f32.mrb[129].mxu1 }
 0x55b   :  { %v9767_v16 = vadd.f32 %v9766_v0, %v9765_v34  ;;  %v9768_v11 = vpop.f32.mrb[130].mxu1 }
 0x55c   :  { %v9769_v39 = vpop.f32.mrb[131].mxu1 }
 0x55d   :  { %v13148_v58 = vadd.f32 %v9767_v16, %v13009_v50  ;;  %v9770_v42 = vadd.f32 %v9769_v39, %v9768_v11 }
 0x55e   :  { %5448 = vmatmul.mubr.bf16.gmra.mrb[248].mxu0 %v14363_v5 }
 0x55f   :  { %v13152_v3 = vadd.f32 %v9770_v42, %v13012_v41  ;;  %5455 = vmatprep.mubr.bf16.mxu0 %v14364_v12 }
 0x561   :  { %v9771_v9 = vpop.f32.mrb[132].mxu1 }
 0x562   :  { %v9772_v26 = vpop.f32.mrb[133].mxu1 }
 0x563   :  { %v9773_v25 = vadd.f32 %v9772_v26, %v9771_v9  ;;  %v9774_v62 = vpop.f32.mrb[134].mxu1 }
 0x564   :  { %v9775_v52 = vpop.f32.mrb[135].mxu1 }
 0x565   :  { %v13156_v56 = vadd.f32 %v9773_v25, %v13019_v35  ;;  %v9776_v61 = vadd.f32 %v9775_v52, %v9774_v62 }
 0x566   :  { %5456 = vmatmul.mubr.bf16.gmra.mrb[252].mxu0 %v14365_v1  ;;  %v14374_v1 = vld [vmem:[#allocation37_spill] sm:$0xff] }
 0x567   :  { %v13160_v50 = vadd.f32 %v9776_v61, %v13022_v30  ;;  %5463 = vmatprep.mubr.bf16.mxu0 %v14366_v2 }
 0x569   :  { %v9777_v5 = vpop.f32.mrb[136].mxu1 }
 0x56a   :  { %v9778_v41 = vpop.f32.mrb[137].mxu1 }
 0x56b   :  { %v9779_v20 = vadd.f32 %v9778_v41, %v9777_v5  ;;  %v9780_v12 = vpop.f32.mrb[138].mxu1 }
 0x56c   :  { %v9781_v53 = vpop.f32.mrb[139].mxu1 }
 0x56d   :  { %v13164_v6 = vadd.f32 %v9779_v20, %v13029_v36  ;;  %v9782_v17 = vadd.f32 %v9781_v53, %v9780_v12 }
 0x56e   :  { %5464 = vmatmul.mubr.bf16.gmra.mrb[0].mxu0 %v14367_v37 }
 0x56f   :  { %v13168_v35 = vadd.f32 %v9782_v17, %v13032_v32  ;;  %5471 = vmatprep.mubr.bf16.mxu0 %v14374_v1 }
 0x571   :  { %v9783_v30 = vpop.f32.mrb[140].mxu1 }
 0x572   :  { %v9784_v40 = vpop.f32.mrb[141].mxu1 }
 0x573   :  { %v9785_v46 = vadd.f32 %v9784_v40, %v9783_v30  ;;  %v9786_v2 = vpop.f32.mrb[142].mxu1 }
 0x574   :  { %v9787_v34 = vpop.f32.mrb[143].mxu1 }
 0x575   :  { %v13172_v0 = vadd.f32 %v9785_v46, %v13039_v22  ;;  %v9788_v16 = vadd.f32 %v9787_v34, %v9786_v2 }
 0x576   :  { %5472 = vmatmul.mubr.bf16.gmra.mrb[4].mxu0 %v14369_v27  ;;  %v14375_v27 = vld [vmem:[#allocation42_spill] sm:$0xff] }
 0x577   :  { %v13176_v36 = vadd.f32 %v9788_v16, %v13042_v48  ;;  %5479 = vmatprep.mubr.bf16.mxu0 %v14370_v10 }
 0x579   :  { %v9789_v37 = vpop.f32.mrb[144].mxu1 }
 0x57a   :  { %v9790_v32 = vpop.f32.mrb[145].mxu1 }
 0x57b   :  { %v9791_v11 = vadd.f32 %v9790_v32, %v9789_v37  ;;  %v9792_v39 = vpop.f32.mrb[146].mxu1 }
 0x57c   :  { %v9793_v42 = vpop.f32.mrb[147].mxu1 }
 0x57d   :  { %v13180_v9 = vadd.f32 %v9791_v11, %v13049_v23  ;;  %v9794_v26 = vadd.f32 %v9793_v42, %v9792_v39 }
 0x57e   :  { %5480 = vmatmul.mubr.bf16.gmra.mrb[8].mxu0 %v12719_v29 }
 0x57f   :  { %v13184_v22 = vadd.f32 %v9794_v26, %v13052_v55  ;;  %5487 = vmatprep.mubr.bf16.mxu0 %v14375_v27 }
 0x581   :  { %v9795_v48 = vpop.f32.mrb[148].mxu1 }
 0x582   :  { %v9796_v25 = vpop.f32.mrb[149].mxu1 }
 0x583   :  { %v9797_v62 = vadd.f32 %v9796_v25, %v9795_v48  ;;  %v9798_v10 = vpop.f32.mrb[150].mxu1 }
 0x584   :  { %v9799_v52 = vpop.f32.mrb[151].mxu1 }
 0x585   :  { %v13188_v61 = vadd.f32 %v9797_v62, %v13059_v15  ;;  %v9800_v5 = vadd.f32 %v9799_v52, %v9798_v10 }
 0x586   :  { %5488 = vmatmul.mubr.bf16.gmra.mrb[12].mxu0 %v12762_v49 }
 0x587   :  { %v13192_v23 = vadd.f32 %v9800_v5, %v13062_v47  ;;  %5495 = vmatprep.mubr.bf16.mxu0 %v12777_v57 }
 0x589   :  { %v9801_v29 = vpop.f32.mrb[152].mxu1 }
 0x58a   :  { %v9802_v55 = vpop.f32.mrb[153].mxu1 }
 0x58b   :  { %v9803_v41 = vadd.f32 %v9802_v55, %v9801_v29  ;;  %v9804_v20 = vpop.f32.mrb[154].mxu1  ;;  %v14386_v55 = vld [vmem:[#allocation15_spill] sm:$0xff] }
 0x58c   :  { %v9805_v12 = vpop.f32.mrb[155].mxu1 }
 0x58d   :  { %v13196_v53 = vadd.f32 %v9803_v41, %v13069_v31  ;;  %v9806_v17 = vadd.f32 %v9805_v12, %v9804_v20  ;;  %v14387_v41 = vld [vmem:[#allocation19_spill] sm:$0xff] }
 0x58e   :  { %5496 = vmatmul.mubr.bf16.gmra.mrb[16].mxu0 %v12789_v4  ;;  %v13239_v20 = vrot.slane %v14387_v41, %v14386_v55  ;;  %v11106_v55 = vld [vmem:[#allocation11 + $0x184] ss:$8 sps:$4 sm:$0xff]  }
 0x58f   :  { %v13200_v15 = vadd.f32 %v9806_v17, %v13072_v38  ;;  %5503 = vmatprep.mubr.bf16.mxu0 %v12792_v13 }
 0x591   :  { %v9807_v49 = vpop.f32.mrb[156].mxu1 }
 0x592   :  { %v9808_v47 = vpop.f32.mrb[157].mxu1 }
 0x593   :  { %v9809_v1 = vadd.f32 %v9808_v47, %v9807_v49  ;;  %v9810_v57 = vpop.f32.mrb[158].mxu1 }
 0x594   :  { %v9811_v30 = vpop.f32.mrb[159].mxu1 }
 0x595   :  { %v13204_v40 = vadd.f32 %v9809_v1, %v13079_v44  ;;  %v9812_v46 = vadd.f32 %v9811_v30, %v9810_v57 }
 0x596   :  { %5504 = vmatmul.mubr.bf16.gmra.mrb[20].mxu0 %v12795_v14 }
 0x597   :  { %14376 = vst [vmem:[#allocation24_spill] sm:$0xff] %v13204_v40  ;;  %v13208_v31 = vadd.f32 %v9812_v46, %v13082_v7  ;;  %5511 = vmatprep.mubr.bf16.mxu0 %v12800_v43 }
 0x599   :  { %14377 = vst [vmem:[#allocation25_spill] sm:$0xff] %v13208_v31  ;;  %v9813_v4 = vpop.f32.mrb[160].mxu1 }
 0x59a   :  { %v9814_v38 = vpop.f32.mrb[161].mxu1 }
 0x59b   :  { %v9815_v2 = vadd.f32 %v9814_v38, %v9813_v4  ;;  %v9816_v13 = vpop.f32.mrb[162].mxu1 }
 0x59c   :  { %v9817_v34 = vpop.f32.mrb[163].mxu1 }
 0x59d   :  { %v13212_v16 = vadd.f32 %v9815_v2, %v13092_v60  ;;  %v9818_v37 = vadd.f32 %v9817_v34, %v9816_v13 }
 0x59e   :  { %5512 = vmatmul.mubr.bf16.gmra.mrb[24].mxu0 %v12813_v28  ;;  %v14382_v28 = vld [vmem:[#allocation20_spill] sm:$0xff] }
 0x59f   :  { %14378 = vst [vmem:[#allocation27_spill] sm:$0xff] %v13212_v16  ;;  %v13216_v44 = vadd.f32 %v9818_v37, %v13101_v8  ;;  %5519 = vmatprep.mubr.bf16.mxu0 %v13099_v45  ;;  %v11080_v37 = vld [vmem:[#allocation11 + $0x100] ss:$8 sps:$4 sm:$0xff]  }
 0x5a1   :  { %14379 = vst [vmem:[#allocation28_spill] sm:$0xff] %v13216_v44  ;;  %v9819_v14 = vpop.f32.mrb[164].mxu1 }
 0x5a2   :  { %v9820_v7 = vpop.f32.mrb[165].mxu1 }
 0x5a3   :  { %v9821_v32 = vadd.f32 %v9820_v7, %v9819_v14  ;;  %v9822_v43 = vpop.f32.mrb[166].mxu1 }
 0x5a4   :  { %v9823_v11 = vpop.f32.mrb[167].mxu1 }
 0x5a5   :  { %v13220_v39 = vadd.f32 %v9821_v32, %v13111_v59  ;;  %v9824_v42 = vadd.f32 %v9823_v11, %v9822_v43  ;;  %v11085_v32 = vld [vmem:[#allocation11 + $0x114] ss:$8 sps:$4 sm:$0xff]  }
 0x5a6   :  { %5520 = vmatmul.mubr.bf16.gmra.mrb[28].mxu0 %v13117_v21 }
 0x5a7   :  { %14380 = vst [vmem:[#allocation32_spill] sm:$0xff] %v13220_v39  ;;  %v13224_v60 = vadd.f32 %v9824_v42, %v13120_v33  ;;  %5527 = vmatprep.mubr.bf16.mxu0 %v14382_v28 }
 0x5a9   :  { %14381 = vst [vmem:[#allocation33_spill] sm:$0xff] %v13224_v60  ;;  %v9825_v8 = vpop.f32.mrb[168].mxu1 }
 0x5aa   :  { %v9826_v26 = vpop.f32.mrb[169].mxu1 }
 0x5ab   :  { %v9827_v27 = vadd.f32 %v9826_v26, %v9825_v8  ;;  %v9828_v45 = vpop.f32.mrb[170].mxu1 }
 0x5ac   :  { %v9829_v48 = vpop.f32.mrb[171].mxu1 }
 0x5ad   :  { %v13228_v25 = vadd.f32 %v9827_v27, %v13127_v63  ;;  %v9830_v62 = vadd.f32 %v9829_v48, %v9828_v45  ;;  %v14388_v63 = vld [vmem:[#allocation16_spill] sm:$0xff] }
 0x5ae   :  { %5528 = vmatmul.mubr.bf16.gmra.mrb[32].mxu0 %v13105_v18  ;;  %v13243_v12 = vrot.slane %v14387_v41, %v14388_v63  ;;  %v11083_v45 = vld [vmem:[#allocation11 + $0x110] ss:$8 sps:$4 sm:$0xff]  }
 0x5af   :  { %14383 = vst [vmem:[#allocation35_spill] sm:$0xff] %v13228_v25  ;;  %v13232_v59 = vadd.f32 %v9830_v62, %v13130_v54 }
 0x5b1   :  { %14384 = vst [vmem:[#allocation36_spill] sm:$0xff] %v13232_v59  ;;  %v9831_v21 = vpop.f32.mrb[172].mxu1  ;;  %v11112_v59 = vld [vmem:[#allocation11 + $0x1a4] ss:$8 sps:$4 sm:$0xff]  }
 0x5b2   :  { %v9832_v10 = vpop.f32.mrb[173].mxu1 }
 0x5b3   :  { %v9833_v33 = vadd.f32 %v9832_v10, %v9831_v21  ;;  %v9834_v52 = vpop.f32.mrb[174].mxu1  ;;  %v11088_v21 = vld [vmem:[#allocation11 + $0x124] ss:$8 sps:$4 sm:$0xff]  }
 0x5b4   :  { %v9835_v5 = vpop.f32.mrb[175].mxu1 }
 0x5b5   :  { %v13235_v29 = vadd.f32 %v9833_v33, %v13135_v19 }
 0x5b7   :  { %14385 = vst [vmem:[#allocation40_spill] sm:$0xff] %v13235_v29 }
 0x5b9   :  { %v4864_v18 = vpop.f32.mrb[188].mxu0 }
 0x5ba   :  { %v10051_v54 = vadd.f32 %v4864_v18, %v13239_v20  ;;  %v4866_v17 = vpop.f32.mrb[189].mxu0 }
 0x5bb   :  { %v10052_v49 = vadd.f32 %v4866_v17, %v13243_v12  ;;  %v4868_v47 = vpop.f32.mrb[190].mxu0  ;;  %v11086_v17 = vld [vmem:[#allocation11 + $0x120] ss:$8 sps:$4 sm:$0xff]  }
 0x5bc   :  { %v10053_v1 = vadd.f32 %v4868_v47, %v13239_v20  ;;  %v4870_v57 = vpop.f32.mrb[191].mxu0  ;;  %v5535_v30 = vmax.f32 %v10051_v54, 0.0 }
 0x5bd   :  { %v10054_v19 = vadd.f32 %v4870_v57, %v13243_v12  ;;  %v5536_v4 = vmax.f32 %v10052_v49, 0.0 }
 0x5be   :  { %v5538_v46 = vmax.f32 %v10053_v1, 0.0 }
 0x5bf   :  { %v5539_v38 = vmax.f32 %v10054_v19, 0.0  ;;  %v11091_v19 = vld [vmem:[#allocation11 + $0x134] ss:$8 sps:$4 sm:$0xff]  }
 0x5c0   :  { %v5610_v2 = vpack.c.bf16 %v5538_v46, %v5535_v30 }
 0x5c1   :  { %v5611_v13 = vpack.c.bf16 %v5539_v38, %v5536_v4  ;;  %v4874_v34 = vpop.f32.mrb[192].mxu0 }
 0x5c2   :  { %5649 = vst [vmem:[#allocation5] sm:$0xff] %v5610_v2  ;;  %v10055_v14 = vadd.f32 %v4874_v34, %v13239_v20  ;;  %v4876_v7 = vpop.f32.mrb[193].mxu0  ;;  %v5742_v8 = vshll.u32 %v5610_v2, 16  ;;  %v5740_v1 = vshrl.u32 %v5610_v2, 16 }
 0x5c3   :  { %5650 = vst [vmem:[#allocation5 + $0x8] sm:$0xff] %v5611_v13  ;;  %v10056_v43 = vadd.f32 %v4876_v7, %v13243_v12  ;;  %v4878_v11 = vpop.f32.mrb[194].mxu0  ;;  %7658 = vmatprep.mubr.bf16.mxu1 %v5611_v13  ;;  %v5754_v27 = vshll.u32 %v5611_v13, 16  ;;  %v5752_v4 = vshrl.u32 %v5611_v13, 16 }
 0x5c4   :  { %v10057_v42 = vadd.f32 %v4878_v11, %v13239_v20  ;;  %v4880_v28 = vpop.f32.mrb[195].mxu0  ;;  %7659 = vmatmul.mubr.bf16.vlgmr.msra.gmra.mrb[176].mxu1 %v5610_v2  ;;  %v5541_v48 = vmax.f32 %v10055_v14, 0.0  ;;  %v5744_v5 = vrot.slane %v5742_v8, 1  ;;  %v11089_v11 = vld [vmem:[#allocation11 + $0x130] ss:$8 sps:$4 sm:$0xff]  }
 0x5c5   :  { %v10058_v26 = vadd.f32 %v4880_v28, %v13243_v12  ;;  %7788 = vmatpush1.bf16.msra.mxu1 %v11080_v37  ;;  %v5542_v10 = vmax.f32 %v10056_v43, 0.0  ;;  %v5756_v54 = vrot.slane %v5754_v27, 1  ;;  %v11094_v27 = vld [vmem:[#allocation11 + $0x144] ss:$8 sps:$4 sm:$0xff]  }
 0x5c6   :  { %v5544_v62 = vmax.f32 %v10057_v42, 0.0  ;;  %7789 = vmatprep.subr.bf16.mxu1 %v11085_v32  ;;  %v5745_v2 = vor.u32 %v5744_v5, %v5740_v1 }
 0x5c7   :  { %v5545_v33 = vmax.f32 %v10058_v26, 0.0  ;;  %v5757_v7 = vor.u32 %v5756_v54, %v5752_v4 }
 0x5c8   :  { %v13253_v52 = vpack.c.bf16 %v5544_v62, %v5541_v48 }
 0x5c9   :  { %v13255_v41 = vpack.c.bf16 %v5545_v33, %v5542_v10  ;;  %v4884_v18 = vpop.f32.mrb[196].mxu0  ;;  %7790 = vmatpush1.bf16.msra.mxu1 %v11083_v45 }
 0x5ca   :  { %14389 = vst [vmem:[#allocation41_spill] sm:$0xff] %v13253_v52  ;;  %v10059_v49 = vadd.f32 %v4884_v18, %v13239_v20  ;;  %v4886_v47 = vpop.f32.mrb[197].mxu0  ;;  %v5747_v57 = vshll.u32 %v13253_v52, 16  ;;  %7791 = vmatprep.subr.bf16.mxu1 %v11088_v21  ;;  %v5775_v26 = vshrl.u32 %v13253_v52, 16  ;;  %v11092_v18 = vld [vmem:[#allocation11 + $0x140] ss:$8 sps:$4 sm:$0xff]  }
 0x5cb   :  { %14390 = vst [vmem:[#allocation18_spill] sm:$0xff] %v13255_v41  ;;  %v10060_v30 = vadd.f32 %v4886_v47, %v13243_v12  ;;  %v4888_v46 = vpop.f32.mrb[198].mxu0  ;;  %v5759_v38 = vshll.u32 %v13255_v41, 16  ;;  %v5783_v34 = vshrl.u32 %v13255_v41, 16  ;;  %7668 = vmatprep.mubr.bf16.mxu1 %v13255_v41 }
 0x5cc   :  { %v10061_v37 = vadd.f32 %v4888_v46, %v13239_v20  ;;  %v4890_v14 = vpop.f32.mrb[199].mxu0  ;;  %7669 = vmatmul.mubr.bf16.gmra.mrb[180].mxu1 %v13253_v52  ;;  %v5749_v42 = vrot.slane %v5747_v57, 1  ;;  %v5547_v13 = vmax.f32 %v10059_v49, 0.0  ;;  %v6095_v47 = vrot.slane %v5775_v26, 2 }
 0x5cd   :  { %v10062_v32 = vadd.f32 %v4890_v14, %v13243_v12  ;;  %v5761_v43 = vrot.slane %v5759_v38, 1  ;;  %7792 = vmatpush1.bf16.msra.mxu1 %v11086_v17  ;;  %v5548_v28 = vmax.f32 %v10060_v30, 0.0  ;;  %v6107_v21 = vrot.slane %v5783_v34, 2  ;;  %v11097_v30 = vld [vmem:[#allocation11 + $0x154] ss:$8 sps:$4 sm:$0xff]  }
 0x5ce   :  { %v5550_v8 = vmax.f32 %v10061_v37, 0.0  ;;  %7793 = vmatprep.subr.bf16.mxu1 %v11091_v19  ;;  %v13268_v48 = vsel %vm626_vm4, %v5745_v2, %v5749_v42  ;;  %v6108_v54 = vrot.slane %v5759_v38, 3  ;;  %v6096_v1 = vrot.slane %v5747_v57, 3 }
 0x5cf   :  { %v5551_v45 = vmax.f32 %v10062_v32, 0.0  ;;  %v13271_v62 = vsel %vm626_vm4, %v5757_v7, %v5761_v43  ;;  %v5777_v14 = vor.u32 %v5775_v26, %v5749_v42  ;;  %v11100_v26 = vld [vmem:[#allocation11 + $0x164] ss:$8 sps:$4 sm:$0xff]  }
 0x5d0   :  { %14391 = vst [vmem:[#allocation14_spill] sm:$0xff] %v13271_v62  ;;  %v13273_v10 = vpack.c.bf16 %v5550_v8, %v5547_v13  ;;  %v13282_v2 = vor.u32 %v6108_v54, %v6107_v21  ;;  %v5785_v8 = vor.u32 %v5783_v34, %v5761_v43 }
 0x5d1   :  { %v13275_v33 = vpack.c.bf16 %v5551_v45, %v5548_v28  ;;  %v4894_v5 = vpop.f32.mrb[200].mxu0  ;;  %7794 = vmatpush1.bf16.msra.mxu1 %v11089_v11  ;;  %v11095_v28 = vld [vmem:[#allocation11 + $0x150] ss:$8 sps:$4 sm:$0xff]  }
 0x5d2   :  { %v10063_v17 = vadd.f32 %v4894_v5, %v13239_v20  ;;  %v4896_v49 = vpop.f32.mrb[201].mxu0  ;;  %v5779_v19 = vshll.u32 %v13273_v10, 16  ;;  %7795 = vmatprep.subr.bf16.mxu1 %v11094_v27  ;;  %14392 = vst [vmem:[#allocation17_spill] sm:$0xff] %v13282_v2  ;;  %v5799_v57 = vshrl.u32 %v13273_v10, 16 }
 0x5d3   :  { %v10064_v46 = vadd.f32 %v4896_v49, %v13243_v12  ;;  %v4898_v4 = vpop.f32.mrb[202].mxu0  ;;  %v5787_v37 = vshll.u32 %v13275_v33, 16  ;;  %7678 = vmatprep.mubr.bf16.mxu1 %v13275_v33  ;;  %v5807_v32 = vshrl.u32 %v13275_v33, 16 }
 0x5d4   :  { %v10065_v38 = vadd.f32 %v4898_v4, %v13239_v20  ;;  %v4900_v7 = vpop.f32.mrb[203].mxu0  ;;  %7679 = vmatmul.mubr.bf16.gmra.mrb[184].mxu1 %v13273_v10  ;;  %v5781_v11 = vrot.slane %v5779_v19, 1  ;;  %v5553_v45 = vmax.f32 %v10063_v17, 0.0  ;;  %v13295_v4 = vor.u32 %v6096_v1, %v6095_v47 }
 0x5d5   :  { %v10066_v13 = vadd.f32 %v4900_v7, %v13243_v12  ;;  %7796 = vmatpush1.bf16.msra.mxu1 %v11092_v18  ;;  %v5789_v27 = vrot.slane %v5787_v37, 1  ;;  %v5554_v5 = vmax.f32 %v10064_v46, 0.0  ;;  %v6127_v18 = vrot.slane %v5807_v32, 2 }
 0x5d6   :  { %v5556_v42 = vmax.f32 %v10065_v38, 0.0  ;;  %7797 = vmatprep.subr.bf16.mxu1 %v11097_v30  ;;  %v13290_v21 = vsel %vm626_vm4, %v5777_v14, %v5781_v11  ;;  %14394 = vst [vmem:[#allocation22_spill] sm:$0xff] %v13295_v4  ;;  %v6128_v7 = vrot.slane %v5787_v37, 3  ;;  %v6123_v34 = vrot.slane %v5799_v57, 2  ;;  %v11098_v30 = vld [vmem:[#allocation11 + $0x160] ss:$8 sps:$4 sm:$0xff]  }
 0x5d7   :  { %v5557_v54 = vmax.f32 %v10066_v13, 0.0  ;;  %v13293_v49 = vsel %vm626_vm4, %v5785_v8, %v5789_v27  ;;  %v6124_v38 = vrot.slane %v5779_v19, 3  ;;  %v11103_v8 = vld [vmem:[#allocation11 + $0x174] ss:$8 sps:$4 sm:$0xff]   ;;  %v5801_v47 = vor.u32 %v5799_v57, %v5781_v11 }
 0x5d8   :  { %14393 = vst [vmem:[#allocation21_spill] sm:$0xff] %v13293_v49  ;;  %v13297_v63 = vpack.c.bf16 %v5556_v42, %v5553_v45  ;;  %v6129_v1 = vor.u32 %v6128_v7, %v6127_v18  ;;  %v11101_v18 = vld [vmem:[#allocation11 + $0x170] ss:$8 sps:$4 sm:$0xff]   ;;  %v5809_v7 = vor.u32 %v5807_v32, %v5789_v27 }
 0x5d9   :  { %v13299_v43 = vpack.c.bf16 %v5557_v54, %v5554_v5  ;;  %v4904_v17 = vpop.f32.mrb[204].mxu0  ;;  %7798 = vmatpush1.bf16.msra.mxu1 %v11095_v28  ;;  %v6125_v28 = vor.u32 %v6124_v38, %v6123_v34 }
 0x5da   :  { %v10067_v14 = vadd.f32 %v4904_v17, %v13239_v20  ;;  %v4906_v46 = vpop.f32.mrb[205].mxu0  ;;  %v5803_v13 = vshll.u32 %v13297_v63, 16  ;;  %7799 = vmatprep.subr.bf16.mxu1 %v11100_v26  ;;  %v5823_v17 = vshrl.u32 %v13297_v63, 16  ;;  %v13312_v57 = vsel %vm743_vm5, %v13282_v2, %v6129_v1 }
 0x5db   :  { %v10068_v45 = vadd.f32 %v4906_v46, %v13243_v12  ;;  %v4908_v42 = vpop.f32.mrb[206].mxu0  ;;  %v5811_v37 = vshll.u32 %v13299_v43, 16  ;;  %v5831_v5 = vshrl.u32 %v13299_v43, 16  ;;  %7688 = vmatprep.mubr.bf16.mxu1 %v13299_v43  ;;  %14395 = vst [vmem:[#allocation23_spill] sm:$0xff] %v13312_v57  ;;  %v13317_v34 = vsel %vm743_vm5, %v13295_v4, %v6125_v28 }
 0x5dc   :  { %v10069_v19 = vadd.f32 %v4908_v42, %v13239_v20  ;;  %v4910_v54 = vpop.f32.mrb[207].mxu0  ;;  %7689 = vmatmul.mubr.bf16.gmra.mrb[188].mxu1 %v13297_v63  ;;  %v5805_v26 = vrot.slane %v5803_v13, 1  ;;  %14396 = vst [vmem:[#allocation26_spill] sm:$0xff] %v13317_v34  ;;  %v5559_v38 = vmax.f32 %v10067_v14, 0.0  ;;  %v6135_v29 = vrot.slane %v5823_v17, 2 }
 0x5dd   :  { %v10070_v11 = vadd.f32 %v4910_v54, %v13243_v12  ;;  %7800 = vmatpush1.bf16.msra.mxu1 %v11098_v30  ;;  %v5813_v46 = vrot.slane %v5811_v37, 1  ;;  %v6139_v62 = vrot.slane %v5831_v5, 2  ;;  %v5560_v2 = vmax.f32 %v10068_v45, 0.0 }
 0x5de   :  { %v5562_v42 = vmax.f32 %v10069_v19, 0.0  ;;  %7801 = vmatprep.subr.bf16.mxu1 %v11103_v8  ;;  %v13320_v49 = vsel %vm626_vm4, %v5801_v47, %v5805_v26  ;;  %v6140_v30 = vrot.slane %v5811_v37, 3  ;;  %v5825_v27 = vor.u32 %v5823_v17, %v5805_v26  ;;  %v11104_v8 = vld [vmem:[#allocation11 + $0x180] ss:$8 sps:$4 sm:$0xff]   ;;  %v11109_v26 = vld [vmem:[#allocation11 + $0x194] ss:$8 sps:$4 sm:$0xff]  }
 0x5df   :  { %v5563_v57 = vmax.f32 %v10070_v11, 0.0  ;;  %v13323_v54 = vsel %vm626_vm4, %v5809_v7, %v5813_v46  ;;  %v6136_v4 = vrot.slane %v5803_v13, 3  ;;  %v5833_v19 = vor.u32 %v5831_v5, %v5813_v46 }
 0x5e0   :  { %14397 = vst [vmem:[#allocation29_spill] sm:$0xff] %v13323_v54  ;;  %v13325_v32 = vpack.c.bf16 %v5562_v42, %v5559_v38  ;;  %v6141_v47 = vor.u32 %v6140_v30, %v6139_v62  ;;  %v11107_v42 = vld [vmem:[#allocation11 + $0x190] ss:$8 sps:$4 sm:$0xff]  }
 0x5e1   :  { %v13327_v34 = vpack.c.bf16 %v5563_v57, %v5560_v2  ;;  %v4914_v14 = vpop.f32.mrb[208].mxu0  ;;  %7802 = vmatpush1.bf16.msra.mxu1 %v11101_v18  ;;  %v13333_v17 = vor.u32 %v6136_v4, %v6135_v29  ;;  %v6357_v4 = vrot.slane %v13273_v10, 3 }
 0x5e2   :  { %v10071_v45 = vadd.f32 %v4914_v14, %v13239_v20  ;;  %v4916_v11 = vpop.f32.mrb[209].mxu0  ;;  %v5827_v7 = vshll.u32 %v13325_v32, 16  ;;  %v5847_v37 = vshrl.u32 %v13325_v32, 16  ;;  %7803 = vmatprep.subr.bf16.mxu1 %v11106_v55  ;;  %v13340_v5 = vsel %vm743_vm5, %v6129_v1, %v6141_v47 }
 0x5e3   :  { %v10072_v2 = vadd.f32 %v4916_v11, %v13243_v12  ;;  %v4918_v13 = vpop.f32.mrb[210].mxu0  ;;  %v5835_v57 = vshll.u32 %v13327_v34, 16  ;;  %v5855_v62 = vshrl.u32 %v13327_v34, 16  ;;  %7698 = vmatprep.mubr.bf16.mxu1 %v13327_v34  ;;  %14398 = vst [vmem:[#allocation30_spill] sm:$0xff] %v13340_v5  ;;  %v13346_v29 = vsel %vm743_vm5, %v6125_v28, %v13333_v17 }
 0x5e4   :  { %v10073_v18 = vadd.f32 %v4918_v13, %v13239_v20  ;;  %v4920_v46 = vpop.f32.mrb[211].mxu0  ;;  %7699 = vmatmul.mubr.bf16.gmra.mrb[192].mxu1 %v13325_v32  ;;  %v5829_v55 = vrot.slane %v5827_v7, 1  ;;  %14399 = vst [vmem:[#allocation31_spill] sm:$0xff] %v13346_v29  ;;  %v6363_v1 = vrot.slane %v13297_v63, 3  ;;  %v5565_v11 = vmax.f32 %v10071_v45, 0.0 }
 0x5e5   :  { %v10074_v38 = vadd.f32 %v4920_v46, %v13243_v12  ;;  %7804 = vmatpush1.bf16.msra.mxu1 %v11104_v8  ;;  %v5837_v30 = vrot.slane %v5835_v57, 1  ;;  %v6151_v14 = vrot.slane %v5855_v62, 2  ;;  %v6152_v54 = vrot.slane %v5835_v57, 3 }
 0x5e6   :  { %v5568_v13 = vmax.f32 %v10073_v18, 0.0  ;;  %7805 = vmatprep.subr.bf16.mxu1 %v11109_v26  ;;  %v13352_v5 = vsel %vm626_vm4, %v5825_v27, %v5829_v55  ;;  %v5566_v28 = vmax.f32 %v10072_v2, 0.0  ;;  %v6147_v46 = vrot.slane %v5847_v37, 2  ;;  %v11110_v27 = vld [vmem:[#allocation11 + $0x1a0] ss:$8 sps:$4 sm:$0xff]  }
 0x5e7   :  { %v5569_v29 = vmax.f32 %v10074_v38, 0.0  ;;  %v13355_v10 = vsel %vm626_vm4, %v5833_v19, %v5837_v30  ;;  %v13360_v60 = vor.u32 %v6152_v54, %v6151_v14  ;;  %v6148_v63 = vrot.slane %v5827_v7, 3 }
 0x5e8   :  { %14400 = vst [vmem:[#allocation34_spill] sm:$0xff] %v13355_v10  ;;  %v13358_v25 = vpack.c.bf16 %v5568_v13, %v5565_v11  ;;  %v5849_v18 = vor.u32 %v5847_v37, %v5829_v55  ;;  %v14401_v2 = vrot.slane %v13253_v52, 3  ;;  %v13370_v19 = vsel %vm415_vm0, %v6357_v4, %v6363_v1 }
 0x5e9   :  { %v13362_v45 = vpack.c.bf16 %v5569_v29, %v5566_v28  ;;  %v4924_v26 = vpop.f32.mrb[212].mxu0  ;;  %7806 = vmatpush1.bf16.msra.mxu1 %v11107_v42  ;;  %14403 = vst [vmem:[#allocation39_spill] sm:$0xff] %v13370_v19  ;;  %v11115_v29 = vld [vmem:[#allocation11 + $0x1b4] ss:$8 sps:$4 sm:$0xff]   ;;  %v13377_v37 = vsel %vm743_vm5, %v6141_v47, %v13360_v60  ;;  %v6149_v13 = vor.u32 %v6148_v63, %v6147_v46  ;;  %v6369_v47 = vrot.slane %v13325_v32, 3 }
 0x5ea   :  { %v13367_v57 = vsel %vm415_vm0, %v14401_v2, %v6357_v4  ;;  %v10075_v38 = vadd.f32 %v4924_v26, %v13239_v20  ;;  %v4926_v11 = vpop.f32.mrb[213].mxu0  ;;  %v5851_v54 = vshll.u32 %v13358_v25, 16  ;;  %v5871_v7 = vshrl.u32 %v13358_v25, 16  ;;  %7807 = vmatprep.subr.bf16.mxu1 %v11112_v59  ;;  %14404 = vst [vmem:[#allocation37_spill] sm:$0xff] %v13377_v37  ;;  %v11113_v19 = vld [vmem:[#allocation11 + $0x1b0] ss:$8 sps:$4 sm:$0xff]  }
 0x5eb   :  { %14402 = vst [vmem:[#allocation38_spill] sm:$0xff] %v13367_v57  ;;  %v10076_v55 = vadd.f32 %v4926_v11, %v13243_v12  ;;  %v4928_v42 = vpop.f32.mrb[214].mxu0  ;;  %v5859_v14 = vshll.u32 %v13362_v45, 16  ;;  %v5879_v4 = vshrl.u32 %v13362_v45, 16  ;;  %7708 = vmatprep.mubr.bf16.mxu1 %v13362_v45  ;;  %v5857_v2 = vor.u32 %v5855_v62, %v5837_v30  ;;  %v11118_v63 = vld [vmem:[#allocation11 + $0x1c4] ss:$8 sps:$4 sm:$0xff]  }
 0x5ec   :  { %v10077_v28 = vadd.f32 %v4928_v42, %v13239_v20  ;;  %v4930_v26 = vpop.f32.mrb[215].mxu0  ;;  %7709 = vmatmul.mubr.bf16.gmra.mrb[196].mxu1 %v13358_v25  ;;  %v5853_v59 = vrot.slane %v5851_v54, 1  ;;  %v5571_v8 = vmax.f32 %v10075_v38, 0.0  ;;  %v13389_v52 = vsel %vm743_vm5, %v13333_v17, %v6149_v13 }
 0x5ed   :  { %v10078_v11 = vadd.f32 %v4930_v26, %v13243_v12  ;;  %7808 = vmatpush1.bf16.msra.mxu1 %v11110_v27  ;;  %v5861_v57 = vrot.slane %v5859_v14, 1  ;;  %14405 = vst [vmem:[#allocation42_spill] sm:$0xff] %v13389_v52  ;;  %v6163_v37 = vrot.slane %v5879_v4, 2  ;;  %v6159_v62 = vrot.slane %v5871_v7, 2 }
 0x5ee   :  { %v5574_v46 = vmax.f32 %v10077_v28, 0.0  ;;  %7809 = vmatprep.subr.bf16.mxu1 %v11115_v29  ;;  %v13392_v42 = vsel %vm626_vm4, %v5849_v18, %v5853_v59  ;;  %v5572_v30 = vmax.f32 %v10076_v55, 0.0  ;;  %v6164_v27 = vrot.slane %v5859_v14, 3  ;;  %v11116_v18 = vld [vmem:[#allocation11 + $0x1c0] ss:$8 sps:$4 sm:$0xff]  }
 0x5ef   :  { %v5575_v32 = vmax.f32 %v10078_v11, 0.0  ;;  %v13395_v38 = vsel %vm626_vm4, %v5857_v2, %v5861_v57  ;;  %v5873_v10 = vor.u32 %v5871_v7, %v5853_v59  ;;  %v6160_v39 = vrot.slane %v5851_v54, 3  ;;  %v11121_v7 = vld [vmem:[#allocation11 + $0x1d4] ss:$8 sps:$4 sm:$0xff]  }
 0x5f0   :  { %14406 = vst [vmem:[#allocation20_spill] sm:$0xff] %v13395_v38  ;;  %v13397_v26 = vpack.c.bf16 %v5574_v46, %v5571_v8  ;;  %v13400_v17 = vsel %vm415_vm0, %v6363_v1, %v6369_v47  ;;  %v5881_v52 = vor.u32 %v5879_v4, %v5861_v57  ;;  %v6165_v44 = vor.u32 %v6164_v27, %v6163_v37  ;;  %v11119_v27 = vld [vmem:[#allocation11 + $0x1d0] ss:$8 sps:$4 sm:$0xff]   ;;  %v11124_v1 = vld [vmem:[#allocation11 + $0x1e4] ss:$8 sps:$4 sm:$0xff]  }
 0x5f1   :  { %14407 = vst [vmem:[#allocation19_spill] sm:$0xff] %v13400_v17  ;;  %v13402_v29 = vpack.c.bf16 %v5575_v32, %v5572_v30  ;;  %v4934_v28 = vpop.f32.mrb[216].mxu0  ;;  %7810 = vmatpush1.bf16.msra.mxu1 %v11113_v19  ;;  %v14288_v55 = vrot.slane %v13358_v25, 3  ;;  %v6161_v54 = vor.u32 %v6160_v39, %v6159_v62 }
 0x5f2   :  { %v10079_v2 = vadd.f32 %v4934_v28, %v13239_v20  ;;  %v4936_v11 = vpop.f32.mrb[217].mxu0  ;;  %v5875_v8 = vshll.u32 %v13397_v26, 16  ;;  %7811 = vmatprep.subr.bf16.mxu1 %v11118_v63  ;;  %v13414_v37 = vsel %vm743_vm5, %v13360_v60, %v6165_v44  ;;  %v5895_v39 = vshrl.u32 %v13397_v26, 16 }
 0x5f3   :  { %v10080_v14 = vadd.f32 %v4936_v11, %v13243_v12  ;;  %v4938_v59 = vpop.f32.mrb[218].mxu0  ;;  %v5883_v19 = vshll.u32 %v13402_v29, 16  ;;  %v5903_v57 = vshrl.u32 %v13402_v29, 16  ;;  %7718 = vmatprep.mubr.bf16.mxu1 %v13402_v29  ;;  %14408 = vst [vmem:[#allocation43_spill] sm:$0xff] %v13414_v37  ;;  %v13420_v62 = vsel %vm743_vm5, %v6149_v13, %v6161_v54 }
 0x5f4   :  { %v10081_v4 = vadd.f32 %v4938_v59, %v13239_v20  ;;  %v4940_v46 = vpop.f32.mrb[219].mxu0  ;;  %7719 = vmatmul.mubr.bf16.gmra.mrb[200].mxu1 %v13397_v26  ;;  %v5877_v63 = vrot.slane %v5875_v8, 1  ;;  %14409 = vst [vmem:[#allocation44_spill] sm:$0xff] %v13420_v62  ;;  %v5577_v30 = vmax.f32 %v10079_v2, 0.0  ;;  %v13426_v60 = vsel %vm415_vm0, %v6369_v47, %v14288_v55 }
 0x5f5   :  { %v10082_v32 = vadd.f32 %v4940_v46, %v13243_v12  ;;  %7812 = vmatpush1.bf16.msra.mxu1 %v11116_v18  ;;  %v5885_v28 = vrot.slane %v5883_v19, 1  ;;  %14410 = vst [vmem:[#allocation45_spill] sm:$0xff] %v13426_v60  ;;  %v5578_v11 = vmax.f32 %v10080_v14, 0.0  ;;  %v6175_v13 = vrot.slane %v5903_v57, 2 }
 0x5f6   :  { %v5580_v59 = vmax.f32 %v10081_v4, 0.0  ;;  %7813 = vmatprep.subr.bf16.mxu1 %v11121_v7  ;;  %v13429_v17 = vsel %vm626_vm4, %v5873_v10, %v5877_v63  ;;  %v5897_v2 = vor.u32 %v5895_v39, %v5877_v63  ;;  %v6176_v18 = vrot.slane %v5883_v19, 3  ;;  %v11122_v7 = vld [vmem:[#allocation11 + $0x1e0] ss:$8 sps:$4 sm:$0xff]  }
 0x5f7   :  { %v5581_v62 = vmax.f32 %v10082_v32, 0.0  ;;  %v13432_v46 = vsel %vm626_vm4, %v5881_v52, %v5885_v28  ;;  %v5905_v38 = vor.u32 %v5903_v57, %v5885_v28  ;;  %v6171_v16 = vrot.slane %v5895_v39, 2 }
 0x5f8   :  { %14411 = vst [vmem:[#allocation46_spill] sm:$0xff] %v13432_v46  ;;  %v13434_v37 = vpack.c.bf16 %v5580_v59, %v5577_v30  ;;  %v6172_v47 = vrot.slane %v5875_v8, 3  ;;  %v6177_v4 = vor.u32 %v6176_v18, %v6175_v13  ;;  %v14412_v32 = vrot.slane %v13275_v33, 3 }
 0x5f9   :  { %v13436_v55 = vpack.c.bf16 %v5581_v62, %v5578_v11  ;;  %v4944_v14 = vpop.f32.mrb[220].mxu0  ;;  %7814 = vmatpush1.bf16.msra.mxu1 %v11119_v27  ;;  %v14413_v63 = vrot.slane %v13255_v41, 3  ;;  %v11127_v62 = vld [vmem:[#allocation11 + $0x1f4] ss:$8 sps:$4 sm:$0xff]   ;;  %v11130_v41 = vld [vmem:[#allocation11 + $0x204] ss:$8 sps:$4 sm:$0xff]  }
 0x5fa   :  { %v10083_v19 = vadd.f32 %v4944_v14, %v13239_v20  ;;  %v4946_v57 = vpop.f32.mrb[221].mxu0  ;;  %v5899_v8 = vshll.u32 %v13434_v37, 16  ;;  %v5919_v39 = vshrl.u32 %v13434_v37, 16  ;;  %7815 = vmatprep.subr.bf16.mxu1 %v11124_v1  ;;  %v6173_v30 = vor.u32 %v6172_v47, %v6171_v16 }
 0x5fb   :  { %v13444_v52 = vsel %vm415_vm0, %v14413_v63, %v14412_v32  ;;  %v10084_v27 = vadd.f32 %v4946_v57, %v13243_v12  ;;  %v4948_v28 = vpop.f32.mrb[222].mxu0  ;;  %v5907_v11 = vshll.u32 %v13436_v55, 16  ;;  %v5927_v59 = vshrl.u32 %v13436_v55, 16  ;;  %7728 = vmatprep.mubr.bf16.mxu1 %v13436_v55  ;;  %v11125_v57 = vld [vmem:[#allocation11 + $0x1f0] ss:$8 sps:$4 sm:$0xff]  }
 0x5fc   :  { %14414 = vst [vmem:[#allocation47_spill] sm:$0xff] %v13444_v52  ;;  %v13454_v13 = vsel %vm743_vm5, %v6165_v44, %v6177_v4  ;;  %v5583_v18 = vmax.f32 %v10083_v19, 0.0  ;;  %v10085_v14 = vadd.f32 %v4948_v28, %v13239_v20  ;;  %v4950_v32 = vpop.f32.mrb[223].mxu0  ;;  %7729 = vmatmul.mubr.bf16.gmra.mrb[204].mxu1 %v13434_v37  ;;  %v5901_v1 = vrot.slane %v5899_v8, 1 }
 0x5fd   :  { %14415 = vst [vmem:[#allocation48_spill] sm:$0xff] %v13454_v13  ;;  %v13459_v16 = vsel %vm743_vm5, %v6161_v54, %v6173_v30  ;;  %v5584_v47 = vmax.f32 %v10084_v27, 0.0  ;;  %v10086_v63 = vadd.f32 %v4950_v32, %v13243_v12  ;;  %7816 = vmatpush1.bf16.msra.mxu1 %v11122_v7  ;;  %v5909_v10 = vrot.slane %v5907_v11, 1 }
 0x5fe   :  { %14416 = vst [vmem:[#allocation49_spill] sm:$0xff] %v13459_v16  ;;  %v14417_v52 = vrot.slane %v13397_v26, 3  ;;  %v14418_v44 = vrot.slane %v13358_v25, 3  ;;  %v5586_v28 = vmax.f32 %v10085_v14, 0.0  ;;  %7817 = vmatprep.subr.bf16.mxu1 %v11127_v62  ;;  %v13470_v60 = vsel %vm626_vm4, %v5897_v2, %v5901_v1 }
 0x5ff   :  { %v5921_v54 = vor.u32 %v5919_v39, %v5901_v1  ;;  %v6187_v27 = vrot.slane %v5927_v59, 2  ;;  %v5587_v16 = vmax.f32 %v10086_v63, 0.0  ;;  %v13473_v7 = vsel %vm626_vm4, %v5905_v38, %v5909_v10 }
 0x600   :  { %v13467_v19 = vsel %vm415_vm0, %v14418_v44, %v14417_v52  ;;  %14420 = vst [vmem:[#allocation51_spill] sm:$0xff] %v13473_v7  ;;  %v5929_v32 = vor.u32 %v5927_v59, %v5909_v10  ;;  %v6188_v13 = vrot.slane %v5907_v11, 3  ;;  %v13475_v46 = vpack.c.bf16 %v5586_v28, %v5583_v18 }
 0x601   :  { %14419 = vst [vmem:[#allocation50_spill] sm:$0xff] %v13467_v19  ;;  %v6183_v25 = vrot.slane %v5919_v39, 2  ;;  %v6184_v31 = vrot.slane %v5899_v8, 3  ;;  %v14290_v52 = vrot.slane %v13434_v37, 3  ;;  %v13478_v14 = vpack.c.bf16 %v5587_v16, %v5584_v47  ;;  %v4954_v62 = vpop.f32.mrb[224].mxu0  ;;  %7818 = vmatpush1.bf16.msra.mxu1 %v11125_v57 }
 0x602   :  { %v6189_v2 = vor.u32 %v6188_v13, %v6187_v27  ;;  %v6365_v1 = vrot.slane %v13299_v43, 3  ;;  %v10087_v38 = vadd.f32 %v4954_v62, %v13239_v20  ;;  %v4956_v44 = vpop.f32.mrb[225].mxu0  ;;  %v5923_v10 = vshll.u32 %v13475_v46, 16  ;;  %7948 = vmatprep.subr.bf16.mxu1 %v11130_v41 }
 0x603   :  { %v5943_v11 = vshrl.u32 %v13475_v46, 16  ;;  %v6185_v8 = vor.u32 %v6184_v31, %v6183_v25  ;;  %v10088_v39 = vadd.f32 %v4956_v44, %v13243_v12  ;;  %v4958_v59 = vpop.f32.mrb[226].mxu0  ;;  %v5931_v18 = vshll.u32 %v13478_v14, 16  ;;  %7738 = vmatprep.mubr.bf16.mxu1 %v13478_v14 }
 0x604   :  { %v5951_v13 = vshrl.u32 %v13478_v14, 16  ;;  %v13490_v43 = vsel %vm743_vm5, %v6177_v4, %v6189_v2  ;;  %v5589_v16 = vmax.f32 %v10087_v38, 0.0  ;;  %v10089_v47 = vadd.f32 %v4958_v59, %v13239_v20  ;;  %v4960_v57 = vpop.f32.mrb[227].mxu0  ;;  %7739 = vmatmul.mubr.bf16.gmra.mrb[208].mxu1 %v13475_v46 }
 0x605   :  { %14421 = vst [vmem:[#allocation52_spill] sm:$0xff] %v13490_v43  ;;  %v5925_v41 = vrot.slane %v5923_v10, 1  ;;  %v13495_v31 = vsel %vm743_vm5, %v6173_v30, %v6185_v8  ;;  %v5590_v28 = vmax.f32 %v10088_v39, 0.0  ;;  %v10090_v27 = vadd.f32 %v4960_v57, %v13243_v12 }
 0x606   :  { %14422 = vst [vmem:[#allocation53_spill] sm:$0xff] %v13495_v31  ;;  %v5933_v25 = vrot.slane %v5931_v18, 1  ;;  %v14423_v62 = vrot.slane %v13397_v26, 3  ;;  %v5592_v38 = vmax.f32 %v10089_v47, 0.0  ;;  %v6199_v63 = vrot.slane %v5951_v13, 2 }
 0x607   :  { %v13506_v44 = vsel %vm626_vm4, %v5921_v54, %v5925_v41  ;;  %v5945_v59 = vor.u32 %v5943_v11, %v5925_v41  ;;  %v5593_v19 = vmax.f32 %v10090_v27, 0.0  ;;  %v6200_v57 = vrot.slane %v5931_v18, 3 }
 0x608   :  { %v13503_v4 = vsel %vm415_vm0, %v14423_v62, %v14290_v52  ;;  %v13509_v30 = vsel %vm626_vm4, %v5929_v32, %v5933_v25  ;;  %v5953_v39 = vor.u32 %v5951_v13, %v5933_v25  ;;  %v13511_v31 = vpack.c.bf16 %v5592_v38, %v5589_v16 }
 0x609   :  { %14424 = vst [vmem:[#allocation54_spill] sm:$0xff] %v13503_v4  ;;  %14425 = vst [vmem:[#allocation55_spill] sm:$0xff] %v13509_v30  ;;  %v6195_v43 = vrot.slane %v5943_v11, 2  ;;  %v6196_v7 = vrot.slane %v5923_v10, 3  ;;  %v14291_v26 = vrot.slane %v13475_v46, 3  ;;  %v13514_v62 = vpack.c.bf16 %v5593_v19, %v5590_v28  ;;  %v4964_v47 = vpop.f32.mrb[228].mxu0 }
 0x60a   :  { %v6201_v52 = vor.u32 %v6200_v57, %v6199_v63  ;;  %v14426_v54 = vrot.slane %v13275_v33, 3  ;;  %v14428_v32 = vrot.slane %v13327_v34, 3  ;;  %v10091_v18 = vadd.f32 %v4964_v47, %v13239_v20  ;;  %v4966_v11 = vpop.f32.mrb[229].mxu0 }
 0x60b   :  { %v5947_v10 = vshll.u32 %v13511_v31, 16  ;;  %v5967_v19 = vshrl.u32 %v13511_v31, 16  ;;  %v6197_v16 = vor.u32 %v6196_v7, %v6195_v43  ;;  %v10092_v63 = vadd.f32 %v4966_v11, %v13243_v12  ;;  %v4968_v28 = vpop.f32.mrb[230].mxu0  ;;  %7748 = vmatprep.mubr.bf16.mxu1 %v13514_v62 }
 0x60c   :  { %v13519_v41 = vsel %vm415_vm0, %v14426_v54, %v6365_v1  ;;  %v13524_v13 = vsel %vm415_vm0, %v6365_v1, %v14428_v32  ;;  %v5955_v33 = vshll.u32 %v13514_v62, 16  ;;  %v5975_v27 = vshrl.u32 %v13514_v62, 16  ;;  %v4970_v57 = vpop.f32.mrb[231].mxu0  ;;  %7749 = vmatmul.mubr.bf16.gmra.mrb[212].mxu1 %v13511_v31 }
 0x60d   :  { %14427 = vst [vmem:[#allocation56_spill] sm:$0xff] %v13519_v41  ;;  %14429 = vst [vmem:[#allocation57_spill] sm:$0xff] %v13524_v13  ;;  %v13534_v1 = vsel %vm743_vm5, %v6189_v2, %v6201_v52  ;;  %v5595_v25 = vmax.f32 %v10091_v18, 0.0  ;;  %v10093_v38 = vadd.f32 %v4968_v28, %v13239_v20  ;;  %v5949_v47 = vrot.slane %v5947_v10, 1 }
 0x60e   :  { %14430 = vst [vmem:[#allocation58_spill] sm:$0xff] %v13534_v1  ;;  %v13539_v7 = vsel %vm743_vm5, %v6185_v8, %v6197_v16  ;;  %v5596_v43 = vmax.f32 %v10092_v63, 0.0  ;;  %v10094_v54 = vadd.f32 %v4970_v57, %v13243_v12  ;;  %v5957_v32 = vrot.slane %v5955_v33, 1 }
 0x60f   :  { %14431 = vst [vmem:[#allocation59_spill] sm:$0xff] %v13539_v7  ;;  %v14432_v11 = vrot.slane %v13434_v37, 3  ;;  %v5598_v18 = vmax.f32 %v10093_v38, 0.0  ;;  %v13550_v28 = vsel %vm626_vm4, %v5945_v59, %v5949_v47  ;;  %v5969_v13 = vor.u32 %v5967_v19, %v5949_v47 }
 0x610   :  { %14434 = vst [vmem:[#allocation61_spill] sm:$0xff] %v13550_v28  ;;  %v6211_v41 = vrot.slane %v5975_v27, 2  ;;  %v5599_v4 = vmax.f32 %v10094_v54, 0.0  ;;  %v13553_v8 = vsel %vm626_vm4, %v5953_v39, %v5957_v32  ;;  %v5977_v63 = vor.u32 %v5975_v27, %v5957_v32 }
 0x611   :  { %v13547_v2 = vsel %vm415_vm0, %v14432_v11, %v14291_v26  ;;  %14435 = vst [vmem:[#allocation62_spill] sm:$0xff] %v13553_v8  ;;  %v6212_v57 = vrot.slane %v5955_v33, 3  ;;  %v13555_v7 = vpack.c.bf16 %v5598_v18, %v5595_v25  ;;  %v6207_v1 = vrot.slane %v5967_v19, 2  ;;  %v4974_v38 = vpop.f32.mrb[232].mxu0 }
 0x612   :  { %14433 = vst [vmem:[#allocation60_spill] sm:$0xff] %v13547_v2  ;;  %v6208_v30 = vrot.slane %v5947_v10, 3  ;;  %v14292_v37 = vrot.slane %v13511_v31, 3  ;;  %v13558_v11 = vpack.c.bf16 %v5599_v4, %v5596_v43  ;;  %v6377_v59 = vrot.slane %v13362_v45, 3  ;;  %v4976_v39 = vpop.f32.mrb[233].mxu0 }
 0x613   :  { %v6213_v26 = vor.u32 %v6212_v57, %v6211_v41  ;;  %v10095_v54 = vadd.f32 %v4974_v38, %v13239_v20  ;;  %v5971_v27 = vshll.u32 %v13555_v7, 16  ;;  %v5991_v33 = vshrl.u32 %v13555_v7, 16  ;;  %v4978_v19 = vpop.f32.mrb[234].mxu0 }
 0x614   :  { %v6209_v25 = vor.u32 %v6208_v30, %v6207_v1  ;;  %v10096_v10 = vadd.f32 %v4976_v39, %v13243_v12  ;;  %v5979_v4 = vshll.u32 %v13558_v11, 16  ;;  %v5999_v43 = vshrl.u32 %v13558_v11, 16  ;;  %7758 = vmatprep.mubr.bf16.mxu1 %v13558_v11  ;;  %v4980_v18 = vpop.f32.mrb[235].mxu0 }
 0x615   :  { %v13570_v45 = vsel %vm743_vm5, %v6201_v52, %v6213_v26  ;;  %v5601_v41 = vmax.f32 %v10095_v54, 0.0  ;;  %v10097_v32 = vadd.f32 %v4978_v19, %v13239_v20  ;;  %7759 = vmatmul.mubr.bf16.gmra.mrb[216].mxu1 %v13555_v7  ;;  %v5973_v57 = vrot.slane %v5971_v27, 1 }
 0x616   :  { %14436 = vst [vmem:[#allocation63_spill] sm:$0xff] %v13570_v45  ;;  %v13575_v30 = vsel %vm743_vm5, %v6197_v16, %v6209_v25  ;;  %v5602_v1 = vmax.f32 %v10096_v10, 0.0  ;;  %v10098_v38 = vadd.f32 %v4980_v18, %v13243_v12  ;;  %v5981_v39 = vrot.slane %v5979_v4, 1 }
 0x617   :  { %14437 = vst [vmem:[#allocation64_spill] sm:$0xff] %v13575_v30  ;;  %v14438_v47 = vrot.slane %v13475_v46, 3  ;;  %v5604_v54 = vmax.f32 %v10097_v32, 0.0  ;;  %v13586_v19 = vsel %vm626_vm4, %v5969_v13, %v5973_v57  ;;  %v5993_v2 = vor.u32 %v5991_v33, %v5973_v57 }
 0x618   :  { %v6223_v45 = vrot.slane %v5999_v43, 2  ;;  %v5605_v8 = vmax.f32 %v10098_v38, 0.0  ;;  %v13589_v16 = vsel %vm626_vm4, %v5977_v63, %v5981_v39  ;;  %v6001_v10 = vor.u32 %v5999_v43, %v5981_v39 }
 0x619   :  { %v13583_v52 = vsel %vm415_vm0, %v14438_v47, %v14292_v37  ;;  %v6224_v18 = vrot.slane %v5979_v4, 3  ;;  %v13591_v30 = vpack.c.bf16 %v5604_v54, %v5601_v41  ;;  %v6219_v28 = vrot.slane %v5991_v33, 2  ;;  %v4984_v32 = vpop.f32.mrb[236].mxu0 }
 0x61a   :  { %v6220_v40 = vrot.slane %v5971_v27, 3  ;;  %v6405_v46 = vrot.slane %v13555_v7, 3  ;;  %v13594_v47 = vpack.c.bf16 %v5605_v8, %v5602_v1  ;;  %v14439_v13 = vrot.slane %v13327_v34, 3  ;;  %v4986_v33 = vpop.f32.mrb[237].mxu0 }
 0x61b   :  { %v6225_v37 = vor.u32 %v6224_v18, %v6223_v45  ;;  %v14441_v63 = vrot.slane %v13402_v29, 3  ;;  %v10099_v4 = vadd.f32 %v4984_v32, %v13239_v20  ;;  %v5995_v27 = vshll.u32 %v13591_v30, 16  ;;  %v4988_v41 = vpop.f32.mrb[238].mxu0 }
 0x61c   :  { %v13599_v57 = vsel %vm415_vm0, %v14439_v13, %v6377_v59  ;;  %v14294_v7 = vshrl.u32 %v13591_v30, 16  ;;  %v6221_v8 = vor.u32 %v6220_v40, %v6219_v28  ;;  %v10100_v45 = vadd.f32 %v4986_v33, %v13243_v12  ;;  %7768 = vmatprep.mubr.bf16.mxu1 %v13594_v47  ;;  %v4989_v20 = vpop.f32.mrb[239].mxu0 }
 0x61d   :  { %14440 = vst [vmem:[#allocation65_spill] sm:$0xff] %v13599_v57  ;;  %v13604_v43 = vsel %vm415_vm0, %v6377_v59, %v14441_v63  ;;  %v6003_v34 = vshll.u32 %v13594_v47, 16  ;;  %v14293_v1 = vshrl.u32 %v13594_v47, 16  ;;  %v13614_v59 = vsel %vm743_vm5, %v6213_v26, %v6225_v37  ;;  %7769 = vmatmul.mubr.bf16.gmra.mrb[220].mxu1 %v13591_v30 }
 0x61e   :  { %14442 = vst [vmem:[#allocation66_spill] sm:$0xff] %v13604_v43  ;;  %v5607_v38 = vmax.f32 %v10099_v4, 0.0  ;;  %v13617_v39 = vrot.slane %v5995_v27, 1  ;;  %v13620_v40 = vsel %vm743_vm5, %v6209_v25, %v6221_v8  ;;  %v6231_v12 = vrot.slane %v14294_v7, 2 }
 0x61f   :  { %v5608_v28 = vmax.f32 %v10100_v45, 0.0  ;;  %v13624_v54 = vrot.slane %v6003_v34, 1  ;;  %v6235_v18 = vrot.slane %v14293_v1, 2  ;;  %v6236_v26 = vrot.slane %v6003_v34, 3 }
 0x620   :  { %v5646_v32 = vpack.c.bf16 %v5607_v38, %v5607_v38  ;;  %v13630_v13 = vsel %vm626_vm4, %v5993_v2, %v13617_v39  ;;  %v6232_v63 = vrot.slane %v5995_v27, 3  ;;  %v14443_v41 = vrot.slane %v13511_v31, 3 }
 0x621   :  { %v5647_v4 = vpack.c.bf16 %v5608_v28, %v5608_v28  ;;  %v13634_v25 = vsel %vm626_vm4, %v6001_v10, %v13624_v54  ;;  %v13636_v33 = vor.u32 %v6236_v26, %v6235_v18  ;;  %v6411_v38 = vrot.slane %v13591_v30, 3  ;;  %v9853_v27 = vpop.f32.mrb[240].mxu0 }
 0x622   :  { %5685 = vst [vmem:[#allocation5 + $0x120] sm:$0xf] %v5646_v32  ;;  %v13638_v45 = vor.u32 %v6232_v63, %v6231_v12  ;;  %v13643_v34 = vsel %vm415_vm0, %v14443_v41, %v6405_v46  ;;  %v6389_v2 = vrot.slane %v13436_v55, 3  ;;  %v6395_v20 = vrot.slane %v13478_v14, 3  ;;  %v9854_v31 = vpop.f32.mrb[241].mxu0 }
 0x623   :  { %5686 = vst [vmem:[#allocation5 + $0x128] sm:$0xf] %v5647_v4  ;;  %v13649_v10 = vsel %vm743_vm5, %v6225_v37, %v13636_v33  ;;  %v6401_v12 = vrot.slane %v13514_v62, 3  ;;  %v6407_v28 = vrot.slane %v13558_v11, 3  ;;  %v13659_v26 = vsel %vm415_vm0, %v6405_v46, %v6411_v38  ;;  %v9856_v63 = vpop.f32.mrb[242].mxu0 }
 0x624   :  { %v13656_v18 = vsel %vm743_vm5, %v6221_v8, %v13638_v45  ;;  %v14444_v55 = vrot.slane %v13402_v29, 3  ;;  %v6413_v37 = vrot.slane %v13594_v47, 3  ;;  %v9855_v14 = vadd.f32 %v9854_v31, %v9853_v27  ;;  %v9857_v46 = vpop.f32.mrb[243].mxu0 }
 0x625   :  { %v13668_v62 = vsel %vm415_vm0, %v6389_v2, %v6395_v20  ;;  %v13671_v11 = vsel %vm415_vm0, %v6395_v20, %v6401_v12  ;;  %v13674_v8 = vsel %vm415_vm0, %v6401_v12, %v6407_v28  ;;  %v9858_v41 = vadd.f32 %v9857_v46, %v9856_v63 }
 0x626   :  { %v13664_v32 = vsel %vm415_vm0, %v14444_v55, %v6389_v2  ;;  %14446 = vst [vmem:[#allocation68_spill] sm:$0xff] %v13668_v62  ;;  %14447 = vst [vmem:[#allocation69_spill] sm:$0xff] %v13671_v11  ;;  %v13677_v4 = vsel %vm415_vm0, %v6407_v28, %v6413_v37  ;;  %v5434_v29 = vadd.f32 %v9855_v14, %v13140_v24 }
 0x627   :  { %14445 = vst [vmem:[#allocation67_spill] sm:$0xff] %v13664_v32  ;;  %14448 = vst [vmem:[#allocation70_spill] sm:$0xff] %v13674_v8  ;;  %v5437_v55 = vadd.f32 %v9858_v41, %v13144_v51 }
 0x628   :  { %14449 = vst [vmem:[#allocation71_spill] sm:$0xff] %v13677_v4  ;;  %v5537_v31 = vmax.f32 %v5434_v29, 0.0  ;;  %v11128_v29 = vld [vmem:[#allocation11 + $0x200] ss:$8 sps:$4 sm:$0xff]  }
 0x629   :  { %v5540_v1 = vmax.f32 %v5437_v55, 0.0  ;;  %v9859_v2 = vpop.f32.mrb[244].mxu0  ;;  %v5724_v7 = vld [vmem:[#allocation5 + $0x120] sm:$0xf]  ;;  %v11133_v55 = vld [vmem:[#allocation11 + $0x214] ss:$8 sps:$4 sm:$0xff]  }
 0x62a   :  { %v5725_v27 = vld [vmem:[#allocation5 + $0x128] sm:$0xf]  ;;  %v9860_v20 = vpop.f32.mrb[245].mxu0  ;;  %v13685_v51 = vld [vmem:[#allocation5 + $0x120] sm:$0x7f] }
 0x62b   :  { %7778 = vmatprep.mubr.bf16.mxu1 %v5725_v27  ;;  %v5612_v11 = vpack.c.bf16 %v5540_v1, %v5537_v31  ;;  %v9861_v12 = vadd.f32 %v9860_v20, %v9859_v2  ;;  %v9862_v8 = vpop.f32.mrb[246].mxu0  ;;  %v13683_v63 = vld [vmem:[#allocation5 + $0x128] sm:$0x7f] }
 0x62c   :  { %7779 = vmatmul.mubr.bf16.gmra.mrb[224].mxu1 %v5724_v7  ;;  %v9863_v28 = vpop.f32.mrb[247].mxu0  ;;  %14450 = vst [vmem:[#allocation72_spill] sm:$0xff] %v13683_v63  ;;  %v14295_v7 = vrot.slane %v13685_v51, 3  ;;  %v14297_v1 = vrot.slane %v13683_v63, 3 }
 0x62d   :  { %7819 = vmatprep.mubr.bf16.mxu1 %v13268_v48  ;;  %5651 = vst [vmem:[#allocation5 + $0x10] sm:$0xff] %v5612_v11  ;;  %v5442_v24 = vadd.f32 %v9861_v12, %v13148_v58  ;;  %v9864_v14 = vadd.f32 %v9863_v28, %v9862_v8  ;;  %v5766_v41 = vshll.u32 %v5612_v11, 16  ;;  %v11131_v28 = vld [vmem:[#allocation11 + $0x210] ss:$8 sps:$4 sm:$0xff]  }
 0x62e   :  { %v13693_v58 = vsel %vm415_vm0, %v6411_v38, %v14295_v7 }
 0x62f   :  { %v5445_v46 = vadd.f32 %v9864_v14, %v13152_v3  ;;  %v5543_v27 = vmax.f32 %v5442_v24, 0.0  ;;  %v13698_v3 = vsel %vm415_vm0, %v6413_v37, %v14297_v1  ;;  %v11136_v14 = vld [vmem:[#allocation11 + $0x224] ss:$8 sps:$4 sm:$0xff]   ;;  %v5764_v1 = vshrl.u32 %v5612_v11, 16 }
 0x630   :  { %14451 = vst [vmem:[#allocation73_spill] sm:$0xff] %v13698_v3 }
 0x631   :  { %v5546_v48 = vmax.f32 %v5445_v46, 0.0  ;;  %v9865_v31 = vpop.f32.mrb[248].mxu0  ;;  %v5768_v46 = vrot.slane %v5766_v41, 1 }
 0x632   :  { %v9866_v2 = vpop.f32.mrb[249].mxu0 }
 0x633   :  { %v13700_v8 = vpack.c.bf16 %v5546_v48, %v5543_v27  ;;  %v9867_v20 = vadd.f32 %v9866_v2, %v9865_v31  ;;  %v9868_v12 = vpop.f32.mrb[250].mxu0  ;;  %v11134_v31 = vld [vmem:[#allocation11 + $0x220] ss:$8 sps:$4 sm:$0xff]   ;;  %v5769_v2 = vor.u32 %v5768_v46, %v5764_v1 }
 0x634   :  { %7820 = vmatmul.mubr.bf16.vlgmr.msra.gmra.mrb[176].mxu1 %v5612_v11  ;;  %v9869_v24 = vpop.f32.mrb[251].mxu0 }
 0x635   :  { %7949 = vmatpush1.bf16.msra.mxu1 %v11128_v29  ;;  %7829 = vmatprep.mubr.bf16.mxu1 %v13290_v21  ;;  %v5450_v38 = vadd.f32 %v9867_v20, %v13156_v56  ;;  %v9870_v7 = vadd.f32 %v9869_v24, %v9868_v12  ;;  %v5771_v63 = vshll.u32 %v13700_v8, 16  ;;  %v5791_v37 = vshrl.u32 %v13700_v8, 16  ;;  %v11139_v21 = vld [vmem:[#allocation11 + $0x234] ss:$8 sps:$4 sm:$0xff]  }
 0x636   :  { %7950 = vmatprep.subr.bf16.mxu1 %v11133_v55 }
 0x637   :  { %v5453_v27 = vadd.f32 %v9870_v7, %v13160_v50  ;;  %v6119_v48 = vrot.slane %v5791_v37, 2  ;;  %v6120_v29 = vrot.slane %v5771_v63, 3  ;;  %v5773_v55 = vrot.slane %v5771_v63, 1  ;;  %v11142_v63 = vld [vmem:[#allocation11 + $0x244] ss:$8 sps:$4 sm:$0xff]  }
 0x638   :  { %v5549_v3 = vmax.f32 %v5450_v38, 0.0 }
 0x639   :  { %7951 = vmatpush1.bf16.msra.mxu1 %v11131_v28  ;;  %v5552_v41 = vmax.f32 %v5453_v27, 0.0  ;;  %v9871_v4 = vpop.f32.mrb[252].mxu0  ;;  %v13707_v56 = vor.u32 %v6120_v29, %v6119_v48  ;;  %v13711_v11 = vsel %vm626_vm4, %v5769_v2, %v5773_v55  ;;  %v11137_v28 = vld [vmem:[#allocation11 + $0x230] ss:$8 sps:$4 sm:$0xff]   ;;  %v14298_v27 = vrot.slane %v13700_v8, 3 }
 0x63a   :  { %7952 = vmatprep.subr.bf16.mxu1 %v11136_v14  ;;  %v9872_v20 = vpop.f32.mrb[253].mxu0 }
 0x63b   :  { %v5618_v50 = vpack.c.bf16 %v5552_v41, %v5549_v3  ;;  %v9873_v7 = vadd.f32 %v9872_v20, %v9871_v4  ;;  %v9874_v12 = vpop.f32.mrb[254].mxu0  ;;  %v11140_v4 = vld [vmem:[#allocation11 + $0x240] ss:$8 sps:$4 sm:$0xff]   ;;  %v5793_v3 = vor.u32 %v5791_v37, %v5773_v55 }
 0x63c   :  { %7830 = vmatmul.mubr.bf16.gmra.mrb[180].mxu1 %v13700_v8  ;;  %v9875_v1 = vpop.f32.mrb[255].mxu0 }
 0x63d   :  { %7839 = vmatprep.mubr.bf16.mxu1 %v13320_v49  ;;  %7953 = vmatpush1.bf16.msra.mxu1 %v11134_v31  ;;  %v5458_v24 = vadd.f32 %v9873_v7, %v13164_v6  ;;  %v9876_v14 = vadd.f32 %v9875_v1, %v9874_v12  ;;  %v5795_v46 = vshll.u32 %v5618_v50, 16  ;;  %v5815_v38 = vshrl.u32 %v5618_v50, 16  ;;  %v11145_v31 = vld [vmem:[#allocation11 + $0x254] ss:$8 sps:$4 sm:$0xff]  }
 0x63e   :  { %7954 = vmatprep.subr.bf16.mxu1 %v11139_v21  ;;  %v6361_v48 = vrot.slane %v5618_v50, 3 }
 0x63f   :  { %v5461_v29 = vadd.f32 %v9876_v14, %v13168_v35  ;;  %v5797_v2 = vrot.slane %v5795_v46, 1  ;;  %v6131_v49 = vrot.slane %v5815_v38, 2  ;;  %v6132_v41 = vrot.slane %v5795_v46, 3  ;;  %v11148_v46 = vld [vmem:[#allocation11 + $0x264] ss:$8 sps:$4 sm:$0xff]  }
 0x640   :  { %v13720_v6 = vsel %vm415_vm0, %v14298_v27, %v6361_v48  ;;  %v5555_v21 = vmax.f32 %v5458_v24, 0.0 }
 0x641   :  { %7955 = vmatpush1.bf16.msra.mxu1 %v11137_v28  ;;  %14452 = vst [vmem:[#allocation74_spill] sm:$0xff] %v13720_v6  ;;  %v5558_v20 = vmax.f32 %v5461_v29, 0.0  ;;  %v9877_v7 = vpop.f32.mrb[0].mxu0  ;;  %v13723_v12 = vsel %vm626_vm4, %v5793_v3, %v5797_v2  ;;  %v6133_v28 = vor.u32 %v6132_v41, %v6131_v49 }
 0x642   :  { %7956 = vmatprep.subr.bf16.mxu1 %v11142_v63  ;;  %v9878_v35 = vpop.f32.mrb[1].mxu0  ;;  %v11143_v63 = vld [vmem:[#allocation11 + $0x250] ss:$8 sps:$4 sm:$0xff]  }
 0x643   :  { %v5621_v37 = vpack.c.bf16 %v5558_v20, %v5555_v21  ;;  %v9879_v55 = vadd.f32 %v9878_v35, %v9877_v7  ;;  %v9880_v1 = vpop.f32.mrb[2].mxu0  ;;  %v13728_v24 = vsel %vm743_vm5, %v13707_v56, %v6133_v28  ;;  %v11146_v21 = vld [vmem:[#allocation11 + $0x260] ss:$8 sps:$4 sm:$0xff]  }
 0x644   :  { %7840 = vmatmul.mubr.bf16.gmra.mrb[184].mxu1 %v5618_v50  ;;  %v9881_v14 = vpop.f32.mrb[3].mxu0 }
 0x645   :  { %7849 = vmatprep.mubr.bf16.mxu1 %v13352_v5  ;;  %7957 = vmatpush1.bf16.msra.mxu1 %v11140_v4  ;;  %v5466_v29 = vadd.f32 %v9879_v55, %v13172_v0  ;;  %v9882_v3 = vadd.f32 %v9881_v14, %v9880_v1  ;;  %v5819_v27 = vshll.u32 %v5621_v37, 16  ;;  %v5839_v50 = vshrl.u32 %v5621_v37, 16 }
 0x646   :  { %7958 = vmatprep.subr.bf16.mxu1 %v11145_v31  ;;  %v6367_v49 = vrot.slane %v5621_v37, 3  ;;  %v5817_v5 = vor.u32 %v5815_v38, %v5797_v2  ;;  %v11151_v31 = vld [vmem:[#allocation11 + $0x274] ss:$8 sps:$4 sm:$0xff]   ;;  %v11149_v2 = vld [vmem:[#allocation11 + $0x270] ss:$8 sps:$4 sm:$0xff]  }
 0x647   :  { %v5469_v41 = vadd.f32 %v9882_v3, %v13176_v36  ;;  %v5821_v4 = vrot.slane %v5819_v27, 1  ;;  %v6143_v20 = vrot.slane %v5839_v50, 2  ;;  %v6144_v7 = vrot.slane %v5819_v27, 3 }
 0x648   :  { %v13733_v35 = vsel %vm415_vm0, %v6361_v48, %v6367_v49  ;;  %v5561_v62 = vmax.f32 %v5466_v29, 0.0  ;;  %v11154_v48 = vld [vmem:[#allocation11 + $0x284] ss:$8 sps:$4 sm:$0xff]  }
 0x649   :  { %7959 = vmatpush1.bf16.msra.mxu1 %v11143_v63  ;;  %14453 = vst [vmem:[#allocation75_spill] sm:$0xff] %v13733_v35  ;;  %v5564_v32 = vmax.f32 %v5469_v41, 0.0  ;;  %v9883_v0 = vpop.f32.mrb[4].mxu0  ;;  %v13736_v55 = vsel %vm626_vm4, %v5817_v5, %v5821_v4  ;;  %v6145_v36 = vor.u32 %v6144_v7, %v6143_v20  ;;  %v5841_v20 = vor.u32 %v5839_v50, %v5821_v4  ;;  %v11157_v7 = vld [vmem:[#allocation11 + $0x294] ss:$8 sps:$4 sm:$0xff]  }
 0x64a   :  { %7960 = vmatprep.subr.bf16.mxu1 %v11148_v46  ;;  %v9884_v1 = vpop.f32.mrb[5].mxu0  ;;  %v11155_v4 = vld [vmem:[#allocation11 + $0x290] ss:$8 sps:$4 sm:$0xff]  }
 0x64b   :  { %v5624_v63 = vpack.c.bf16 %v5564_v32, %v5561_v62  ;;  %v9885_v14 = vadd.f32 %v9884_v1, %v9883_v0  ;;  %v9886_v38 = vpop.f32.mrb[6].mxu0  ;;  %v13740_v46 = vsel %vm743_vm5, %v6133_v28, %v6145_v36  ;;  %v11152_v62 = vld [vmem:[#allocation11 + $0x280] ss:$8 sps:$4 sm:$0xff]   ;;  %v14468_v35 = vld [vmem:[#allocation36_spill] sm:$0xff] }
 0x64c   :  { %7850 = vmatmul.mubr.bf16.gmra.mrb[188].mxu1 %v5621_v37  ;;  %v9887_v27 = vpop.f32.mrb[7].mxu0 }
 0x64d   :  { %7859 = vmatprep.mubr.bf16.mxu1 %v13392_v42  ;;  %7961 = vmatpush1.bf16.msra.mxu1 %v11146_v21  ;;  %v5474_v29 = vadd.f32 %v9885_v14, %v13180_v9  ;;  %v9888_v3 = vadd.f32 %v9887_v27, %v9886_v38  ;;  %v5843_v41 = vshll.u32 %v5624_v63, 16  ;;  %v5863_v5 = vshrl.u32 %v5624_v63, 16 }
 0x64e   :  { %7962 = vmatprep.subr.bf16.mxu1 %v11151_v31  ;;  %v6373_v37 = vrot.slane %v5624_v63, 3 }
 0x64f   :  { %v5477_v32 = vadd.f32 %v9888_v3, %v13184_v22  ;;  %v5845_v42 = vrot.slane %v5843_v41, 1  ;;  %v6155_v21 = vrot.slane %v5863_v5, 2  ;;  %v6156_v31 = vrot.slane %v5843_v41, 3 }
 0x650   :  { %v13745_v0 = vsel %vm415_vm0, %v6367_v49, %v6373_v37  ;;  %v5567_v28 = vmax.f32 %v5474_v29, 0.0  ;;  %v11160_v49 = vld [vmem:[#allocation11 + $0x2a4] ss:$8 sps:$4 sm:$0xff]  }
 0x651   :  { %7963 = vmatpush1.bf16.msra.mxu1 %v11149_v2  ;;  %14454 = vst [vmem:[#allocation76_spill] sm:$0xff] %v13745_v0  ;;  %v5570_v1 = vmax.f32 %v5477_v32, 0.0  ;;  %v9889_v9 = vpop.f32.mrb[8].mxu0  ;;  %v13748_v14 = vsel %vm626_vm4, %v5841_v20, %v5845_v42  ;;  %v6157_v22 = vor.u32 %v6156_v31, %v6155_v21  ;;  %v11158_v31 = vld [vmem:[#allocation11 + $0x2a0] ss:$8 sps:$4 sm:$0xff]  }
 0x652   :  { %7964 = vmatprep.subr.bf16.mxu1 %v11154_v48  ;;  %v9890_v38 = vpop.f32.mrb[9].mxu0 }
 0x653   :  { %v5627_v2 = vpack.c.bf16 %v5570_v1, %v5567_v28  ;;  %v9891_v27 = vadd.f32 %v9890_v38, %v9889_v9  ;;  %v9892_v50 = vpop.f32.mrb[10].mxu0  ;;  %v13752_v29 = vsel %vm743_vm5, %v6145_v36, %v6157_v22  ;;  %v5865_v28 = vor.u32 %v5863_v5, %v5845_v42  ;;  %v11163_v1 = vld [vmem:[#allocation11 + $0x2b4] ss:$8 sps:$4 sm:$0xff]   ;;  %v11161_v42 = vld [vmem:[#allocation11 + $0x2b0] ss:$8 sps:$4 sm:$0xff]  }
 0x654   :  { %7860 = vmatmul.mubr.bf16.gmra.mrb[192].mxu1 %v5624_v63  ;;  %v9893_v48 = vpop.f32.mrb[11].mxu0 }
 0x655   :  { %7869 = vmatprep.mubr.bf16.mxu1 %v13429_v17  ;;  %7965 = vmatpush1.bf16.msra.mxu1 %v11152_v62  ;;  %v5482_v3 = vadd.f32 %v9891_v27, %v13188_v61  ;;  %v9894_v41 = vadd.f32 %v9893_v48, %v9892_v50  ;;  %v5867_v32 = vshll.u32 %v5627_v2, 16  ;;  %v5887_v20 = vshrl.u32 %v5627_v2, 16 }
 0x656   :  { %7966 = vmatprep.subr.bf16.mxu1 %v11157_v7  ;;  %v6379_v63 = vrot.slane %v5627_v2, 3 }
 0x657   :  { %v5485_v21 = vadd.f32 %v9894_v41, %v13192_v23  ;;  %v5869_v17 = vrot.slane %v5867_v32, 1  ;;  %v6167_v62 = vrot.slane %v5887_v20, 2  ;;  %v6168_v7 = vrot.slane %v5867_v32, 3 }
 0x658   :  { %v13757_v9 = vsel %vm415_vm0, %v6373_v37, %v6379_v63  ;;  %v5573_v36 = vmax.f32 %v5482_v3, 0.0  ;;  %v11166_v37 = vld [vmem:[#allocation11 + $0x2c4] ss:$8 sps:$4 sm:$0xff]  }
 0x659   :  { %7967 = vmatpush1.bf16.msra.mxu1 %v11155_v4  ;;  %14455 = vst [vmem:[#allocation77_spill] sm:$0xff] %v13757_v9  ;;  %v5576_v38 = vmax.f32 %v5485_v21, 0.0  ;;  %v9895_v61 = vpop.f32.mrb[12].mxu0  ;;  %v13760_v27 = vsel %vm626_vm4, %v5865_v28, %v5869_v17  ;;  %v6169_v23 = vor.u32 %v6168_v7, %v6167_v62  ;;  %v11164_v7 = vld [vmem:[#allocation11 + $0x2c0] ss:$8 sps:$4 sm:$0xff]  }
 0x65a   :  { %7968 = vmatprep.subr.bf16.mxu1 %v11160_v49  ;;  %v9896_v50 = vpop.f32.mrb[13].mxu0  ;;  %v5727_v9 = vld [vmem:[#allocation5 + $0x120] sm:$0x1f] }
 0x65b   :  { %v5630_v4 = vpack.c.bf16 %v5576_v38, %v5573_v36  ;;  %v9897_v48 = vadd.f32 %v9896_v50, %v9895_v61  ;;  %v9898_v5 = vpop.f32.mrb[14].mxu0  ;;  %v13764_v3 = vsel %vm743_vm5, %v6157_v22, %v6169_v23  ;;  %v5889_v36 = vor.u32 %v5887_v20, %v5869_v17  ;;  %v11169_v38 = vld [vmem:[#allocation11 + $0x2d4] ss:$8 sps:$4 sm:$0xff]   ;;  %v11167_v17 = vld [vmem:[#allocation11 + $0x2d0] ss:$8 sps:$4 sm:$0xff]  }
 0x65c   :  { %7870 = vmatmul.mubr.bf16.gmra.mrb[196].mxu1 %v5627_v2  ;;  %v9899_v49 = vpop.f32.mrb[15].mxu0 }
 0x65d   :  { %7879 = vmatprep.mubr.bf16.mxu1 %v13470_v60  ;;  %7969 = vmatpush1.bf16.msra.mxu1 %v11158_v31  ;;  %v5490_v41 = vadd.f32 %v9897_v48, %v13196_v53  ;;  %v9900_v32 = vadd.f32 %v9899_v49, %v9898_v5  ;;  %v5891_v21 = vshll.u32 %v5630_v4, 16  ;;  %v5911_v28 = vshrl.u32 %v5630_v4, 16 }
 0x65e   :  { %7970 = vmatprep.subr.bf16.mxu1 %v11163_v1  ;;  %v6385_v2 = vrot.slane %v5630_v4, 3 }
 0x65f   :  { %v5493_v62 = vadd.f32 %v9900_v32, %v13200_v15  ;;  %v5893_v60 = vrot.slane %v5891_v21, 1  ;;  %v6179_v31 = vrot.slane %v5911_v28, 2  ;;  %v6180_v1 = vrot.slane %v5891_v21, 3  ;;  %v14457_v32 = vld [vmem:[#allocation24_spill] sm:$0xff] }
 0x660   :  { %v13769_v61 = vsel %vm415_vm0, %v6379_v63, %v6385_v2  ;;  %v5579_v22 = vmax.f32 %v5490_v41, 0.0  ;;  %v11172_v63 = vld [vmem:[#allocation11 + $0x2e4] ss:$8 sps:$4 sm:$0xff]  }
 0x661   :  { %7971 = vmatpush1.bf16.msra.mxu1 %v11161_v42  ;;  %14456 = vst [vmem:[#allocation78_spill] sm:$0xff] %v13769_v61  ;;  %v5582_v50 = vmax.f32 %v5493_v62, 0.0  ;;  %v9901_v53 = vpop.f32.mrb[16].mxu0  ;;  %v13772_v48 = vsel %vm626_vm4, %v5889_v36, %v5893_v60  ;;  %v6181_v15 = vor.u32 %v6180_v1, %v6179_v31  ;;  %v14458_v31 = vld [vmem:[#allocation25_spill] sm:$0xff] }
 0x662   :  { %7972 = vmatprep.subr.bf16.mxu1 %v11166_v37  ;;  %v9902_v5 = vpop.f32.mrb[17].mxu0 }
 0x663   :  { %v5633_v42 = vpack.c.bf16 %v5582_v50, %v5579_v22  ;;  %v9903_v49 = vadd.f32 %v9902_v5, %v9901_v53  ;;  %v9904_v20 = vpop.f32.mrb[18].mxu0  ;;  %v13776_v41 = vsel %vm743_vm5, %v6169_v23, %v6181_v15  ;;  %v11170_v22 = vld [vmem:[#allocation11 + $0x2e0] ss:$8 sps:$4 sm:$0xff]   ;;  %v5913_v50 = vor.u32 %v5911_v28, %v5893_v60  ;;  %v11175_v53 = vld [vmem:[#allocation11 + $0x2f4] ss:$8 sps:$4 sm:$0xff]  }
 0x664   :  { %7880 = vmatmul.mubr.bf16.gmra.mrb[200].mxu1 %v5630_v4  ;;  %v9905_v37 = vpop.f32.mrb[19].mxu0  ;;  %v14460_v60 = vld [vmem:[#allocation61_spill] sm:$0xff] }
 0x665   :  { %7889 = vmatprep.mubr.bf16.mxu1 %v13506_v44  ;;  %7973 = vmatpush1.bf16.msra.mxu1 %v11164_v7  ;;  %v5498_v21 = vadd.f32 %v9903_v49, %v14457_v32  ;;  %v9906_v62 = vadd.f32 %v9905_v37, %v9904_v20  ;;  %v5915_v36 = vshll.u32 %v5633_v42, 16  ;;  %v5935_v43 = vshrl.u32 %v5633_v42, 16 }
 0x666   :  { %7974 = vmatprep.subr.bf16.mxu1 %v11169_v38  ;;  %v6391_v4 = vrot.slane %v5633_v42, 3 }
 0x667   :  { %v5501_v1 = vadd.f32 %v9906_v62, %v14458_v31  ;;  %v5917_v44 = vrot.slane %v5915_v36, 1  ;;  %v6191_v7 = vrot.slane %v5935_v43, 2  ;;  %v6192_v38 = vrot.slane %v5915_v36, 3  ;;  %v14461_v31 = vld [vmem:[#allocation27_spill] sm:$0xff] }
 0x668   :  { %v13781_v5 = vsel %vm415_vm0, %v6385_v2, %v6391_v4  ;;  %v5585_v23 = vmax.f32 %v5498_v21, 0.0  ;;  %v11178_v2 = vld [vmem:[#allocation11 + $0x304] ss:$8 sps:$4 sm:$0xff]  }
 0x669   :  { %7975 = vmatpush1.bf16.msra.mxu1 %v11167_v17  ;;  %14459 = vst [vmem:[#allocation24_spill] sm:$0xff] %v13781_v5  ;;  %v5588_v61 = vmax.f32 %v5501_v1, 0.0  ;;  %v9907_v49 = vpop.f32.mrb[20].mxu0  ;;  %v13784_v20 = vsel %vm626_vm4, %v5913_v50, %v5917_v44  ;;  %v6193_v32 = vor.u32 %v6192_v38, %v6191_v7  ;;  %v14462_v7 = vld [vmem:[#allocation28_spill] sm:$0xff]  ;;  %v5937_v38 = vor.u32 %v5935_v43, %v5917_v44 }
 0x66a   :  { %7976 = vmatprep.subr.bf16.mxu1 %v11172_v63  ;;  %v9908_v37 = vpop.f32.mrb[21].mxu0  ;;  %v11173_v63 = vld [vmem:[#allocation11 + $0x2f0] ss:$8 sps:$4 sm:$0xff]  }
 0x66b   :  { %v5636_v17 = vpack.c.bf16 %v5588_v61, %v5585_v23  ;;  %v9909_v62 = vadd.f32 %v9908_v37, %v9907_v49  ;;  %v9910_v28 = vpop.f32.mrb[22].mxu0  ;;  %v13788_v21 = vsel %vm743_vm5, %v6181_v15, %v6193_v32 }
 0x66c   :  { %7890 = vmatmul.mubr.bf16.gmra.mrb[204].mxu1 %v5633_v42  ;;  %v9911_v36 = vpop.f32.mrb[23].mxu0 }
 0x66d   :  { %7899 = vmatprep.mubr.bf16.mxu1 %v14460_v60  ;;  %7977 = vmatpush1.bf16.msra.mxu1 %v11170_v22  ;;  %v5506_v1 = vadd.f32 %v9909_v62, %v14461_v31  ;;  %v9912_v50 = vadd.f32 %v9911_v36, %v9910_v28  ;;  %v5939_v5 = vshll.u32 %v5636_v17, 16  ;;  %v5959_v57 = vshrl.u32 %v5636_v17, 16 }
 0x66e   :  { %7978 = vmatprep.subr.bf16.mxu1 %v11175_v53  ;;  %v6397_v42 = vrot.slane %v5636_v17, 3 }
 0x66f   :  { %v5509_v61 = vadd.f32 %v9912_v50, %v14462_v7  ;;  %v5941_v23 = vrot.slane %v5939_v5, 1  ;;  %v6203_v49 = vrot.slane %v5959_v57, 2  ;;  %v6204_v22 = vrot.slane %v5939_v5, 3 }
 0x670   :  { %v13793_v53 = vsel %vm415_vm0, %v6391_v4, %v6397_v42  ;;  %v5591_v37 = vmax.f32 %v5506_v1, 0.0  ;;  %v14464_v4 = vld [vmem:[#allocation32_spill] sm:$0xff] }
 0x671   :  { %7979 = vmatpush1.bf16.msra.mxu1 %v11173_v63  ;;  %14463 = vst [vmem:[#allocation25_spill] sm:$0xff] %v13793_v53  ;;  %v5594_v15 = vmax.f32 %v5509_v61, 0.0  ;;  %v9913_v60 = vpop.f32.mrb[24].mxu0  ;;  %v13796_v62 = vsel %vm626_vm4, %v5937_v38, %v5941_v23  ;;  %v6205_v36 = vor.u32 %v6204_v22, %v6203_v49  ;;  %v14465_v38 = vld [vmem:[#allocation33_spill] sm:$0xff] }
 0x672   :  { %8109 = vmatprep.subr.bf16.mxu1 %v11178_v2  ;;  %v9914_v28 = vpop.f32.mrb[25].mxu0 }
 0x673   :  { %v5639_v31 = vpack.c.bf16 %v5594_v15, %v5591_v37  ;;  %v9915_v50 = vadd.f32 %v9914_v28, %v9913_v60  ;;  %v9916_v63 = vpop.f32.mrb[26].mxu0  ;;  %v13800_v44 = vsel %vm743_vm5, %v6193_v32, %v6205_v36 }
 0x674   :  { %7900 = vmatmul.mubr.bf16.gmra.mrb[208].mxu1 %v5636_v17  ;;  %v9917_v43 = vpop.f32.mrb[27].mxu0  ;;  %v5961_v17 = vor.u32 %v5959_v57, %v5941_v23 }
 0x675   :  { %7909 = vmatprep.mubr.bf16.mxu1 %v13586_v19  ;;  %v5514_v5 = vadd.f32 %v9915_v50, %v14464_v4  ;;  %v9918_v2 = vadd.f32 %v9917_v43, %v9916_v63  ;;  %v5963_v1 = vshll.u32 %v5639_v31, 16  ;;  %v5983_v7 = vshrl.u32 %v5639_v31, 16 }
 0x676   :  { %v6403_v61 = vrot.slane %v5639_v31, 3  ;;  %v6019_v63 = vshll.u32 %v5727_v9, 16 }
 0x677   :  { %v5517_v53 = vadd.f32 %v9918_v2, %v14465_v38  ;;  %v5965_v49 = vrot.slane %v5963_v1, 1  ;;  %v6215_v22 = vrot.slane %v5983_v7, 2  ;;  %v6216_v37 = vrot.slane %v5963_v1, 3 }
 0x678   :  { %v13805_v15 = vsel %vm415_vm0, %v6397_v42, %v6403_v61  ;;  %v5597_v19 = vmax.f32 %v5514_v5, 0.0  ;;  %v14467_v42 = vld [vmem:[#allocation35_spill] sm:$0xff] }
 0x679   :  { %14466 = vst [vmem:[#allocation61_spill] sm:$0xff] %v13805_v15  ;;  %v5600_v60 = vmax.f32 %v5517_v53, 0.0  ;;  %v9919_v32 = vpop.f32.mrb[28].mxu0  ;;  %v13808_v28 = vsel %vm626_vm4, %v5961_v17, %v5965_v49  ;;  %v6217_v43 = vor.u32 %v6216_v37, %v6215_v22  ;;  %v6021_v17 = vrot.slane %v6019_v63, 1 }
 0x67a   :  { %v9920_v50 = vpop.f32.mrb[29].mxu0  ;;  %v5985_v6 = vor.u32 %v5983_v7, %v5965_v49 }
 0x67b   :  { %v5642_v4 = vpack.c.bf16 %v5600_v60, %v5597_v19  ;;  %v9921_v2 = vadd.f32 %v9920_v50, %v9919_v32  ;;  %v9922_v38 = vpop.f32.mrb[30].mxu0  ;;  %v13812_v23 = vsel %vm743_vm5, %v6205_v36, %v6217_v43  ;;  %v14469_v19 = vshrl.u32 %v13591_v30, 16 }
 0x67c   :  { %7910 = vmatmul.mubr.bf16.gmra.mrb[212].mxu1 %v5639_v31  ;;  %v9923_v57 = vpop.f32.mrb[31].mxu0 }
 0x67d   :  { %7919 = vmatprep.mubr.bf16.mxu1 %v13630_v13  ;;  %v5522_v5 = vadd.f32 %v9921_v2, %v14467_v42  ;;  %v9924_v53 = vadd.f32 %v9923_v57, %v9922_v38  ;;  %v5987_v1 = vshll.u32 %v5642_v4, 16  ;;  %v6007_v15 = vshrl.u32 %v5642_v4, 16  ;;  %v14470_v42 = vld [vmem:[#allocation40_spill] sm:$0xff] }
 0x67e   :  { %v6409_v0 = vrot.slane %v5642_v4, 3  ;;  %v6017_v13 = vor.u32 %v14469_v19, %v13617_v39 }
 0x67f   :  { %v5525_v31 = vadd.f32 %v9924_v53, %v14468_v35  ;;  %v5989_v22 = vrot.slane %v5987_v1, 1  ;;  %v6227_v37 = vrot.slane %v6007_v15, 2  ;;  %v6228_v60 = vrot.slane %v5987_v1, 3 }
 0x680   :  { %v13820_v36 = vsel %vm415_vm0, %v6403_v61, %v6409_v0  ;;  %v5603_v32 = vmax.f32 %v5522_v5, 0.0  ;;  %v6022_v35 = vsel %vm626_vm4, %v6017_v13, %v6021_v17  ;;  %v6039_v1 = vshrl.u32 %v5727_v9, 16 }
 0x681   :  { %v5606_v50 = vmax.f32 %v5525_v31, 0.0  ;;  %v9925_v2 = vpop.f32.mrb[32].mxu0  ;;  %v13823_v38 = vsel %vm626_vm4, %v5985_v6, %v5989_v22  ;;  %v6229_v7 = vor.u32 %v6228_v60, %v6227_v37  ;;  %v6009_v31 = vor.u32 %v6007_v15, %v5989_v22 }
 0x682   :  { %v9926_v63 = vpop.f32.mrb[33].mxu0 }
 0x683   :  { %v13826_v49 = vpack.c.bf16 %v5606_v50, %v5603_v32  ;;  %v9927_v57 = vadd.f32 %v9926_v63, %v9925_v2  ;;  %v9928_v30 = vpop.f32.mrb[34].mxu0  ;;  %v13829_v61 = vsel %vm743_vm5, %v6217_v43, %v6229_v7  ;;  %v6041_v50 = vor.u32 %v6039_v1, %v6021_v17  ;;  %v11188_v1 = vld [vmem:[#allocation11 + $0x340] ss:$8 sps:$4 sm:$0xff]  }
 0x684   :  { %7920 = vmatmul.mubr.bf16.gmra.mrb[216].mxu1 %v5642_v4  ;;  %v9929_v39 = vpop.f32.mrb[35].mxu0  ;;  %v14471_v30 = vld [vmem:[#allocation14_spill] sm:$0xff] }
 0x685   :  { %7929 = vmatprep.mubr.bf16.mxu1 %v6022_v35  ;;  %v5530_v5 = vadd.f32 %v9927_v57, %v14470_v42  ;;  %v6011_v53 = vshll.u32 %v13826_v49, 16  ;;  %v6031_v6 = vshrl.u32 %v13826_v49, 16  ;;  %v6415_v4 = vrot.slane %v13826_v49, 3  ;;  %v11176_v35 = vld [vmem:[#allocation11 + $0x300] ss:$8 sps:$4 sm:$0xff]  }
 0x686   :  { %v11181_v57 = vld [vmem:[#allocation11 + $0x314] ss:$8 sps:$4 sm:$0xff]   ;;  %v11184_v39 = vld [vmem:[#allocation11 + $0x324] ss:$8 sps:$4 sm:$0xff]   ;;  %v11182_v42 = vld [vmem:[#allocation11 + $0x320] ss:$8 sps:$4 sm:$0xff]  }
 0x687   :  { %v5609_v37 = vmax.f32 %v5530_v5, 0.0  ;;  %v13835_v19 = vrot.slane %v6011_v53, 1  ;;  %v6239_v13 = vrot.slane %v6031_v6, 2  ;;  %v6240_v60 = vrot.slane %v6011_v53, 3  ;;  %v14472_v5 = vld [vmem:[#allocation21_spill] sm:$0xff] }
 0x688   :  { %v13840_v43 = vsel %vm415_vm0, %v6409_v0, %v6415_v4  ;;  %v11185_v53 = vld [vmem:[#allocation11 + $0x330] ss:$8 sps:$4 sm:$0xff]  }
 0x689   :  { %v5648_v32 = vpack.c.bf16 %v5609_v37, %v5609_v37  ;;  %v13844_v2 = vsel %vm626_vm4, %v6009_v31, %v13835_v19  ;;  %v13846_v63 = vor.u32 %v6240_v60, %v6239_v13  ;;  %v11193_v31 = vld [vmem:[#allocation11 + $0x354] ss:$8 sps:$4 sm:$0xff]   ;;  %v11191_v37 = vld [vmem:[#allocation11 + $0x350] ss:$8 sps:$4 sm:$0xff]   ;;  %v11196_v13 = vld [vmem:[#allocation11 + $0x364] ss:$8 sps:$4 sm:$0xff]  }
 0x68a   :  { %v11194_v60 = vld [vmem:[#allocation11 + $0x360] ss:$8 sps:$4 sm:$0xff]  }
 0x68b   :  { %5687 = vst [vmem:[#allocation5 + $0x130] sm:$0xf] %v5648_v32  ;;  %v13851_v9 = vsel %vm743_vm5, %v6229_v7, %v13846_v63  ;;  %v11179_v7 = vld [vmem:[#allocation11 + $0x310] ss:$8 sps:$4 sm:$0xff]   ;;  %v14474_v32 = vld [vmem:[#allocation34_spill] sm:$0xff] }
 0x68c   :  { %7930 = vmatmul.mubr.bf16.gmra.mrb[220].mxu1 %v13826_v49 }
 0x68d   :  { %7939 = vmatprep.mubr.bf16.mxu1 %v6041_v50  ;;  %v11197_v50 = vld [vmem:[#allocation11 + $0x370] ss:$8 sps:$4 sm:$0xff]  }
 0x692   :  { %v5726_v15 = vld [vmem:[#allocation5 + $0x130] sm:$0xf] }
 0x693   :  { %v13853_v22 = vld [vmem:[#allocation5 + $0x130] sm:$0x7f] }
 0x694   :  { %7940 = vmatmul.mubr.bf16.gmra.mrb[224].mxu1 %v5726_v15  ;;  %v6421_v0 = vrot.slane %v13853_v22, 3  ;;  %v11202_v15 = vld [vmem:[#allocation11 + $0x384] ss:$8 sps:$4 sm:$0xff]  }
 0x695   :  { %7980 = vmatprep.mubr.bf16.mxu1 %v13711_v11  ;;  %v11187_v11 = vld [vmem:[#allocation11 + $0x334] ss:$8 sps:$4 sm:$0xff]  }
 0x696   :  { %v13860_v17 = vsel %vm415_vm0, %v6415_v4, %v6421_v0  ;;  %v11190_v4 = vld [vmem:[#allocation11 + $0x344] ss:$8 sps:$4 sm:$0xff]  }
 0x69c   :  { %7981 = vmatmul.mubr.bf16.vlgmr.msra.gmra.mrb[176].mxu1 %v14471_v30  ;;  %v11203_v30 = vld [vmem:[#allocation11 + $0x390] ss:$8 sps:$4 sm:$0xff]  }
 0x69d   :  { %8110 = vmatpush1.bf16.msra.mxu1 %v11176_v35  ;;  %7990 = vmatprep.mubr.bf16.mxu1 %v13723_v12  ;;  %v14473_v12 = vld [vmem:[#allocation29_spill] sm:$0xff]  ;;  %v11200_v35 = vld [vmem:[#allocation11 + $0x380] ss:$8 sps:$4 sm:$0xff]  }
 0x69e   :  { %8111 = vmatprep.subr.bf16.mxu1 %v11181_v57  ;;  %v14475_v57 = vld [vmem:[#allocation20_spill] sm:$0xff] }
 0x6a1   :  { %8112 = vmatpush1.bf16.msra.mxu1 %v11179_v7  ;;  %v11208_v7 = vld [vmem:[#allocation11 + $0x3a4] ss:$8 sps:$4 sm:$0xff]  }
 0x6a2   :  { %8113 = vmatprep.subr.bf16.mxu1 %v11184_v39  ;;  %v11206_v39 = vld [vmem:[#allocation11 + $0x3a0] ss:$8 sps:$4 sm:$0xff]  }
 0x6a4   :  { %7991 = vmatmul.mubr.bf16.gmra.mrb[180].mxu1 %v14472_v5  ;;  %v11214_v5 = vld [vmem:[#allocation11 + $0x3c4] ss:$8 sps:$4 sm:$0xff]  }
 0x6a5   :  { %8000 = vmatprep.mubr.bf16.mxu1 %v13736_v55  ;;  %8114 = vmatpush1.bf16.msra.mxu1 %v11182_v42  ;;  %v11199_v55 = vld [vmem:[#allocation11 + $0x374] ss:$8 sps:$4 sm:$0xff]   ;;  %v14476_v42 = vld [vmem:[#allocation46_spill] sm:$0xff] }
 0x6a6   :  { %8115 = vmatprep.subr.bf16.mxu1 %v11187_v11  ;;  %v11209_v11 = vld [vmem:[#allocation11 + $0x3b0] ss:$8 sps:$4 sm:$0xff]  }
 0x6a9   :  { %8116 = vmatpush1.bf16.msra.mxu1 %v11185_v53  ;;  %v11212_v53 = vld [vmem:[#allocation11 + $0x3c0] ss:$8 sps:$4 sm:$0xff]  }
 0x6aa   :  { %8117 = vmatprep.subr.bf16.mxu1 %v11190_v4  ;;  %v14477_v4 = vld [vmem:[#allocation51_spill] sm:$0xff] }
 0x6ac   :  { %8001 = vmatmul.mubr.bf16.gmra.mrb[184].mxu1 %v14473_v12  ;;  %v11218_v12 = vld [vmem:[#allocation11 + $0x3e0] ss:$8 sps:$4 sm:$0xff]  }
 0x6ad   :  { %8010 = vmatprep.mubr.bf16.mxu1 %v13748_v14  ;;  %8118 = vmatpush1.bf16.msra.mxu1 %v11188_v1  ;;  %v11205_v14 = vld [vmem:[#allocation11 + $0x394] ss:$8 sps:$4 sm:$0xff]   ;;  %v11215_v1 = vld [vmem:[#allocation11 + $0x3d0] ss:$8 sps:$4 sm:$0xff]  }
 0x6ae   :  { %8119 = vmatprep.subr.bf16.mxu1 %v11193_v31  ;;  %v11220_v31 = vld [vmem:[#allocation11 + $0x3e4] ss:$8 sps:$4 sm:$0xff]  }
 0x6b1   :  { %8120 = vmatpush1.bf16.msra.mxu1 %v11191_v37  ;;  %v14478_v37 = vld [vmem:[#allocation55_spill] sm:$0xff] }
 0x6b2   :  { %8121 = vmatprep.subr.bf16.mxu1 %v11196_v13  ;;  %v11221_v13 = vld [vmem:[#allocation11 + $0x3f0] ss:$8 sps:$4 sm:$0xff]  }
 0x6b4   :  { %8011 = vmatmul.mubr.bf16.gmra.mrb[188].mxu1 %v14474_v32 }
 0x6b5   :  { %8020 = vmatprep.mubr.bf16.mxu1 %v13760_v27  ;;  %8122 = vmatpush1.bf16.msra.mxu1 %v11194_v60  ;;  %v11211_v27 = vld [vmem:[#allocation11 + $0x3b4] ss:$8 sps:$4 sm:$0xff]   ;;  %v11226_v60 = vld [vmem:[#allocation11 + $0x404] ss:$8 sps:$4 sm:$0xff]  }
 0x6b6   :  { %8123 = vmatprep.subr.bf16.mxu1 %v11199_v55  ;;  %v14479_v55 = vld [vmem:[#allocation62_spill] sm:$0xff] }
 0x6b9   :  { %8124 = vmatpush1.bf16.msra.mxu1 %v11197_v50 }
 0x6ba   :  { %8125 = vmatprep.subr.bf16.mxu1 %v11202_v15  ;;  %v5728_v15 = vld [vmem:[#allocation5 + $0x128] sm:$0x1f] }
 0x6bc   :  { %8021 = vmatmul.mubr.bf16.gmra.mrb[192].mxu1 %v14475_v57  ;;  %v5731_v57 = vld [vmem:[#allocation5 + $0x8] sm:$0xfc] }
 0x6bd   :  { %8030 = vmatprep.mubr.bf16.mxu1 %v13772_v48  ;;  %8126 = vmatpush1.bf16.msra.mxu1 %v11200_v35  ;;  %v11217_v48 = vld [vmem:[#allocation11 + $0x3d4] ss:$8 sps:$4 sm:$0xff]   ;;  %v6027_v35 = vshll.u32 %v5728_v15, 16 }
 0x6be   :  { %8127 = vmatprep.subr.bf16.mxu1 %v11205_v14 }
 0x6c1   :  { %8128 = vmatpush1.bf16.msra.mxu1 %v11203_v30  ;;  %v6100_v30 = vshrl.u32 %v5731_v57, 16 }
 0x6c2   :  { %8129 = vmatprep.subr.bf16.mxu1 %v11208_v7  ;;  %v6103_v7 = vshll.u32 %v5731_v57, 16  ;;  %v11236_v57 = vld [vmem:[#allocation11 + $0x440] ss:$8 sps:$4 sm:$0xff]  }
 0x6c3   :  { %v6102_v49 = vrot.slane %v6100_v30, 2  ;;  %v14486_v30 = vld [vmem:[#allocation31_spill] sm:$0xff] }
 0x6c4   :  { %8031 = vmatmul.mubr.bf16.gmra.mrb[196].mxu1 %v14476_v42 }
 0x6c5   :  { %8040 = vmatprep.mubr.bf16.mxu1 %v13784_v20  ;;  %8130 = vmatpush1.bf16.msra.mxu1 %v11206_v39  ;;  %v11223_v20 = vld [vmem:[#allocation11 + $0x3f4] ss:$8 sps:$4 sm:$0xff]  }
 0x6c6   :  { %8131 = vmatprep.subr.bf16.mxu1 %v11211_v27 }
 0x6c9   :  { %8132 = vmatpush1.bf16.msra.mxu1 %v11209_v11 }
 0x6ca   :  { %8133 = vmatprep.subr.bf16.mxu1 %v11214_v5  ;;  %v6042_v5 = vshrl.u32 %v5728_v15, 16  ;;  %v14484_v15 = vld [vmem:[#allocation26_spill] sm:$0xff] }
 0x6cc   :  { %8041 = vmatmul.mubr.bf16.gmra.mrb[200].mxu1 %v14477_v4 }
 0x6cd   :  { %8050 = vmatprep.mubr.bf16.mxu1 %v13796_v62  ;;  %8134 = vmatpush1.bf16.msra.mxu1 %v11212_v53  ;;  %v5729_v62 = vld [vmem:[#allocation5 + $0x130] sm:$0x1f] }
 0x6ce   :  { %8135 = vmatprep.subr.bf16.mxu1 %v11217_v48  ;;  %v6035_v32 = vshll.u32 %v5729_v62, 16  ;;  %v6045_v39 = vshrl.u32 %v5729_v62, 16  ;;  %v11232_v62 = vld [vmem:[#allocation11 + $0x424] ss:$8 sps:$4 sm:$0xff]  }
 0x6d0   :  { %v6037_v50 = vrot.slane %v6035_v32, 1  ;;  %v11230_v32 = vld [vmem:[#allocation11 + $0x420] ss:$8 sps:$4 sm:$0xff]  }
 0x6d1   :  { %8136 = vmatpush1.bf16.msra.mxu1 %v11215_v1 }
 0x6d2   :  { %8137 = vmatprep.subr.bf16.mxu1 %v11220_v31  ;;  %v6047_v42 = vor.u32 %v6045_v39, %v6037_v50  ;;  %v14481_v31 = vld [vmem:[#allocation17_spill] sm:$0xff]  ;;  %v11242_v39 = vld [vmem:[#allocation11 + $0x460] ss:$8 sps:$4 sm:$0xff]  }
 0x6d4   :  { %8051 = vmatmul.mubr.bf16.gmra.mrb[204].mxu1 %v14478_v37  ;;  %v14482_v37 = vld [vmem:[#allocation22_spill] sm:$0xff] }
 0x6d5   :  { %8060 = vmatprep.mubr.bf16.mxu1 %v13808_v28  ;;  %8138 = vmatpush1.bf16.msra.mxu1 %v11218_v12  ;;  %v6033_v28 = vor.u32 %v6031_v6, %v13835_v19  ;;  %v6105_v6 = vrot.slane %v6103_v7, 3  ;;  %v5730_v19 = vld [vmem:[#allocation5] sm:$0xfc]  ;;  %v14487_v7 = vld [vmem:[#allocation37_spill] sm:$0xff] }
 0x6d6   :  { %8139 = vmatprep.subr.bf16.mxu1 %v11223_v20  ;;  %v6091_v11 = vshll.u32 %v5730_v19, 16  ;;  %v11224_v12 = vld [vmem:[#allocation11 + $0x400] ss:$8 sps:$4 sm:$0xff]   ;;  %v11229_v20 = vld [vmem:[#allocation11 + $0x414] ss:$8 sps:$4 sm:$0xff]  }
 0x6d7   :  { %v6038_v14 = vsel %vm626_vm4, %v6033_v28, %v6037_v50  ;;  %v6106_v53 = vor.u32 %v6105_v6, %v6102_v49  ;;  %v11235_v50 = vld [vmem:[#allocation11 + $0x434] ss:$8 sps:$4 sm:$0xff]   ;;  %v14485_v28 = vld [vmem:[#allocation30_spill] sm:$0xff]  ;;  %v14489_v49 = vld [vmem:[#allocation43_spill] sm:$0xff] }
 0x6d8   :  { %v6093_v1 = vrot.slane %v6091_v11, 3  ;;  %v11245_v6 = vld [vmem:[#allocation11 + $0x470] ss:$8 sps:$4 sm:$0xff]   ;;  %v11253_v11 = vld [vmem:[#allocation11 + $0x494] ss:$8 sps:$4 sm:$0xff]  }
 0x6d9   :  { %8140 = vmatpush1.bf16.msra.mxu1 %v11221_v13 }
 0x6da   :  { %8270 = vmatprep.subr.bf16.mxu1 %v11226_v60  ;;  %v14483_v60 = vld [vmem:[#allocation23_spill] sm:$0xff] }
 0x6dc   :  { %8061 = vmatmul.mubr.bf16.gmra.mrb[208].mxu1 %v14479_v55  ;;  %v11227_v55 = vld [vmem:[#allocation11 + $0x410] ss:$8 sps:$4 sm:$0xff]  }
 0x6dd   :  { %8070 = vmatprep.mubr.bf16.mxu1 %v13823_v38  ;;  %v6029_v38 = vrot.slane %v6027_v35, 1  ;;  %v11233_v35 = vld [vmem:[#allocation11 + $0x430] ss:$8 sps:$4 sm:$0xff]  }
 0x6df   :  { %v6044_v48 = vor.u32 %v6042_v5, %v6029_v38  ;;  %v14490_v5 = vld [vmem:[#allocation44_spill] sm:$0xff] }
 0x6e4   :  { %8071 = vmatmul.mubr.bf16.gmra.mrb[212].mxu1 %v13589_v16  ;;  %v14480_v16 = vshrl.u32 %v13594_v47, 16  ;;  %v6110_v47 = vsel %vm743_vm5, %v6106_v53, %v14481_v31  ;;  %v14491_v53 = vld [vmem:[#allocation48_spill] sm:$0xff] }
 0x6e5   :  { %8080 = vmatprep.mubr.bf16.mxu1 %v13844_v2  ;;  %v11259_v31 = vld [vmem:[#allocation11 + $0x4b4] ss:$8 sps:$4 sm:$0xff]  }
 0x6e6   :  { %v6025_v2 = vor.u32 %v14480_v16, %v13624_v54  ;;  %v11239_v16 = vld [vmem:[#allocation11 + $0x450] ss:$8 sps:$4 sm:$0xff]  }
 0x6e8   :  { %v6030_v27 = vsel %vm626_vm4, %v6025_v2, %v6029_v38  ;;  %v11241_v38 = vld [vmem:[#allocation11 + $0x454] ss:$8 sps:$4 sm:$0xff]   ;;  %v11244_v2 = vld [vmem:[#allocation11 + $0x464] ss:$8 sps:$4 sm:$0xff]  }
 0x6ec   :  { %8081 = vmatmul.mubr.bf16.gmra.mrb[216].mxu1 %v13634_v25  ;;  %v6088_v25 = vshrl.u32 %v5730_v19, 16  ;;  %v11250_v19 = vld [vmem:[#allocation11 + $0x484] ss:$8 sps:$4 sm:$0xff]  }
 0x6ed   :  { %8090 = vmatprep.mubr.bf16.mxu1 %v6038_v14  ;;  %v11238_v14 = vld [vmem:[#allocation11 + $0x444] ss:$8 sps:$4 sm:$0xff]  }
 0x6ee   :  { %v6090_v4 = vrot.slane %v6088_v25, 2  ;;  %v11248_v25 = vld [vmem:[#allocation11 + $0x480] ss:$8 sps:$4 sm:$0xff]  }
 0x6f0   :  { %v6094_v54 = vor.u32 %v6093_v1, %v6090_v4  ;;  %v11256_v4 = vld [vmem:[#allocation11 + $0x4a4] ss:$8 sps:$4 sm:$0xff]   ;;  %v11254_v1 = vld [vmem:[#allocation11 + $0x4a0] ss:$8 sps:$4 sm:$0xff]  }
 0x6f2   :  { %v6098_v13 = vsel %vm743_vm5, %v6094_v54, %v14482_v37  ;;  %v14493_v54 = vld [vmem:[#allocation52_spill] sm:$0xff]  ;;  %v11260_v37 = vld [vmem:[#allocation11 + $0x4c0] ss:$8 sps:$4 sm:$0xff]  }
 0x6f4   :  { %8091 = vmatmul.mubr.bf16.gmra.mrb[220].mxu1 %v6030_v27  ;;  %v11247_v27 = vld [vmem:[#allocation11 + $0x474] ss:$8 sps:$4 sm:$0xff]  }
 0x6f5   :  { %8100 = vmatprep.mubr.bf16.mxu1 %v6047_v42  ;;  %v14488_v42 = vld [vmem:[#allocation42_spill] sm:$0xff] }
 0x6fc   :  { %8101 = vmatmul.mubr.bf16.gmra.mrb[224].mxu1 %v6044_v48  ;;  %v11251_v48 = vld [vmem:[#allocation11 + $0x490] ss:$8 sps:$4 sm:$0xff]  }
 0x6fd   :  { %8141 = vmatprep.mubr.bf16.mxu1 %v6110_v47  ;;  %v14492_v47 = vld [vmem:[#allocation49_spill] sm:$0xff] }
 0x704   :  { %8142 = vmatmul.mubr.bf16.vlgmr.msra.gmra.mrb[176].mxu1 %v6098_v13  ;;  %v11265_v13 = vld [vmem:[#allocation11 + $0x4d4] ss:$8 sps:$4 sm:$0xff]  }
 0x705   :  { %8271 = vmatpush1.bf16.msra.mxu1 %v11224_v12  ;;  %8151 = vmatprep.mubr.bf16.mxu1 %v14483_v60  ;;  %v11257_v12 = vld [vmem:[#allocation11 + $0x4b0] ss:$8 sps:$4 sm:$0xff]  }
 0x706   :  { %8272 = vmatprep.subr.bf16.mxu1 %v11229_v20  ;;  %v11262_v20 = vld [vmem:[#allocation11 + $0x4c4] ss:$8 sps:$4 sm:$0xff]   ;;  %v14494_v60 = vld [vmem:[#allocation53_spill] sm:$0xff] }
 0x709   :  { %8273 = vmatpush1.bf16.msra.mxu1 %v11227_v55  ;;  %v14495_v55 = vld [vmem:[#allocation58_spill] sm:$0xff] }
 0x70a   :  { %8274 = vmatprep.subr.bf16.mxu1 %v11232_v62  ;;  %v11263_v62 = vld [vmem:[#allocation11 + $0x4d0] ss:$8 sps:$4 sm:$0xff]  }
 0x70c   :  { %8152 = vmatmul.mubr.bf16.gmra.mrb[180].mxu1 %v14484_v15  ;;  %v11271_v15 = vld [vmem:[#allocation11 + $0x4f4] ss:$8 sps:$4 sm:$0xff]  }
 0x70d   :  { %8161 = vmatprep.mubr.bf16.mxu1 %v14485_v28  ;;  %8275 = vmatpush1.bf16.msra.mxu1 %v11230_v32  ;;  %v11268_v32 = vld [vmem:[#allocation11 + $0x4e4] ss:$8 sps:$4 sm:$0xff]  }
 0x70e   :  { %8276 = vmatprep.subr.bf16.mxu1 %v11235_v50  ;;  %v11266_v50 = vld [vmem:[#allocation11 + $0x4e0] ss:$8 sps:$4 sm:$0xff]  }
 0x70f   :  { %v14496_v28 = vld [vmem:[#allocation59_spill] sm:$0xff] }
 0x711   :  { %8277 = vmatpush1.bf16.msra.mxu1 %v11233_v35  ;;  %v14497_v35 = vld [vmem:[#allocation63_spill] sm:$0xff] }
 0x712   :  { %8278 = vmatprep.subr.bf16.mxu1 %v11238_v14  ;;  %v11269_v14 = vld [vmem:[#allocation11 + $0x4f0] ss:$8 sps:$4 sm:$0xff]  }
 0x714   :  { %8162 = vmatmul.mubr.bf16.gmra.mrb[184].mxu1 %v14486_v30  ;;  %v11320_v30 = vld [vmem:[#allocation5 + $0x128] sm:$0x7f] }
 0x715   :  { %8171 = vmatprep.mubr.bf16.mxu1 %v14487_v7  ;;  %8279 = vmatpush1.bf16.msra.mxu1 %v11236_v57  ;;  %v11274_v57 = vld [vmem:[#allocation11 + $0x504] ss:$8 sps:$4 sm:$0xff]   ;;  %v6253_v7 = vshrl.u32 %v11320_v30, 16 }
 0x716   :  { %8280 = vmatprep.subr.bf16.mxu1 %v11241_v38  ;;  %v14498_v38 = vld [vmem:[#allocation64_spill] sm:$0xff] }
 0x719   :  { %8281 = vmatpush1.bf16.msra.mxu1 %v11239_v16  ;;  %v6256_v16 = vshll.u32 %v11320_v30, 16  ;;  %v14504_v30 = vld [vmem:[#allocation45_spill] sm:$0xff] }
 0x71a   :  { %8282 = vmatprep.subr.bf16.mxu1 %v11244_v2  ;;  %v6255_v2 = vrot.slane %v6253_v7, 2  ;;  %v11293_v7 = vld [vmem:[#allocation11 + $0x570] ss:$8 sps:$4 sm:$0xff]  }
 0x71c   :  { %8172 = vmatmul.mubr.bf16.gmra.mrb[188].mxu1 %v14488_v42 }
 0x71d   :  { %8181 = vmatprep.mubr.bf16.mxu1 %v14489_v49  ;;  %8283 = vmatpush1.bf16.msra.mxu1 %v11242_v39  ;;  %v6258_v39 = vrot.slane %v6256_v16, 3  ;;  %v11298_v16 = vld [vmem:[#allocation11 + $0x584] ss:$8 sps:$4 sm:$0xff]  }
 0x71e   :  { %8284 = vmatprep.subr.bf16.mxu1 %v11247_v27  ;;  %v11321_v27 = vld [vmem:[#allocation5 + $0x120] sm:$0x7f] }
 0x71f   :  { %v6244_v42 = vshrl.u32 %v11321_v27, 16  ;;  %v6247_v49 = vshll.u32 %v11321_v27, 16  ;;  %v11299_v27 = vld [vmem:[#allocation11 + $0x590] ss:$8 sps:$4 sm:$0xff]  }
 0x721   :  { %8285 = vmatpush1.bf16.msra.mxu1 %v11245_v6  ;;  %v6259_v6 = vor.u32 %v6258_v39, %v6255_v2  ;;  %v11301_v2 = vld [vmem:[#allocation11 + $0x594] ss:$8 sps:$4 sm:$0xff]   ;;  %v14505_v39 = vld [vmem:[#allocation50_spill] sm:$0xff] }
 0x722   :  { %8286 = vmatprep.subr.bf16.mxu1 %v11250_v19  ;;  %v6246_v19 = vrot.slane %v6244_v42, 2  ;;  %v11304_v42 = vld [vmem:[#allocation11 + $0x5a4] ss:$8 sps:$4 sm:$0xff]  }
 0x724   :  { %8182 = vmatmul.mubr.bf16.gmra.mrb[192].mxu1 %v14490_v5  ;;  %v5732_v5 = vld [vmem:[#allocation5 + $0x10] sm:$0xfc] }
 0x725   :  { %8191 = vmatprep.mubr.bf16.mxu1 %v14491_v53  ;;  %8287 = vmatpush1.bf16.msra.mxu1 %v11248_v25  ;;  %v6249_v25 = vrot.slane %v6247_v49, 3  ;;  %v6112_v53 = vshrl.u32 %v5732_v5, 16  ;;  %v11307_v49 = vld [vmem:[#allocation11 + $0x5b4] ss:$8 sps:$4 sm:$0xff]  }
 0x726   :  { %8288 = vmatprep.subr.bf16.mxu1 %v11253_v11 }
 0x727   :  { %v6250_v11 = vor.u32 %v6249_v25, %v6246_v19  ;;  %v11305_v19 = vld [vmem:[#allocation11 + $0x5b0] ss:$8 sps:$4 sm:$0xff]   ;;  %v11310_v25 = vld [vmem:[#allocation11 + $0x5c4] ss:$8 sps:$4 sm:$0xff]  }
 0x729   :  { %8289 = vmatpush1.bf16.msra.mxu1 %v11251_v48  ;;  %v6115_v48 = vshll.u32 %v5732_v5, 16  ;;  %v11316_v5 = vld [vmem:[#allocation11 + $0x5e4] ss:$8 sps:$4 sm:$0xff]  }
 0x72a   :  { %8290 = vmatprep.subr.bf16.mxu1 %v11256_v4 }
 0x72c   :  { %8192 = vmatmul.mubr.bf16.gmra.mrb[196].mxu1 %v14492_v47  ;;  %v14499_v47 = vld [vmem:[#allocation41_spill] sm:$0xff] }
 0x72d   :  { %8201 = vmatprep.mubr.bf16.mxu1 %v14493_v54  ;;  %8291 = vmatpush1.bf16.msra.mxu1 %v11254_v1  ;;  %v6114_v1 = vrot.slane %v6112_v53, 2  ;;  %v11317_v53 = vld [vmem:[#allocation11 + $0x5f0] ss:$8 sps:$4 sm:$0xff]  }
 0x72e   :  { %8292 = vmatprep.subr.bf16.mxu1 %v11259_v31  ;;  %v6117_v31 = vrot.slane %v6115_v48, 3  ;;  %v6265_v48 = vshll.u32 %v13853_v22, 16 }
 0x731   :  { %8293 = vmatpush1.bf16.msra.mxu1 %v11257_v12  ;;  %v11272_v12 = vld [vmem:[#allocation11 + $0x500] ss:$8 sps:$4 sm:$0xff]  }
 0x732   :  { %8294 = vmatprep.subr.bf16.mxu1 %v11262_v20  ;;  %v11277_v20 = vld [vmem:[#allocation11 + $0x514] ss:$8 sps:$4 sm:$0xff]  }
 0x734   :  { %8202 = vmatmul.mubr.bf16.gmra.mrb[200].mxu1 %v14494_v60  ;;  %v11280_v60 = vld [vmem:[#allocation11 + $0x524] ss:$8 sps:$4 sm:$0xff]  }
 0x735   :  { %8211 = vmatprep.mubr.bf16.mxu1 %v14495_v55  ;;  %8295 = vmatpush1.bf16.msra.mxu1 %v11260_v37  ;;  %v14501_v37 = vld [vmem:[#allocation38_spill] sm:$0xff] }
 0x736   :  { %8296 = vmatprep.subr.bf16.mxu1 %v11265_v13  ;;  %v11275_v13 = vld [vmem:[#allocation11 + $0x510] ss:$8 sps:$4 sm:$0xff]   ;;  %v11278_v55 = vld [vmem:[#allocation11 + $0x520] ss:$8 sps:$4 sm:$0xff]  }
 0x739   :  { %8297 = vmatpush1.bf16.msra.mxu1 %v11263_v62  ;;  %v11283_v62 = vld [vmem:[#allocation11 + $0x534] ss:$8 sps:$4 sm:$0xff]  }
 0x73a   :  { %8298 = vmatprep.subr.bf16.mxu1 %v11268_v32  ;;  %v14502_v32 = vld [vmem:[#allocation39_spill] sm:$0xff] }
 0x73c   :  { %8212 = vmatmul.mubr.bf16.gmra.mrb[204].mxu1 %v14496_v28  ;;  %v11289_v28 = vld [vmem:[#allocation11 + $0x554] ss:$8 sps:$4 sm:$0xff]  }
 0x73d   :  { %8221 = vmatprep.mubr.bf16.mxu1 %v14497_v35  ;;  %8299 = vmatpush1.bf16.msra.mxu1 %v11266_v50  ;;  %v11281_v50 = vld [vmem:[#allocation11 + $0x530] ss:$8 sps:$4 sm:$0xff]   ;;  %v14503_v35 = vld [vmem:[#allocation19_spill] sm:$0xff] }
 0x73e   :  { %8300 = vmatprep.subr.bf16.mxu1 %v11271_v15  ;;  %v11286_v15 = vld [vmem:[#allocation11 + $0x544] ss:$8 sps:$4 sm:$0xff]  }
 0x741   :  { %8301 = vmatpush1.bf16.msra.mxu1 %v11269_v14  ;;  %v11287_v14 = vld [vmem:[#allocation11 + $0x550] ss:$8 sps:$4 sm:$0xff]  }
 0x742   :  { %8431 = vmatprep.subr.bf16.mxu1 %v11274_v57  ;;  %v11292_v57 = vld [vmem:[#allocation11 + $0x564] ss:$8 sps:$4 sm:$0xff]  }
 0x744   :  { %8222 = vmatmul.mubr.bf16.gmra.mrb[208].mxu1 %v14498_v38  ;;  %v11295_v38 = vld [vmem:[#allocation11 + $0x574] ss:$8 sps:$4 sm:$0xff]  }
 0x745   :  { %8231 = vmatprep.mubr.bf16.mxu1 %v13614_v59  ;;  %v6260_v59 = vsel %vm743_vm5, %v13636_v33, %v6259_v6  ;;  %v6118_v33 = vor.u32 %v6117_v31, %v6114_v1  ;;  %v14509_v1 = vrot.slane %v13700_v8, 3  ;;  %v14517_v8 = vld [vmem:[#allocation57_spill] sm:$0xff] }
 0x74c   :  { %8232 = vmatmul.mubr.bf16.gmra.mrb[212].mxu1 %v13620_v40  ;;  %v6251_v40 = vsel %vm743_vm5, %v13638_v45, %v6250_v11  ;;  %v6122_v45 = vsel %vm743_vm5, %v6118_v33, %v13707_v56  ;;  %v11284_v56 = vld [vmem:[#allocation11 + $0x540] ss:$8 sps:$4 sm:$0xff]  }
 0x74d   :  { %8241 = vmatprep.mubr.bf16.mxu1 %v13649_v10  ;;  %v5736_v10 = vld [vmem:[#allocation5] sm:$0xf8] }
 0x74e   :  { %v6348_v4 = vrot.slane %v5736_v10, 3  ;;  %v11319_v10 = vld [vmem:[#allocation11 + $0x5f4] ss:$8 sps:$4 sm:$0xff]   ;;  %v14513_v33 = vld [vmem:[#allocation47_spill] sm:$0xff] }
 0x754   :  { %8242 = vmatmul.mubr.bf16.gmra.mrb[216].mxu1 %v13656_v18  ;;  %v14500_v18 = vrot.slane %v14499_v47, 3  ;;  %v5737_v47 = vld [vmem:[#allocation5 + $0x8] sm:$0xf8] }
 0x755   :  { %8251 = vmatprep.mubr.bf16.mxu1 %v6260_v59  ;;  %v11313_v59 = vld [vmem:[#allocation11 + $0x5d4] ss:$8 sps:$4 sm:$0xff]  }
 0x756   :  { %v6350_v54 = vsel %vm415_vm0, %v6348_v4, %v14500_v18  ;;  %v14510_v18 = vld [vmem:[#allocation18_spill] sm:$0xff] }
 0x75c   :  { %8252 = vmatmul.mubr.bf16.gmra.mrb[220].mxu1 %v6251_v40  ;;  %v11311_v40 = vld [vmem:[#allocation11 + $0x5d0] ss:$8 sps:$4 sm:$0xff]  }
 0x75d   :  { %8261 = vmatprep.mubr.bf16.mxu1 %v6259_v6  ;;  %v14506_v6 = vld [vmem:[#allocation54_spill] sm:$0xff] }
 0x764   :  { %8262 = vmatmul.mubr.bf16.gmra.mrb[224].mxu1 %v6250_v11  ;;  %v14507_v11 = vld [vmem:[#allocation60_spill] sm:$0xff] }
 0x765   :  { %8302 = vmatprep.mubr.bf16.mxu1 %v6350_v54 }
 0x76c   :  { %8303 = vmatmul.mubr.bf16.vlgmr.msra.gmra.mrb[176].mxu1 %v6122_v45  ;;  %v14518_v45 = vld [vmem:[#allocation77_spill] sm:$0xff] }
 0x76d   :  { %8432 = vmatpush1.bf16.msra.mxu1 %v11272_v12  ;;  %8312 = vmatprep.mubr.bf16.mxu1 %v14501_v37  ;;  %v14515_v12 = vld [vmem:[#allocation56_spill] sm:$0xff]  ;;  %v14519_v37 = vld [vmem:[#allocation65_spill] sm:$0xff] }
 0x76e   :  { %8433 = vmatprep.subr.bf16.mxu1 %v11277_v20  ;;  %v14516_v20 = vld [vmem:[#allocation76_spill] sm:$0xff] }
 0x771   :  { %8434 = vmatpush1.bf16.msra.mxu1 %v11275_v13  ;;  %v14520_v13 = vld [vmem:[#allocation78_spill] sm:$0xff] }
 0x772   :  { %8435 = vmatprep.subr.bf16.mxu1 %v11280_v60  ;;  %v14521_v60 = vld [vmem:[#allocation66_spill] sm:$0xff] }
 0x774   :  { %8313 = vmatmul.mubr.bf16.gmra.mrb[180].mxu1 %v13728_v24  ;;  %v11290_v24 = vld [vmem:[#allocation11 + $0x560] ss:$8 sps:$4 sm:$0xff]  }
 0x775   :  { %8322 = vmatprep.mubr.bf16.mxu1 %v14502_v32  ;;  %8436 = vmatpush1.bf16.msra.mxu1 %v11278_v55  ;;  %v14522_v55 = vld [vmem:[#allocation24_spill] sm:$0xff]  ;;  %v14524_v32 = vld [vmem:[#allocation25_spill] sm:$0xff] }
 0x776   :  { %8437 = vmatprep.subr.bf16.mxu1 %v11283_v62  ;;  %v14523_v62 = vld [vmem:[#allocation67_spill] sm:$0xff] }
 0x779   :  { %8438 = vmatpush1.bf16.msra.mxu1 %v11281_v50  ;;  %v14525_v50 = vld [vmem:[#allocation68_spill] sm:$0xff] }
 0x77a   :  { %8439 = vmatprep.subr.bf16.mxu1 %v11286_v15  ;;  %v14526_v15 = vld [vmem:[#allocation61_spill] sm:$0xff] }
 0x77c   :  { %8323 = vmatmul.mubr.bf16.gmra.mrb[184].mxu1 %v13740_v46  ;;  %v11296_v46 = vld [vmem:[#allocation11 + $0x580] ss:$8 sps:$4 sm:$0xff]  }
 0x77d   :  { %8332 = vmatprep.mubr.bf16.mxu1 %v14503_v35  ;;  %8440 = vmatpush1.bf16.msra.mxu1 %v11284_v56  ;;  %v14527_v56 = vld [vmem:[#allocation69_spill] sm:$0xff]  ;;  %v14529_v35 = vld [vmem:[#allocation71_spill] sm:$0xff] }
 0x77e   :  { %8441 = vmatprep.subr.bf16.mxu1 %v11289_v28  ;;  %v14528_v28 = vld [vmem:[#allocation70_spill] sm:$0xff] }
 0x781   :  { %8442 = vmatpush1.bf16.msra.mxu1 %v11287_v14  ;;  %v14530_v14 = vld [vmem:[#allocation73_spill] sm:$0xff] }
 0x782   :  { %8443 = vmatprep.subr.bf16.mxu1 %v11292_v57  ;;  %v14531_v57 = vld [vmem:[#allocation72_spill] sm:$0xff] }
 0x784   :  { %8333 = vmatmul.mubr.bf16.gmra.mrb[188].mxu1 %v13752_v29  ;;  %v11302_v29 = vld [vmem:[#allocation11 + $0x5a0] ss:$8 sps:$4 sm:$0xff]  }
 0x785   :  { %8342 = vmatprep.mubr.bf16.mxu1 %v14504_v30  ;;  %8444 = vmatpush1.bf16.msra.mxu1 %v11290_v24  ;;  %v14532_v24 = vrot.slane %v14531_v57, 3 }
 0x786   :  { %8445 = vmatprep.subr.bf16.mxu1 %v11295_v38  ;;  %v14533_v38 = vld [vmem:[#allocation15_spill] sm:$0xff] }
 0x789   :  { %8446 = vmatpush1.bf16.msra.mxu1 %v11293_v7 }
 0x78a   :  { %8447 = vmatprep.subr.bf16.mxu1 %v11298_v16 }
 0x78c   :  { %8343 = vmatmul.mubr.bf16.gmra.mrb[192].mxu1 %v13764_v3  ;;  %v11308_v3 = vld [vmem:[#allocation11 + $0x5c0] ss:$8 sps:$4 sm:$0xff]  }
 0x78d   :  { %8352 = vmatprep.mubr.bf16.mxu1 %v14505_v39  ;;  %8448 = vmatpush1.bf16.msra.mxu1 %v11296_v46 }
 0x78e   :  { %8449 = vmatprep.subr.bf16.mxu1 %v11301_v2 }
 0x791   :  { %8450 = vmatpush1.bf16.msra.mxu1 %v11299_v27 }
 0x792   :  { %8451 = vmatprep.subr.bf16.mxu1 %v11304_v42 }
 0x794   :  { %8353 = vmatmul.mubr.bf16.gmra.mrb[196].mxu1 %v13776_v41  ;;  %v11314_v41 = vld [vmem:[#allocation11 + $0x5e0] ss:$8 sps:$4 sm:$0xff]  }
 0x795   :  { %8362 = vmatprep.mubr.bf16.mxu1 %v14506_v6  ;;  %8452 = vmatpush1.bf16.msra.mxu1 %v11302_v29 }
 0x796   :  { %8453 = vmatprep.subr.bf16.mxu1 %v11307_v49 }
 0x799   :  { %8454 = vmatpush1.bf16.msra.mxu1 %v11305_v19 }
 0x79a   :  { %8455 = vmatprep.subr.bf16.mxu1 %v11310_v25 }
 0x79c   :  { %8363 = vmatmul.mubr.bf16.gmra.mrb[200].mxu1 %v13788_v21  ;;  %v6262_v21 = vshrl.u32 %v13853_v22, 16 }
 0x79d   :  { %8372 = vmatprep.mubr.bf16.mxu1 %v14507_v11  ;;  %8456 = vmatpush1.bf16.msra.mxu1 %v11308_v3 }
 0x79e   :  { %8457 = vmatprep.subr.bf16.mxu1 %v11313_v59  ;;  %v6264_v4 = vrot.slane %v6262_v21, 2 }
 0x7a1   :  { %8458 = vmatpush1.bf16.msra.mxu1 %v11311_v40 }
 0x7a2   :  { %8459 = vmatprep.subr.bf16.mxu1 %v11316_v5 }
 0x7a4   :  { %8373 = vmatmul.mubr.bf16.gmra.mrb[204].mxu1 %v13800_v44  ;;  %v6267_v44 = vrot.slane %v6265_v48, 3 }
 0x7a5   :  { %8382 = vmatprep.mubr.bf16.mxu1 %v13583_v52  ;;  %8460 = vmatpush1.bf16.msra.mxu1 %v11314_v41 }
 0x7a6   :  { %8461 = vmatprep.subr.bf16.mxu1 %v11319_v10  ;;  %v6268_v52 = vor.u32 %v6267_v44, %v6264_v4 }
 0x7a9   :  { %8462 = vmatpush1.bf16.msra.mxu1 %v11317_v53 }
 0x7ac   :  { %8383 = vmatmul.mubr.bf16.gmra.mrb[208].mxu1 %v13812_v23  ;;  %v6269_v23 = vsel %vm743_vm5, %v13846_v63, %v6268_v52  ;;  %v14512_v63 = vld [vmem:[#allocation74_spill] sm:$0xff] }
 0x7ad   :  { %8392 = vmatprep.mubr.bf16.mxu1 %v13643_v34  ;;  %v14508_v34 = vrot.slane %v13685_v51, 3  ;;  %v14514_v51 = vld [vmem:[#allocation75_spill] sm:$0xff] }
 0x7b4   :  { %8393 = vmatmul.mubr.bf16.gmra.mrb[212].mxu1 %v13829_v61  ;;  %v5738_v61 = vld [vmem:[#allocation5 + $0x10] sm:$0xf8] }
 0x7b5   :  { %8402 = vmatprep.mubr.bf16.mxu1 %v13659_v26  ;;  %v6354_v26 = vrot.slane %v5738_v61, 3 }
 0x7b7   :  { %v6356_v31 = vsel %vm415_vm0, %v6354_v26, %v14509_v1 }
 0x7bc   :  { %8403 = vmatmul.mubr.bf16.gmra.mrb[216].mxu1 %v13851_v9  ;;  %v6351_v9 = vrot.slane %v5737_v47, 3 }
 0x7bd   :  { %8412 = vmatprep.mubr.bf16.mxu1 %v13693_v58  ;;  %v14511_v58 = vrot.slane %v14510_v18, 3 }
 0x7bf   :  { %v6353_v54 = vsel %vm415_vm0, %v6351_v9, %v14511_v58 }
 0x7c4   :  { %8413 = vmatmul.mubr.bf16.gmra.mrb[220].mxu1 %v6269_v23 }
 0x7c5   :  { %8422 = vmatprep.mubr.bf16.mxu1 %v14508_v34 }
 0x7cc   :  { %8423 = vmatmul.mubr.bf16.gmra.mrb[224].mxu1 %v6268_v52 }
 0x7cd   :  { %8463 = vmatprep.mubr.bf16.mxu1 %v6356_v31 }
 0x7d4   :  { %8464 = vmatmul.mubr.bf16.vlgmr.msra.gmra.mrb[176].mxu1 %v6353_v54 }
 0x7d5   :  { %8473 = vmatprep.mubr.bf16.mxu1 %v14512_v63 }
 0x7dc   :  { %8474 = vmatmul.mubr.bf16.gmra.mrb[180].mxu1 %v14513_v33 }
 0x7dd   :  { %8483 = vmatprep.mubr.bf16.mxu1 %v14514_v51 }
 0x7e4   :  { %8484 = vmatmul.mubr.bf16.gmra.mrb[184].mxu1 %v14515_v12 }
 0x7e5   :  { %8493 = vmatprep.mubr.bf16.mxu1 %v14516_v20 }
 0x7ec   :  { %8494 = vmatmul.mubr.bf16.gmra.mrb[188].mxu1 %v14517_v8 }
 0x7ed   :  { %8503 = vmatprep.mubr.bf16.mxu1 %v14518_v45 }
 0x7f4   :  { %8504 = vmatmul.mubr.bf16.gmra.mrb[192].mxu1 %v14519_v37 }
 0x7f5   :  { %8513 = vmatprep.mubr.bf16.mxu1 %v14520_v13 }
 0x7fc   :  { %8514 = vmatmul.mubr.bf16.gmra.mrb[196].mxu1 %v14521_v60 }
 0x7fd   :  { %8523 = vmatprep.mubr.bf16.mxu1 %v14522_v55 }
 0x804   :  { %8524 = vmatmul.mubr.bf16.gmra.mrb[200].mxu1 %v14523_v62 }
 0x805   :  { %8533 = vmatprep.mubr.bf16.mxu1 %v14524_v32 }
 0x80c   :  { %8534 = vmatmul.mubr.bf16.gmra.mrb[204].mxu1 %v14525_v50 }
 0x80d   :  { %8543 = vmatprep.mubr.bf16.mxu1 %v14526_v15 }
 0x814   :  { %8544 = vmatmul.mubr.bf16.gmra.mrb[208].mxu1 %v14527_v56 }
 0x815   :  { %8553 = vmatprep.mubr.bf16.mxu1 %v13820_v36  ;;  %v6654_v36 = vld [vmem:[%s14239_s11] sm:$0x3] }
 0x816   :  { %v13987_v30 = vrot.slane %v6654_v36, %v14533_v38 }
 0x81c   :  { %8554 = vmatmul.mubr.bf16.gmra.mrb[212].mxu1 %v14528_v28 }
 0x81d   :  { %8563 = vmatprep.mubr.bf16.mxu1 %v13840_v43  ;;  %v8642_v43 = vld [vmem:[%s14240_s12] sm:$0x3] }
 0x824   :  { %8564 = vmatmul.mubr.bf16.gmra.mrb[216].mxu1 %v14529_v35 }
 0x825   :  { %8573 = vmatprep.mubr.bf16.mxu1 %v13860_v17  ;;  %v14534_v17 = vld [vmem:[#allocation16_spill] sm:$0xff] }
 0x826   :  { %v13993_v7 = vrot.slane %v6654_v36, %v14534_v17  ;;  %v14001_v39 = vrot.slane %v8642_v43, %v14534_v17 }
 0x82c   :  { %8574 = vmatmul.mubr.bf16.gmra.mrb[220].mxu1 %v14530_v14 }
 0x82d   :  { %8583 = vmatprep.mubr.bf16.mxu1 %v6421_v0  ;;  %v13997_v0 = vrot.slane %v8642_v43, %v14533_v38 }
 0x834   :  { %8584 = vmatmul.mubr.bf16.gmra.mrb[224].mxu1 %v14532_v24 }
 0x8a7   :  { %v8465_v16 = vpop.f32.mrb[176].mxu1 }
 0x8a8   :  { %v10101_v22 = vadd.f32 %v8465_v16, %v13987_v30  ;;  %v8467_v46 = vpop.f32.mrb[177].mxu1 }
 0x8a9   :  { %v10102_v2 = vadd.f32 %v8467_v46, %v13993_v7  ;;  %v8469_v27 = vpop.f32.mrb[178].mxu1 }
 0x8aa   :  { %v8592_v42 = vmax.f32 %v10101_v22, 0.0  ;;  %v10103_v29 = vadd.f32 %v8469_v27, %v13987_v30  ;;  %v8471_v49 = vpop.f32.mrb[179].mxu1 }
 0x8ab   :  { %v8593_v6 = vmax.f32 %v10102_v2, 0.0  ;;  %v10104_v19 = vadd.f32 %v8471_v49, %v13993_v7 }
 0x8ac   :  { %v8654_v25 = vmul.f32 %v13997_v0, %v8592_v42  ;;  %v8594_v3 = vmax.f32 %v10103_v29, 0.0 }
 0x8ad   :  { %v8655_v59 = vmul.f32 %v14001_v39, %v8593_v6  ;;  %v8595_v11 = vmax.f32 %v10104_v19, 0.0 }
 0x8ae   :  { %v8656_v40 = vmul.f32 %v13997_v0, %v8594_v3 }
 0x8af   :  { %v8657_v5 = vmul.f32 %v14001_v39, %v8595_v11  ;;  %v8475_v41 = vpop.f32.mrb[180].mxu1  ;;  %v8704_v10 = vadd.f32 %v8655_v59, %v8654_v25 }
 0x8b0   :  { %v10105_v53 = vadd.f32 %v8475_v41, %v13987_v30  ;;  %v8477_v21 = vpop.f32.mrb[181].mxu1 }
 0x8b1   :  { %v10106_v48 = vadd.f32 %v8477_v21, %v13993_v7  ;;  %v8479_v4 = vpop.f32.mrb[182].mxu1  ;;  %8705 = vadd.xlane.f32.xlu1 %v8704_v10  ;;  %v8707_v44 = vadd.f32 %v8657_v5, %v8656_v40 }
 0x8b2   :  { %v8596_v52 = vmax.f32 %v10105_v53, 0.0  ;;  %v10107_v23 = vadd.f32 %v8479_v4, %v13987_v30  ;;  %v8481_v34 = vpop.f32.mrb[183].mxu1 }
 0x8b3   :  { %v8597_v61 = vmax.f32 %v10106_v48, 0.0  ;;  %v10108_v26 = vadd.f32 %v8481_v34, %v13993_v7  ;;  %8708 = vadd.xlane.f32.xlu0 %v8707_v44 }
 0x8b4   :  { %v8658_v1 = vmul.f32 %v13997_v0, %v8596_v52  ;;  %v8598_v31 = vmax.f32 %v10107_v23, 0.0 }
 0x8b5   :  { %v8659_v47 = vmul.f32 %v14001_v39, %v8597_v61  ;;  %v8599_v9 = vmax.f32 %v10108_v26, 0.0 }
 0x8b6   :  { %v8660_v18 = vmul.f32 %v13997_v0, %v8598_v31 }
 0x8b7   :  { %v8661_v58 = vmul.f32 %v14001_v39, %v8599_v9  ;;  %v8485_v54 = vpop.f32.mrb[184].mxu1  ;;  %v8710_v63 = vadd.f32 %v8659_v47, %v8658_v1 }
 0x8b8   :  { %v10109_v33 = vadd.f32 %v8485_v54, %v13987_v30  ;;  %v8487_v51 = vpop.f32.mrb[185].mxu1 }
 0x8b9   :  { %v10110_v12 = vadd.f32 %v8487_v51, %v13993_v7  ;;  %v8489_v20 = vpop.f32.mrb[186].mxu1  ;;  %8711 = vadd.xlane.f32.xlu0 %v8710_v63  ;;  %v8713_v8 = vadd.f32 %v8661_v58, %v8660_v18 }
 0x8ba   :  { %v8600_v45 = vmax.f32 %v10109_v33, 0.0  ;;  %v10111_v37 = vadd.f32 %v8489_v20, %v13987_v30  ;;  %v8491_v13 = vpop.f32.mrb[187].mxu1 }
 0x8bb   :  { %v8601_v60 = vmax.f32 %v10110_v12, 0.0  ;;  %v10112_v55 = vadd.f32 %v8491_v13, %v13993_v7  ;;  %8714 = vadd.xlane.f32.xlu1 %v8713_v8 }
 0x8bc   :  { %v8662_v62 = vmul.f32 %v13997_v0, %v8600_v45  ;;  %v8602_v32 = vmax.f32 %v10111_v37, 0.0 }
 0x8bd   :  { %v8663_v50 = vmul.f32 %v14001_v39, %v8601_v60  ;;  %v8603_v15 = vmax.f32 %v10112_v55, 0.0 }
 0x8be   :  { %v8664_v56 = vmul.f32 %v13997_v0, %v8602_v32 }
 0x8bf   :  { %v8665_v28 = vmul.f32 %v14001_v39, %v8603_v15  ;;  %v8495_v35 = vpop.f32.mrb[188].mxu1  ;;  %v8716_v14 = vadd.f32 %v8663_v50, %v8662_v62 }
 0x8c0   :  { %v10113_v57 = vadd.f32 %v8495_v35, %v13987_v30  ;;  %v8497_v24 = vpop.f32.mrb[189].mxu1 }
 0x8c1   :  { %v10114_v36 = vadd.f32 %v8497_v24, %v13993_v7  ;;  %v8499_v38 = vpop.f32.mrb[190].mxu1  ;;  %8717 = vadd.xlane.f32.xlu0 %v8716_v14  ;;  %v8719_v43 = vadd.f32 %v8665_v28, %v8664_v56 }
 0x8c2   :  { %v8604_v17 = vmax.f32 %v10113_v57, 0.0  ;;  %v10115_v16 = vadd.f32 %v8499_v38, %v13987_v30  ;;  %v8501_v22 = vpop.f32.mrb[191].mxu1 }
 0x8c3   :  { %v8605_v46 = vmax.f32 %v10114_v36, 0.0  ;;  %v10116_v2 = vadd.f32 %v8501_v22, %v13993_v7  ;;  %8720 = vadd.xlane.f32.xlu1 %v8719_v43 }
 0x8c4   :  { %v8666_v27 = vmul.f32 %v13997_v0, %v8604_v17  ;;  %v8606_v42 = vmax.f32 %v10115_v16, 0.0 }
 0x8c5   :  { %v8667_v29 = vmul.f32 %v14001_v39, %v8605_v46  ;;  %v8607_v49 = vmax.f32 %v10116_v2, 0.0 }
 0x8c6   :  { %v8668_v6 = vmul.f32 %v13997_v0, %v8606_v42 }
 0x8c7   :  { %v8669_v19 = vmul.f32 %v14001_v39, %v8607_v49  ;;  %v8505_v25 = vpop.f32.mrb[192].mxu1  ;;  %v8722_v3 = vadd.f32 %v8667_v29, %v8666_v27 }
 0x8c8   :  { %v10117_v59 = vadd.f32 %v8505_v25, %v13987_v30  ;;  %v8507_v11 = vpop.f32.mrb[193].mxu1 }
 0x8c9   :  { %v10118_v40 = vadd.f32 %v8507_v11, %v13993_v7  ;;  %v8509_v5 = vpop.f32.mrb[194].mxu1  ;;  %8723 = vadd.xlane.f32.xlu0 %v8722_v3  ;;  %v8725_v41 = vadd.f32 %v8669_v19, %v8668_v6 }
 0x8ca   :  { %v8608_v10 = vmax.f32 %v10117_v59, 0.0  ;;  %v10119_v53 = vadd.f32 %v8509_v5, %v13987_v30  ;;  %v8511_v21 = vpop.f32.mrb[195].mxu1 }
 0x8cb   :  { %v8609_v48 = vmax.f32 %v10118_v40, 0.0  ;;  %v10120_v4 = vadd.f32 %v8511_v21, %v13993_v7  ;;  %8726 = vadd.xlane.f32.xlu1 %v8725_v41 }
 0x8cc   :  { %v8670_v44 = vmul.f32 %v13997_v0, %v8608_v10  ;;  %v8610_v52 = vmax.f32 %v10119_v53, 0.0 }
 0x8cd   :  { %v8671_v23 = vmul.f32 %v14001_v39, %v8609_v48  ;;  %v8611_v34 = vmax.f32 %v10120_v4, 0.0 }
 0x8ce   :  { %v8672_v61 = vmul.f32 %v13997_v0, %v8610_v52 }
 0x8cf   :  { %v8673_v26 = vmul.f32 %v14001_v39, %v8611_v34  ;;  %v8515_v1 = vpop.f32.mrb[196].mxu1  ;;  %v8728_v31 = vadd.f32 %v8671_v23, %v8670_v44 }
 0x8d0   :  { %v10121_v47 = vadd.f32 %v8515_v1, %v13987_v30  ;;  %v8517_v9 = vpop.f32.mrb[197].mxu1 }
 0x8d1   :  { %v10122_v18 = vadd.f32 %v8517_v9, %v13993_v7  ;;  %v8519_v58 = vpop.f32.mrb[198].mxu1  ;;  %8729 = vadd.xlane.f32.xlu0 %v8728_v31  ;;  %v8731_v54 = vadd.f32 %v8673_v26, %v8672_v61 }
 0x8d2   :  { %v8612_v63 = vmax.f32 %v10121_v47, 0.0  ;;  %v10123_v33 = vadd.f32 %v8519_v58, %v13987_v30  ;;  %v8521_v51 = vpop.f32.mrb[199].mxu1 }
 0x8d3   :  { %v8613_v12 = vmax.f32 %v10122_v18, 0.0  ;;  %v10124_v20 = vadd.f32 %v8521_v51, %v13993_v7  ;;  %8732 = vadd.xlane.f32.xlu1 %v8731_v54 }
 0x8d4   :  { %v8674_v8 = vmul.f32 %v13997_v0, %v8612_v63  ;;  %v8614_v45 = vmax.f32 %v10123_v33, 0.0 }
 0x8d5   :  { %v8675_v37 = vmul.f32 %v14001_v39, %v8613_v12  ;;  %v8615_v13 = vmax.f32 %v10124_v20, 0.0 }
 0x8d6   :  { %v8676_v60 = vmul.f32 %v13997_v0, %v8614_v45 }
 0x8d7   :  { %v8677_v55 = vmul.f32 %v14001_v39, %v8615_v13  ;;  %v8525_v62 = vpop.f32.mrb[200].mxu1  ;;  %v8734_v32 = vadd.f32 %v8675_v37, %v8674_v8 }
 0x8d8   :  { %v10125_v50 = vadd.f32 %v8525_v62, %v13987_v30  ;;  %v8527_v15 = vpop.f32.mrb[201].mxu1 }
 0x8d9   :  { %v10126_v56 = vadd.f32 %v8527_v15, %v13993_v7  ;;  %v8529_v28 = vpop.f32.mrb[202].mxu1  ;;  %8735 = vadd.xlane.f32.xlu0 %v8734_v32  ;;  %v8737_v35 = vadd.f32 %v8677_v55, %v8676_v60 }
 0x8da   :  { %v8616_v14 = vmax.f32 %v10125_v50, 0.0  ;;  %v10127_v57 = vadd.f32 %v8529_v28, %v13987_v30  ;;  %v8531_v24 = vpop.f32.mrb[203].mxu1 }
 0x8db   :  { %v8617_v36 = vmax.f32 %v10126_v56, 0.0  ;;  %v10128_v38 = vadd.f32 %v8531_v24, %v13993_v7  ;;  %8738 = vadd.xlane.f32.xlu1 %v8737_v35 }
 0x8dc   :  { %v8678_v43 = vmul.f32 %v13997_v0, %v8616_v14  ;;  %v8618_v17 = vmax.f32 %v10127_v57, 0.0 }
 0x8dd   :  { %v8679_v16 = vmul.f32 %v14001_v39, %v8617_v36  ;;  %v8619_v22 = vmax.f32 %v10128_v38, 0.0 }
 0x8de   :  { %v8680_v46 = vmul.f32 %v13997_v0, %v8618_v17 }
 0x8df   :  { %v8681_v2 = vmul.f32 %v14001_v39, %v8619_v22  ;;  %v8535_v27 = vpop.f32.mrb[204].mxu1  ;;  %v8740_v42 = vadd.f32 %v8679_v16, %v8678_v43 }
 0x8e0   :  { %v10129_v29 = vadd.f32 %v8535_v27, %v13987_v30  ;;  %v8537_v49 = vpop.f32.mrb[205].mxu1 }
 0x8e1   :  { %v10130_v6 = vadd.f32 %v8537_v49, %v13993_v7  ;;  %v8539_v19 = vpop.f32.mrb[206].mxu1  ;;  %8741 = vadd.xlane.f32.xlu0 %v8740_v42  ;;  %v8743_v25 = vadd.f32 %v8681_v2, %v8680_v46 }
 0x8e2   :  { %v8620_v3 = vmax.f32 %v10129_v29, 0.0  ;;  %v10131_v59 = vadd.f32 %v8539_v19, %v13987_v30  ;;  %v8541_v11 = vpop.f32.mrb[207].mxu1 }
 0x8e3   :  { %v8621_v40 = vmax.f32 %v10130_v6, 0.0  ;;  %v10132_v5 = vadd.f32 %v8541_v11, %v13993_v7  ;;  %8744 = vadd.xlane.f32.xlu1 %v8743_v25 }
 0x8e4   :  { %v8682_v41 = vmul.f32 %v13997_v0, %v8620_v3  ;;  %v8622_v10 = vmax.f32 %v10131_v59, 0.0 }
 0x8e5   :  { %v8683_v53 = vmul.f32 %v14001_v39, %v8621_v40  ;;  %v8623_v21 = vmax.f32 %v10132_v5, 0.0 }
 0x8e6   :  { %v8684_v48 = vmul.f32 %v13997_v0, %v8622_v10 }
 0x8e7   :  { %v8685_v4 = vmul.f32 %v14001_v39, %v8623_v21  ;;  %v8545_v44 = vpop.f32.mrb[208].mxu1  ;;  %v8746_v52 = vadd.f32 %v8683_v53, %v8682_v41 }
 0x8e8   :  { %v10133_v23 = vadd.f32 %v8545_v44, %v13987_v30  ;;  %v8547_v34 = vpop.f32.mrb[209].mxu1 }
 0x8e9   :  { %v10134_v61 = vadd.f32 %v8547_v34, %v13993_v7  ;;  %v8549_v26 = vpop.f32.mrb[210].mxu1  ;;  %8747 = vadd.xlane.f32.xlu0 %v8746_v52  ;;  %v8749_v1 = vadd.f32 %v8685_v4, %v8684_v48 }
 0x8ea   :  { %v8624_v31 = vmax.f32 %v10133_v23, 0.0  ;;  %v10135_v47 = vadd.f32 %v8549_v26, %v13987_v30  ;;  %v8551_v9 = vpop.f32.mrb[211].mxu1 }
 0x8eb   :  { %v8625_v18 = vmax.f32 %v10134_v61, 0.0  ;;  %v10136_v58 = vadd.f32 %v8551_v9, %v13993_v7  ;;  %8750 = vadd.xlane.f32.xlu1 %v8749_v1 }
 0x8ec   :  { %v8686_v54 = vmul.f32 %v13997_v0, %v8624_v31  ;;  %v8626_v63 = vmax.f32 %v10135_v47, 0.0 }
 0x8ed   :  { %v8687_v33 = vmul.f32 %v14001_v39, %v8625_v18  ;;  %v8627_v51 = vmax.f32 %v10136_v58, 0.0 }
 0x8ee   :  { %v8688_v12 = vmul.f32 %v13997_v0, %v8626_v63 }
 0x8ef   :  { %v8689_v20 = vmul.f32 %v14001_v39, %v8627_v51  ;;  %v8555_v8 = vpop.f32.mrb[212].mxu1  ;;  %v8752_v45 = vadd.f32 %v8687_v33, %v8686_v54 }
 0x8f0   :  { %v10137_v37 = vadd.f32 %v8555_v8, %v13987_v30  ;;  %v8557_v13 = vpop.f32.mrb[213].mxu1 }
 0x8f1   :  { %v10138_v60 = vadd.f32 %v8557_v13, %v13993_v7  ;;  %v8559_v55 = vpop.f32.mrb[214].mxu1  ;;  %8753 = vadd.xlane.f32.xlu0 %v8752_v45  ;;  %v8755_v62 = vadd.f32 %v8689_v20, %v8688_v12 }
 0x8f2   :  { %v8628_v32 = vmax.f32 %v10137_v37, 0.0  ;;  %v10139_v50 = vadd.f32 %v8559_v55, %v13987_v30  ;;  %v8561_v15 = vpop.f32.mrb[215].mxu1 }
 0x8f3   :  { %v8629_v56 = vmax.f32 %v10138_v60, 0.0  ;;  %v10140_v28 = vadd.f32 %v8561_v15, %v13993_v7  ;;  %8756 = vadd.xlane.f32.xlu1 %v8755_v62 }
 0x8f4   :  { %v8690_v35 = vmul.f32 %v13997_v0, %v8628_v32  ;;  %v8630_v14 = vmax.f32 %v10139_v50, 0.0  ;;  %v14101_v32 = vld [vmem:[#allocation6] ss:$0 sm:$0xff] }
 0x8f5   :  { %v8691_v57 = vmul.f32 %v14001_v39, %v8629_v56  ;;  %v8631_v24 = vmax.f32 %v10140_v28, 0.0 }
 0x8f6   :  { %v8692_v36 = vmul.f32 %v13997_v0, %v8630_v14 }
 0x8f7   :  { %v8693_v38 = vmul.f32 %v14001_v39, %v8631_v24  ;;  %v8565_v43 = vpop.f32.mrb[216].mxu1  ;;  %v8758_v17 = vadd.f32 %v8691_v57, %v8690_v35 }
 0x8f8   :  { %v10141_v16 = vadd.f32 %v8565_v43, %v13987_v30  ;;  %v8567_v22 = vpop.f32.mrb[217].mxu1 }
 0x8f9   :  { %v10142_v46 = vadd.f32 %v8567_v22, %v13993_v7  ;;  %v8569_v2 = vpop.f32.mrb[218].mxu1  ;;  %8759 = vadd.xlane.f32.xlu0 %v8758_v17  ;;  %v8761_v27 = vadd.f32 %v8693_v38, %v8692_v36 }
 0x8fa   :  { %v8632_v42 = vmax.f32 %v10141_v16, 0.0  ;;  %v10143_v29 = vadd.f32 %v8569_v2, %v13987_v30  ;;  %v8571_v49 = vpop.f32.mrb[219].mxu1 }
 0x8fb   :  { %v8633_v6 = vmax.f32 %v10142_v46, 0.0  ;;  %v10144_v19 = vadd.f32 %v8571_v49, %v13993_v7  ;;  %8762 = vadd.xlane.f32.xlu1 %v8761_v27 }
 0x8fc   :  { %v8694_v25 = vmul.f32 %v13997_v0, %v8632_v42  ;;  %v8634_v3 = vmax.f32 %v10143_v29, 0.0 }
 0x8fd   :  { %v8695_v59 = vmul.f32 %v14001_v39, %v8633_v6  ;;  %v8635_v11 = vmax.f32 %v10144_v19, 0.0 }
 0x8fe   :  { %v8696_v40 = vmul.f32 %v13997_v0, %v8634_v3 }
 0x8ff   :  { %v8697_v5 = vmul.f32 %v14001_v39, %v8635_v11  ;;  %v8575_v41 = vpop.f32.mrb[220].mxu1  ;;  %v8764_v10 = vadd.f32 %v8695_v59, %v8694_v25 }
 0x900   :  { %v10145_v53 = vadd.f32 %v8575_v41, %v13987_v30  ;;  %v8577_v21 = vpop.f32.mrb[221].mxu1 }
 0x901   :  { %v10146_v48 = vadd.f32 %v8577_v21, %v13993_v7  ;;  %v8579_v4 = vpop.f32.mrb[222].mxu1  ;;  %8765 = vadd.xlane.f32.xlu0 %v8764_v10  ;;  %v8767_v44 = vadd.f32 %v8697_v5, %v8696_v40 }
 0x902   :  { %v8636_v52 = vmax.f32 %v10145_v53, 0.0  ;;  %v10147_v23 = vadd.f32 %v8579_v4, %v13987_v30  ;;  %v8581_v34 = vpop.f32.mrb[223].mxu1 }
 0x903   :  { %v8637_v61 = vmax.f32 %v10146_v48, 0.0  ;;  %v10148_v26 = vadd.f32 %v8581_v34, %v13993_v7  ;;  %8768 = vadd.xlane.f32.xlu1 %v8767_v44 }
 0x904   :  { %v8698_v1 = vmul.f32 %v13997_v0, %v8636_v52  ;;  %v8638_v31 = vmax.f32 %v10147_v23, 0.0 }
 0x905   :  { %v8699_v47 = vmul.f32 %v14001_v39, %v8637_v61  ;;  %v8639_v9 = vmax.f32 %v10148_v26, 0.0 }
 0x906   :  { %v8700_v18 = vmul.f32 %v13997_v0, %v8638_v31 }
 0x907   :  { %v8701_v58 = vmul.f32 %v14001_v39, %v8639_v9  ;;  %v8585_v54 = vpop.f32.mrb[224].mxu1  ;;  %v8770_v63 = vadd.f32 %v8699_v47, %v8698_v1 }
 0x908   :  { %v10149_v33 = vadd.f32 %v8585_v54, %v13987_v30  ;;  %v8587_v51 = vpop.f32.mrb[225].mxu1 }
 0x909   :  { %v10150_v12 = vadd.f32 %v8587_v51, %v13993_v7  ;;  %v8589_v20 = vpop.f32.mrb[226].mxu1  ;;  %8771 = vadd.xlane.f32.xlu0 %v8770_v63  ;;  %v8773_v8 = vadd.f32 %v8701_v58, %v8700_v18 }
 0x90a   :  { %v8640_v45 = vmax.f32 %v10149_v33, 0.0  ;;  %v8590_v37 = vpop.f32.mrb[227].mxu1 }
 0x90b   :  { %v8641_v13 = vmax.f32 %v10150_v12, 0.0  ;;  %8774 = vadd.xlane.f32.xlu1 %v8773_v8 }
 0x90c   :  { %v8702_v60 = vmul.f32 %v13997_v0, %v8640_v45 }
 0x90d   :  { %v8703_v55 = vmul.f32 %v14001_v39, %v8641_v13 }
 0x90f   :  { %v8776_v62 = vadd.f32 %v8703_v55, %v8702_v60 }
 0x911   :  { %8777 = vadd.xlane.f32.xlu0 %v8776_v62 }
 0x93e   :  { %v8706_v30 = vpop.xlane.xlu1 %8705 }
 0x93f   :  { %v8786_v50 = vadd.f32 %v14101_v32, %v8706_v30 }
 0x940   :  { %v8709_v7 = vpop.xlane.xlu0 %8708 }
 0x941   :  { %8812 = vst.msk [vmem:[%s14242_s14] sm:$0xff] %vm8811_vm6, %v8786_v50  ;;  %v8787_v15 = vadd.f32 %v14101_v32, %v8709_v7 }
 0x943   :  { %8813 = vst.msk [vmem:[%s14242_s14 + $0x8] sm:$0xff] %vm8811_vm6, %v8787_v15 }
 0x946   :  { %v8712_v0 = vpop.xlane.xlu0 %8711 }
 0x947   :  { %v8788_v39 = vadd.f32 %v14101_v32, %v8712_v0 }
 0x948   :  { %v8715_v56 = vpop.xlane.xlu1 %8714 }
 0x949   :  { %8814 = vst.msk [vmem:[%s14242_s14 + $0x10] sm:$0xff] %vm8811_vm6, %v8788_v39  ;;  %v8789_v28 = vadd.f32 %v14101_v32, %v8715_v56 }
 0x94b   :  { %8815 = vst.msk [vmem:[%s14242_s14 + $0x18] sm:$0xff] %vm8811_vm6, %v8789_v28 }
 0x94e   :  { %v8718_v35 = vpop.xlane.xlu0 %8717 }
 0x94f   :  { %v8790_v14 = vadd.f32 %v14101_v32, %v8718_v35 }
 0x950   :  { %v8721_v57 = vpop.xlane.xlu1 %8720 }
 0x951   :  { %8816 = vst.msk [vmem:[%s14242_s14 + $0x20] sm:$0xff] %vm8811_vm6, %v8790_v14  ;;  %v8791_v24 = vadd.f32 %v14101_v32, %v8721_v57 }
 0x953   :  { %8817 = vst.msk [vmem:[%s14242_s14 + $0x28] sm:$0xff] %vm8811_vm6, %v8791_v24 }
 0x956   :  { %v8724_v36 = vpop.xlane.xlu0 %8723 }
 0x957   :  { %v8792_v38 = vadd.f32 %v14101_v32, %v8724_v36 }
 0x958   :  { %v8727_v43 = vpop.xlane.xlu1 %8726 }
 0x959   :  { %8818 = vst.msk [vmem:[%s14242_s14 + $0x30] sm:$0xff] %vm8811_vm6, %v8792_v38  ;;  %v8793_v17 = vadd.f32 %v14101_v32, %v8727_v43 }
 0x95b   :  { %8819 = vst.msk [vmem:[%s14242_s14 + $0x38] sm:$0xff] %vm8811_vm6, %v8793_v17 }
 0x95e   :  { %v8730_v16 = vpop.xlane.xlu0 %8729 }
 0x95f   :  { %v8794_v22 = vadd.f32 %v14101_v32, %v8730_v16 }
 0x960   :  { %v8733_v46 = vpop.xlane.xlu1 %8732 }
 0x961   :  { %8820 = vst.msk [vmem:[%s14242_s14 + $0x40] sm:$0xff] %vm8811_vm6, %v8794_v22  ;;  %v8795_v2 = vadd.f32 %v14101_v32, %v8733_v46 }
 0x963   :  { %8821 = vst.msk [vmem:[%s14242_s14 + $0x48] sm:$0xff] %vm8811_vm6, %v8795_v2 }
 0x966   :  { %v8736_v27 = vpop.xlane.xlu0 %8735 }
 0x967   :  { %v8796_v42 = vadd.f32 %v14101_v32, %v8736_v27 }
 0x968   :  { %v8739_v29 = vpop.xlane.xlu1 %8738 }
 0x969   :  { %8822 = vst.msk [vmem:[%s14242_s14 + $0x50] sm:$0xff] %vm8811_vm6, %v8796_v42  ;;  %v8797_v49 = vadd.f32 %v14101_v32, %v8739_v29 }
 0x96b   :  { %8823 = vst.msk [vmem:[%s14242_s14 + $0x58] sm:$0xff] %vm8811_vm6, %v8797_v49 }
 0x96e   :  { %v8742_v6 = vpop.xlane.xlu0 %8741 }
 0x96f   :  { %v8798_v19 = vadd.f32 %v14101_v32, %v8742_v6 }
 0x970   :  { %v8745_v25 = vpop.xlane.xlu1 %8744 }
 0x971   :  { %8824 = vst.msk [vmem:[%s14242_s14 + $0x60] sm:$0xff] %vm8811_vm6, %v8798_v19  ;;  %v8799_v3 = vadd.f32 %v14101_v32, %v8745_v25 }
 0x973   :  { %8825 = vst.msk [vmem:[%s14242_s14 + $0x68] sm:$0xff] %vm8811_vm6, %v8799_v3 }
 0x976   :  { %v8748_v59 = vpop.xlane.xlu0 %8747 }
 0x977   :  { %v8800_v11 = vadd.f32 %v14101_v32, %v8748_v59 }
 0x978   :  { %v8751_v40 = vpop.xlane.xlu1 %8750 }
 0x979   :  { %8826 = vst.msk [vmem:[%s14242_s14 + $0x70] sm:$0xff] %vm8811_vm6, %v8800_v11  ;;  %v8801_v5 = vadd.f32 %v14101_v32, %v8751_v40 }
 0x97b   :  { %8827 = vst.msk [vmem:[%s14242_s14 + $0x78] sm:$0xff] %vm8811_vm6, %v8801_v5 }
 0x97e   :  { %v8754_v41 = vpop.xlane.xlu0 %8753 }
 0x97f   :  { %v8802_v10 = vadd.f32 %v14101_v32, %v8754_v41 }
 0x980   :  { %v8757_v53 = vpop.xlane.xlu1 %8756 }
 0x981   :  { %8828 = vst.msk [vmem:[%s14242_s14 + $0x80] sm:$0xff] %vm8811_vm6, %v8802_v10  ;;  %v8803_v21 = vadd.f32 %v14101_v32, %v8757_v53 }
 0x983   :  { %8829 = vst.msk [vmem:[%s14242_s14 + $0x88] sm:$0xff] %vm8811_vm6, %v8803_v21 }
 0x986   :  { %v8760_v48 = vpop.xlane.xlu0 %8759 }
 0x987   :  { %v8804_v4 = vadd.f32 %v14101_v32, %v8760_v48 }
 0x988   :  { %v8763_v44 = vpop.xlane.xlu1 %8762 }
 0x989   :  { %8830 = vst.msk [vmem:[%s14242_s14 + $0x90] sm:$0xff] %vm8811_vm6, %v8804_v4  ;;  %v8805_v52 = vadd.f32 %v14101_v32, %v8763_v44 }
 0x98b   :  { %8831 = vst.msk [vmem:[%s14242_s14 + $0x98] sm:$0xff] %vm8811_vm6, %v8805_v52 }
 0x98e   :  { %v8766_v23 = vpop.xlane.xlu0 %8765 }
 0x98f   :  { %v8806_v34 = vadd.f32 %v14101_v32, %v8766_v23 }
 0x990   :  { %v8769_v61 = vpop.xlane.xlu1 %8768 }
 0x991   :  { %8832 = vst.msk [vmem:[%s14242_s14 + $0xa0] sm:$0xff] %vm8811_vm6, %v8806_v34  ;;  %v8807_v26 = vadd.f32 %v14101_v32, %v8769_v61 }
 0x993   :  { %8833 = vst.msk [vmem:[%s14242_s14 + $0xa8] sm:$0xff] %vm8811_vm6, %v8807_v26 }
 0x996   :  { %v8772_v1 = vpop.xlane.xlu0 %8771 }
 0x997   :  { %v8808_v31 = vadd.f32 %v14101_v32, %v8772_v1 }
 0x998   :  { %v8775_v47 = vpop.xlane.xlu1 %8774 }
 0x999   :  { %8834 = vst.msk [vmem:[%s14242_s14 + $0xb0] sm:$0xff] %vm8811_vm6, %v8808_v31  ;;  %v8809_v9 = vadd.f32 %v14101_v32, %v8775_v47 }
 0x99b   :  { %8835 = vst.msk [vmem:[%s14242_s14 + $0xb8] sm:$0xff] %vm8811_vm6, %v8809_v9 }
 0x99e   :  { %v8778_v18 = vpop.xlane.xlu0 %8777 }
 0x99f   :  { %v8810_v58 = vadd.f32 %v14101_v32, %v8778_v18 }
 0x9a1   :  { %8836 = vst.msk [vmem:[%s14242_s14 + $0xc0] sm:$0xff] %vm8811_vm6, %v8810_v58 }
 0x9a2   :  { %8841 = vsyncpa [#allocation8], 1 }
 0x9a3   :  { %8842 = vsyncpa [#allocation10], 1 }

</bundles_post_ra>
